<compile_context>
chip_gen: v6e
topology: v6e:2x2x1
jax: 0.10.0
libtpu: 0.0.40
codegen_flags: <defaults>
</compile_context>

<pallas_src>
import jax
import jax.numpy as jnp
from jax import lax
from jax.experimental import pallas as pl
from jax.experimental.pallas import tpu as pltpu


# ---------------------------------------------------------------------------
# Fused residual-stack kernel
# ---------------------------------------------------------------------------
def _make_residual_stack_kernel(B, H, W, C, Crh, L):
    BHW = B * H * W

    def kernel(x_ref, w3_ref, w1_ref, o_ref, xcur, xpad, acc):
        # Keep the 1-pixel zero border valid.  Scratch is uninitialized
        # per-core and the interior is overwritten every layer, so only the
        # ring needs (re)zeroing each grid step (megacore-safe, tiny).
        zrow = jnp.zeros((B, 1, W + 2, C), jnp.float32)
        zcol = jnp.zeros((B, H + 2, 1, C), jnp.float32)
        xpad[:, pl.ds(0, 1), :, :] = zrow
        xpad[:, pl.ds(H + 1, 1), :, :] = zrow
        xpad[:, :, pl.ds(0, 1), :] = zcol
        xpad[:, :, pl.ds(W + 1, 1), :] = zcol

        # Resident running activation (f32 on the residual path).
        xcur[...] = x_ref[...].reshape(BHW, C).astype(jnp.float32)

        for l in range(L):                               # L small & static
            # inplace nn.ReLU(True): the residual add sees relu(x).
            xcur[...] = jnp.maximum(xcur[...], 0.0)
            xpad[:, pl.ds(1, H), pl.ds(1, W), :] = xcur[...].reshape(B, H, W, C)

            # 3x3 conv = 9 shifted-tap matmuls, bf16 operands, f32 accumulate
            # into a VMEM scratch (no im2col buffer, low register pressure).
            for t in range(9):
                kh, kw = t // 3, t % 3
                tap = xpad[:, pl.ds(kh, H), pl.ds(kw, W), :]
                tap = tap.reshape(BHW, C).astype(jnp.bfloat16)
                p = jnp.dot(tap, w3_ref[l, t],
                            preferred_element_type=jnp.float32)
                if t == 0:
                    acc[...] = p
                else:
                    acc[...] += p

            # ReLU -> 1x1 conv (bf16 x bf16 -> f32) -> residual add.
            h = jnp.maximum(acc[...], 0.0).astype(jnp.bfloat16)
            y = jnp.dot(h, w1_ref[l], preferred_element_type=jnp.float32)
            xcur[...] += y

        # trailing F.relu
        o_ref[...] = (jnp.maximum(xcur[...], 0.0)
                      .reshape(B, H, W, C).astype(o_ref.dtype))

    return kernel


def _pick_batch_tile(N, H, W, C, budget_bytes=24 << 20):
    """Largest batch tile that fits the VMEM budget and keeps >=2 grid steps."""
    per_img = (2 * 2 * H * W * C * 4        # in + out blocks, double-buffered
               + H * W * C * 4              # xcur (f32)
               + (H + 2) * (W + 2) * C * 4) # xpad (f32)
    max_bt = max(1, budget_bytes // per_img)
    best = 1
    for bt in range(1, N // 2 + 1):          # >=2 grid steps -> both v7x TCs fed
        if N % bt == 0 and bt <= max_bt:
            best = bt
    return best


def residual_stack_nhwc(x_nhwc, w3_taps, w1_mats):
    """x_nhwc: (N,H,W,C) f32; w3_taps: (L,9,C,Crh) bf16; w1_mats: (L,Crh,C) bf16."""
    N, H, W, C = x_nhwc.shape
    L, _, _, Crh = w3_taps.shape
    B = _pick_batch_tile(N, H, W, C)
    kern = _make_residual_stack_kernel(B, H, W, C, Crh, L)
    return pl.pallas_call(
        kern,
        out_shape=jax.ShapeDtypeStruct((N, H, W, C), x_nhwc.dtype),
        grid=(N // B,),
        in_specs=[
            pl.BlockSpec((B, H, W, C), lambda n: (n, 0, 0, 0)),
            pl.BlockSpec((L, 9, C, Crh), lambda n: (0, 0, 0, 0)),   # staged once
            pl.BlockSpec((L, Crh, C), lambda n: (0, 0, 0)),         # staged once
        ],
        out_specs=pl.BlockSpec((B, H, W, C), lambda n: (n, 0, 0, 0)),
        scratch_shapes=[
            pltpu.VMEM((B * H * W, C), jnp.float32),            # resident activation
            pltpu.VMEM((B, H + 2, W + 2, C), jnp.float32),      # zero-padded activation
            pltpu.VMEM((B * H * W, Crh), jnp.float32),          # 3x3 accumulator
        ],
        compiler_params=pltpu.CompilerParams(
            dimension_semantics=("parallel",),          # batch -> both TCs on v7x
            vmem_limit_bytes=32 * 1024 * 1024,          # safe on v7x's 64 MiB VMEM
        ),
    )(x_nhwc, w3_taps, w1_mats)


# ---------------------------------------------------------------------------
# Params (PyTorch layouts) + public forward (NCHW in / NCHW out)
# ---------------------------------------------------------------------------
def init_residual_stack_params(key, num_hiddens, num_residual_layers,
                               num_residual_hiddens, scale=0.05):
    """OIHW conv weights, bias=False as in the PyTorch module."""
    params = []
    ks = jax.random.split(key, 2 * max(num_residual_layers, 1))
    for i in range(num_residual_layers):
        w3 = scale * jax.random.normal(
            ks[2 * i], (num_residual_hiddens, num_hiddens, 3, 3), jnp.float32)
        w1 = scale * jax.random.normal(
            ks[2 * i + 1], (num_hiddens, num_residual_hiddens, 1, 1), jnp.float32)
        params.append((w3, w1))
    return params


def residual_stack_forward(params, x_nchw):
    """Pallas ResidualStack forward. x_nchw: (N, C, H, W) PyTorch layout."""
    N, C, H, W = x_nchw.shape
    L = len(params)
    if L == 0:
        return jax.nn.relu(x_nchw)
    # Layout assumptions baked into the kernel (lane-dense C, clean reshapes).
    assert C % 128 == 0, f"channels must be a multiple of 128, got {C}"
    assert W % 8 == 0, f"width must be a multiple of 8, got {W}"
    Crh = params[0][0].shape[0]
    # OIHW 3x3 -> (kh,kw,Cin,Cout) -> (9, Cin, Crh); OIHW 1x1 -> (Crh, Cout).
    w3_taps = jnp.stack([
        jnp.transpose(w3, (2, 3, 1, 0)).reshape(9, C, Crh) for w3, _ in params
    ]).astype(jnp.bfloat16)
    w1_mats = jnp.stack([
        jnp.transpose(w1[:, :, 0, 0], (1, 0)) for _, w1 in params
    ]).astype(jnp.bfloat16)
    x = jnp.transpose(x_nchw, (0, 2, 3, 1))            # NCHW -> NHWC
    y = residual_stack_nhwc(x, w3_taps, w1_mats)
    return jnp.transpose(y, (0, 3, 1, 2))              # NHWC -> NCHW


# ---------------------------------------------------------------------------
# Pure-JAX reference (high-precision) for a correctness check
# ---------------------------------------------------------------------------
def residual_stack_ref(params, x_nchw):
    x = x_nchw
    for w3, w1 in params:
        xr = jax.nn.relu(x)                            # inplace ReLU(True) mutates x
        h = lax.conv_general_dilated(
            xr, w3, (1, 1), [(1, 1), (1, 1)],
            dimension_numbers=("NCHW", "OIHW", "NCHW"),
            precision=lax.Precision.HIGHEST)
        h = jax.nn.relu(h)
        h = lax.conv_general_dilated(
            h, w1, (1, 1), [(0, 0), (0, 0)],
            dimension_numbers=("NCHW", "OIHW", "NCHW"),
            precision=lax.Precision.HIGHEST)
        x = xr + h
    return jax.nn.relu(x)


# ---------------------------------------------------------------------------
if __name__ == "__main__":
    N, H, W = 2, 16, 16
    num_hiddens = 128                  # in_channels == num_hiddens (residual add)
    num_residual_layers = 2
    num_residual_hiddens = 32

    key = jax.random.PRNGKey(0)
    kx, kp = jax.random.split(key)
    x = 0.5 * jax.random.normal(kx, (N, num_hiddens, H, W), jnp.float32)   # NCHW
    params = init_residual_stack_params(kp, num_hiddens, num_residual_layers,
                                        num_residual_hiddens)

    fwd = jax.jit(residual_stack_forward)
    out = jax.block_until_ready(fwd(params, x))
    assert out.shape == (N, num_hiddens, H, W), out.shape

    ref = jax.block_until_ready(residual_stack_ref(params, x))
    max_err = float(jnp.max(jnp.abs(out - ref)))
    # bf16 MXU operands with f32 accumulation vs. an fp32 HIGHEST-precision
    # reference: observed error is ~1e-2 worst-case at these magnitudes.
    assert bool(jnp.allclose(out, ref, rtol=2e-2, atol=2e-2)), max_err

    print("KERNEL_OK")
</pallas_src>

<mosaic_0001>
module attributes {stable_mosaic.version = 11 : i64} {
  func.func @kernel(%arg0: i32, %arg1: memref<1x16x16x128xf32, #tpu.memory_space<vmem>>, %arg2: memref<2x9x128x32xbf16, #tpu.memory_space<vmem>>, %arg3: memref<2x32x128xbf16, #tpu.memory_space<vmem>>, %arg4: memref<1x16x16x128xf32, #tpu.memory_space<vmem>>, %arg5: memref<256x128xf32, #tpu.memory_space<vmem>>, %arg6: memref<1x18x18x128xf32, #tpu.memory_space<vmem>>, %arg7: memref<256x32xf32, #tpu.memory_space<vmem>>) attributes {dimension_semantics = [#tpu.dimension_semantics<parallel>], iteration_bounds = array<i64: 2>, scalar_prefetch = 0 : i64, scratch_operands = 3 : i64, tpu.core_type = #tpu.core_type<tc>, window_params = [{transform_indices = @transform_0, window_bounds = array<i64: 1, 16, 16, 128>}, {pipeline_mode = #tpu.pipeline_mode<synchronous>, transform_indices = @transform_1, window_bounds = array<i64: 2, 9, 128, 32>}, {pipeline_mode = #tpu.pipeline_mode<synchronous>, transform_indices = @transform_2, window_bounds = array<i64: 2, 32, 128>}, {transform_indices = @transform_3, window_bounds = array<i64: 1, 16, 16, 128>}]} {
    %cst = arith.constant 0.000000e+00 : f32
    %0 = vector.broadcast %cst : f32 to vector<1x1x18x128xf32>
    %cst_0 = arith.constant 0.000000e+00 : f32
    %1 = vector.broadcast %cst_0 : f32 to vector<1x18x1x128xf32>
    %c0 = arith.constant 0 : index
    %c0_1 = arith.constant 0 : index
    %c0_2 = arith.constant 0 : index
    %c0_3 = arith.constant 0 : index
    %2 = vector.load %arg6[%c0, %c0_1, %c0_2, %c0_3] : memref<1x18x18x128xf32, #tpu.memory_space<vmem>>, vector<1x1x18x128xf32>
    tpu.vector_store %arg6[%c0, %c0_1, %c0_2, %c0_3], %0 {strides = array<i32>} : memref<1x18x18x128xf32, #tpu.memory_space<vmem>>, vector<1x1x18x128xf32>,
    %c0_4 = arith.constant 0 : index
    %c17 = arith.constant 17 : index
    %c0_5 = arith.constant 0 : index
    %c0_6 = arith.constant 0 : index
    %3 = vector.load %arg6[%c0_4, %c17, %c0_5, %c0_6] : memref<1x18x18x128xf32, #tpu.memory_space<vmem>>, vector<1x1x18x128xf32>
    tpu.vector_store %arg6[%c0_4, %c17, %c0_5, %c0_6], %0 {strides = array<i32>} : memref<1x18x18x128xf32, #tpu.memory_space<vmem>>, vector<1x1x18x128xf32>,
    %c0_7 = arith.constant 0 : index
    %c0_8 = arith.constant 0 : index
    %c0_9 = arith.constant 0 : index
    %c0_10 = arith.constant 0 : index
    %4 = vector.load %arg6[%c0_7, %c0_8, %c0_9, %c0_10] : memref<1x18x18x128xf32, #tpu.memory_space<vmem>>, vector<1x18x1x128xf32>
    tpu.vector_store %arg6[%c0_7, %c0_8, %c0_9, %c0_10], %1 {strides = array<i32>} : memref<1x18x18x128xf32, #tpu.memory_space<vmem>>, vector<1x18x1x128xf32>,
    %c0_11 = arith.constant 0 : index
    %c0_12 = arith.constant 0 : index
    %c17_13 = arith.constant 17 : index
    %c0_14 = arith.constant 0 : index
    %5 = vector.load %arg6[%c0_11, %c0_12, %c17_13, %c0_14] : memref<1x18x18x128xf32, #tpu.memory_space<vmem>>, vector<1x18x1x128xf32>
    tpu.vector_store %arg6[%c0_11, %c0_12, %c17_13, %c0_14], %1 {strides = array<i32>} : memref<1x18x18x128xf32, #tpu.memory_space<vmem>>, vector<1x18x1x128xf32>,
    %c0_15 = arith.constant 0 : index
    %c0_16 = arith.constant 0 : index
    %c0_17 = arith.constant 0 : index
    %c0_18 = arith.constant 0 : index
    %6 = vector.load %arg1[%c0_15, %c0_16, %c0_17, %c0_18] : memref<1x16x16x128xf32, #tpu.memory_space<vmem>>, vector<1x16x16x128xf32>
    %7 = vector.shape_cast %6 : vector<1x16x16x128xf32> to vector<256x128xf32>
    %c0_19 = arith.constant 0 : index
    %c0_20 = arith.constant 0 : index
    %8 = vector.load %arg5[%c0_19, %c0_20] : memref<256x128xf32, #tpu.memory_space<vmem>>, vector<256x128xf32>
    tpu.vector_store %arg5[%c0_19, %c0_20], %7 {strides = array<i32>} : memref<256x128xf32, #tpu.memory_space<vmem>>, vector<256x128xf32>,
    %c0_21 = arith.constant 0 : index
    %c0_22 = arith.constant 0 : index
    %9 = vector.load %arg5[%c0_21, %c0_22] : memref<256x128xf32, #tpu.memory_space<vmem>>, vector<256x128xf32>
    %cst_23 = arith.constant 0.000000e+00 : f32
    %10 = vector.broadcast %cst_23 : f32 to vector<256x128xf32>
    %11 = arith.maximumf %9, %10 : vector<256x128xf32>
    %c0_24 = arith.constant 0 : index
    %c0_25 = arith.constant 0 : index
    %12 = vector.load %arg5[%c0_24, %c0_25] : memref<256x128xf32, #tpu.memory_space<vmem>>, vector<256x128xf32>
    tpu.vector_store %arg5[%c0_24, %c0_25], %11 {strides = array<i32>} : memref<256x128xf32, #tpu.memory_space<vmem>>, vector<256x128xf32>,
    %c0_26 = arith.constant 0 : index
    %c0_27 = arith.constant 0 : index
    %13 = vector.load %arg5[%c0_26, %c0_27] : memref<256x128xf32, #tpu.memory_space<vmem>>, vector<256x128xf32>
    %14 = vector.shape_cast %13 : vector<256x128xf32> to vector<1x16x16x128xf32>
    %c0_28 = arith.constant 0 : index
    %c1 = arith.constant 1 : index
    %c1_29 = arith.constant 1 : index
    %c0_30 = arith.constant 0 : index
    %15 = vector.load %arg6[%c0_28, %c1, %c1_29, %c0_30] : memref<1x18x18x128xf32, #tpu.memory_space<vmem>>, vector<1x16x16x128xf32>
    tpu.vector_store %arg6[%c0_28, %c1, %c1_29, %c0_30], %14 {strides = array<i32>} : memref<1x18x18x128xf32, #tpu.memory_space<vmem>>, vector<1x16x16x128xf32>,
    %c0_31 = arith.constant 0 : index
    %c0_32 = arith.constant 0 : index
    %c0_33 = arith.constant 0 : index
    %c0_34 = arith.constant 0 : index
    %16 = vector.load %arg6[%c0_31, %c0_32, %c0_33, %c0_34] : memref<1x18x18x128xf32, #tpu.memory_space<vmem>>, vector<1x16x16x128xf32>
    %17 = vector.shape_cast %16 : vector<1x16x16x128xf32> to vector<256x128xf32>
    %18 = arith.truncf %17 : vector<256x128xf32> to vector<256x128xbf16>
    %c0_35 = arith.constant 0 : index
    %c0_36 = arith.constant 0 : index
    %c0_37 = arith.constant 0 : index
    %c0_38 = arith.constant 0 : index
    %19 = vector.load %arg2[%c0_35, %c0_36, %c0_37, %c0_38] : memref<2x9x128x32xbf16, #tpu.memory_space<vmem>>, vector<1x1x128x32xbf16>
    %20 = vector.shape_cast %19 : vector<1x1x128x32xbf16> to vector<128x32xbf16>
    %cst_39 = arith.constant dense<0.000000e+00> : vector<256x32xf32>
    %21 = tpu.matmul %18, %20, %cst_39 {dimension_numbers = #tpu.dot_dimension_numbers<[1], [0], [0], [1], [0, 0, 1, 1], [], []>} : vector<256x128xbf16>, vector<128x32xbf16>, vector<256x32xf32> -> vector<256x32xf32>
    %c0_40 = arith.constant 0 : index
    %c0_41 = arith.constant 0 : index
    %22 = vector.load %arg7[%c0_40, %c0_41] : memref<256x32xf32, #tpu.memory_space<vmem>>, vector<256x32xf32>
    tpu.vector_store %arg7[%c0_40, %c0_41], %21 {strides = array<i32>} : memref<256x32xf32, #tpu.memory_space<vmem>>, vector<256x32xf32>,
    %c0_42 = arith.constant 0 : index
    %c0_43 = arith.constant 0 : index
    %c1_44 = arith.constant 1 : index
    %c0_45 = arith.constant 0 : index
    %23 = vector.load %arg6[%c0_42, %c0_43, %c1_44, %c0_45] : memref<1x18x18x128xf32, #tpu.memory_space<vmem>>, vector<1x16x16x128xf32>
    %24 = vector.shape_cast %23 : vector<1x16x16x128xf32> to vector<256x128xf32>
    %25 = arith.truncf %24 : vector<256x128xf32> to vector<256x128xbf16>
    %c0_46 = arith.constant 0 : index
    %c1_47 = arith.constant 1 : index
    %c0_48 = arith.constant 0 : index
    %c0_49 = arith.constant 0 : index
    %26 = vector.load %arg2[%c0_46, %c1_47, %c0_48, %c0_49] : memref<2x9x128x32xbf16, #tpu.memory_space<vmem>>, vector<1x1x128x32xbf16>
    %27 = vector.shape_cast %26 : vector<1x1x128x32xbf16> to vector<128x32xbf16>
    %cst_50 = arith.constant dense<0.000000e+00> : vector<256x32xf32>
    %28 = tpu.matmul %25, %27, %cst_50 {dimension_numbers = #tpu.dot_dimension_numbers<[1], [0], [0], [1], [0, 0, 1, 1], [], []>} : vector<256x128xbf16>, vector<128x32xbf16>, vector<256x32xf32> -> vector<256x32xf32>
    %c0_51 = arith.constant 0 : index
    %c0_52 = arith.constant 0 : index
    %29 = vector.load %arg7[%c0_51, %c0_52] : memref<256x32xf32, #tpu.memory_space<vmem>>, vector<256x32xf32>
    %30 = arith.addf %29, %28 : vector<256x32xf32>
    %c0_53 = arith.constant 0 : index
    %c0_54 = arith.constant 0 : index
    %31 = vector.load %arg7[%c0_53, %c0_54] : memref<256x32xf32, #tpu.memory_space<vmem>>, vector<256x32xf32>
    tpu.vector_store %arg7[%c0_53, %c0_54], %30 {strides = array<i32>} : memref<256x32xf32, #tpu.memory_space<vmem>>, vector<256x32xf32>,
    %c0_55 = arith.constant 0 : index
    %c0_56 = arith.constant 0 : index
    %c2 = arith.constant 2 : index
    %c0_57 = arith.constant 0 : index
    %32 = vector.load %arg6[%c0_55, %c0_56, %c2, %c0_57] : memref<1x18x18x128xf32, #tpu.memory_space<vmem>>, vector<1x16x16x128xf32>
    %33 = vector.shape_cast %32 : vector<1x16x16x128xf32> to vector<256x128xf32>
    %34 = arith.truncf %33 : vector<256x128xf32> to vector<256x128xbf16>
    %c0_58 = arith.constant 0 : index
    %c2_59 = arith.constant 2 : index
    %c0_60 = arith.constant 0 : index
    %c0_61 = arith.constant 0 : index
    %35 = vector.load %arg2[%c0_58, %c2_59, %c0_60, %c0_61] : memref<2x9x128x32xbf16, #tpu.memory_space<vmem>>, vector<1x1x128x32xbf16>
    %36 = vector.shape_cast %35 : vector<1x1x128x32xbf16> to vector<128x32xbf16>
    %cst_62 = arith.constant dense<0.000000e+00> : vector<256x32xf32>
    %37 = tpu.matmul %34, %36, %cst_62 {dimension_numbers = #tpu.dot_dimension_numbers<[1], [0], [0], [1], [0, 0, 1, 1], [], []>} : vector<256x128xbf16>, vector<128x32xbf16>, vector<256x32xf32> -> vector<256x32xf32>
    %c0_63 = arith.constant 0 : index
    %c0_64 = arith.constant 0 : index
    %38 = vector.load %arg7[%c0_63, %c0_64] : memref<256x32xf32, #tpu.memory_space<vmem>>, vector<256x32xf32>
    %39 = arith.addf %38, %37 : vector<256x32xf32>
    %c0_65 = arith.constant 0 : index
    %c0_66 = arith.constant 0 : index
    %40 = vector.load %arg7[%c0_65, %c0_66] : memref<256x32xf32, #tpu.memory_space<vmem>>, vector<256x32xf32>
    tpu.vector_store %arg7[%c0_65, %c0_66], %39 {strides = array<i32>} : memref<256x32xf32, #tpu.memory_space<vmem>>, vector<256x32xf32>,
    %c0_67 = arith.constant 0 : index
    %c1_68 = arith.constant 1 : index
    %c0_69 = arith.constant 0 : index
    %c0_70 = arith.constant 0 : index
    %41 = vector.load %arg6[%c0_67, %c1_68, %c0_69, %c0_70] : memref<1x18x18x128xf32, #tpu.memory_space<vmem>>, vector<1x16x16x128xf32>
    %42 = vector.shape_cast %41 : vector<1x16x16x128xf32> to vector<256x128xf32>
    %43 = arith.truncf %42 : vector<256x128xf32> to vector<256x128xbf16>
    %c0_71 = arith.constant 0 : index
    %c3 = arith.constant 3 : index
    %c0_72 = arith.constant 0 : index
    %c0_73 = arith.constant 0 : index
    %44 = vector.load %arg2[%c0_71, %c3, %c0_72, %c0_73] : memref<2x9x128x32xbf16, #tpu.memory_space<vmem>>, vector<1x1x128x32xbf16>
    %45 = vector.shape_cast %44 : vector<1x1x128x32xbf16> to vector<128x32xbf16>
    %cst_74 = arith.constant dense<0.000000e+00> : vector<256x32xf32>
    %46 = tpu.matmul %43, %45, %cst_74 {dimension_numbers = #tpu.dot_dimension_numbers<[1], [0], [0], [1], [0, 0, 1, 1], [], []>} : vector<256x128xbf16>, vector<128x32xbf16>, vector<256x32xf32> -> vector<256x32xf32>
    %c0_75 = arith.constant 0 : index
    %c0_76 = arith.constant 0 : index
    %47 = vector.load %arg7[%c0_75, %c0_76] : memref<256x32xf32, #tpu.memory_space<vmem>>, vector<256x32xf32>
    %48 = arith.addf %47, %46 : vector<256x32xf32>
    %c0_77 = arith.constant 0 : index
    %c0_78 = arith.constant 0 : index
    %49 = vector.load %arg7[%c0_77, %c0_78] : memref<256x32xf32, #tpu.memory_space<vmem>>, vector<256x32xf32>
    tpu.vector_store %arg7[%c0_77, %c0_78], %48 {strides = array<i32>} : memref<256x32xf32, #tpu.memory_space<vmem>>, vector<256x32xf32>,
    %c0_79 = arith.constant 0 : index
    %c1_80 = arith.constant 1 : index
    %c1_81 = arith.constant 1 : index
    %c0_82 = arith.constant 0 : index
    %50 = vector.load %arg6[%c0_79, %c1_80, %c1_81, %c0_82] : memref<1x18x18x128xf32, #tpu.memory_space<vmem>>, vector<1x16x16x128xf32>
    %51 = vector.shape_cast %50 : vector<1x16x16x128xf32> to vector<256x128xf32>
    %52 = arith.truncf %51 : vector<256x128xf32> to vector<256x128xbf16>
    %c0_83 = arith.constant 0 : index
    %c4 = arith.constant 4 : index
    %c0_84 = arith.constant 0 : index
    %c0_85 = arith.constant 0 : index
    %53 = vector.load %arg2[%c0_83, %c4, %c0_84, %c0_85] : memref<2x9x128x32xbf16, #tpu.memory_space<vmem>>, vector<1x1x128x32xbf16>
    %54 = vector.shape_cast %53 : vector<1x1x128x32xbf16> to vector<128x32xbf16>
    %cst_86 = arith.constant dense<0.000000e+00> : vector<256x32xf32>
    %55 = tpu.matmul %52, %54, %cst_86 {dimension_numbers = #tpu.dot_dimension_numbers<[1], [0], [0], [1], [0, 0, 1, 1], [], []>} : vector<256x128xbf16>, vector<128x32xbf16>, vector<256x32xf32> -> vector<256x32xf32>
    %c0_87 = arith.constant 0 : index
    %c0_88 = arith.constant 0 : index
    %56 = vector.load %arg7[%c0_87, %c0_88] : memref<256x32xf32, #tpu.memory_space<vmem>>, vector<256x32xf32>
    %57 = arith.addf %56, %55 : vector<256x32xf32>
    %c0_89 = arith.constant 0 : index
    %c0_90 = arith.constant 0 : index
    %58 = vector.load %arg7[%c0_89, %c0_90] : memref<256x32xf32, #tpu.memory_space<vmem>>, vector<256x32xf32>
    tpu.vector_store %arg7[%c0_89, %c0_90], %57 {strides = array<i32>} : memref<256x32xf32, #tpu.memory_space<vmem>>, vector<256x32xf32>,
    %c0_91 = arith.constant 0 : index
    %c1_92 = arith.constant 1 : index
    %c2_93 = arith.constant 2 : index
    %c0_94 = arith.constant 0 : index
    %59 = vector.load %arg6[%c0_91, %c1_92, %c2_93, %c0_94] : memref<1x18x18x128xf32, #tpu.memory_space<vmem>>, vector<1x16x16x128xf32>
    %60 = vector.shape_cast %59 : vector<1x16x16x128xf32> to vector<256x128xf32>
    %61 = arith.truncf %60 : vector<256x128xf32> to vector<256x128xbf16>
    %c0_95 = arith.constant 0 : index
    %c5 = arith.constant 5 : index
    %c0_96 = arith.constant 0 : index
    %c0_97 = arith.constant 0 : index
    %62 = vector.load %arg2[%c0_95, %c5, %c0_96, %c0_97] : memref<2x9x128x32xbf16, #tpu.memory_space<vmem>>, vector<1x1x128x32xbf16>
    %63 = vector.shape_cast %62 : vector<1x1x128x32xbf16> to vector<128x32xbf16>
    %cst_98 = arith.constant dense<0.000000e+00> : vector<256x32xf32>
    %64 = tpu.matmul %61, %63, %cst_98 {dimension_numbers = #tpu.dot_dimension_numbers<[1], [0], [0], [1], [0, 0, 1, 1], [], []>} : vector<256x128xbf16>, vector<128x32xbf16>, vector<256x32xf32> -> vector<256x32xf32>
    %c0_99 = arith.constant 0 : index
    %c0_100 = arith.constant 0 : index
    %65 = vector.load %arg7[%c0_99, %c0_100] : memref<256x32xf32, #tpu.memory_space<vmem>>, vector<256x32xf32>
    %66 = arith.addf %65, %64 : vector<256x32xf32>
    %c0_101 = arith.constant 0 : index
    %c0_102 = arith.constant 0 : index
    %67 = vector.load %arg7[%c0_101, %c0_102] : memref<256x32xf32, #tpu.memory_space<vmem>>, vector<256x32xf32>
    tpu.vector_store %arg7[%c0_101, %c0_102], %66 {strides = array<i32>} : memref<256x32xf32, #tpu.memory_space<vmem>>, vector<256x32xf32>,
    %c0_103 = arith.constant 0 : index
    %c2_104 = arith.constant 2 : index
    %c0_105 = arith.constant 0 : index
    %c0_106 = arith.constant 0 : index
    %68 = vector.load %arg6[%c0_103, %c2_104, %c0_105, %c0_106] : memref<1x18x18x128xf32, #tpu.memory_space<vmem>>, vector<1x16x16x128xf32>
    %69 = vector.shape_cast %68 : vector<1x16x16x128xf32> to vector<256x128xf32>
    %70 = arith.truncf %69 : vector<256x128xf32> to vector<256x128xbf16>
    %c0_107 = arith.constant 0 : index
    %c6 = arith.constant 6 : index
    %c0_108 = arith.constant 0 : index
    %c0_109 = arith.constant 0 : index
    %71 = vector.load %arg2[%c0_107, %c6, %c0_108, %c0_109] : memref<2x9x128x32xbf16, #tpu.memory_space<vmem>>, vector<1x1x128x32xbf16>
    %72 = vector.shape_cast %71 : vector<1x1x128x32xbf16> to vector<128x32xbf16>
    %cst_110 = arith.constant dense<0.000000e+00> : vector<256x32xf32>
    %73 = tpu.matmul %70, %72, %cst_110 {dimension_numbers = #tpu.dot_dimension_numbers<[1], [0], [0], [1], [0, 0, 1, 1], [], []>} : vector<256x128xbf16>, vector<128x32xbf16>, vector<256x32xf32> -> vector<256x32xf32>
    %c0_111 = arith.constant 0 : index
    %c0_112 = arith.constant 0 : index
    %74 = vector.load %arg7[%c0_111, %c0_112] : memref<256x32xf32, #tpu.memory_space<vmem>>, vector<256x32xf32>
    %75 = arith.addf %74, %73 : vector<256x32xf32>
    %c0_113 = arith.constant 0 : index
    %c0_114 = arith.constant 0 : index
    %76 = vector.load %arg7[%c0_113, %c0_114] : memref<256x32xf32, #tpu.memory_space<vmem>>, vector<256x32xf32>
    tpu.vector_store %arg7[%c0_113, %c0_114], %75 {strides = array<i32>} : memref<256x32xf32, #tpu.memory_space<vmem>>, vector<256x32xf32>,
    %c0_115 = arith.constant 0 : index
    %c2_116 = arith.constant 2 : index
    %c1_117 = arith.constant 1 : index
    %c0_118 = arith.constant 0 : index
    %77 = vector.load %arg6[%c0_115, %c2_116, %c1_117, %c0_118] : memref<1x18x18x128xf32, #tpu.memory_space<vmem>>, vector<1x16x16x128xf32>
    %78 = vector.shape_cast %77 : vector<1x16x16x128xf32> to vector<256x128xf32>
    %79 = arith.truncf %78 : vector<256x128xf32> to vector<256x128xbf16>
    %c0_119 = arith.constant 0 : index
    %c7 = arith.constant 7 : index
    %c0_120 = arith.constant 0 : index
    %c0_121 = arith.constant 0 : index
    %80 = vector.load %arg2[%c0_119, %c7, %c0_120, %c0_121] : memref<2x9x128x32xbf16, #tpu.memory_space<vmem>>, vector<1x1x128x32xbf16>
    %81 = vector.shape_cast %80 : vector<1x1x128x32xbf16> to vector<128x32xbf16>
    %cst_122 = arith.constant dense<0.000000e+00> : vector<256x32xf32>
    %82 = tpu.matmul %79, %81, %cst_122 {dimension_numbers = #tpu.dot_dimension_numbers<[1], [0], [0], [1], [0, 0, 1, 1], [], []>} : vector<256x128xbf16>, vector<128x32xbf16>, vector<256x32xf32> -> vector<256x32xf32>
    %c0_123 = arith.constant 0 : index
    %c0_124 = arith.constant 0 : index
    %83 = vector.load %arg7[%c0_123, %c0_124] : memref<256x32xf32, #tpu.memory_space<vmem>>, vector<256x32xf32>
    %84 = arith.addf %83, %82 : vector<256x32xf32>
    %c0_125 = arith.constant 0 : index
    %c0_126 = arith.constant 0 : index
    %85 = vector.load %arg7[%c0_125, %c0_126] : memref<256x32xf32, #tpu.memory_space<vmem>>, vector<256x32xf32>
    tpu.vector_store %arg7[%c0_125, %c0_126], %84 {strides = array<i32>} : memref<256x32xf32, #tpu.memory_space<vmem>>, vector<256x32xf32>,
    %c0_127 = arith.constant 0 : index
    %c2_128 = arith.constant 2 : index
    %c2_129 = arith.constant 2 : index
    %c0_130 = arith.constant 0 : index
    %86 = vector.load %arg6[%c0_127, %c2_128, %c2_129, %c0_130] : memref<1x18x18x128xf32, #tpu.memory_space<vmem>>, vector<1x16x16x128xf32>
    %87 = vector.shape_cast %86 : vector<1x16x16x128xf32> to vector<256x128xf32>
    %88 = arith.truncf %87 : vector<256x128xf32> to vector<256x128xbf16>
    %c0_131 = arith.constant 0 : index
    %c8 = arith.constant 8 : index
    %c0_132 = arith.constant 0 : index
    %c0_133 = arith.constant 0 : index
    %89 = vector.load %arg2[%c0_131, %c8, %c0_132, %c0_133] : memref<2x9x128x32xbf16, #tpu.memory_space<vmem>>, vector<1x1x128x32xbf16>
    %90 = vector.shape_cast %89 : vector<1x1x128x32xbf16> to vector<128x32xbf16>
    %cst_134 = arith.constant dense<0.000000e+00> : vector<256x32xf32>
    %91 = tpu.matmul %88, %90, %cst_134 {dimension_numbers = #tpu.dot_dimension_numbers<[1], [0], [0], [1], [0, 0, 1, 1], [], []>} : vector<256x128xbf16>, vector<128x32xbf16>, vector<256x32xf32> -> vector<256x32xf32>
    %c0_135 = arith.constant 0 : index
    %c0_136 = arith.constant 0 : index
    %92 = vector.load %arg7[%c0_135, %c0_136] : memref<256x32xf32, #tpu.memory_space<vmem>>, vector<256x32xf32>
    %93 = arith.addf %92, %91 : vector<256x32xf32>
    %c0_137 = arith.constant 0 : index
    %c0_138 = arith.constant 0 : index
    %94 = vector.load %arg7[%c0_137, %c0_138] : memref<256x32xf32, #tpu.memory_space<vmem>>, vector<256x32xf32>
    tpu.vector_store %arg7[%c0_137, %c0_138], %93 {strides = array<i32>} : memref<256x32xf32, #tpu.memory_space<vmem>>, vector<256x32xf32>,
    %c0_139 = arith.constant 0 : index
    %c0_140 = arith.constant 0 : index
    %95 = vector.load %arg7[%c0_139, %c0_140] : memref<256x32xf32, #tpu.memory_space<vmem>>, vector<256x32xf32>
    %cst_141 = arith.constant 0.000000e+00 : f32
    %96 = vector.broadcast %cst_141 : f32 to vector<256x32xf32>
    %97 = arith.maximumf %95, %96 : vector<256x32xf32>
    %98 = arith.truncf %97 : vector<256x32xf32> to vector<256x32xbf16>
    %c0_142 = arith.constant 0 : index
    %c0_143 = arith.constant 0 : index
    %c0_144 = arith.constant 0 : index
    %99 = vector.load %arg3[%c0_142, %c0_143, %c0_144] : memref<2x32x128xbf16, #tpu.memory_space<vmem>>, vector<1x32x128xbf16>
    %100 = vector.shape_cast %99 : vector<1x32x128xbf16> to vector<32x128xbf16>
    %cst_145 = arith.constant dense<0.000000e+00> : vector<256x128xf32>
    %101 = tpu.matmul %98, %100, %cst_145 {dimension_numbers = #tpu.dot_dimension_numbers<[1], [0], [0], [1], [0, 0, 1, 1], [], []>} : vector<256x32xbf16>, vector<32x128xbf16>, vector<256x128xf32> -> vector<256x128xf32>
    %c0_146 = arith.constant 0 : index
    %c0_147 = arith.constant 0 : index
    %102 = vector.load %arg5[%c0_146, %c0_147] : memref<256x128xf32, #tpu.memory_space<vmem>>, vector<256x128xf32>
    %103 = arith.addf %102, %101 : vector<256x128xf32>
    %c0_148 = arith.constant 0 : index
    %c0_149 = arith.constant 0 : index
    %104 = vector.load %arg5[%c0_148, %c0_149] : memref<256x128xf32, #tpu.memory_space<vmem>>, vector<256x128xf32>
    tpu.vector_store %arg5[%c0_148, %c0_149], %103 {strides = array<i32>} : memref<256x128xf32, #tpu.memory_space<vmem>>, vector<256x128xf32>,
    %c0_150 = arith.constant 0 : index
    %c0_151 = arith.constant 0 : index
    %105 = vector.load %arg5[%c0_150, %c0_151] : memref<256x128xf32, #tpu.memory_space<vmem>>, vector<256x128xf32>
    %cst_152 = arith.constant 0.000000e+00 : f32
    %106 = vector.broadcast %cst_152 : f32 to vector<256x128xf32>
    %107 = arith.maximumf %105, %106 : vector<256x128xf32>
    %c0_153 = arith.constant 0 : index
    %c0_154 = arith.constant 0 : index
    %108 = vector.load %arg5[%c0_153, %c0_154] : memref<256x128xf32, #tpu.memory_space<vmem>>, vector<256x128xf32>
    tpu.vector_store %arg5[%c0_153, %c0_154], %107 {strides = array<i32>} : memref<256x128xf32, #tpu.memory_space<vmem>>, vector<256x128xf32>,
    %c0_155 = arith.constant 0 : index
    %c0_156 = arith.constant 0 : index
    %109 = vector.load %arg5[%c0_155, %c0_156] : memref<256x128xf32, #tpu.memory_space<vmem>>, vector<256x128xf32>
    %110 = vector.shape_cast %109 : vector<256x128xf32> to vector<1x16x16x128xf32>
    %c0_157 = arith.constant 0 : index
    %c1_158 = arith.constant 1 : index
    %c1_159 = arith.constant 1 : index
    %c0_160 = arith.constant 0 : index
    %111 = vector.load %arg6[%c0_157, %c1_158, %c1_159, %c0_160] : memref<1x18x18x128xf32, #tpu.memory_space<vmem>>, vector<1x16x16x128xf32>
    tpu.vector_store %arg6[%c0_157, %c1_158, %c1_159, %c0_160], %110 {strides = array<i32>} : memref<1x18x18x128xf32, #tpu.memory_space<vmem>>, vector<1x16x16x128xf32>,
    %c0_161 = arith.constant 0 : index
    %c0_162 = arith.constant 0 : index
    %c0_163 = arith.constant 0 : index
    %c0_164 = arith.constant 0 : index
    %112 = vector.load %arg6[%c0_161, %c0_162, %c0_163, %c0_164] : memref<1x18x18x128xf32, #tpu.memory_space<vmem>>, vector<1x16x16x128xf32>
    %113 = vector.shape_cast %112 : vector<1x16x16x128xf32> to vector<256x128xf32>
    %114 = arith.truncf %113 : vector<256x128xf32> to vector<256x128xbf16>
    %c1_165 = arith.constant 1 : index
    %c0_166 = arith.constant 0 : index
    %c0_167 = arith.constant 0 : index
    %c0_168 = arith.constant 0 : index
    %115 = vector.load %arg2[%c1_165, %c0_166, %c0_167, %c0_168] : memref<2x9x128x32xbf16, #tpu.memory_space<vmem>>, vector<1x1x128x32xbf16>
    %116 = vector.shape_cast %115 : vector<1x1x128x32xbf16> to vector<128x32xbf16>
    %cst_169 = arith.constant dense<0.000000e+00> : vector<256x32xf32>
    %117 = tpu.matmul %114, %116, %cst_169 {dimension_numbers = #tpu.dot_dimension_numbers<[1], [0], [0], [1], [0, 0, 1, 1], [], []>} : vector<256x128xbf16>, vector<128x32xbf16>, vector<256x32xf32> -> vector<256x32xf32>
    %c0_170 = arith.constant 0 : index
    %c0_171 = arith.constant 0 : index
    %118 = vector.load %arg7[%c0_170, %c0_171] : memref<256x32xf32, #tpu.memory_space<vmem>>, vector<256x32xf32>
    tpu.vector_store %arg7[%c0_170, %c0_171], %117 {strides = array<i32>} : memref<256x32xf32, #tpu.memory_space<vmem>>, vector<256x32xf32>,
    %c0_172 = arith.constant 0 : index
    %c0_173 = arith.constant 0 : index
    %c1_174 = arith.constant 1 : index
    %c0_175 = arith.constant 0 : index
    %119 = vector.load %arg6[%c0_172, %c0_173, %c1_174, %c0_175] : memref<1x18x18x128xf32, #tpu.memory_space<vmem>>, vector<1x16x16x128xf32>
    %120 = vector.shape_cast %119 : vector<1x16x16x128xf32> to vector<256x128xf32>
    %121 = arith.truncf %120 : vector<256x128xf32> to vector<256x128xbf16>
    %c1_176 = arith.constant 1 : index
    %c1_177 = arith.constant 1 : index
    %c0_178 = arith.constant 0 : index
    %c0_179 = arith.constant 0 : index
    %122 = vector.load %arg2[%c1_176, %c1_177, %c0_178, %c0_179] : memref<2x9x128x32xbf16, #tpu.memory_space<vmem>>, vector<1x1x128x32xbf16>
    %123 = vector.shape_cast %122 : vector<1x1x128x32xbf16> to vector<128x32xbf16>
    %cst_180 = arith.constant dense<0.000000e+00> : vector<256x32xf32>
    %124 = tpu.matmul %121, %123, %cst_180 {dimension_numbers = #tpu.dot_dimension_numbers<[1], [0], [0], [1], [0, 0, 1, 1], [], []>} : vector<256x128xbf16>, vector<128x32xbf16>, vector<256x32xf32> -> vector<256x32xf32>
    %c0_181 = arith.constant 0 : index
    %c0_182 = arith.constant 0 : index
    %125 = vector.load %arg7[%c0_181, %c0_182] : memref<256x32xf32, #tpu.memory_space<vmem>>, vector<256x32xf32>
    %126 = arith.addf %125, %124 : vector<256x32xf32>
    %c0_183 = arith.constant 0 : index
    %c0_184 = arith.constant 0 : index
    %127 = vector.load %arg7[%c0_183, %c0_184] : memref<256x32xf32, #tpu.memory_space<vmem>>, vector<256x32xf32>
    tpu.vector_store %arg7[%c0_183, %c0_184], %126 {strides = array<i32>} : memref<256x32xf32, #tpu.memory_space<vmem>>, vector<256x32xf32>,
    %c0_185 = arith.constant 0 : index
    %c0_186 = arith.constant 0 : index
    %c2_187 = arith.constant 2 : index
    %c0_188 = arith.constant 0 : index
    %128 = vector.load %arg6[%c0_185, %c0_186, %c2_187, %c0_188] : memref<1x18x18x128xf32, #tpu.memory_space<vmem>>, vector<1x16x16x128xf32>
    %129 = vector.shape_cast %128 : vector<1x16x16x128xf32> to vector<256x128xf32>
    %130 = arith.truncf %129 : vector<256x128xf32> to vector<256x128xbf16>
    %c1_189 = arith.constant 1 : index
    %c2_190 = arith.constant 2 : index
    %c0_191 = arith.constant 0 : index
    %c0_192 = arith.constant 0 : index
    %131 = vector.load %arg2[%c1_189, %c2_190, %c0_191, %c0_192] : memref<2x9x128x32xbf16, #tpu.memory_space<vmem>>, vector<1x1x128x32xbf16>
    %132 = vector.shape_cast %131 : vector<1x1x128x32xbf16> to vector<128x32xbf16>
    %cst_193 = arith.constant dense<0.000000e+00> : vector<256x32xf32>
    %133 = tpu.matmul %130, %132, %cst_193 {dimension_numbers = #tpu.dot_dimension_numbers<[1], [0], [0], [1], [0, 0, 1, 1], [], []>} : vector<256x128xbf16>, vector<128x32xbf16>, vector<256x32xf32> -> vector<256x32xf32>
    %c0_194 = arith.constant 0 : index
    %c0_195 = arith.constant 0 : index
    %134 = vector.load %arg7[%c0_194, %c0_195] : memref<256x32xf32, #tpu.memory_space<vmem>>, vector<256x32xf32>
    %135 = arith.addf %134, %133 : vector<256x32xf32>
    %c0_196 = arith.constant 0 : index
    %c0_197 = arith.constant 0 : index
    %136 = vector.load %arg7[%c0_196, %c0_197] : memref<256x32xf32, #tpu.memory_space<vmem>>, vector<256x32xf32>
    tpu.vector_store %arg7[%c0_196, %c0_197], %135 {strides = array<i32>} : memref<256x32xf32, #tpu.memory_space<vmem>>, vector<256x32xf32>,
    %c0_198 = arith.constant 0 : index
    %c1_199 = arith.constant 1 : index
    %c0_200 = arith.constant 0 : index
    %c0_201 = arith.constant 0 : index
    %137 = vector.load %arg6[%c0_198, %c1_199, %c0_200, %c0_201] : memref<1x18x18x128xf32, #tpu.memory_space<vmem>>, vector<1x16x16x128xf32>
    %138 = vector.shape_cast %137 : vector<1x16x16x128xf32> to vector<256x128xf32>
    %139 = arith.truncf %138 : vector<256x128xf32> to vector<256x128xbf16>
    %c1_202 = arith.constant 1 : index
    %c3_203 = arith.constant 3 : index
    %c0_204 = arith.constant 0 : index
    %c0_205 = arith.constant 0 : index
    %140 = vector.load %arg2[%c1_202, %c3_203, %c0_204, %c0_205] : memref<2x9x128x32xbf16, #tpu.memory_space<vmem>>, vector<1x1x128x32xbf16>
    %141 = vector.shape_cast %140 : vector<1x1x128x32xbf16> to vector<128x32xbf16>
    %cst_206 = arith.constant dense<0.000000e+00> : vector<256x32xf32>
    %142 = tpu.matmul %139, %141, %cst_206 {dimension_numbers = #tpu.dot_dimension_numbers<[1], [0], [0], [1], [0, 0, 1, 1], [], []>} : vector<256x128xbf16>, vector<128x32xbf16>, vector<256x32xf32> -> vector<256x32xf32>
    %c0_207 = arith.constant 0 : index
    %c0_208 = arith.constant 0 : index
    %143 = vector.load %arg7[%c0_207, %c0_208] : memref<256x32xf32, #tpu.memory_space<vmem>>, vector<256x32xf32>
    %144 = arith.addf %143, %142 : vector<256x32xf32>
    %c0_209 = arith.constant 0 : index
    %c0_210 = arith.constant 0 : index
    %145 = vector.load %arg7[%c0_209, %c0_210] : memref<256x32xf32, #tpu.memory_space<vmem>>, vector<256x32xf32>
    tpu.vector_store %arg7[%c0_209, %c0_210], %144 {strides = array<i32>} : memref<256x32xf32, #tpu.memory_space<vmem>>, vector<256x32xf32>,
    %c0_211 = arith.constant 0 : index
    %c1_212 = arith.constant 1 : index
    %c1_213 = arith.constant 1 : index
    %c0_214 = arith.constant 0 : index
    %146 = vector.load %arg6[%c0_211, %c1_212, %c1_213, %c0_214] : memref<1x18x18x128xf32, #tpu.memory_space<vmem>>, vector<1x16x16x128xf32>
    %147 = vector.shape_cast %146 : vector<1x16x16x128xf32> to vector<256x128xf32>
    %148 = arith.truncf %147 : vector<256x128xf32> to vector<256x128xbf16>
    %c1_215 = arith.constant 1 : index
    %c4_216 = arith.constant 4 : index
    %c0_217 = arith.constant 0 : index
    %c0_218 = arith.constant 0 : index
    %149 = vector.load %arg2[%c1_215, %c4_216, %c0_217, %c0_218] : memref<2x9x128x32xbf16, #tpu.memory_space<vmem>>, vector<1x1x128x32xbf16>
    %150 = vector.shape_cast %149 : vector<1x1x128x32xbf16> to vector<128x32xbf16>
    %cst_219 = arith.constant dense<0.000000e+00> : vector<256x32xf32>
    %151 = tpu.matmul %148, %150, %cst_219 {dimension_numbers = #tpu.dot_dimension_numbers<[1], [0], [0], [1], [0, 0, 1, 1], [], []>} : vector<256x128xbf16>, vector<128x32xbf16>, vector<256x32xf32> -> vector<256x32xf32>
    %c0_220 = arith.constant 0 : index
    %c0_221 = arith.constant 0 : index
    %152 = vector.load %arg7[%c0_220, %c0_221] : memref<256x32xf32, #tpu.memory_space<vmem>>, vector<256x32xf32>
    %153 = arith.addf %152, %151 : vector<256x32xf32>
    %c0_222 = arith.constant 0 : index
    %c0_223 = arith.constant 0 : index
    %154 = vector.load %arg7[%c0_222, %c0_223] : memref<256x32xf32, #tpu.memory_space<vmem>>, vector<256x32xf32>
    tpu.vector_store %arg7[%c0_222, %c0_223], %153 {strides = array<i32>} : memref<256x32xf32, #tpu.memory_space<vmem>>, vector<256x32xf32>,
    %c0_224 = arith.constant 0 : index
    %c1_225 = arith.constant 1 : index
    %c2_226 = arith.constant 2 : index
    %c0_227 = arith.constant 0 : index
    %155 = vector.load %arg6[%c0_224, %c1_225, %c2_226, %c0_227] : memref<1x18x18x128xf32, #tpu.memory_space<vmem>>, vector<1x16x16x128xf32>
    %156 = vector.shape_cast %155 : vector<1x16x16x128xf32> to vector<256x128xf32>
    %157 = arith.truncf %156 : vector<256x128xf32> to vector<256x128xbf16>
    %c1_228 = arith.constant 1 : index
    %c5_229 = arith.constant 5 : index
    %c0_230 = arith.constant 0 : index
    %c0_231 = arith.constant 0 : index
    %158 = vector.load %arg2[%c1_228, %c5_229, %c0_230, %c0_231] : memref<2x9x128x32xbf16, #tpu.memory_space<vmem>>, vector<1x1x128x32xbf16>
    %159 = vector.shape_cast %158 : vector<1x1x128x32xbf16> to vector<128x32xbf16>
    %cst_232 = arith.constant dense<0.000000e+00> : vector<256x32xf32>
    %160 = tpu.matmul %157, %159, %cst_232 {dimension_numbers = #tpu.dot_dimension_numbers<[1], [0], [0], [1], [0, 0, 1, 1], [], []>} : vector<256x128xbf16>, vector<128x32xbf16>, vector<256x32xf32> -> vector<256x32xf32>
    %c0_233 = arith.constant 0 : index
    %c0_234 = arith.constant 0 : index
    %161 = vector.load %arg7[%c0_233, %c0_234] : memref<256x32xf32, #tpu.memory_space<vmem>>, vector<256x32xf32>
    %162 = arith.addf %161, %160 : vector<256x32xf32>
    %c0_235 = arith.constant 0 : index
    %c0_236 = arith.constant 0 : index
    %163 = vector.load %arg7[%c0_235, %c0_236] : memref<256x32xf32, #tpu.memory_space<vmem>>, vector<256x32xf32>
    tpu.vector_store %arg7[%c0_235, %c0_236], %162 {strides = array<i32>} : memref<256x32xf32, #tpu.memory_space<vmem>>, vector<256x32xf32>,
    %c0_237 = arith.constant 0 : index
    %c2_238 = arith.constant 2 : index
    %c0_239 = arith.constant 0 : index
    %c0_240 = arith.constant 0 : index
    %164 = vector.load %arg6[%c0_237, %c2_238, %c0_239, %c0_240] : memref<1x18x18x128xf32, #tpu.memory_space<vmem>>, vector<1x16x16x128xf32>
    %165 = vector.shape_cast %164 : vector<1x16x16x128xf32> to vector<256x128xf32>
    %166 = arith.truncf %165 : vector<256x128xf32> to vector<256x128xbf16>
    %c1_241 = arith.constant 1 : index
    %c6_242 = arith.constant 6 : index
    %c0_243 = arith.constant 0 : index
    %c0_244 = arith.constant 0 : index
    %167 = vector.load %arg2[%c1_241, %c6_242, %c0_243, %c0_244] : memref<2x9x128x32xbf16, #tpu.memory_space<vmem>>, vector<1x1x128x32xbf16>
    %168 = vector.shape_cast %167 : vector<1x1x128x32xbf16> to vector<128x32xbf16>
    %cst_245 = arith.constant dense<0.000000e+00> : vector<256x32xf32>
    %169 = tpu.matmul %166, %168, %cst_245 {dimension_numbers = #tpu.dot_dimension_numbers<[1], [0], [0], [1], [0, 0, 1, 1], [], []>} : vector<256x128xbf16>, vector<128x32xbf16>, vector<256x32xf32> -> vector<256x32xf32>
    %c0_246 = arith.constant 0 : index
    %c0_247 = arith.constant 0 : index
    %170 = vector.load %arg7[%c0_246, %c0_247] : memref<256x32xf32, #tpu.memory_space<vmem>>, vector<256x32xf32>
    %171 = arith.addf %170, %169 : vector<256x32xf32>
    %c0_248 = arith.constant 0 : index
    %c0_249 = arith.constant 0 : index
    %172 = vector.load %arg7[%c0_248, %c0_249] : memref<256x32xf32, #tpu.memory_space<vmem>>, vector<256x32xf32>
    tpu.vector_store %arg7[%c0_248, %c0_249], %171 {strides = array<i32>} : memref<256x32xf32, #tpu.memory_space<vmem>>, vector<256x32xf32>,
    %c0_250 = arith.constant 0 : index
    %c2_251 = arith.constant 2 : index
    %c1_252 = arith.constant 1 : index
    %c0_253 = arith.constant 0 : index
    %173 = vector.load %arg6[%c0_250, %c2_251, %c1_252, %c0_253] : memref<1x18x18x128xf32, #tpu.memory_space<vmem>>, vector<1x16x16x128xf32>
    %174 = vector.shape_cast %173 : vector<1x16x16x128xf32> to vector<256x128xf32>
    %175 = arith.truncf %174 : vector<256x128xf32> to vector<256x128xbf16>
    %c1_254 = arith.constant 1 : index
    %c7_255 = arith.constant 7 : index
    %c0_256 = arith.constant 0 : index
    %c0_257 = arith.constant 0 : index
    %176 = vector.load %arg2[%c1_254, %c7_255, %c0_256, %c0_257] : memref<2x9x128x32xbf16, #tpu.memory_space<vmem>>, vector<1x1x128x32xbf16>
    %177 = vector.shape_cast %176 : vector<1x1x128x32xbf16> to vector<128x32xbf16>
    %cst_258 = arith.constant dense<0.000000e+00> : vector<256x32xf32>
    %178 = tpu.matmul %175, %177, %cst_258 {dimension_numbers = #tpu.dot_dimension_numbers<[1], [0], [0], [1], [0, 0, 1, 1], [], []>} : vector<256x128xbf16>, vector<128x32xbf16>, vector<256x32xf32> -> vector<256x32xf32>
    %c0_259 = arith.constant 0 : index
    %c0_260 = arith.constant 0 : index
    %179 = vector.load %arg7[%c0_259, %c0_260] : memref<256x32xf32, #tpu.memory_space<vmem>>, vector<256x32xf32>
    %180 = arith.addf %179, %178 : vector<256x32xf32>
    %c0_261 = arith.constant 0 : index
    %c0_262 = arith.constant 0 : index
    %181 = vector.load %arg7[%c0_261, %c0_262] : memref<256x32xf32, #tpu.memory_space<vmem>>, vector<256x32xf32>
    tpu.vector_store %arg7[%c0_261, %c0_262], %180 {strides = array<i32>} : memref<256x32xf32, #tpu.memory_space<vmem>>, vector<256x32xf32>,
    %c0_263 = arith.constant 0 : index
    %c2_264 = arith.constant 2 : index
    %c2_265 = arith.constant 2 : index
    %c0_266 = arith.constant 0 : index
    %182 = vector.load %arg6[%c0_263, %c2_264, %c2_265, %c0_266] : memref<1x18x18x128xf32, #tpu.memory_space<vmem>>, vector<1x16x16x128xf32>
    %183 = vector.shape_cast %182 : vector<1x16x16x128xf32> to vector<256x128xf32>
    %184 = arith.truncf %183 : vector<256x128xf32> to vector<256x128xbf16>
    %c1_267 = arith.constant 1 : index
    %c8_268 = arith.constant 8 : index
    %c0_269 = arith.constant 0 : index
    %c0_270 = arith.constant 0 : index
    %185 = vector.load %arg2[%c1_267, %c8_268, %c0_269, %c0_270] : memref<2x9x128x32xbf16, #tpu.memory_space<vmem>>, vector<1x1x128x32xbf16>
    %186 = vector.shape_cast %185 : vector<1x1x128x32xbf16> to vector<128x32xbf16>
    %cst_271 = arith.constant dense<0.000000e+00> : vector<256x32xf32>
    %187 = tpu.matmul %184, %186, %cst_271 {dimension_numbers = #tpu.dot_dimension_numbers<[1], [0], [0], [1], [0, 0, 1, 1], [], []>} : vector<256x128xbf16>, vector<128x32xbf16>, vector<256x32xf32> -> vector<256x32xf32>
    %c0_272 = arith.constant 0 : index
    %c0_273 = arith.constant 0 : index
    %188 = vector.load %arg7[%c0_272, %c0_273] : memref<256x32xf32, #tpu.memory_space<vmem>>, vector<256x32xf32>
    %189 = arith.addf %188, %187 : vector<256x32xf32>
    %c0_274 = arith.constant 0 : index
    %c0_275 = arith.constant 0 : index
    %190 = vector.load %arg7[%c0_274, %c0_275] : memref<256x32xf32, #tpu.memory_space<vmem>>, vector<256x32xf32>
    tpu.vector_store %arg7[%c0_274, %c0_275], %189 {strides = array<i32>} : memref<256x32xf32, #tpu.memory_space<vmem>>, vector<256x32xf32>,
    %c0_276 = arith.constant 0 : index
    %c0_277 = arith.constant 0 : index
    %191 = vector.load %arg7[%c0_276, %c0_277] : memref<256x32xf32, #tpu.memory_space<vmem>>, vector<256x32xf32>
    %cst_278 = arith.constant 0.000000e+00 : f32
    %192 = vector.broadcast %cst_278 : f32 to vector<256x32xf32>
    %193 = arith.maximumf %191, %192 : vector<256x32xf32>
    %194 = arith.truncf %193 : vector<256x32xf32> to vector<256x32xbf16>
    %c1_279 = arith.constant 1 : index
    %c0_280 = arith.constant 0 : index
    %c0_281 = arith.constant 0 : index
    %195 = vector.load %arg3[%c1_279, %c0_280, %c0_281] : memref<2x32x128xbf16, #tpu.memory_space<vmem>>, vector<1x32x128xbf16>
    %196 = vector.shape_cast %195 : vector<1x32x128xbf16> to vector<32x128xbf16>
    %cst_282 = arith.constant dense<0.000000e+00> : vector<256x128xf32>
    %197 = tpu.matmul %194, %196, %cst_282 {dimension_numbers = #tpu.dot_dimension_numbers<[1], [0], [0], [1], [0, 0, 1, 1], [], []>} : vector<256x32xbf16>, vector<32x128xbf16>, vector<256x128xf32> -> vector<256x128xf32>
    %c0_283 = arith.constant 0 : index
    %c0_284 = arith.constant 0 : index
    %198 = vector.load %arg5[%c0_283, %c0_284] : memref<256x128xf32, #tpu.memory_space<vmem>>, vector<256x128xf32>
    %199 = arith.addf %198, %197 : vector<256x128xf32>
    %c0_285 = arith.constant 0 : index
    %c0_286 = arith.constant 0 : index
    %200 = vector.load %arg5[%c0_285, %c0_286] : memref<256x128xf32, #tpu.memory_space<vmem>>, vector<256x128xf32>
    tpu.vector_store %arg5[%c0_285, %c0_286], %199 {strides = array<i32>} : memref<256x128xf32, #tpu.memory_space<vmem>>, vector<256x128xf32>,
    %c0_287 = arith.constant 0 : index
    %c0_288 = arith.constant 0 : index
    %201 = vector.load %arg5[%c0_287, %c0_288] : memref<256x128xf32, #tpu.memory_space<vmem>>, vector<256x128xf32>
    %cst_289 = arith.constant 0.000000e+00 : f32
    %202 = vector.broadcast %cst_289 : f32 to vector<256x128xf32>
    %203 = arith.maximumf %201, %202 : vector<256x128xf32>
    %204 = vector.shape_cast %203 : vector<256x128xf32> to vector<1x16x16x128xf32>
    %c0_290 = arith.constant 0 : index
    %c0_291 = arith.constant 0 : index
    %c0_292 = arith.constant 0 : index
    %c0_293 = arith.constant 0 : index
    %205 = vector.load %arg4[%c0_290, %c0_291, %c0_292, %c0_293] : memref<1x16x16x128xf32, #tpu.memory_space<vmem>>, vector<1x16x16x128xf32>
    tpu.vector_store %arg4[%c0_290, %c0_291, %c0_292, %c0_293], %204 {strides = array<i32>} : memref<1x16x16x128xf32, #tpu.memory_space<vmem>>, vector<1x16x16x128xf32>,
    return
  }
  func.func @transform_0(%arg0: i32) -> (i32, i32, i32, i32) {
    %c0_i32 = arith.constant 0 : i32
    %c0_i32_0 = arith.constant 0 : i32
    %c0_i32_1 = arith.constant 0 : i32
    %c0_i32_2 = arith.constant 0 : i32
    return %arg0, %c0_i32, %c0_i32_0, %c0_i32_1 : i32, i32, i32, i32
  }
  func.func @transform_1(%arg0: i32) -> (i32, i32, i32, i32) {
    %c0_i32 = arith.constant 0 : i32
    %c0_i32_0 = arith.constant 0 : i32
    %c0_i32_1 = arith.constant 0 : i32
    %c0_i32_2 = arith.constant 0 : i32
    %c0_i32_3 = arith.constant 0 : i32
    return %c0_i32, %c0_i32_0, %c0_i32_1, %c0_i32_2 : i32, i32, i32, i32
  }
  func.func @transform_2(%arg0: i32) -> (i32, i32, i32) {
    %c0_i32 = arith.constant 0 : i32
    %c0_i32_0 = arith.constant 0 : i32
    %c0_i32_1 = arith.constant 0 : i32
    %c0_i32_2 = arith.constant 0 : i32
    return %c0_i32, %c0_i32_0, %c0_i32_1 : i32, i32, i32
  }
  func.func @transform_3(%arg0: i32) -> (i32, i32, i32, i32) {
    %c0_i32 = arith.constant 0 : i32
    %c0_i32_0 = arith.constant 0 : i32
    %c0_i32_1 = arith.constant 0 : i32
    %c0_i32_2 = arith.constant 0 : i32
    return %arg0, %c0_i32, %c0_i32_0, %c0_i32_1 : i32, i32, i32, i32
  }
}

</mosaic_0001>

<bundles_post_ra>
// kernel: residual_stack_forward.1
= control target key start
LH: loop header
LB: loop body
LE: loop exit
PB: predicated region body
PF: predicated region fallthrough
CT: control target
= control target key end

     0   :  { %8 = vsyncpa [#allocation6], 0  ;;  %s12577_s0 = inlined_call_operand.vmem [shape: f32[2,16,16,128], index: 0, kind: input, shape index: {}]   ;;  %s12578_s1 = inlined_call_operand.vmem [shape: bf16[2,9,128,32], index: 1, kind: input, shape index: {}]   ;;  %s12579_s2 = inlined_call_operand.vmem [shape: bf16[2,32,128], index: 2, kind: input, shape index: {}]   ;;  %s12580_s3 = inlined_call_operand.hbm [shape: f32[2,16,16,128], index: 3, kind: output, shape index: {}]  }
   0x1   :  { %10 = vsyncpa [#allocation6 + $0x1], 0  ;;  %s10323_s12 = smov 0   ;;  %s10325_s13 = smov 0  }
   0x2   :  { %s10327_s14 = smov 0   ;;  %s10329_s15 = smov 0  }
   0x3 LB: > { %s10344_s16 = sadd.s32 4294967295, %s10297_s15   ;;  %s8106_s17 = sadd.s32 4294967294, %s10297_s15   ;;  %s10297_s15 = sphi %s10329_s15, %s12586_s15   ;;  %s10293_s14 = sphi %s10327_s14, %s12585_s14   ;;  %s10289_s13 = sphi %s10325_s13, %s12584_s13   ;;  %s10285_s12 = sphi %s10323_s12, %s12583_s12  }
   0x4   : > { %s10348_s18 = sadd.s32 1, %s10297_s15   ;;  %s91_s19 = sadd.s32 1, %s10293_s14 }
   0x5   : > { %s88_s20 = ssub.s32 %s10297_s15, %s10348_s18  ;;  %p101_p0 = scmp.ne.s32.totalorder %s10293_s14, %s10289_s13 }
   0x6   : > { %p89_p1 = scmp.eq.s32.totalorder %s88_s20, 0  ;;  %p102_p2 = scmp.eq.s32.totalorder %s10344_s16, 1 }
   0x7   : > { %p107_p3 = scmp.ne.s32.totalorder %s10289_s13, %s10285_s12  ;;  %p108_p4 = scmp.eq.s32.totalorder %s8106_s17, 1 }
   0x8   : > { %s10359_s21 = scalar_select %p89_p1, %s10293_s14, %s91_s19  }
   0x9   : > { %p10361_p5 = por %p102_p2, %p101_p0  ;;  %p10365_p6 = por %p108_p4, %p107_p3 }
   0xa   : > { %p8109_p7 = scmp.ge.s32.totalorder %s10297_s15, 1  ;;  %p140_p8 = scmp.lt.s32.totalorder %s10297_s15, 3 }
   0xc   : > { %p141_p9 = pnand %p8109_p7, %p140_p8 }
   0xd   : > { %p164_p10 = scmp.lt.s32.totalorder (!%p141_p9), %s10344_s16, 1  ;;  %s8575_s24 = sshll.u32 (!%p141_p9), %s10344_s16, 12 }
   0xe   : > { %144 = sbr.rel (%p141_p9) target bundleno = 1478 (0x5c6), region = 32  ;;  %s12529_s28 = scalar_lea.hbm (!%p141_p9), %s12580_s3, %s8575_s24 }
   0xf   : > { %s10300_s30 = smov (!%p141_p9), [#allocation5]  }
  0x10   : > { %s10241_s4 = sshll.u32 (!%p141_p9), %s10300_s30, 4  ;;  %s10242_s4 = int_to_ptr.vmem [resolvable:$false] %s10241_s4 }
  0x13   : > { %v10022_v0 = vld [vmem:[%s12578_s1 + $0x38] sm:$0xff]   ;;  %v10023_v1 = vld [vmem:[%s12578_s1 + $0x30] sm:$0xff]   ;;  %v10299_v2 = vmov 0.0   ;;  %v10024_v4 = vld [vmem:[%s12578_s1 + $0x28] sm:$0xff]   ;;  %s165_s5 = scalar_select %p164_p10, %s10344_s16, 1  ;;  %vm711_vm0 = vcmask 261120  }
  0x14   : > { %170 = vst [vmem:[#allocation3] sm:$0xff] %v10299_v2  ;;  %171 = vst [vmem:[#allocation3 + $0x8] sm:$0xff] %v10299_v2  ;;  %9044 = vmatprep.subr.bf16.mxu0 %v10022_v0  ;;  %v10025_v3 = vld [vmem:[%s12578_s1 + $0x78] sm:$0xff]   ;;  %v10027_v5 = vld [vmem:[%s12578_s1 + $0x70] sm:$0xff]  }
  0x15   : > { %172 = vst [vmem:[#allocation3 + $0x10] sm:$0x3] %v10299_v2  ;;  %174 = vst [vmem:[#allocation3 + $0x198] sm:$0xff] %v10299_v2  ;;  %9045 = vmatpush3.bf16.msra.mxu0 %v10022_v0  ;;  %9092 = vmatprep.subr.bf16.mxu1 %v10025_v3  ;;  %v10029_v6 = vld [vmem:[%s12578_s1 + $0x68] sm:$0xff]   ;;  %v10026_v7 = vld [vmem:[%s12578_s1 + $0x20] sm:$0xff]   ;;  %s8574_s17 = sshll.u32 %s165_s5, 8 }
  0x16   : > { %175 = vst [vmem:[#allocation3 + $0x1a0] sm:$0xff] %v10299_v2  ;;  %176 = vst [vmem:[#allocation3 + $0x1a8] sm:$0x3] %v10299_v2  ;;  %9046 = vmatprep.subr.bf16.mxu0 %v10023_v1  ;;  %9093 = vmatpush3.bf16.msra.mxu1 %v10025_v3  ;;  %v10031_v8 = vld [vmem:[%s12578_s1 + $0x60] sm:$0xff]   ;;  %s10442_s26 = scalar_lea.vmem %s12577_s0, %s8574_s17  ;;  %v10028_v9 = vld [vmem:[%s12578_s1 + $0x18] sm:$0xff]   ;;  %s161_s17 = sand.u32 1, %s10289_s13  }
  0x17   : > { %178 = vst [vmem:[#allocation3 + $0x18] sm:$0x1] %v10299_v2  ;;  %179 = vst [vmem:[#allocation3 + $0x30] sm:$0x1] %v10299_v2  ;;  %9094 = vmatprep.subr.bf16.mxu1 %v10027_v5  ;;  %v10033_v10 = vld [vmem:[%s12578_s1 + $0x58] sm:$0xff]   ;;  %v10451_v12 = vld [vmem:[%s10442_s26] sm:$0xff] }
  0x18   : > { %180 = vst [vmem:[#allocation3 + $0x48] sm:$0x1] %v10299_v2  ;;  %181 = vst [vmem:[#allocation3 + $0x60] sm:$0x1] %v10299_v2  ;;  %v10454_v13 = vld [vmem:[%s10442_s26 + $0x8] sm:$0xff]  ;;  %v309_v15 = vmax.f32 %v10451_v12, 0.0 }
  0x19   : > { %182 = vst [vmem:[#allocation3 + $0x78] sm:$0x1] %v10299_v2  ;;  %183 = vst [vmem:[#allocation3 + $0x90] sm:$0x1] %v10299_v2  ;;  %9047 = vmatpush3.bf16.msra.mxu0 %v10023_v1  ;;  %v310_v16 = vmax.f32 %v10454_v13, 0.0  ;;  %v10030_v17 = vld [vmem:[%s12578_s1 + $0x10] sm:$0xff]  }
  0x1a   : > { %184 = vst [vmem:[#allocation3 + $0xa8] sm:$0x1] %v10299_v2  ;;  %185 = vst [vmem:[#allocation3 + $0xc0] sm:$0x1] %v10299_v2  ;;  %9048 = vmatprep.subr.bf16.mxu0 %v10024_v4  ;;  %9095 = vmatpush3.bf16.msra.mxu1 %v10027_v5  ;;  %v10032_v18 = vld [vmem:[%s12578_s1 + $0x8] sm:$0xff]   ;;  %v10035_v19 = vld [vmem:[%s12578_s1 + $0x50] sm:$0xff]  }
  0x1b   : > { %186 = vst [vmem:[#allocation3 + $0xd8] sm:$0x1] %v10299_v2  ;;  %187 = vst [vmem:[#allocation3 + $0xf0] sm:$0x1] %v10299_v2  ;;  %9096 = vmatprep.subr.bf16.mxu1 %v10029_v6  ;;  %v10473_v20 = vld [vmem:[%s10442_s26 + $0x10] sm:$0xff]  ;;  %v10476_v21 = vld [vmem:[%s10442_s26 + $0x18] sm:$0xff] }
  0x1c   : > { %188 = vst [vmem:[#allocation3 + $0x108] sm:$0x1] %v10299_v2  ;;  %189 = vst [vmem:[#allocation3 + $0x120] sm:$0x1] %v10299_v2  ;;  %v311_v22 = vmax.f32 %v10473_v20, 0.0  ;;  %v312_v23 = vmax.f32 %v10476_v21, 0.0 }
  0x1d   : > { %190 = vst [vmem:[#allocation3 + $0x138] sm:$0x1] %v10299_v2  ;;  %191 = vst [vmem:[#allocation3 + $0x150] sm:$0x1] %v10299_v2  ;;  %9049 = vmatpush3.bf16.msra.mxu0 %v10024_v4  ;;  %v744_v24 = vld [vmem:[#allocation3 + $0x1] sm:$0xff]  ;;  %v745_v25 = vld [vmem:[#allocation3 + $0x9] sm:$0xff] }
  0x1e   : > { %192 = vst [vmem:[#allocation3 + $0x168] sm:$0x1] %v10299_v2  ;;  %193 = vst [vmem:[#allocation3 + $0x180] sm:$0x1] %v10299_v2  ;;  %9050 = vmatprep.subr.bf16.mxu0 %v10026_v7  ;;  %9097 = vmatpush3.bf16.msra.mxu1 %v10029_v6  ;;  %v10481_v26 = vld [vmem:[%s10442_s26 + $0x20] sm:$0xff]  ;;  %v776_v27 = vpack.c.bf16 %v745_v25, %v744_v24  ;;  %v10484_v28 = vld [vmem:[%s10442_s26 + $0x28] sm:$0xff]  ;;  %v10618_v12 = vpack.c.bf16 %v312_v23, %v311_v22 }
  0x1f   : > { %196 = vst [vmem:[#allocation3 + $0x29] sm:$0x1] %v10299_v2  ;;  %197 = vst [vmem:[#allocation3 + $0x41] sm:$0x1] %v10299_v2  ;;  %9098 = vmatprep.subr.bf16.mxu1 %v10031_v8  ;;  %v313_v29 = vmax.f32 %v10481_v26, 0.0  ;;  %v314_v30 = vmax.f32 %v10484_v28, 0.0 }
  0x20   : > { %198 = vst [vmem:[#allocation3 + $0x59] sm:$0x1] %v10299_v2  ;;  %199 = vst [vmem:[#allocation3 + $0x71] sm:$0x1] %v10299_v2  ;;  %v10493_v31 = vld [vmem:[%s10442_s26 + $0x30] sm:$0xff]  ;;  %v10496_v32 = vld [vmem:[%s10442_s26 + $0x38] sm:$0xff]  ;;  %9108 = vmatprep.mubr.bf16.mxu1 %v776_v27 }
  0x21   : > { %200 = vst [vmem:[#allocation3 + $0x89] sm:$0x1] %v10299_v2  ;;  %201 = vst [vmem:[#allocation3 + $0xa1] sm:$0x1] %v10299_v2  ;;  %9051 = vmatpush3.bf16.msra.mxu0 %v10026_v7  ;;  %v315_v33 = vmax.f32 %v10493_v31, 0.0  ;;  %v316_v34 = vmax.f32 %v10496_v32, 0.0 }
  0x22   : > { %202 = vst [vmem:[#allocation3 + $0xb9] sm:$0x1] %v10299_v2  ;;  %203 = vst [vmem:[#allocation3 + $0xd1] sm:$0x1] %v10299_v2  ;;  %9052 = vmatprep.subr.bf16.mxu0 %v10028_v9  ;;  %9099 = vmatpush3.bf16.msra.mxu1 %v10031_v8  ;;  %v10503_v35 = vld [vmem:[%s10442_s26 + $0x40] sm:$0xff]  ;;  %v10506_v36 = vld [vmem:[%s10442_s26 + $0x48] sm:$0xff] }
  0x23   : > { %204 = vst [vmem:[#allocation3 + $0xe9] sm:$0x1] %v10299_v2  ;;  %205 = vst [vmem:[#allocation3 + $0x101] sm:$0x1] %v10299_v2  ;;  %9100 = vmatprep.subr.bf16.mxu1 %v10033_v10  ;;  %v10036_v37 = vld [vmem:[%s12578_s1 + $0x48] sm:$0xff]   ;;  %v317_v38 = vmax.f32 %v10503_v35, 0.0 }
  0x24   : > { %206 = vst [vmem:[#allocation3 + $0x119] sm:$0x1] %v10299_v2  ;;  %207 = vst [vmem:[#allocation3 + $0x131] sm:$0x1] %v10299_v2  ;;  %v318_v39 = vmax.f32 %v10506_v36, 0.0  ;;  %v10516_v40 = vld [vmem:[%s10442_s26 + $0x50] sm:$0xff] }
  0x25   : > { %208 = vst [vmem:[#allocation3 + $0x149] sm:$0x1] %v10299_v2  ;;  %209 = vst [vmem:[#allocation3 + $0x161] sm:$0x1] %v10299_v2  ;;  %9053 = vmatpush3.bf16.msra.mxu0 %v10028_v9  ;;  %v10034_v41 = vld [vmem:[%s12578_s1] sm:$0xff]   ;;  %v10526_v42 = vld [vmem:[%s10442_s26 + $0x58] sm:$0xff]  ;;  %v10606_v9 = vpack.c.bf16 %v310_v16, %v309_v15 }
  0x26   : > { %210 = vst [vmem:[#allocation3 + $0x179] sm:$0x1] %v10299_v2  ;;  %211 = vst [vmem:[#allocation3 + $0x191] sm:$0x1] %v10299_v2  ;;  %9054 = vmatprep.subr.bf16.mxu0 %v10030_v17  ;;  %9101 = vmatpush3.bf16.msra.mxu1 %v10033_v10  ;;  %v319_v43 = vmax.f32 %v10516_v40, 0.0  ;;  %v10038_v45 = vld [vmem:[%s12578_s1 + $0x40] sm:$0xff]  }
  0x27   : > { %177 = vst [vmem:[#allocation3] sm:$0x1] %v10299_v2  ;;  %194 = vst [vmem:[#allocation3 + $0x198] sm:$0x1] %v10299_v2  ;;  %9102 = vmatprep.subr.bf16.mxu1 %v10035_v19  ;;  %v320_v46 = vmax.f32 %v10526_v42, 0.0  ;;  %v10538_v47 = vld [vmem:[%s10442_s26 + $0x60] sm:$0xff] }
  0x28   : > { %195 = vst [vmem:[#allocation3 + $0x11] sm:$0x1] %v10299_v2  ;;  %212 = vst [vmem:[#allocation3 + $0x1a9] sm:$0x1] %v10299_v2  ;;  %v10541_v48 = vld [vmem:[%s10442_s26 + $0x68] sm:$0xff]  ;;  %v321_v50 = vmax.f32 %v10538_v47, 0.0 }
  0x29   : > { %406 = vst [vmem:[#allocation3 + $0x19] sm:$0xff] %v309_v15  ;;  %407 = vst [vmem:[#allocation3 + $0x21] sm:$0xff] %v310_v16  ;;  %9055 = vmatpush3.bf16.msra.mxu0 %v10030_v17  ;;  %v322_v51 = vmax.f32 %v10541_v48, 0.0  ;;  %v10548_v52 = vld [vmem:[%s10442_s26 + $0x70] sm:$0xff]  ;;  %v10553_v53 = vld [vmem:[%s10442_s26 + $0x78] sm:$0xff]  ;;  %s8110_s19 = sshll.u32 %s161_s17, 8 }
  0x2a   : > { %408 = vst [vmem:[#allocation3 + $0x31] sm:$0xff] %v311_v22  ;;  %409 = vst [vmem:[#allocation3 + $0x39] sm:$0xff] %v312_v23  ;;  %9056 = vmatprep.subr.bf16.mxu0 %v10032_v18  ;;  %9103 = vmatpush3.bf16.msra.mxu1 %v10035_v19  ;;  %v323_v54 = vmax.f32 %v10548_v52, 0.0  ;;  %v10557_v55 = vld [vmem:[%s10442_s26 + $0x80] sm:$0xff]  ;;  %v10560_v56 = vld [vmem:[%s10442_s26 + $0x88] sm:$0xff]  ;;  %v324_v60 = vmax.f32 %v10553_v53, 0.0 }
  0x2b   : > { %410 = vst [vmem:[#allocation3 + $0x49] sm:$0xff] %v313_v29  ;;  %411 = vst [vmem:[#allocation3 + $0x51] sm:$0xff] %v314_v30  ;;  %9104 = vmatprep.subr.bf16.mxu1 %v10036_v37  ;;  %v10037_v57 = vld [vmem:[%s12578_s1 + $0xb8] sm:$0xff]   ;;  %v325_v61 = vmax.f32 %v10557_v55, 0.0  ;;  %v326_v62 = vmax.f32 %v10560_v56, 0.0  ;;  %v10583_v0 = vld [vmem:[%s10442_s26 + $0x90] sm:$0xff] }
  0x2c   : > { %412 = vst [vmem:[#allocation3 + $0x61] sm:$0xff] %v315_v33  ;;  %413 = vst [vmem:[#allocation3 + $0x69] sm:$0xff] %v316_v34  ;;  %v10586_v1 = vld [vmem:[%s10442_s26 + $0x98] sm:$0xff]  ;;  %v327_v3 = vmax.f32 %v10583_v0, 0.0  ;;  %v10593_v5 = vld [vmem:[%s10442_s26 + $0xa0] sm:$0xff]  ;;  %s12492_s20 = scalar_lea.vmem [#allocation5], %s8110_s19 }
  0x2d   : > { %414 = vst [vmem:[#allocation3 + $0x79] sm:$0xff] %v317_v38  ;;  %415 = vst [vmem:[#allocation3 + $0x81] sm:$0xff] %v318_v39  ;;  %9057 = vmatpush3.bf16.msra.mxu0 %v10032_v18  ;;  %v328_v4 = vmax.f32 %v10586_v1, 0.0  ;;  %v10039_v6 = vld [vmem:[%s12578_s1 + $0xb0] sm:$0xff]   ;;  %v10599_v7 = vld [vmem:[%s10442_s26 + $0xa8] sm:$0xff]  ;;  %v329_v8 = vmax.f32 %v10593_v5, 0.0 }
  0x2e   : > { %v438_v11 = vld [vmem:[#allocation3] sm:$0xff]  ;;  %416 = vst [vmem:[#allocation3 + $0x91] sm:$0xff] %v319_v43  ;;  %417 = vst [vmem:[#allocation3 + $0x99] sm:$0xff] %v320_v46  ;;  %9058 = vmatprep.subr.bf16.mxu0 %v10034_v41  ;;  %9105 = vmatpush3.bf16.msra.mxu1 %v10036_v37  ;;  %v330_v10 = vmax.f32 %v10599_v7, 0.0  ;;  %v10040_v13 = vld [vmem:[%s12578_s1 + $0xa8] sm:$0xff]   ;;  %s8044_s25 = sshll.u32 %s12492_s20, 4  ;;  %s12531_s25 = int_to_ptr.vmem [resolvable:$true] %s8044_s25 }
  0x2f   : > { %v470_v14 = vpack.c.bf16 %v10299_v2, %v438_v11  ;;  %418 = vst [vmem:[#allocation3 + $0xa9] sm:$0xff] %v321_v50  ;;  %419 = vst [vmem:[#allocation3 + $0xb1] sm:$0xff] %v322_v51  ;;  %9106 = vmatprep.subr.bf16.mxu1 %v10038_v45  ;;  %v10044_v17 = vld [vmem:[%s12578_s1 + $0xf8] sm:$0xff]   ;;  %v10045_v19 = vld [vmem:[%s12578_s1 + $0xf0] sm:$0xff]   ;;  %s12537_s16 = scalar_lea.sflag [#allocation6], %s161_s17  ;;  %s10237_s29 = scalar_lea.vmem %s12531_s25, 4096 }
  0x30   : > { %v440_v44 = vld [vmem:[#allocation3 + $0x18] sm:$0xff]  ;;  %v441_v49 = vld [vmem:[#allocation3 + $0x20] sm:$0xff]  ;;  %420 = vst [vmem:[#allocation3 + $0xc1] sm:$0xff] %v323_v54  ;;  %421 = vst [vmem:[#allocation3 + $0xc9] sm:$0xff] %v324_v60  ;;  %p10238_p11 = scmp.ne.s32.totalorder %s12531_s25, %s10237_s29  ;;  %s10243_s5 = scalar_lea.vmem %s10242_s4, 8192 }
  0x31   : > { %9060 = vmatprep.mubr.bf16.mxu0 %v470_v14  ;;  %v442_v58 = vld [vmem:[#allocation3 + $0x30] sm:$0xff]  ;;  %v443_v59 = vld [vmem:[#allocation3 + $0x38] sm:$0xff]  ;;  %v10574_v63 = vpack.c.bf16 %v441_v49, %v440_v44  ;;  %422 = vst [vmem:[#allocation3 + $0xd9] sm:$0xff] %v325_v61  ;;  %423 = vst [vmem:[#allocation3 + $0xe1] sm:$0xff] %v326_v62  ;;  %9059 = vmatpush3.bf16.msra.mxu0 %v10034_v41  ;;  %p10244_p0 = scmp.lt.s32.totalorder %s12531_s25, %s10242_s4  ;;  %p10245_p1 = scmp.lt.s32.totalorder %s10243_s5, %s10237_s29 }
  0x32   : > { %v10588_v2 = vpack.c.bf16 %v443_v59, %v442_v58  ;;  %9140 = vmatprep.subr.bf16.mxu0 %v10037_v57  ;;  %424 = vst [vmem:[#allocation3 + $0xf1] sm:$0xff] %v327_v3  ;;  %425 = vst [vmem:[#allocation3 + $0xf9] sm:$0xff] %v328_v4  ;;  %9107 = vmatpush3.bf16.msra.mxu1 %v10038_v45  ;;  %v444_v11 = vld [vmem:[#allocation3 + $0x48] sm:$0xff]  ;;  %v445_v14 = vld [vmem:[#allocation3 + $0x50] sm:$0xff]  ;;  %p10239_p12 = pnand %p10238_p11, %p10361_p5 }
  0x33   : > { %426 = vst [vmem:[#allocation3 + $0x109] sm:$0xff] %v329_v8  ;;  %v446_v15 = vld [vmem:[#allocation3 + $0x60] sm:$0xff]  ;;  %427 = vst [vmem:[#allocation3 + $0x111] sm:$0xff] %v330_v10  ;;  %v447_v16 = vld [vmem:[#allocation3 + $0x68] sm:$0xff]  ;;  %v10632_v18 = vpack.c.bf16 %v445_v14, %v444_v11  ;;  %9188 = vmatprep.subr.bf16.mxu1 %v10044_v17  ;;  %p10246_p2 = por %p10245_p1, %p10244_p0 }
  0x34   : > { %9061 = vmatmul.mubr.bf16.vlgmr.msra.gmra.mxu0 %v10574_v63  ;;  %v10639_v20 = vld [vmem:[%s10442_s26 + $0xb0] sm:$0xff]  ;;  %v10641_v21 = vpack.c.bf16 %v447_v16, %v446_v15  ;;  %v10644_v22 = vld [vmem:[%s10442_s26 + $0xb8] sm:$0xff]  ;;  %v10648_v24 = vld [vmem:[%s10442_s26 + $0xc0] sm:$0xff]  ;;  %p10240_p13 = pneg %p10239_p12 }
  0x35   : > { %9141 = vmatpush3.bf16.msra.mxu0 %v10037_v57  ;;  %9064 = vmatprep.mubr.bf16.mxu0 %v10588_v2  ;;  %v331_v23 = vmax.f32 %v10639_v20, 0.0  ;;  %v10651_v25 = vld [vmem:[%s10442_s26 + $0xc8] sm:$0xff]  ;;  %v10041_v27 = vld [vmem:[%s12578_s1 + $0xa0] sm:$0xff]   ;;  %v332_v37 = vmax.f32 %v10644_v22, 0.0  ;;  %v333_v41 = vmax.f32 %v10648_v24, 0.0  ;;  %v448_v45 = vld [vmem:[#allocation3 + $0x78] sm:$0xff]  ;;  %v10663_v57 = vpack.c.bf16 %v314_v30, %v313_v29 }
  0x36   : > { %9142 = vmatprep.subr.bf16.mxu0 %v10039_v6  ;;  %9109 = vmatmul.mubr.bf16.vlgmr.msra.gmra.mxu1 %v10606_v9  ;;  %v334_v44 = vmax.f32 %v10651_v25, 0.0  ;;  %v449_v49 = vld [vmem:[#allocation3 + $0x80] sm:$0xff]  ;;  %v450_v58 = vld [vmem:[#allocation3 + $0x90] sm:$0xff]  ;;  %v451_v59 = vld [vmem:[#allocation3 + $0x98] sm:$0xff]  ;;  %p10247_p3 = pnand %p10246_p2, %p10240_p13 }
  0x37   : > { %9112 = vmatprep.mubr.bf16.mxu1 %v10618_v12  ;;  %9189 = vmatpush3.bf16.msra.mxu1 %v10044_v17  ;;  %428 = vst [vmem:[#allocation3 + $0x121] sm:$0xff] %v331_v23  ;;  %v10042_v26 = vld [vmem:[%s12578_s1 + $0x98] sm:$0xff]   ;;  %429 = vst [vmem:[#allocation3 + $0x129] sm:$0xff] %v332_v37  ;;  %v10047_v28 = vld [vmem:[%s12578_s1 + $0xe8] sm:$0xff]   ;;  %v10710_v16 = vpack.c.bf16 %v451_v59, %v450_v58  ;;  %v10737_v59 = vpack.c.bf16 %v320_v46, %v319_v43 }
  0x38   : > { %9190 = vmatprep.subr.bf16.mxu1 %v10045_v19  ;;  %430 = vst [vmem:[#allocation3 + $0x139] sm:$0xff] %v333_v41  ;;  %431 = vst [vmem:[#allocation3 + $0x141] sm:$0xff] %v334_v44  ;;  %v10048_v29 = vld [vmem:[%s12578_s1 + $0xe0] sm:$0xff]   ;;  %v10691_v30 = vld [vmem:[%s10442_s26 + $0xd0] sm:$0xff]  ;;  %v10759_v43 = vpack.c.bf16 %v322_v51, %v321_v50 }
  0x39   : > { %9143 = vmatpush3.bf16.msra.mxu0 %v10039_v6  ;;  %v10672_v6 = vpack.c.bf16 %v316_v34, %v315_v33  ;;  %v10694_v31 = vld [vmem:[%s10442_s26 + $0xd8] sm:$0xff]  ;;  %v335_v32 = vmax.f32 %v10691_v30, 0.0  ;;  %v10700_v34 = vld [vmem:[%s10442_s26 + $0xe0] sm:$0xff]  ;;  %v10703_v11 = vld [vmem:[%s10442_s26 + $0xe8] sm:$0xff] }
  0x3a   : > { %9144 = vmatprep.subr.bf16.mxu0 %v10040_v13  ;;  %v336_v33 = vmax.f32 %v10694_v31, 0.0  ;;  %v337_v14 = vmax.f32 %v10700_v34, 0.0  ;;  %v338_v15 = vmax.f32 %v10703_v11, 0.0  ;;  %v10043_v17 = vld [vmem:[%s12578_s1 + $0x90] sm:$0xff]   ;;  %v454_v58 = vld [vmem:[#allocation3 + $0xc0] sm:$0xff]  ;;  %v455_v35 = vld [vmem:[#allocation3 + $0xc8] sm:$0xff] }
  0x3b   : > { %9191 = vmatpush3.bf16.msra.mxu1 %v10045_v19  ;;  %432 = vst [vmem:[#allocation3 + $0x151] sm:$0xff] %v335_v32  ;;  %v10727_v19 = vpack.c.bf16 %v318_v39, %v317_v38  ;;  %v10046_v36 = vld [vmem:[%s12578_s1 + $0x88] sm:$0xff]   ;;  %v10051_v38 = vld [vmem:[%s12578_s1 + $0xd0] sm:$0xff]   ;;  %v10750_v40 = vpack.c.bf16 %v455_v35, %v454_v58  ;;  %v10049_v42 = vld [vmem:[%s12578_s1 + $0x80] sm:$0xff]  }
  0x3c   : > { %9065 = vmatmul.mubr.bf16.gmra.mxu0 %v10632_v18  ;;  %9192 = vmatprep.subr.bf16.mxu1 %v10047_v28  ;;  %433 = vst [vmem:[#allocation3 + $0x159] sm:$0xff] %v336_v33  ;;  %434 = vst [vmem:[#allocation3 + $0x169] sm:$0xff] %v337_v14  ;;  %v10053_v46 = vld [vmem:[%s12578_s1 + $0xc8] sm:$0xff]   ;;  %v457_v47 = vld [vmem:[#allocation3 + $0xe0] sm:$0xff]  ;;  %v10849_v35 = vpack.c.bf16 %v336_v33, %v335_v32  ;;  %v10864_v30 = vpack.c.bf16 %v338_v15, %v337_v14 }
  0x3d   : > { %9068 = vmatprep.mubr.bf16.mxu0 %v10641_v21  ;;  %9145 = vmatpush3.bf16.msra.mxu0 %v10040_v13  ;;  %v10705_v13 = vpack.c.bf16 %v449_v49, %v448_v45  ;;  %435 = vst [vmem:[#allocation3 + $0x171] sm:$0xff] %v338_v15  ;;  %v452_v45 = vld [vmem:[#allocation3 + $0xa8] sm:$0xff]  ;;  %v453_v49 = vld [vmem:[#allocation3 + $0xb0] sm:$0xff]  ;;  %v459_v50 = vld [vmem:[#allocation3 + $0xf8] sm:$0xff] }
  0x3e   : > { %9146 = vmatprep.subr.bf16.mxu0 %v10041_v27  ;;  %9113 = vmatmul.mubr.bf16.gmra.mxu1 %v10663_v57  ;;  %v10747_v39 = vpack.c.bf16 %v453_v49, %v452_v45  ;;  %v458_v48 = vld [vmem:[#allocation3 + $0xf0] sm:$0xff]  ;;  %v10775_v51 = vld [vmem:[%s12578_s1 + $0x138] sm:$0xff]   ;;  %v10054_v52 = vld [vmem:[%s12578_s1 + $0xc0] sm:$0xff]   ;;  %v10798_v45 = vpack.c.bf16 %v328_v4, %v327_v3  ;;  %v10821_v3 = vpack.c.bf16 %v332_v37, %v331_v23 }
  0x3f   : > { %9116 = vmatprep.mubr.bf16.mxu1 %v10672_v6  ;;  %9193 = vmatpush3.bf16.msra.mxu1 %v10047_v28  ;;  %v10769_v28 = vpack.c.bf16 %v324_v60, %v323_v54  ;;  %v10784_v54 = vpack.c.bf16 %v459_v50, %v458_v48  ;;  %v460_v60 = vld [vmem:[#allocation3 + $0x108] sm:$0xff]  ;;  %v10060_v55 = vld [vmem:[%s12578_s1 + $0x178] sm:$0xff]   ;;  %v465_v1 = vld [vmem:[#allocation3 + $0x140] sm:$0xff]  ;;  %v10842_v23 = vpack.c.bf16 %v334_v44, %v333_v41 }
  0x40   : > { %9194 = vmatprep.subr.bf16.mxu1 %v10048_v29  ;;  %v463_v49 = vld [vmem:[#allocation3 + $0x128] sm:$0xff]  ;;  %v464_v0 = vld [vmem:[#allocation3 + $0x138] sm:$0xff]  ;;  %v10055_v34 = vld [vmem:[%s12578_s1 + $0x130] sm:$0xff]  }
  0x41   : > { %9147 = vmatpush3.bf16.msra.mxu0 %v10041_v27  ;;  %v10050_v27 = vld [vmem:[%s12578_s1 + $0xd8] sm:$0xff]   ;;  %v10825_v5 = vpack.c.bf16 %v465_v1, %v464_v0  ;;  %v1115_v25 = vld [vmem:[#allocation3 + $0xa] sm:$0xff]  ;;  %v1117_v32 = vld [vmem:[#allocation3 + $0x22] sm:$0xff] }
  0x42   : > { %9148 = vmatprep.subr.bf16.mxu0 %v10042_v26  ;;  %v466_v4 = vld [vmem:[#allocation3 + $0x150] sm:$0xff]  ;;  %v1116_v31 = vld [vmem:[#allocation3 + $0x1a] sm:$0xff]  ;;  %v1122_v15 = vld [vmem:[#allocation3 + $0x62] sm:$0xff] }
  0x43   : > { %9195 = vmatpush3.bf16.msra.mxu1 %v10048_v29  ;;  %v461_v29 = vld [vmem:[#allocation3 + $0x110] sm:$0xff]  ;;  %v467_v58 = vld [vmem:[#allocation3 + $0x158] sm:$0xff]  ;;  %v468_v37 = vld [vmem:[#allocation3 + $0x168] sm:$0xff] }
  0x44   : > { %9069 = vmatmul.mubr.bf16.gmra.mxu0 %v10705_v13  ;;  %9196 = vmatprep.subr.bf16.mxu1 %v10050_v27  ;;  %v10805_v56 = vpack.c.bf16 %v461_v29, %v460_v60  ;;  %v10828_v7 = vpack.c.bf16 %v467_v58, %v466_v4  ;;  %v469_v24 = vld [vmem:[#allocation3 + $0x170] sm:$0xff]  ;;  %v1124_v60 = vld [vmem:[#allocation3 + $0x7a] sm:$0xff] }
  0x45   : > { %9072 = vmatprep.mubr.bf16.mxu0 %v10710_v16  ;;  %9149 = vmatpush3.bf16.msra.mxu0 %v10042_v26  ;;  %v456_v26 = vld [vmem:[#allocation3 + $0xd8] sm:$0xff]  ;;  %v10857_v41 = vpack.c.bf16 %v469_v24, %v468_v37  ;;  %v1120_v11 = vld [vmem:[#allocation3 + $0x4a] sm:$0xff]  ;;  %v1130_v37 = vld [vmem:[#allocation3 + $0xc2] sm:$0xff] }
  0x46   : > { %9150 = vmatprep.subr.bf16.mxu0 %v10043_v17  ;;  %9117 = vmatmul.mubr.bf16.gmra.mxu1 %v10727_v19  ;;  %v10781_v53 = vpack.c.bf16 %v457_v47, %v456_v26  ;;  %v1118_v33 = vld [vmem:[#allocation3 + $0x32] sm:$0xff]  ;;  %v1123_v26 = vld [vmem:[#allocation3 + $0x6a] sm:$0xff] }
  0x47   : > { %9120 = vmatprep.mubr.bf16.mxu1 %v10737_v59  ;;  %9197 = vmatpush3.bf16.msra.mxu1 %v10050_v27  ;;  %v462_v27 = vld [vmem:[#allocation3 + $0x120] sm:$0xff]  ;;  %v1121_v14 = vld [vmem:[#allocation3 + $0x52] sm:$0xff]  ;;  %v10056_v47 = vld [vmem:[%s12578_s1 + $0x128] sm:$0xff]   ;;  %v10889_v50 = vpack.c.bf16 %v1123_v26, %v1122_v15 }
  0x48   : > { %9198 = vmatprep.subr.bf16.mxu1 %v10051_v38  ;;  %v10886_v48 = vpack.c.bf16 %v1121_v14, %v1120_v11  ;;  %v1126_v29 = vld [vmem:[#allocation3 + $0x92] sm:$0xff]  ;;  %v1128_v58 = vld [vmem:[#allocation3 + $0xaa] sm:$0xff] }
  0x49   : > { %9151 = vmatpush3.bf16.msra.mxu0 %v10043_v17  ;;  %v10791_v17 = vpack.c.bf16 %v326_v62, %v325_v61  ;;  %v10808_v61 = vpack.c.bf16 %v463_v49, %v462_v27  ;;  %v10814_v62 = vpack.c.bf16 %v330_v10, %v329_v8  ;;  %v10831_v8 = vld [vmem:[%s10442_s26 + $0xf0] sm:$0xff]  ;;  %v10834_v10 = vld [vmem:[%s10442_s26 + $0xf8] sm:$0xff]  ;;  %v10062_v24 = vld [vmem:[%s12578_s1 + $0x108] sm:$0xff]  }
  0x4a   : > { %9152 = vmatprep.subr.bf16.mxu0 %v10046_v36  ;;  %v339_v20 = vmax.f32 %v10831_v8, 0.0  ;;  %v340_v22 = vmax.f32 %v10834_v10, 0.0  ;;  %v1127_v27 = vld [vmem:[#allocation3 + $0x9a] sm:$0xff]  ;;  %v10059_v1 = vld [vmem:[%s12578_s1 + $0x110] sm:$0xff]  }
  0x4b   : > { %9199 = vmatpush3.bf16.msra.mxu1 %v10051_v38  ;;  %v1119_v38 = vld [vmem:[#allocation3 + $0x3a] sm:$0xff]  ;;  %v10909_v0 = vpack.c.bf16 %v1127_v27, %v1126_v29  ;;  %v2967_v10 = vld [vmem:[#allocation3 + $0x49] sm:$0xff] }
  0x4c   : > { %9073 = vmatmul.mubr.bf16.gmra.mxu0 %v10747_v39  ;;  %9200 = vmatprep.subr.bf16.mxu1 %v10053_v46  ;;  %436 = vst [vmem:[#allocation3 + $0x181] sm:$0xff] %v339_v20  ;;  %437 = vst [vmem:[#allocation3 + $0x189] sm:$0xff] %v340_v22  ;;  %v10058_v49 = vld [vmem:[%s12578_s1 + $0x118] sm:$0xff]  }
  0x4d   : > { %9076 = vmatprep.mubr.bf16.mxu0 %v10750_v40  ;;  %9153 = vmatpush3.bf16.msra.mxu0 %v10046_v36  ;;  %v1114_v36 = vld [vmem:[#allocation3 + $0x2] sm:$0xff]  ;;  %v10066_v4 = vld [vmem:[%s12578_s1 + $0x158] sm:$0xff]  }
  0x4e   : > { %9154 = vmatprep.subr.bf16.mxu0 %v10049_v42  ;;  %9121 = vmatmul.mubr.bf16.gmra.mxu1 %v10759_v43  ;;  %v1146_v44 = vpack.c.bf16 %v1115_v25, %v1114_v36  ;;  %v1131_v36 = vld [vmem:[#allocation3 + $0xca] sm:$0xff]  ;;  %v10068_v11 = vld [vmem:[%s12578_s1 + $0x1b8] sm:$0xff]  }
  0x4f   : > { %9124 = vmatprep.mubr.bf16.mxu1 %v10769_v28  ;;  %9201 = vmatpush3.bf16.msra.mxu1 %v10053_v46  ;;  %v10871_v46 = vpack.c.bf16 %v1119_v38, %v1118_v33  ;;  %v1132_v33 = vld [vmem:[#allocation3 + $0xda] sm:$0xff]  ;;  %v1134_v38 = vld [vmem:[#allocation3 + $0xf2] sm:$0xff] }
  0x50   : > { %9202 = vmatprep.subr.bf16.mxu1 %v10054_v52  ;;  %v10076_v26 = vld [vmem:[%s12578_s1 + $0x1f8] sm:$0xff]  }
  0x51   : > { %9155 = vmatpush3.bf16.msra.mxu0 %v10049_v42  ;;  %v10868_v42 = vpack.c.bf16 %v1117_v32, %v1116_v31  ;;  %v10065_v31 = vld [vmem:[%s12578_s1 + $0x100] sm:$0xff]   ;;  %v10069_v32 = vld [vmem:[%s12578_s1 + $0x148] sm:$0xff]  }
  0x52   : > { %9236 = vmatprep.subr.bf16.mxu0 %v10775_v51  ;;  %v1143_v29 = vld [vmem:[#allocation3 + $0x15a] sm:$0xff] }
  0x53   : > { %9203 = vmatpush3.bf16.msra.mxu1 %v10054_v52  ;;  %v10063_v52 = vld [vmem:[%s12578_s1 + $0x168] sm:$0xff]  }
  0x54   : > { %9077 = vmatmul.mubr.bf16.gmra.mxu0 %v10781_v53  ;;  %9284 = vmatprep.subr.bf16.mxu1 %v10060_v55 }
  0x55   : > { %9080 = vmatprep.mubr.bf16.mxu0 %v10784_v54 }
  0x56   : > { %9125 = vmatmul.mubr.bf16.gmra.mxu1 %v10791_v17 }
  0x57   : > { %9128 = vmatprep.mubr.bf16.mxu1 %v10798_v45 }
  0x5c   : > { %9081 = vmatmul.mubr.bf16.gmra.mxu0 %v10805_v56 }
  0x5d   : > { %9084 = vmatprep.mubr.bf16.mxu0 %v10808_v61 }
  0x5e   : > { %9129 = vmatmul.mubr.bf16.gmra.mxu1 %v10814_v62 }
  0x5f   : > { %9132 = vmatprep.mubr.bf16.mxu1 %v10821_v3 }
  0x64   : > { %9085 = vmatmul.mubr.bf16.gmra.mxu0 %v10825_v5 }
  0x65   : > { %9088 = vmatprep.mubr.bf16.mxu0 %v10828_v7 }
  0x66   : > { %9133 = vmatmul.mubr.bf16.gmra.mxu1 %v10842_v23 }
  0x67   : > { %9136 = vmatprep.mubr.bf16.mxu1 %v10849_v35 }
  0x6c   : > { %9089 = vmatmul.mubr.bf16.gmra.mxu0 %v10857_v41 }
  0x6d   : > { %9156 = vmatprep.mubr.bf16.mxu0 %v1146_v44  ;;  %v10929_v44 = vpack.c.bf16 %v1131_v36, %v1130_v37  ;;  %v2598_v37 = vld [vmem:[#allocation3 + $0x50] sm:$0xff]  ;;  %v2599_v36 = vld [vmem:[#allocation3 + $0x60] sm:$0xff] }
  0x6e   : > { %9137 = vmatmul.mubr.bf16.gmra.mxu1 %v10864_v30 }
  0x6f   : > { %9204 = vmatprep.mubr.bf16.mxu1 %v10574_v63  ;;  %v10061_v63 = vld [vmem:[%s12578_s1 + $0x170] sm:$0xff]  }
  0x74   : > { %9157 = vmatmul.mubr.bf16.vlgmr.msra.gmra.mxu0 %v10868_v42 }
  0x75   : > { %9237 = vmatpush3.bf16.msra.mxu0 %v10775_v51  ;;  %9160 = vmatprep.mubr.bf16.mxu0 %v10871_v46  ;;  %v10057_v51 = vld [vmem:[%s12578_s1 + $0x120] sm:$0xff]  }
  0x76   : > { %9238 = vmatprep.subr.bf16.mxu0 %v10055_v34  ;;  %9205 = vmatmul.mubr.bf16.vlgmr.msra.gmra.mxu1 %v10588_v2  ;;  %v1125_v2 = vld [vmem:[#allocation3 + $0x82] sm:$0xff] }
  0x77   : > { %9208 = vmatprep.mubr.bf16.mxu1 %v10632_v18  ;;  %9285 = vmatpush3.bf16.msra.mxu1 %v10060_v55  ;;  %v10064_v18 = vld [vmem:[%s12578_s1 + $0x160] sm:$0xff]   ;;  %v10906_v55 = vpack.c.bf16 %v1125_v2, %v1124_v60 }
  0x78   : > { %9286 = vmatprep.subr.bf16.mxu1 %v10061_v63  ;;  %v1140_v60 = vld [vmem:[#allocation3 + $0x13a] sm:$0xff]  ;;  %v1141_v2 = vld [vmem:[#allocation3 + $0x142] sm:$0xff] }
  0x79   : > { %9239 = vmatpush3.bf16.msra.mxu0 %v10055_v34  ;;  %v1135_v34 = vld [vmem:[#allocation3 + $0xfa] sm:$0xff]  ;;  %v10965_v27 = vpack.c.bf16 %v1141_v2, %v1140_v60  ;;  %v2973_v60 = vld [vmem:[#allocation3 + $0x91] sm:$0xff] }
  0x7a   : > { %9240 = vmatprep.subr.bf16.mxu0 %v10056_v47  ;;  %v10949_v15 = vpack.c.bf16 %v1135_v34, %v1134_v38  ;;  %v2602_v38 = vld [vmem:[#allocation3 + $0x80] sm:$0xff] }
  0x7b   : > { %9287 = vmatpush3.bf16.msra.mxu1 %v10061_v63  ;;  %v1137_v63 = vld [vmem:[#allocation3 + $0x112] sm:$0xff] }
  0x7c   : > { %9161 = vmatmul.mubr.bf16.gmra.mxu0 %v10886_v48  ;;  %9288 = vmatprep.subr.bf16.mxu1 %v10063_v52  ;;  %v2974_v2 = vld [vmem:[#allocation3 + $0x99] sm:$0xff] }
  0x7d   : > { %9164 = vmatprep.mubr.bf16.mxu0 %v10889_v50  ;;  %9241 = vmatpush3.bf16.msra.mxu0 %v10056_v47  ;;  %v1136_v47 = vld [vmem:[#allocation3 + $0x10a] sm:$0xff] }
  0x7e   : > { %9242 = vmatprep.subr.bf16.mxu0 %v10057_v51  ;;  %9209 = vmatmul.mubr.bf16.gmra.mxu1 %v10641_v21  ;;  %v1129_v21 = vld [vmem:[#allocation3 + $0xb2] sm:$0xff] }
  0x7f   : > { %9212 = vmatprep.mubr.bf16.mxu1 %v10705_v13  ;;  %9289 = vmatpush3.bf16.msra.mxu1 %v10063_v52  ;;  %v10067_v13 = vld [vmem:[%s12578_s1 + $0x150] sm:$0xff]   ;;  %v10926_v25 = vpack.c.bf16 %v1129_v21, %v1128_v58  ;;  %v2966_v21 = vld [vmem:[#allocation3 + $0x39] sm:$0xff] }
  0x80   : > { %9290 = vmatprep.subr.bf16.mxu1 %v10064_v18 }
  0x81   : > { %9243 = vmatpush3.bf16.msra.mxu0 %v10057_v51  ;;  %v1138_v51 = vld [vmem:[#allocation3 + $0x122] sm:$0xff] }
  0x82   : > { %9244 = vmatprep.subr.bf16.mxu0 %v10058_v49 }
  0x83   : > { %9291 = vmatpush3.bf16.msra.mxu1 %v10064_v18  ;;  %v1142_v18 = vld [vmem:[#allocation3 + $0x152] sm:$0xff] }
  0x84   : > { %9165 = vmatmul.mubr.bf16.gmra.mxu0 %v10906_v55  ;;  %9292 = vmatprep.subr.bf16.mxu1 %v10066_v4 }
  0x85   : > { %9168 = vmatprep.mubr.bf16.mxu0 %v10909_v0  ;;  %9245 = vmatpush3.bf16.msra.mxu0 %v10058_v49  ;;  %v1144_v49 = vld [vmem:[#allocation3 + $0x16a] sm:$0xff] }
  0x86   : > { %9246 = vmatprep.subr.bf16.mxu0 %v10059_v1  ;;  %9213 = vmatmul.mubr.bf16.gmra.mxu1 %v10710_v16  ;;  %v1133_v16 = vld [vmem:[#allocation3 + $0xe2] sm:$0xff] }
  0x87   : > { %9216 = vmatprep.mubr.bf16.mxu1 %v10747_v39  ;;  %9293 = vmatpush3.bf16.msra.mxu1 %v10066_v4  ;;  %v10070_v39 = vld [vmem:[%s12578_s1 + $0x140] sm:$0xff]   ;;  %v10946_v14 = vpack.c.bf16 %v1133_v16, %v1132_v33  ;;  %v1515_v4 = vld [vmem:[#allocation3 + $0x188] sm:$0xff] }
  0x88   : > { %9294 = vmatprep.subr.bf16.mxu1 %v10067_v13 }
  0x89   : > { %9247 = vmatpush3.bf16.msra.mxu0 %v10059_v1  ;;  %v1514_v1 = vld [vmem:[#allocation3 + $0x180] sm:$0xff] }
  0x8a   : > { %9248 = vmatprep.subr.bf16.mxu0 %v10062_v24 }
  0x8b   : > { %9295 = vmatpush3.bf16.msra.mxu1 %v10067_v13 }
  0x8c   : > { %9169 = vmatmul.mubr.bf16.gmra.mxu0 %v10926_v25  ;;  %9296 = vmatprep.subr.bf16.mxu1 %v10069_v32 }
  0x8d   : > { %9172 = vmatprep.mubr.bf16.mxu0 %v10929_v44  ;;  %9249 = vmatpush3.bf16.msra.mxu0 %v10062_v24  ;;  %v2600_v24 = vld [vmem:[#allocation3 + $0x68] sm:$0xff] }
  0x8e   : > { %9250 = vmatprep.subr.bf16.mxu0 %v10065_v31  ;;  %9217 = vmatmul.mubr.bf16.gmra.mxu1 %v10750_v40  ;;  %v1139_v40 = vld [vmem:[#allocation3 + $0x12a] sm:$0xff] }
  0x8f   : > { %9220 = vmatprep.mubr.bf16.mxu1 %v10781_v53  ;;  %9297 = vmatpush3.bf16.msra.mxu1 %v10069_v32  ;;  %v10957_v53 = vpack.c.bf16 %v1137_v63, %v1136_v47  ;;  %v10960_v52 = vpack.c.bf16 %v1139_v40, %v1138_v51  ;;  %v2971_v51 = vld [vmem:[#allocation3 + $0x79] sm:$0xff]  ;;  %v2972_v40 = vld [vmem:[#allocation3 + $0x81] sm:$0xff] }
  0x90   : > { %9298 = vmatprep.subr.bf16.mxu1 %v10070_v39 }
  0x91   : > { %9251 = vmatpush3.bf16.msra.mxu0 %v10065_v31  ;;  %v10087_v31 = vld [vmem:[%s12578_s1 + $0x230] sm:$0xff]  }
  0x92   : > { %9332 = vmatprep.subr.bf16.mxu0 %v10068_v11 }
  0x93   : > { %9299 = vmatpush3.bf16.msra.mxu1 %v10070_v39  ;;  %v2601_v39 = vld [vmem:[#allocation3 + $0x78] sm:$0xff] }
  0x94   : > { %9173 = vmatmul.mubr.bf16.gmra.mxu0 %v10946_v14  ;;  %9380 = vmatprep.subr.bf16.mxu1 %v10076_v26  ;;  %v2630_v63 = vpack.c.bf16 %v2602_v38, %v2601_v39 }
  0x95   : > { %9176 = vmatprep.mubr.bf16.mxu0 %v10949_v15 }
  0x96   : > { %9221 = vmatmul.mubr.bf16.gmra.mxu1 %v10784_v54  ;;  %v10968_v54 = vpack.c.bf16 %v1143_v29, %v1142_v18  ;;  %v10089_v29 = vld [vmem:[%s12578_s1 + $0x220] sm:$0xff]  }
  0x97   : > { %9224 = vmatprep.mubr.bf16.mxu1 %v10805_v56  ;;  %v1145_v56 = vld [vmem:[#allocation3 + $0x172] sm:$0xff] }
  0x98   : > { %v10973_v58 = vpack.c.bf16 %v1145_v56, %v1144_v49 }
  0x9c   : > { %9177 = vmatmul.mubr.bf16.gmra.mxu0 %v10957_v53 }
  0x9d   : > { %9180 = vmatprep.mubr.bf16.mxu0 %v10960_v52 }
  0x9e   : > { %9225 = vmatmul.mubr.bf16.gmra.mxu1 %v10808_v61  ;;  %v10976_v61 = vpack.c.bf16 %v1515_v4, %v1514_v1  ;;  %v3001_v1 = vpack.c.bf16 %v2974_v2, %v2973_v60 }
  0x9f   : > { %9228 = vmatprep.mubr.bf16.mxu1 %v10825_v5  ;;  %v10071_v5 = vld [vmem:[%s12578_s1 + $0x1b0] sm:$0xff]  }
  0xa4   : > { %9181 = vmatmul.mubr.bf16.gmra.mxu0 %v10965_v27 }
  0xa5   : > { %9184 = vmatprep.mubr.bf16.mxu0 %v10968_v54 }
  0xa6   : > { %9229 = vmatmul.mubr.bf16.gmra.mxu1 %v10828_v7  ;;  %v10077_v7 = vld [vmem:[%s12578_s1 + $0x1f0] sm:$0xff]  }
  0xa7   : > { %9232 = vmatprep.mubr.bf16.mxu1 %v10857_v41  ;;  %v10072_v41 = vld [vmem:[%s12578_s1 + $0x1a8] sm:$0xff]  }
  0xac   : > { %9185 = vmatmul.mubr.bf16.gmra.mxu0 %v10973_v58 }
  0xad   : > { %9252 = vmatprep.mubr.bf16.mxu0 %v10606_v9  ;;  %v10073_v9 = vld [vmem:[%s12578_s1 + $0x1a0] sm:$0xff]  }
  0xae   : > { %9233 = vmatmul.mubr.bf16.gmra.mxu1 %v10976_v61 }
  0xaf   : > { %9300 = vmatprep.mubr.bf16.mxu1 %v10868_v42  ;;  %v10074_v42 = vld [vmem:[%s12578_s1 + $0x198] sm:$0xff]  }
  0xb4   : > { %9253 = vmatmul.mubr.bf16.vlgmr.msra.gmra.mxu0 %v10618_v12  ;;  %v10079_v12 = vld [vmem:[%s12578_s1 + $0x1e8] sm:$0xff]  }
  0xb5   : > { %9333 = vmatpush3.bf16.msra.mxu0 %v10068_v11  ;;  %9256 = vmatprep.mubr.bf16.mxu0 %v10663_v57  ;;  %v10080_v57 = vld [vmem:[%s12578_s1 + $0x1e0] sm:$0xff]   ;;  %v2603_v11 = vld [vmem:[#allocation3 + $0x90] sm:$0xff] }
  0xb6   : > { %9334 = vmatprep.subr.bf16.mxu0 %v10071_v5  ;;  %9301 = vmatmul.mubr.bf16.vlgmr.msra.gmra.mxu1 %v10871_v46  ;;  %v10082_v46 = vld [vmem:[%s12578_s1 + $0x1d8] sm:$0xff]  }
  0xb7   : > { %9304 = vmatprep.mubr.bf16.mxu1 %v10886_v48  ;;  %9381 = vmatpush3.bf16.msra.mxu1 %v10076_v26  ;;  %v10078_v48 = vld [vmem:[%s12578_s1 + $0x188] sm:$0xff]  }
  0xb8   : > { %9382 = vmatprep.subr.bf16.mxu1 %v10077_v7 }
  0xb9   : > { %9335 = vmatpush3.bf16.msra.mxu0 %v10071_v5  ;;  %v2605_v5 = vld [vmem:[#allocation3 + $0xa8] sm:$0xff] }
  0xba   : > { %9336 = vmatprep.subr.bf16.mxu0 %v10072_v41 }
  0xbb   : > { %9383 = vmatpush3.bf16.msra.mxu1 %v10077_v7  ;;  %v2606_v7 = vld [vmem:[#allocation3 + $0xb0] sm:$0xff] }
  0xbc   : > { %9257 = vmatmul.mubr.bf16.gmra.mxu0 %v10672_v6  ;;  %9384 = vmatprep.subr.bf16.mxu1 %v10079_v12  ;;  %v10075_v6 = vld [vmem:[%s12578_s1 + $0x190] sm:$0xff]  }
  0xbd   : > { %9260 = vmatprep.mubr.bf16.mxu0 %v10727_v19  ;;  %9337 = vmatpush3.bf16.msra.mxu0 %v10072_v41  ;;  %v10083_v19 = vld [vmem:[%s12578_s1 + $0x1d0] sm:$0xff]   ;;  %v2607_v41 = vld [vmem:[#allocation3 + $0xc0] sm:$0xff] }
  0xbe   : > { %9338 = vmatprep.subr.bf16.mxu0 %v10073_v9  ;;  %9305 = vmatmul.mubr.bf16.gmra.mxu1 %v10889_v50  ;;  %v10085_v50 = vld [vmem:[%s12578_s1 + $0x1c8] sm:$0xff]  }
  0xbf   : > { %9308 = vmatprep.mubr.bf16.mxu1 %v10906_v55  ;;  %9385 = vmatpush3.bf16.msra.mxu1 %v10079_v12  ;;  %v10084_v55 = vld [vmem:[%s12578_s1 + $0x238] sm:$0xff]  }
  0xc0   : > { %9386 = vmatprep.subr.bf16.mxu1 %v10080_v57 }
  0xc1   : > { %9339 = vmatpush3.bf16.msra.mxu0 %v10073_v9 }
  0xc2   : > { %9340 = vmatprep.subr.bf16.mxu0 %v10074_v42 }
  0xc3   : > { %9387 = vmatpush3.bf16.msra.mxu1 %v10080_v57  ;;  %v2608_v57 = vld [vmem:[#allocation3 + $0xc8] sm:$0xff] }
  0xc4   : > { %9261 = vmatmul.mubr.bf16.gmra.mxu0 %v10737_v59  ;;  %9388 = vmatprep.subr.bf16.mxu1 %v10082_v46  ;;  %v10081_v59 = vld [vmem:[%s12578_s1 + $0x180] sm:$0xff]  }
  0xc5   : > { %9264 = vmatprep.mubr.bf16.mxu0 %v10759_v43  ;;  %9341 = vmatpush3.bf16.msra.mxu0 %v10074_v42  ;;  %v10086_v43 = vld [vmem:[%s12578_s1 + $0x1c0] sm:$0xff]   ;;  %v10090_v42 = vld [vmem:[%s12578_s1 + $0x218] sm:$0xff]  }
  0xc6   : > { %9342 = vmatprep.subr.bf16.mxu0 %v10075_v6  ;;  %9309 = vmatmul.mubr.bf16.gmra.mxu1 %v10909_v0  ;;  %v2965_v0 = vld [vmem:[#allocation3 + $0x31] sm:$0xff] }
  0xc7   : > { %9312 = vmatprep.mubr.bf16.mxu1 %v10926_v25  ;;  %9389 = vmatpush3.bf16.msra.mxu1 %v10082_v46  ;;  %v2969_v25 = vld [vmem:[#allocation3 + $0x61] sm:$0xff] }
  0xc8   : > { %9390 = vmatprep.subr.bf16.mxu1 %v10083_v19 }
  0xc9   : > { %9343 = vmatpush3.bf16.msra.mxu0 %v10075_v6 }
  0xca   : > { %9344 = vmatprep.subr.bf16.mxu0 %v10078_v48 }
  0xcb   : > { %9391 = vmatpush3.bf16.msra.mxu1 %v10083_v19 }
  0xcc   : > { %9265 = vmatmul.mubr.bf16.gmra.mxu0 %v10769_v28  ;;  %9392 = vmatprep.subr.bf16.mxu1 %v10085_v50  ;;  %v2595_v28 = vld [vmem:[#allocation3 + $0x30] sm:$0xff] }
  0xcd   : > { %9268 = vmatprep.mubr.bf16.mxu0 %v10791_v17  ;;  %9345 = vmatpush3.bf16.msra.mxu0 %v10078_v48  ;;  %v2596_v17 = vld [vmem:[#allocation3 + $0x38] sm:$0xff] }
  0xce   : > { %9346 = vmatprep.subr.bf16.mxu0 %v10081_v59  ;;  %9313 = vmatmul.mubr.bf16.gmra.mxu1 %v10929_v44  ;;  %v2970_v44 = vld [vmem:[#allocation3 + $0x69] sm:$0xff] }
  0xcf   : > { %9316 = vmatprep.mubr.bf16.mxu1 %v10946_v14  ;;  %9393 = vmatpush3.bf16.msra.mxu1 %v10085_v50  ;;  %v2999_v16 = vpack.c.bf16 %v2970_v44, %v2969_v25  ;;  %v2604_v14 = vld [vmem:[#allocation3 + $0x98] sm:$0xff]  ;;  %v2975_v50 = vld [vmem:[#allocation3 + $0xa9] sm:$0xff] }
  0xd0   : > { %9394 = vmatprep.subr.bf16.mxu1 %v10086_v43 }
  0xd1   : > { %9347 = vmatpush3.bf16.msra.mxu0 %v10081_v59  ;;  %v2632_v59 = vpack.c.bf16 %v2606_v7, %v2605_v5  ;;  %v2615_v7 = vld [vmem:[#allocation3 + $0x120] sm:$0xff] }
  0xd2   : > { %9428 = vmatprep.subr.bf16.mxu0 %v10084_v55 }
  0xd3   : > { %9395 = vmatpush3.bf16.msra.mxu1 %v10086_v43  ;;  %v2976_v43 = vld [vmem:[#allocation3 + $0xb1] sm:$0xff] }
  0xd4   : > { %9269 = vmatmul.mubr.bf16.gmra.mxu0 %v10798_v45  ;;  %v1901_v45 = vpack.c.bf16 %v340_v22, %v339_v20  ;;  %v2968_v20 = vld [vmem:[#allocation3 + $0x51] sm:$0xff]  ;;  %v2629_v22 = vpack.c.bf16 %v2600_v24, %v2599_v36 }
  0xd5   : > { %9272 = vmatprep.mubr.bf16.mxu0 %v10814_v62  ;;  %v2254_v62 = vld [vmem:[#allocation3 + $0x182] sm:$0xff]  ;;  %v2998_v32 = vpack.c.bf16 %v2968_v20, %v2967_v10  ;;  %v2609_v10 = vld [vmem:[#allocation3 + $0xd8] sm:$0xff] }
  0xd6   : > { %9317 = vmatmul.mubr.bf16.gmra.mxu1 %v10949_v15  ;;  %v10088_v15 = vld [vmem:[%s12578_s1 + $0x228] sm:$0xff]   ;;  %v2610_v20 = vld [vmem:[#allocation3 + $0xe0] sm:$0xff] }
  0xd7   : > { %9320 = vmatprep.mubr.bf16.mxu1 %v10957_v53 }
  0xdc   : > { %9273 = vmatmul.mubr.bf16.gmra.mxu0 %v10821_v3  ;;  %v2255_v3 = vld [vmem:[#allocation3 + $0x18a] sm:$0xff] }
  0xdd   : > { %9276 = vmatprep.mubr.bf16.mxu0 %v10842_v23  ;;  %v2627_v23 = vpack.c.bf16 %v2596_v17, %v2595_v28  ;;  %v2271_v13 = vpack.c.bf16 %v2255_v3, %v2254_v62  ;;  %v2633_v17 = vpack.c.bf16 %v2608_v57, %v2607_v41  ;;  %v2978_v62 = vld [vmem:[#allocation3 + $0xc9] sm:$0xff] }
  0xde   : > { %9321 = vmatmul.mubr.bf16.gmra.mxu1 %v10960_v52  ;;  %v2631_v52 = vpack.c.bf16 %v2604_v14, %v2603_v11  ;;  %v2979_v11 = vld [vmem:[#allocation3 + $0xd9] sm:$0xff]  ;;  %v2980_v14 = vld [vmem:[#allocation3 + $0xe1] sm:$0xff] }
  0xdf   : > { %9324 = vmatprep.mubr.bf16.mxu1 %v10965_v27  ;;  %v2616_v41 = vld [vmem:[#allocation3 + $0x128] sm:$0xff] }
  0xe4   : > { %9277 = vmatmul.mubr.bf16.gmra.mxu0 %v10849_v35  ;;  %v2997_v35 = vpack.c.bf16 %v2966_v21, %v2965_v0  ;;  %v10091_v0 = vld [vmem:[%s12578_s1 + $0x210] sm:$0xff]  }
  0xe5   : > { %9280 = vmatprep.mubr.bf16.mxu0 %v10864_v30  ;;  %v2597_v30 = vld [vmem:[#allocation3 + $0x48] sm:$0xff] }
  0xe6   : > { %9325 = vmatmul.mubr.bf16.gmra.mxu1 %v10968_v54  ;;  %v2628_v8 = vpack.c.bf16 %v2598_v37, %v2597_v30  ;;  %v3000_v54 = vpack.c.bf16 %v2972_v40, %v2971_v51  ;;  %v2982_v51 = vld [vmem:[#allocation3 + $0xf9] sm:$0xff] }
  0xe7   : > { %9328 = vmatprep.mubr.bf16.mxu1 %v10973_v58 }
  0xec   : > { %9281 = vmatmul.mubr.bf16.gmra.mxu0 %v1901_v45  ;;  %v2977_v45 = vld [vmem:[#allocation3 + $0xc1] sm:$0xff] }
  0xed   : > { %9348 = vmatprep.mubr.bf16.mxu0 %v2627_v23  ;;  %v3003_v36 = vpack.c.bf16 %v2978_v62, %v2977_v45 }
  0xee   : > { %9329 = vmatmul.mubr.bf16.gmra.mxu1 %v2271_v13 }
  0xef   : > { %9396 = vmatprep.mubr.bf16.mxu1 %v2997_v35  ;;  %v3002_v35 = vpack.c.bf16 %v2976_v43, %v2975_v50  ;;  %v2637_v50 = vpack.c.bf16 %v2616_v41, %v2615_v7  ;;  %v2985_v43 = vld [vmem:[#allocation3 + $0x121] sm:$0xff] }
  0xf4   : > { %v9062_v33 = vpop.f32.mrf.mxu0  ;;  %9349 = vmatmul.mubr.bf16.vlgmr.msra.gmra.mxu0 %v2628_v8 }
  0xf5   : > { %714 = vst.msk [vmem:[#allocation4 + $0x10] sm:$0xff] %vm711_vm0, %v9062_v33  ;;  %9429 = vmatpush3.bf16.msra.mxu0 %v10084_v55  ;;  %9352 = vmatprep.mubr.bf16.mxu0 %v2629_v22  ;;  %v2611_v22 = vld [vmem:[#allocation3 + $0xf0] sm:$0xff] }
  0xf6   : > { %v584_v34 = vpop.f32.mrf.mxu0  ;;  %9430 = vmatprep.subr.bf16.mxu0 %v10087_v31  ;;  %v9110_v26 = vpop.f32.mrf.mxu1  ;;  %9397 = vmatmul.mubr.bf16.vlgmr.msra.gmra.mxu1 %v2998_v32  ;;  %v10092_v32 = vld [vmem:[%s12578_s1 + $0x208] sm:$0xff]  }
  0xf7   : > { %712 = vst.msk [vmem:[#allocation4] sm:$0xff] %vm711_vm0, %v584_v34  ;;  %9400 = vmatprep.mubr.bf16.mxu1 %v2999_v16  ;;  %v2634_v34 = vpack.c.bf16 %v2610_v20, %v2609_v10  ;;  %v2620_v10 = vld [vmem:[#allocation3 + $0x158] sm:$0xff] }
  0xf8   : > { %v9063_v47 = vpop.f32.mrf.mxu0  ;;  %v891_v53 = vpop.f32.mrf.mxu1 }
  0xf9   : > { %715 = vst.msk [vmem:[#allocation4 + $0x18] sm:$0xff] %vm711_vm0, %v9063_v47  ;;  %9431 = vmatpush3.bf16.msra.mxu0 %v10087_v31  ;;  %v2612_v31 = vld [vmem:[#allocation3 + $0xf8] sm:$0xff] }
  0xfa   : > { %v587_v18 = vpop.f32.mrf.mxu0  ;;  %9432 = vmatprep.subr.bf16.mxu0 %v10088_v15  ;;  %v9111_v27 = vpop.f32.mrf.mxu1  ;;  %v2635_v47 = vpack.c.bf16 %v2612_v31, %v2611_v22 }
  0xfb   : > { %713 = vst.msk [vmem:[#allocation4 + $0x8] sm:$0xff] %vm711_vm0, %v587_v18  ;;  %v3004_v18 = vpack.c.bf16 %v2980_v14, %v2979_v11  ;;  %v2990_v11 = vld [vmem:[#allocation3 + $0x159] sm:$0xff] }
  0xfc   : > { %v9066_v49 = vpop.f32.mrf.mxu0  ;;  %v1020_v56 = vld [vmem:[#allocation4 + $0x10] sm:$0xff]  ;;  %9353 = vmatmul.mubr.bf16.gmra.mxu0 %v2630_v63  ;;  %v894_v58 = vpop.f32.mrf.mxu1  ;;  %v2981_v63 = vld [vmem:[#allocation3 + $0xf1] sm:$0xff] }
  0xfd   : > { %718 = vst.msk [vmem:[#allocation4 + $0x30] sm:$0xff] %vm711_vm0, %v9066_v49  ;;  %v1052_v4 = vadd.f32 %v9110_v26, %v1020_v56  ;;  %9356 = vmatprep.mubr.bf16.mxu0 %v2631_v52  ;;  %9433 = vmatpush3.bf16.msra.mxu0 %v10088_v15  ;;  %v10093_v52 = vld [vmem:[%s12578_s1 + $0x200] sm:$0xff]  }
  0xfe   : > { %v600_v9 = vpop.f32.mrf.mxu0  ;;  %v1018_v12 = vld [vmem:[#allocation4] sm:$0xff]  ;;  %9434 = vmatprep.subr.bf16.mxu0 %v10089_v29  ;;  %v9114_v46 = vpop.f32.mrf.mxu1  ;;  %9401 = vmatmul.mubr.bf16.gmra.mxu1 %v3000_v54  ;;  %v3005_v54 = vpack.c.bf16 %v2982_v51, %v2981_v63 }
  0xff   : > { %1084 = vst.msk [vmem:[#allocation4 + $0x10] sm:$0xff] %vm711_vm0, %v1052_v4  ;;  %716 = vst.msk [vmem:[#allocation4 + $0x20] sm:$0xff] %vm711_vm0, %v600_v9  ;;  %v1050_v6 = vadd.f32 %v1018_v12, %v891_v53  ;;  %9404 = vmatprep.mubr.bf16.mxu1 %v3001_v1  ;;  %v2613_v1 = vld [vmem:[#allocation3 + $0x108] sm:$0xff]  ;;  %v2614_v4 = vld [vmem:[#allocation3 + $0x110] sm:$0xff] }
 0x100   : > { %v9067_v19 = vpop.f32.mrf.mxu0  ;;  %v1021_v48 = vld [vmem:[#allocation4 + $0x18] sm:$0xff]  ;;  %v907_v28 = vpop.f32.mrf.mxu1 }
 0x101   : > { %1082 = vst.msk [vmem:[#allocation4] sm:$0xff] %vm711_vm0, %v1050_v6  ;;  %719 = vst.msk [vmem:[#allocation4 + $0x38] sm:$0xff] %vm711_vm0, %v9067_v19  ;;  %v1053_v55 = vadd.f32 %v9111_v27, %v1021_v48  ;;  %9435 = vmatpush3.bf16.msra.mxu0 %v10089_v29  ;;  %v2636_v6 = vpack.c.bf16 %v2614_v4, %v2613_v1  ;;  %v2984_v19 = vld [vmem:[#allocation3 + $0x111] sm:$0xff] }
 0x102   : > { %v603_v3 = vpop.f32.mrf.mxu0  ;;  %v1019_v23 = vld [vmem:[#allocation4 + $0x8] sm:$0xff]  ;;  %9436 = vmatprep.subr.bf16.mxu0 %v10090_v42  ;;  %v9115_v13 = vpop.f32.mrf.mxu1 }
 0x103   : > { %1085 = vst.msk [vmem:[#allocation4 + $0x18] sm:$0xff] %vm711_vm0, %v1053_v55  ;;  %717 = vst.msk [vmem:[#allocation4 + $0x28] sm:$0xff] %vm711_vm0, %v603_v3  ;;  %v1051_v21 = vadd.f32 %v1019_v23, %v894_v58  ;;  %v2986_v55 = vld [vmem:[#allocation3 + $0x129] sm:$0xff] }
 0x104   : > { %v9070_v30 = vpop.f32.mrf.mxu0  ;;  %v1024_v37 = vld [vmem:[#allocation4 + $0x30] sm:$0xff]  ;;  %9357 = vmatmul.mubr.bf16.gmra.mxu0 %v2632_v59  ;;  %v910_v8 = vpop.f32.mrf.mxu1 }
 0x105   : > { %1083 = vst.msk [vmem:[#allocation4 + $0x8] sm:$0xff] %vm711_vm0, %v1051_v21  ;;  %722 = vst.msk [vmem:[#allocation4 + $0x50] sm:$0xff] %vm711_vm0, %v9070_v30  ;;  %v1056_v24 = vadd.f32 %v9114_v46, %v1024_v37  ;;  %9360 = vmatprep.mubr.bf16.mxu0 %v2633_v17  ;;  %9437 = vmatpush3.bf16.msra.mxu0 %v10090_v42  ;;  %v2983_v46 = vld [vmem:[#allocation3 + $0x109] sm:$0xff]  ;;  %v3007_v21 = vpack.c.bf16 %v2986_v55, %v2985_v43  ;;  %v2617_v30 = vld [vmem:[#allocation3 + $0x138] sm:$0xff] }
 0x106   : > { %v616_v25 = vpop.f32.mrf.mxu0  ;;  %v1022_v44 = vld [vmem:[#allocation4 + $0x20] sm:$0xff]  ;;  %9438 = vmatprep.subr.bf16.mxu0 %v10091_v0  ;;  %v9118_v16 = vpop.f32.mrf.mxu1  ;;  %9405 = vmatmul.mubr.bf16.gmra.mxu1 %v3002_v35  ;;  %v3006_v3 = vpack.c.bf16 %v2984_v19, %v2983_v46  ;;  %v2618_v37 = vld [vmem:[#allocation3 + $0x140] sm:$0xff] }
 0x107   : > { %1088 = vst.msk [vmem:[#allocation4 + $0x30] sm:$0xff] %vm711_vm0, %v1056_v24  ;;  %720 = vst.msk [vmem:[#allocation4 + $0x40] sm:$0xff] %vm711_vm0, %v616_v25  ;;  %v1054_v33 = vadd.f32 %v1022_v44, %v907_v28  ;;  %9408 = vmatprep.mubr.bf16.mxu1 %v3003_v36  ;;  %v2638_v31 = vpack.c.bf16 %v2618_v37, %v2617_v30  ;;  %v2995_v37 = vld [vmem:[#allocation3 + $0x199] sm:$0xff] }
 0x108   : > { %v9071_v39 = vpop.f32.mrf.mxu0  ;;  %v1025_v38 = vld [vmem:[#allocation4 + $0x38] sm:$0xff]  ;;  %v923_v26 = vpop.f32.mrf.mxu1 }
 0x109   : > { %1086 = vst.msk [vmem:[#allocation4 + $0x20] sm:$0xff] %vm711_vm0, %v1054_v33  ;;  %723 = vst.msk [vmem:[#allocation4 + $0x58] sm:$0xff] %vm711_vm0, %v9071_v39  ;;  %v1057_v15 = vadd.f32 %v9115_v13, %v1025_v38  ;;  %9439 = vmatpush3.bf16.msra.mxu0 %v10091_v0  ;;  %v2988_v33 = vld [vmem:[#allocation3 + $0x141] sm:$0xff] }
 0x10a   : > { %v619_v40 = vpop.f32.mrf.mxu0  ;;  %v1023_v53 = vld [vmem:[#allocation4 + $0x28] sm:$0xff]  ;;  %9440 = vmatprep.subr.bf16.mxu0 %v10092_v32  ;;  %v9119_v2 = vpop.f32.mrf.mxu1 }
 0x10b   : > { %1089 = vst.msk [vmem:[#allocation4 + $0x38] sm:$0xff] %vm711_vm0, %v1057_v15  ;;  %721 = vst.msk [vmem:[#allocation4 + $0x48] sm:$0xff] %vm711_vm0, %v619_v40  ;;  %v1055_v60 = vadd.f32 %v1023_v53, %v910_v8  ;;  %v2619_v8 = vld [vmem:[#allocation3 + $0x150] sm:$0xff] }
 0x10c   : > { %v9074_v29 = vpop.f32.mrf.mxu0  ;;  %v1028_v27 = vld [vmem:[#allocation4 + $0x50] sm:$0xff]  ;;  %9361 = vmatmul.mubr.bf16.gmra.mxu0 %v2634_v34  ;;  %v926_v56 = vpop.f32.mrf.mxu1  ;;  %v2639_v38 = vpack.c.bf16 %v2620_v10, %v2619_v8  ;;  %v2989_v34 = vld [vmem:[#allocation3 + $0x151] sm:$0xff] }
 0x10d   : > { %1087 = vst.msk [vmem:[#allocation4 + $0x28] sm:$0xff] %vm711_vm0, %v1055_v60  ;;  %726 = vst.msk [vmem:[#allocation4 + $0x70] sm:$0xff] %vm711_vm0, %v9074_v29  ;;  %v1060_v49 = vadd.f32 %v9118_v16, %v1028_v27  ;;  %9364 = vmatprep.mubr.bf16.mxu0 %v2635_v47  ;;  %9441 = vmatpush3.bf16.msra.mxu0 %v10092_v32  ;;  %v2987_v32 = vld [vmem:[#allocation3 + $0x139] sm:$0xff]  ;;  %v3009_v53 = vpack.c.bf16 %v2990_v11, %v2989_v34 }
 0x10e   : > { %v632_v58 = vpop.f32.mrf.mxu0  ;;  %v1026_v5 = vld [vmem:[#allocation4 + $0x40] sm:$0xff]  ;;  %9442 = vmatprep.subr.bf16.mxu0 %v10093_v52  ;;  %v9122_v12 = vpop.f32.mrf.mxu1  ;;  %9409 = vmatmul.mubr.bf16.gmra.mxu1 %v3004_v18  ;;  %v3008_v63 = vpack.c.bf16 %v2988_v33, %v2987_v32 }
 0x10f   : > { %1092 = vst.msk [vmem:[#allocation4 + $0x50] sm:$0xff] %vm711_vm0, %v1060_v49  ;;  %724 = vst.msk [vmem:[#allocation4 + $0x60] sm:$0xff] %vm711_vm0, %v632_v58  ;;  %v1058_v9 = vadd.f32 %v1026_v5, %v923_v26  ;;  %9412 = vmatprep.mubr.bf16.mxu1 %v3005_v54  ;;  %v2622_v18 = vld [vmem:[#allocation3 + $0x170] sm:$0xff] }
 0x110   : > { %v9075_v57 = vpop.f32.mrf.mxu0  ;;  %v1029_v42 = vld [vmem:[#allocation4 + $0x58] sm:$0xff]  ;;  %v939_v59 = vpop.f32.mrf.mxu1  ;;  %v2992_v5 = vld [vmem:[#allocation3 + $0x171] sm:$0xff] }
 0x111   : > { %1090 = vst.msk [vmem:[#allocation4 + $0x40] sm:$0xff] %vm711_vm0, %v1058_v9  ;;  %727 = vst.msk [vmem:[#allocation4 + $0x78] sm:$0xff] %vm711_vm0, %v9075_v57  ;;  %v1061_v48 = vadd.f32 %v9119_v2, %v1029_v42  ;;  %9443 = vmatpush3.bf16.msra.mxu0 %v10093_v52  ;;  %v2621_v2 = vld [vmem:[#allocation3 + $0x168] sm:$0xff] }
 0x112   : > { %v635_v28 = vpop.f32.mrf.mxu0  ;;  %v1027_v17 = vld [vmem:[#allocation4 + $0x48] sm:$0xff]  ;;  %v9123_v62 = vpop.f32.mrf.mxu1  ;;  %v2640_v4 = vpack.c.bf16 %v2622_v18, %v2621_v2  ;;  %v2991_v58 = vld [vmem:[#allocation3 + $0x169] sm:$0xff]  ;;  %v2993_v9 = vld [vmem:[#allocation3 + $0x181] sm:$0xff] }
 0x113   : > { %1093 = vst.msk [vmem:[#allocation4 + $0x58] sm:$0xff] %vm711_vm0, %v1061_v48  ;;  %725 = vst.msk [vmem:[#allocation4 + $0x68] sm:$0xff] %vm711_vm0, %v635_v28  ;;  %v1059_v45 = vadd.f32 %v1027_v17, %v926_v56  ;;  %v3010_v19 = vpack.c.bf16 %v2992_v5, %v2991_v58  ;;  %v2625_v28 = vld [vmem:[#allocation3 + $0x198] sm:$0xff] }
 0x114   : > { %v9078_v23 = vpop.f32.mrf.mxu0  ;;  %v1032_v0 = vld [vmem:[#allocation4 + $0x70] sm:$0xff]  ;;  %9365 = vmatmul.mubr.bf16.gmra.mxu0 %v2636_v6  ;;  %v942_v35 = vpop.f32.mrf.mxu1 }
 0x115   : > { %1091 = vst.msk [vmem:[#allocation4 + $0x48] sm:$0xff] %vm711_vm0, %v1059_v45  ;;  %730 = vst.msk [vmem:[#allocation4 + $0x90] sm:$0xff] %vm711_vm0, %v9078_v23  ;;  %v1064_v13 = vadd.f32 %v9122_v12, %v1032_v0  ;;  %9368 = vmatprep.mubr.bf16.mxu0 %v2637_v50  ;;  %v2994_v12 = vld [vmem:[#allocation3 + $0x189] sm:$0xff]  ;;  %v3341_v5 = vld [vmem:[#allocation3 + $0x7a] sm:$0xff] }
 0x116   : > { %v648_v36 = vpop.f32.mrf.mxu0  ;;  %v1030_v24 = vld [vmem:[#allocation4 + $0x60] sm:$0xff]  ;;  %v9126_v22 = vpop.f32.mrf.mxu1  ;;  %9413 = vmatmul.mubr.bf16.gmra.mxu1 %v3006_v3  ;;  %v3011_v50 = vpack.c.bf16 %v2994_v12, %v2993_v9  ;;  %v3336_v3 = vld [vmem:[#allocation3 + $0x3a] sm:$0xff] }
 0x117   : > { %1096 = vst.msk [vmem:[#allocation4 + $0x70] sm:$0xff] %vm711_vm0, %v1064_v13  ;;  %728 = vst.msk [vmem:[#allocation4 + $0x80] sm:$0xff] %vm711_vm0, %v648_v36  ;;  %v1062_v20 = vadd.f32 %v1030_v24, %v939_v59  ;;  %9416 = vmatprep.mubr.bf16.mxu1 %v3007_v21  ;;  %v2996_v36 = vld [vmem:[#allocation3 + $0x1a1] sm:$0xff] }
 0x118   : > { %v9079_v25 = vpop.f32.mrf.mxu0  ;;  %v1033_v44 = vld [vmem:[#allocation4 + $0x78] sm:$0xff]  ;;  %v955_v39 = vpop.f32.mrf.mxu1 }
 0x119   : > { %1094 = vst.msk [vmem:[#allocation4 + $0x60] sm:$0xff] %vm711_vm0, %v1062_v20  ;;  %731 = vst.msk [vmem:[#allocation4 + $0x98] sm:$0xff] %vm711_vm0, %v9079_v25  ;;  %v1065_v16 = vadd.f32 %v9123_v62, %v1033_v44  ;;  %v3335_v62 = vld [vmem:[#allocation3 + $0x32] sm:$0xff]  ;;  %v3012_v44 = vpack.c.bf16 %v2996_v36, %v2995_v37 }
 0x11a   : > { %v651_v14 = vpop.f32.mrf.mxu0  ;;  %v1031_v15 = vld [vmem:[#allocation4 + $0x68] sm:$0xff]  ;;  %v9127_v47 = vpop.f32.mrf.mxu1  ;;  %v3367_v8 = vpack.c.bf16 %v3336_v3, %v3335_v62 }
 0x11b   : > { %1097 = vst.msk [vmem:[#allocation4 + $0x78] sm:$0xff] %vm711_vm0, %v1065_v16  ;;  %729 = vst.msk [vmem:[#allocation4 + $0x88] sm:$0xff] %vm711_vm0, %v651_v14  ;;  %v1063_v26 = vadd.f32 %v1031_v15, %v942_v35  ;;  %v10170_v35 = vld [vmem:[#allocation3 + $0x8] sm:$0xff] }
 0x11c   : > { %v9082_v51 = vpop.f32.mrf.mxu0  ;;  %v1036_v40 = vld [vmem:[#allocation4 + $0x90] sm:$0xff]  ;;  %9369 = vmatmul.mubr.bf16.gmra.mxu0 %v2638_v31  ;;  %v958_v60 = vpop.f32.mrf.mxu1  ;;  %v2642_v30 = vpack.c.bf16 %v10170_v35, %v2625_v28  ;;  %v3340_v15 = vld [vmem:[#allocation3 + $0x6a] sm:$0xff] }
 0x11d   : > { %1095 = vst.msk [vmem:[#allocation4 + $0x68] sm:$0xff] %vm711_vm0, %v1063_v26  ;;  %734 = vst.msk [vmem:[#allocation4 + $0xb0] sm:$0xff] %vm711_vm0, %v9082_v51  ;;  %v1068_v52 = vadd.f32 %v9126_v22, %v1036_v40  ;;  %9372 = vmatprep.mubr.bf16.mxu0 %v2639_v38  ;;  %v3338_v38 = vld [vmem:[#allocation3 + $0x52] sm:$0xff]  ;;  %v3339_v14 = vld [vmem:[#allocation3 + $0x62] sm:$0xff] }
 0x11e   : > { %v664_v29 = vpop.f32.mrf.mxu0  ;;  %v1034_v27 = vld [vmem:[#allocation4 + $0x80] sm:$0xff]  ;;  %v9130_v49 = vpop.f32.mrf.mxu1  ;;  %9417 = vmatmul.mubr.bf16.gmra.mxu1 %v3008_v63 }
 0x11f   : > { %1100 = vst.msk [vmem:[#allocation4 + $0x90] sm:$0xff] %vm711_vm0, %v1068_v52  ;;  %732 = vst.msk [vmem:[#allocation4 + $0xa0] sm:$0xff] %vm711_vm0, %v664_v29  ;;  %v1066_v54 = vadd.f32 %v1034_v27, %v955_v39  ;;  %9420 = vmatprep.mubr.bf16.mxu1 %v3009_v53  ;;  %v3337_v39 = vld [vmem:[#allocation3 + $0x4a] sm:$0xff] }
 0x120   : > { %v9083_v56 = vpop.f32.mrf.mxu0  ;;  %v1037_v1 = vld [vmem:[#allocation4 + $0x98] sm:$0xff]  ;;  %v971_v41 = vpop.f32.mrf.mxu1  ;;  %v3368_v40 = vpack.c.bf16 %v3338_v38, %v3337_v39 }
 0x121   : > { %1098 = vst.msk [vmem:[#allocation4 + $0x80] sm:$0xff] %vm711_vm0, %v1066_v54  ;;  %735 = vst.msk [vmem:[#allocation4 + $0xb8] sm:$0xff] %vm711_vm0, %v9083_v56  ;;  %v1069_v7 = vadd.f32 %v9127_v47, %v1037_v1  ;;  %v1390_v56 = vld [vmem:[#allocation4 + $0x10] sm:$0xff] }
 0x122   : > { %v667_v57 = vpop.f32.mrf.mxu0  ;;  %v1035_v42 = vld [vmem:[#allocation4 + $0x88] sm:$0xff]  ;;  %v9131_v46 = vpop.f32.mrf.mxu1 }
 0x123   : > { %1101 = vst.msk [vmem:[#allocation4 + $0x98] sm:$0xff] %vm711_vm0, %v1069_v7  ;;  %733 = vst.msk [vmem:[#allocation4 + $0xa8] sm:$0xff] %vm711_vm0, %v667_v57  ;;  %v1067_v6 = vadd.f32 %v1035_v42, %v958_v60  ;;  %v3369_v60 = vpack.c.bf16 %v3340_v15, %v3339_v14  ;;  %v3342_v7 = vld [vmem:[#allocation3 + $0x82] sm:$0xff]  ;;  %v1388_v57 = vld [vmem:[#allocation4] sm:$0xff] }
 0x124   : > { %v9086_v48 = vpop.f32.mrf.mxu0  ;;  %v1040_v59 = vld [vmem:[#allocation4 + $0xb0] sm:$0xff]  ;;  %9373 = vmatmul.mubr.bf16.gmra.mxu0 %v2640_v4  ;;  %v974_v55 = vpop.f32.mrf.mxu1 }
 0x125   : > { %1099 = vst.msk [vmem:[#allocation4 + $0x88] sm:$0xff] %vm711_vm0, %v1067_v6  ;;  %738 = vst.msk [vmem:[#allocation4 + $0xd0] sm:$0xff] %vm711_vm0, %v9086_v48  ;;  %v1072_v43 = vadd.f32 %v9130_v49, %v1040_v59  ;;  %9376 = vmatprep.mubr.bf16.mxu0 %v10976_v61  ;;  %v3344_v42 = vld [vmem:[#allocation3 + $0x9a] sm:$0xff] }
 0x126   : > { %v680_v17 = vpop.f32.mrf.mxu0  ;;  %v1038_v45 = vld [vmem:[#allocation4 + $0xa0] sm:$0xff]  ;;  %v9134_v0 = vpop.f32.mrf.mxu1  ;;  %9421 = vmatmul.mubr.bf16.gmra.mxu1 %v3010_v19 }
 0x127   : > { %1104 = vst.msk [vmem:[#allocation4 + $0xb0] sm:$0xff] %vm711_vm0, %v1072_v43  ;;  %736 = vst.msk [vmem:[#allocation4 + $0xc0] sm:$0xff] %vm711_vm0, %v680_v17  ;;  %v1070_v23 = vadd.f32 %v1038_v45, %v971_v41  ;;  %9424 = vmatprep.mubr.bf16.mxu1 %v3011_v50  ;;  %v3343_v41 = vld [vmem:[#allocation3 + $0x92] sm:$0xff]  ;;  %v1391_v50 = vld [vmem:[#allocation4 + $0x18] sm:$0xff]  ;;  %v3370_v43 = vpack.c.bf16 %v3342_v7, %v3341_v5 }
 0x128   : > { %v9087_v21 = vpop.f32.mrf.mxu0  ;;  %v1041_v13 = vld [vmem:[#allocation4 + $0xb8] sm:$0xff]  ;;  %v987_v24 = vpop.f32.mrf.mxu1  ;;  %v3371_v45 = vpack.c.bf16 %v3344_v42, %v3343_v41  ;;  %v3352_v5 = vld [vmem:[#allocation3 + $0xfa] sm:$0xff] }
 0x129   : > { %1102 = vst.msk [vmem:[#allocation4 + $0xa0] sm:$0xff] %vm711_vm0, %v1070_v23  ;;  %739 = vst.msk [vmem:[#allocation4 + $0xd8] sm:$0xff] %vm711_vm0, %v9087_v21  ;;  %v1073_v61 = vadd.f32 %v9131_v46, %v1041_v13  ;;  %v1389_v23 = vld [vmem:[#allocation4 + $0x8] sm:$0xff] }
 0x12a   : > { %v683_v10 = vpop.f32.mrf.mxu0  ;;  %v1039_v20 = vld [vmem:[#allocation4 + $0xa8] sm:$0xff]  ;;  %v9135_v25 = vpop.f32.mrf.mxu1 }
 0x12b   : > { %1105 = vst.msk [vmem:[#allocation4 + $0xb8] sm:$0xff] %vm711_vm0, %v1073_v61  ;;  %737 = vst.msk [vmem:[#allocation4 + $0xc8] sm:$0xff] %vm711_vm0, %v683_v10  ;;  %v1071_v22 = vadd.f32 %v1039_v20, %v974_v55  ;;  %v3345_v61 = vld [vmem:[#allocation3 + $0xaa] sm:$0xff] }
 0x12c   : > { %v9090_v31 = vpop.f32.mrf.mxu0  ;;  %v1044_v32 = vld [vmem:[#allocation4 + $0xd0] sm:$0xff]  ;;  %9377 = vmatmul.mubr.bf16.gmra.mxu0 %v2642_v30  ;;  %v990_v16 = vpop.f32.mrf.mxu1  ;;  %v1392_v20 = vld [vmem:[#allocation4 + $0x20] sm:$0xff] }
 0x12d   : > { %1103 = vst.msk [vmem:[#allocation4 + $0xa8] sm:$0xff] %vm711_vm0, %v1071_v22  ;;  %742 = vst.msk [vmem:[#allocation4 + $0xf0] sm:$0xff] %vm711_vm0, %v9090_v31  ;;  %v1076_v33 = vadd.f32 %v9134_v0, %v1044_v32  ;;  %9444 = vmatprep.mubr.bf16.mxu0 %v3367_v8  ;;  %v1394_v30 = vld [vmem:[#allocation4 + $0x30] sm:$0xff] }
 0x12e   : > { %v696_v34 = vpop.f32.mrf.mxu0  ;;  %v1042_v11 = vld [vmem:[#allocation4 + $0xc0] sm:$0xff]  ;;  %v9138_v47 = vpop.f32.mrf.mxu1  ;;  %9425 = vmatmul.mubr.bf16.gmra.mxu1 %v3012_v44  ;;  %v3347_v8 = vld [vmem:[#allocation3 + $0xc2] sm:$0xff] }
 0x12f   : > { %1108 = vst.msk [vmem:[#allocation4 + $0xd0] sm:$0xff] %vm711_vm0, %v1076_v33  ;;  %740 = vst.msk [vmem:[#allocation4 + $0xe0] sm:$0xff] %vm711_vm0, %v696_v34  ;;  %v1074_v26 = vadd.f32 %v1042_v11, %v987_v24  ;;  %v3346_v24 = vld [vmem:[#allocation3 + $0xb2] sm:$0xff] }
 0x130   : > { %v9091_v63 = vpop.f32.mrf.mxu0  ;;  %v1045_v51 = vld [vmem:[#allocation4 + $0xd8] sm:$0xff]  ;;  %v1003_v52 = vpop.f32.mrf.mxu1  ;;  %v3372_v38 = vpack.c.bf16 %v3346_v24, %v3345_v61  ;;  %v1400_v24 = vld [vmem:[#allocation4 + $0x60] sm:$0xff] }
 0x131   : > { %1106 = vst.msk [vmem:[#allocation4 + $0xc0] sm:$0xff] %vm711_vm0, %v1074_v26  ;;  %743 = vst.msk [vmem:[#allocation4 + $0xf8] sm:$0xff] %vm711_vm0, %v9091_v63  ;;  %v1077_v53 = vadd.f32 %v9135_v25, %v1045_v51  ;;  %v3348_v25 = vld [vmem:[#allocation3 + $0xca] sm:$0xff] }
 0x132   : > { %v699_v2 = vpop.f32.mrf.mxu0  ;;  %v1043_v18 = vld [vmem:[#allocation4 + $0xc8] sm:$0xff]  ;;  %v9139_v27 = vpop.f32.mrf.mxu1  ;;  %v3373_v15 = vpack.c.bf16 %v3348_v25, %v3347_v8 }
 0x133   : > { %1109 = vst.msk [vmem:[#allocation4 + $0xd8] sm:$0xff] %vm711_vm0, %v1077_v53  ;;  %741 = vst.msk [vmem:[#allocation4 + $0xe8] sm:$0xff] %vm711_vm0, %v699_v2  ;;  %v1075_v29 = vadd.f32 %v1043_v18, %v990_v16  ;;  %v1395_v16 = vld [vmem:[#allocation4 + $0x38] sm:$0xff] }
 0x134   : > { %v1048_v54 = vld [vmem:[#allocation4 + $0xf0] sm:$0xff]  ;;  %v9158_v49 = vpop.f32.mrf.mxu0  ;;  %9445 = vmatmul.mubr.bf16.vlgmr.msra.gmra.mxu0 %v3368_v40  ;;  %v1006_v58 = vpop.f32.mrf.mxu1 }
 0x135   : > { %1107 = vst.msk [vmem:[#allocation4 + $0xc8] sm:$0xff] %vm711_vm0, %v1075_v29  ;;  %v1080_v1 = vadd.f32 %v9138_v47, %v1048_v54  ;;  %v1422_v4 = vadd.f32 %v9158_v49, %v1390_v56  ;;  %9448 = vmatprep.mubr.bf16.mxu0 %v3369_v60  ;;  %v1393_v47 = vld [vmem:[#allocation4 + $0x28] sm:$0xff]  ;;  %v1398_v60 = vld [vmem:[#allocation4 + $0x50] sm:$0xff] }
 0x136   : > { %v1046_v9 = vld [vmem:[#allocation4 + $0xe0] sm:$0xff]  ;;  %v1261_v12 = vpop.f32.mrf.mxu0  ;;  %v9206_v19 = vpop.f32.mrf.mxu1  ;;  %v3349_v54 = vld [vmem:[#allocation3 + $0xda] sm:$0xff]  ;;  %v3350_v49 = vld [vmem:[#allocation3 + $0xe2] sm:$0xff] }
 0x137   : > { %1112 = vst.msk [vmem:[#allocation4 + $0xf0] sm:$0xff] %vm711_vm0, %v1080_v1  ;;  %1454 = vst.msk [vmem:[#allocation4 + $0x10] sm:$0xff] %vm711_vm0, %v1422_v4  ;;  %v1078_v6 = vadd.f32 %v1046_v9, %v1003_v52  ;;  %v1420_v46 = vadd.f32 %v1388_v57, %v1261_v12  ;;  %v3351_v56 = vld [vmem:[#allocation3 + $0xf2] sm:$0xff]  ;;  %v1399_v57 = vld [vmem:[#allocation4 + $0x58] sm:$0xff] }
 0x138   : > { %v1049_v48 = vld [vmem:[#allocation4 + $0xf8] sm:$0xff]  ;;  %v9159_v59 = vpop.f32.mrf.mxu0  ;;  %v1631_v17 = vpop.f32.mrf.mxu1  ;;  %v1396_v4 = vld [vmem:[#allocation4 + $0x40] sm:$0xff] }
 0x139   : > { %1110 = vst.msk [vmem:[#allocation4 + $0xe0] sm:$0xff] %vm711_vm0, %v1078_v6  ;;  %1452 = vst.msk [vmem:[#allocation4] sm:$0xff] %vm711_vm0, %v1420_v46  ;;  %v1081_v55 = vadd.f32 %v9139_v27, %v1049_v48  ;;  %v1423_v28 = vadd.f32 %v9159_v59, %v1391_v50  ;;  %v3374_v6 = vpack.c.bf16 %v3350_v49, %v3349_v54  ;;  %v1404_v49 = vld [vmem:[#allocation4 + $0x80] sm:$0xff] }
 0x13a   : > { %v1047_v62 = vld [vmem:[#allocation4 + $0xe8] sm:$0xff]  ;;  %v1264_v3 = vpop.f32.mrf.mxu0  ;;  %v9207_v13 = vpop.f32.mrf.mxu1  ;;  %v3375_v59 = vpack.c.bf16 %v3352_v5, %v3351_v56 }
 0x13b   : > { %1113 = vst.msk [vmem:[#allocation4 + $0xf8] sm:$0xff] %vm711_vm0, %v1081_v55  ;;  %1455 = vst.msk [vmem:[#allocation4 + $0x18] sm:$0xff] %vm711_vm0, %v1423_v28  ;;  %v1079_v0 = vadd.f32 %v1047_v62, %v1006_v58  ;;  %v1421_v21 = vadd.f32 %v1389_v23, %v1264_v3  ;;  %v1402_v3 = vld [vmem:[#allocation4 + $0x70] sm:$0xff] }
 0x13c   : > { %v9162_v35 = vpop.f32.mrf.mxu0  ;;  %9449 = vmatmul.mubr.bf16.gmra.mxu0 %v3370_v43  ;;  %v1634_v36 = vpop.f32.mrf.mxu1  ;;  %v1397_v43 = vld [vmem:[#allocation4 + $0x48] sm:$0xff] }
 0x13d   : > { %1111 = vst.msk [vmem:[#allocation4 + $0xe8] sm:$0xff] %vm711_vm0, %v1079_v0  ;;  %1453 = vst.msk [vmem:[#allocation4 + $0x8] sm:$0xff] %vm711_vm0, %v1421_v21  ;;  %v1426_v37 = vadd.f32 %v9162_v35, %v1394_v30  ;;  %9452 = vmatprep.mubr.bf16.mxu0 %v3371_v45  ;;  %v3353_v0 = vld [vmem:[#allocation3 + $0x10a] sm:$0xff]  ;;  %v3354_v30 = vld [vmem:[#allocation3 + $0x112] sm:$0xff] }
 0x13e   : > { %v1277_v10 = vpop.f32.mrf.mxu0  ;;  %v1760_v22 = vld [vmem:[#allocation4 + $0x10] sm:$0xff]  ;;  %v9210_v32 = vpop.f32.mrf.mxu1 }
 0x13f   : > { %1458 = vst.msk [vmem:[#allocation4 + $0x30] sm:$0xff] %vm711_vm0, %v1426_v37  ;;  %v1424_v44 = vadd.f32 %v1392_v20, %v1277_v10  ;;  %v1792_v31 = vadd.f32 %v9206_v19, %v1760_v22  ;;  %v3355_v37 = vld [vmem:[#allocation3 + $0x122] sm:$0xff]  ;;  %v3356_v10 = vld [vmem:[#allocation3 + $0x12a] sm:$0xff] }
 0x140   : > { %v9163_v33 = vpop.f32.mrf.mxu0  ;;  %v1758_v39 = vld [vmem:[#allocation4] sm:$0xff]  ;;  %v1647_v14 = vpop.f32.mrf.mxu1 }
 0x141   : > { %1456 = vst.msk [vmem:[#allocation4 + $0x20] sm:$0xff] %vm711_vm0, %v1424_v44  ;;  %1824 = vst.msk [vmem:[#allocation4 + $0x10] sm:$0xff] %vm711_vm0, %v1792_v31  ;;  %v1427_v34 = vadd.f32 %v9163_v33, %v1395_v16  ;;  %v1790_v11 = vadd.f32 %v1758_v39, %v1631_v17  ;;  %v1403_v31 = vld [vmem:[#allocation4 + $0x78] sm:$0xff]  ;;  %v3376_v33 = vpack.c.bf16 %v3354_v30, %v3353_v0  ;;  %v1408_v30 = vld [vmem:[#allocation4 + $0xa0] sm:$0xff] }
 0x142   : > { %v1280_v26 = vpop.f32.mrf.mxu0  ;;  %v1761_v63 = vld [vmem:[#allocation4 + $0x18] sm:$0xff]  ;;  %v9211_v53 = vpop.f32.mrf.mxu1 }
 0x143   : > { %1459 = vst.msk [vmem:[#allocation4 + $0x38] sm:$0xff] %vm711_vm0, %v1427_v34  ;;  %1822 = vst.msk [vmem:[#allocation4] sm:$0xff] %vm711_vm0, %v1790_v11  ;;  %v1425_v51 = vadd.f32 %v1393_v47, %v1280_v26  ;;  %v1793_v40 = vadd.f32 %v9207_v13, %v1761_v63  ;;  %v3377_v34 = vpack.c.bf16 %v3356_v10, %v3355_v37  ;;  %v3361_v0 = vld [vmem:[#allocation3 + $0x16a] sm:$0xff] }
 0x144   : > { %v9166_v52 = vpop.f32.mrf.mxu0  ;;  %v1759_v2 = vld [vmem:[#allocation4 + $0x8] sm:$0xff]  ;;  %9453 = vmatmul.mubr.bf16.gmra.mxu0 %v3372_v38  ;;  %v1650_v27 = vpop.f32.mrf.mxu1 }
 0x145   : > { %1457 = vst.msk [vmem:[#allocation4 + $0x28] sm:$0xff] %vm711_vm0, %v1425_v51  ;;  %1825 = vst.msk [vmem:[#allocation4 + $0x18] sm:$0xff] %vm711_vm0, %v1793_v40  ;;  %v1430_v18 = vadd.f32 %v9166_v52, %v1398_v60  ;;  %v1791_v29 = vadd.f32 %v1759_v2, %v1634_v36  ;;  %9456 = vmatprep.mubr.bf16.mxu0 %v3373_v15  ;;  %v10094_v36 = vld [vmem:[%s12579_s2 + $0x8] sm:$0xff]   ;;  %v1406_v40 = vld [vmem:[#allocation4 + $0x90] sm:$0xff] }
 0x146   : > { %v1293_v1 = vpop.f32.mrf.mxu0  ;;  %v1764_v58 = vld [vmem:[#allocation4 + $0x30] sm:$0xff]  ;;  %v9214_v9 = vpop.f32.mrf.mxu1  ;;  %9476 = vmatprep.subr.bf16.mxu1 %v10094_v36 }
 0x147   : > { %1462 = vst.msk [vmem:[#allocation4 + $0x50] sm:$0xff] %vm711_vm0, %v1430_v18  ;;  %1823 = vst.msk [vmem:[#allocation4 + $0x8] sm:$0xff] %vm711_vm0, %v1791_v29  ;;  %v1428_v7 = vadd.f32 %v1396_v4, %v1293_v1  ;;  %v1796_v41 = vadd.f32 %v9210_v32, %v1764_v58  ;;  %9477 = vmatpush3.bf16.msra.mxu1 %v10094_v36  ;;  %v3357_v18 = vld [vmem:[#allocation3 + $0x13a] sm:$0xff]  ;;  %v3358_v29 = vld [vmem:[#allocation3 + $0x142] sm:$0xff] }
 0x148   : > { %v9167_v12 = vpop.f32.mrf.mxu0  ;;  %v1762_v42 = vld [vmem:[#allocation4 + $0x20] sm:$0xff]  ;;  %v1663_v48 = vpop.f32.mrf.mxu1  ;;  %v3360_v1 = vld [vmem:[#allocation3 + $0x15a] sm:$0xff] }
 0x149   : > { %1460 = vst.msk [vmem:[#allocation4 + $0x40] sm:$0xff] %vm711_vm0, %v1428_v7  ;;  %1828 = vst.msk [vmem:[#allocation4 + $0x30] sm:$0xff] %vm711_vm0, %v1796_v41  ;;  %v1431_v46 = vadd.f32 %v9167_v12, %v1399_v57  ;;  %v1794_v19 = vadd.f32 %v1762_v42, %v1647_v14  ;;  %v1401_v14 = vld [vmem:[#allocation4 + $0x68] sm:$0xff]  ;;  %v1407_v41 = vld [vmem:[#allocation4 + $0x98] sm:$0xff]  ;;  %v3378_v12 = vpack.c.bf16 %v3358_v29, %v3357_v18 }
 0x14a   : > { %v1296_v50 = vpop.f32.mrf.mxu0  ;;  %v1765_v55 = vld [vmem:[#allocation4 + $0x38] sm:$0xff]  ;;  %v9215_v45 = vpop.f32.mrf.mxu1 }
 0x14b   : > { %1463 = vst.msk [vmem:[#allocation4 + $0x58] sm:$0xff] %vm711_vm0, %v1431_v46  ;;  %1826 = vst.msk [vmem:[#allocation4 + $0x20] sm:$0xff] %vm711_vm0, %v1794_v19  ;;  %v1429_v28 = vadd.f32 %v1397_v43, %v1296_v50  ;;  %v1797_v17 = vadd.f32 %v9211_v53, %v1765_v55  ;;  %v3364_v36 = vld [vmem:[#allocation3 + $0x18a] sm:$0xff] }
 0x14c   : > { %v9170_v62 = vpop.f32.mrf.mxu0  ;;  %v1763_v23 = vld [vmem:[#allocation4 + $0x28] sm:$0xff]  ;;  %9457 = vmatmul.mubr.bf16.gmra.mxu0 %v3374_v6  ;;  %v1666_v35 = vpop.f32.mrf.mxu1 }
 0x14d   : > { %1461 = vst.msk [vmem:[#allocation4 + $0x48] sm:$0xff] %vm711_vm0, %v1429_v28  ;;  %1829 = vst.msk [vmem:[#allocation4 + $0x38] sm:$0xff] %vm711_vm0, %v1797_v17  ;;  %v1434_v21 = vadd.f32 %v9170_v62, %v1402_v3  ;;  %v1795_v13 = vadd.f32 %v1763_v23, %v1650_v27  ;;  %9460 = vmatprep.mubr.bf16.mxu0 %v3375_v59  ;;  %v3359_v27 = vld [vmem:[#allocation3 + $0x152] sm:$0xff]  ;;  %v1410_v17 = vld [vmem:[#allocation4 + $0xb0] sm:$0xff] }
 0x14e   : > { %v1309_v61 = vpop.f32.mrf.mxu0  ;;  %v1768_v8 = vld [vmem:[#allocation4 + $0x50] sm:$0xff]  ;;  %v9218_v25 = vpop.f32.mrf.mxu1  ;;  %v3379_v46 = vpack.c.bf16 %v3360_v1, %v3359_v27 }
 0x14f   : > { %1466 = vst.msk [vmem:[#allocation4 + $0x70] sm:$0xff] %vm711_vm0, %v1434_v21  ;;  %1827 = vst.msk [vmem:[#allocation4 + $0x28] sm:$0xff] %vm711_vm0, %v1795_v13  ;;  %v1432_v20 = vadd.f32 %v1400_v24, %v1309_v61  ;;  %v1800_v22 = vadd.f32 %v9214_v9, %v1768_v8  ;;  %v3362_v21 = vld [vmem:[#allocation3 + $0x172] sm:$0xff]  ;;  %v3363_v13 = vld [vmem:[#allocation3 + $0x182] sm:$0xff] }
 0x150   : > { %v9171_v44 = vpop.f32.mrf.mxu0  ;;  %v1766_v32 = vld [vmem:[#allocation4 + $0x40] sm:$0xff]  ;;  %v1679_v38 = vpop.f32.mrf.mxu1 }
 0x151   : > { %1464 = vst.msk [vmem:[#allocation4 + $0x60] sm:$0xff] %vm711_vm0, %v1432_v20  ;;  %1832 = vst.msk [vmem:[#allocation4 + $0x50] sm:$0xff] %vm711_vm0, %v1800_v22  ;;  %v1435_v16 = vadd.f32 %v9171_v44, %v1403_v31  ;;  %v1798_v39 = vadd.f32 %v1766_v32, %v1663_v48  ;;  %v1405_v48 = vld [vmem:[#allocation4 + $0x88] sm:$0xff]  ;;  %v1411_v20 = vld [vmem:[#allocation4 + $0xb8] sm:$0xff] }
 0x152   : > { %v1312_v11 = vpop.f32.mrf.mxu0  ;;  %v1769_v15 = vld [vmem:[#allocation4 + $0x58] sm:$0xff]  ;;  %v9219_v63 = vpop.f32.mrf.mxu1 }
 0x153   : > { %1467 = vst.msk [vmem:[#allocation4 + $0x78] sm:$0xff] %vm711_vm0, %v1435_v16  ;;  %1830 = vst.msk [vmem:[#allocation4 + $0x40] sm:$0xff] %vm711_vm0, %v1798_v39  ;;  %v1433_v26 = vadd.f32 %v1401_v14, %v1312_v11  ;;  %v1801_v47 = vadd.f32 %v9215_v45, %v1769_v15  ;;  %v1409_v39 = vld [vmem:[#allocation4 + $0xa8] sm:$0xff] }
 0x154   : > { %v9174_v51 = vpop.f32.mrf.mxu0  ;;  %v1767_v53 = vld [vmem:[#allocation4 + $0x48] sm:$0xff]  ;;  %9461 = vmatmul.mubr.bf16.gmra.mxu0 %v3376_v33  ;;  %v1682_v2 = vpop.f32.mrf.mxu1  ;;  %v3381_v33 = vpack.c.bf16 %v3364_v36, %v3363_v13 }
 0x155   : > { %1465 = vst.msk [vmem:[#allocation4 + $0x68] sm:$0xff] %vm711_vm0, %v1433_v26  ;;  %1833 = vst.msk [vmem:[#allocation4 + $0x58] sm:$0xff] %vm711_vm0, %v1801_v47  ;;  %v1438_v52 = vadd.f32 %v9174_v51, %v1406_v40  ;;  %v1799_v60 = vadd.f32 %v1767_v53, %v1666_v35  ;;  %9464 = vmatprep.mubr.bf16.mxu0 %v3377_v34  ;;  %v1414_v26 = vld [vmem:[#allocation4 + $0xd0] sm:$0xff] }
 0x156   : > { %v1325_v54 = vpop.f32.mrf.mxu0  ;;  %v1772_v56 = vld [vmem:[#allocation4 + $0x70] sm:$0xff]  ;;  %v9222_v5 = vpop.f32.mrf.mxu1 }
 0x157   : > { %1470 = vst.msk [vmem:[#allocation4 + $0x90] sm:$0xff] %vm711_vm0, %v1438_v52  ;;  %1831 = vst.msk [vmem:[#allocation4 + $0x48] sm:$0xff] %vm711_vm0, %v1799_v60  ;;  %v1436_v4 = vadd.f32 %v1404_v49, %v1325_v54  ;;  %v1804_v58 = vadd.f32 %v9218_v25, %v1772_v56  ;;  %v3380_v25 = vpack.c.bf16 %v3362_v21, %v3361_v0  ;;  %v3365_v53 = vld [vmem:[#allocation3 + $0x19a] sm:$0xff]  ;;  %v3366_v52 = vld [vmem:[#allocation3 + $0x1a2] sm:$0xff] }
 0x158   : > { %v9175_v7 = vpop.f32.mrf.mxu0  ;;  %v1770_v9 = vld [vmem:[#allocation4 + $0x60] sm:$0xff]  ;;  %v1695_v6 = vpop.f32.mrf.mxu1  ;;  %v1415_v56 = vld [vmem:[#allocation4 + $0xd8] sm:$0xff] }
 0x159   : > { %1468 = vst.msk [vmem:[#allocation4 + $0x80] sm:$0xff] %vm711_vm0, %v1436_v4  ;;  %1836 = vst.msk [vmem:[#allocation4 + $0x70] sm:$0xff] %vm711_vm0, %v1804_v58  ;;  %v1439_v57 = vadd.f32 %v9175_v7, %v1407_v41  ;;  %v1802_v42 = vadd.f32 %v1770_v9, %v1679_v38  ;;  %v3382_v4 = vpack.c.bf16 %v3366_v52, %v3365_v53  ;;  %v1413_v9 = vld [vmem:[#allocation4 + $0xc8] sm:$0xff]  ;;  %v1419_v21 = vld [vmem:[#allocation4 + $0xf8] sm:$0xff] }
 0x15a   : > { %v1328_v19 = vpop.f32.mrf.mxu0  ;;  %v1773_v59 = vld [vmem:[#allocation4 + $0x78] sm:$0xff]  ;;  %v9223_v55 = vpop.f32.mrf.mxu1 }
 0x15b   : > { %1471 = vst.msk [vmem:[#allocation4 + $0x98] sm:$0xff] %vm711_vm0, %v1439_v57  ;;  %1834 = vst.msk [vmem:[#allocation4 + $0x60] sm:$0xff] %vm711_vm0, %v1802_v42  ;;  %v1437_v50 = vadd.f32 %v1405_v48, %v1328_v19  ;;  %v1805_v43 = vadd.f32 %v9219_v63, %v1773_v59  ;;  %v1418_v19 = vld [vmem:[#allocation4 + $0xf0] sm:$0xff] }
 0x15c   : > { %v9178_v28 = vpop.f32.mrf.mxu0  ;;  %v1771_v45 = vld [vmem:[#allocation4 + $0x68] sm:$0xff]  ;;  %9465 = vmatmul.mubr.bf16.gmra.mxu0 %v3378_v12  ;;  %v1698_v23 = vpop.f32.mrf.mxu1 }
 0x15d   : > { %1469 = vst.msk [vmem:[#allocation4 + $0x88] sm:$0xff] %vm711_vm0, %v1437_v50  ;;  %1837 = vst.msk [vmem:[#allocation4 + $0x78] sm:$0xff] %vm711_vm0, %v1805_v43  ;;  %v1442_v62 = vadd.f32 %v9178_v28, %v1410_v17  ;;  %v1803_v3 = vadd.f32 %v1771_v45, %v1682_v2  ;;  %9468 = vmatprep.mubr.bf16.mxu0 %v3379_v46  ;;  %v1412_v2 = vld [vmem:[#allocation4 + $0xc0] sm:$0xff] }
 0x15e   : > { %v1341_v35 = vpop.f32.mrf.mxu0  ;;  %v1776_v37 = vld [vmem:[#allocation4 + $0x90] sm:$0xff]  ;;  %v9226_v8 = vpop.f32.mrf.mxu1  ;;  %v1416_v17 = vld [vmem:[#allocation4 + $0xe0] sm:$0xff] }
 0x15f   : > { %1474 = vst.msk [vmem:[#allocation4 + $0xb0] sm:$0xff] %vm711_vm0, %v1442_v62  ;;  %1835 = vst.msk [vmem:[#allocation4 + $0x68] sm:$0xff] %vm711_vm0, %v1803_v3  ;;  %v1440_v61 = vadd.f32 %v1408_v30, %v1341_v35  ;;  %v1808_v24 = vadd.f32 %v9222_v5, %v1776_v37 }
 0x160   : > { %v9179_v10 = vpop.f32.mrf.mxu0  ;;  %v1774_v22 = vld [vmem:[#allocation4 + $0x80] sm:$0xff]  ;;  %v1711_v32 = vpop.f32.mrf.mxu1 }
 0x161   : > { %1472 = vst.msk [vmem:[#allocation4 + $0xa0] sm:$0xff] %vm711_vm0, %v1440_v61  ;;  %1840 = vst.msk [vmem:[#allocation4 + $0x90] sm:$0xff] %vm711_vm0, %v1808_v24  ;;  %v1443_v44 = vadd.f32 %v9179_v10, %v1411_v20  ;;  %v1806_v31 = vadd.f32 %v1774_v22, %v1695_v6  ;;  %v1417_v61 = vld [vmem:[#allocation4 + $0xe8] sm:$0xff] }
 0x162   : > { %v1344_v16 = vpop.f32.mrf.mxu0  ;;  %v1777_v38 = vld [vmem:[#allocation4 + $0x98] sm:$0xff]  ;;  %v9227_v14 = vpop.f32.mrf.mxu1 }
 0x163   : > { %1475 = vst.msk [vmem:[#allocation4 + $0xb8] sm:$0xff] %vm711_vm0, %v1443_v44  ;;  %1838 = vst.msk [vmem:[#allocation4 + $0x80] sm:$0xff] %vm711_vm0, %v1806_v31  ;;  %v1441_v34 = vadd.f32 %v1409_v39, %v1344_v16  ;;  %v1809_v11 = vadd.f32 %v9223_v55, %v1777_v38  ;;  %v10095_v55 = vld [vmem:[%s12579_s2] sm:$0xff]   ;;  %v2128_v38 = vld [vmem:[#allocation4] sm:$0xff] }
 0x164   : > { %v9182_v15 = vpop.f32.mrf.mxu0  ;;  %v1775_v47 = vld [vmem:[#allocation4 + $0x88] sm:$0xff]  ;;  %9469 = vmatmul.mubr.bf16.gmra.mxu0 %v3380_v25  ;;  %v1714_v40 = vpop.f32.mrf.mxu1  ;;  %9478 = vmatprep.subr.bf16.mxu1 %v10095_v55  ;;  %v2130_v44 = vld [vmem:[#allocation4 + $0x10] sm:$0xff] }
 0x165   : > { %1473 = vst.msk [vmem:[#allocation4 + $0xa8] sm:$0xff] %vm711_vm0, %v1441_v34  ;;  %1841 = vst.msk [vmem:[#allocation4 + $0x98] sm:$0xff] %vm711_vm0, %v1809_v11  ;;  %v1446_v63 = vadd.f32 %v9182_v15, %v1414_v26  ;;  %v1807_v51 = vadd.f32 %v1775_v47, %v1698_v23  ;;  %9472 = vmatprep.mubr.bf16.mxu0 %v3381_v33  ;;  %9479 = vmatpush3.bf16.msra.mxu1 %v10095_v55  ;;  %v2131_v47 = vld [vmem:[#allocation4 + $0x18] sm:$0xff] }
 0x166   : > { %v1357_v60 = vpop.f32.mrf.mxu0  ;;  %v1780_v18 = vld [vmem:[#allocation4 + $0xb0] sm:$0xff]  ;;  %v9230_v54 = vpop.f32.mrf.mxu1 }
 0x167   : > { %1478 = vst.msk [vmem:[#allocation4 + $0xd0] sm:$0xff] %vm711_vm0, %v1446_v63  ;;  %1839 = vst.msk [vmem:[#allocation4 + $0x88] sm:$0xff] %vm711_vm0, %v1807_v51  ;;  %v1444_v29 = vadd.f32 %v1412_v2, %v1357_v60  ;;  %v1812_v27 = vadd.f32 %v9226_v8, %v1780_v18  ;;  %v2129_v60 = vld [vmem:[#allocation4 + $0x8] sm:$0xff] }
 0x168   : > { %v9183_v49 = vpop.f32.mrf.mxu0  ;;  %v1778_v1 = vld [vmem:[#allocation4 + $0xa0] sm:$0xff]  ;;  %v1727_v7 = vpop.f32.mrf.mxu1 }
 0x169   : > { %1476 = vst.msk [vmem:[#allocation4 + $0xc0] sm:$0xff] %vm711_vm0, %v1444_v29  ;;  %1844 = vst.msk [vmem:[#allocation4 + $0xb0] sm:$0xff] %vm711_vm0, %v1812_v27  ;;  %v1447_v58 = vadd.f32 %v9183_v49, %v1415_v56  ;;  %v1810_v5 = vadd.f32 %v1778_v1, %v1711_v32  ;;  %v2134_v49 = vld [vmem:[#allocation4 + $0x30] sm:$0xff] }
 0x16a   : > { %v1360_v41 = vpop.f32.mrf.mxu0  ;;  %v1781_v12 = vld [vmem:[#allocation4 + $0xb8] sm:$0xff]  ;;  %v9231_v6 = vpop.f32.mrf.mxu1 }
 0x16b   : > { %1479 = vst.msk [vmem:[#allocation4 + $0xd8] sm:$0xff] %vm711_vm0, %v1447_v58  ;;  %1842 = vst.msk [vmem:[#allocation4 + $0xa0] sm:$0xff] %vm711_vm0, %v1810_v5  ;;  %v1445_v57 = vadd.f32 %v1413_v9, %v1360_v41  ;;  %v1813_v42 = vadd.f32 %v9227_v14, %v1781_v12  ;;  %v2132_v5 = vld [vmem:[#allocation4 + $0x20] sm:$0xff] }
 0x16c   : > { %v9186_v46 = vpop.f32.mrf.mxu0  ;;  %v1779_v48 = vld [vmem:[#allocation4 + $0xa8] sm:$0xff]  ;;  %9473 = vmatmul.mubr.bf16.gmra.mxu0 %v3382_v4  ;;  %v1730_v43 = vpop.f32.mrf.mxu1 }
 0x16d   : > { %1477 = vst.msk [vmem:[#allocation4 + $0xc8] sm:$0xff] %vm711_vm0, %v1445_v57  ;;  %1845 = vst.msk [vmem:[#allocation4 + $0xb8] sm:$0xff] %vm711_vm0, %v1813_v42  ;;  %v1450_v59 = vadd.f32 %v9186_v46, %v1418_v19  ;;  %v1811_v50 = vadd.f32 %v1779_v48, %v1714_v40  ;;  %v2135_v42 = vld [vmem:[#allocation4 + $0x38] sm:$0xff] }
 0x16e   : > { %v1373_v28 = vpop.f32.mrf.mxu0  ;;  %v1784_v45 = vld [vmem:[#allocation4 + $0xd0] sm:$0xff]  ;;  %v9234_v23 = vpop.f32.mrf.mxu1 }
 0x16f   : > { %1482 = vst.msk [vmem:[#allocation4 + $0xf0] sm:$0xff] %vm711_vm0, %v1450_v59  ;;  %1843 = vst.msk [vmem:[#allocation4 + $0xa8] sm:$0xff] %vm711_vm0, %v1811_v50  ;;  %v1448_v62 = vadd.f32 %v1416_v17, %v1373_v28  ;;  %v1816_v3 = vadd.f32 %v9230_v54, %v1784_v45  ;;  %v2133_v50 = vld [vmem:[#allocation4 + $0x28] sm:$0xff] }
 0x170   : > { %v9187_v0 = vpop.f32.mrf.mxu0  ;;  %v1782_v13 = vld [vmem:[#allocation4 + $0xc0] sm:$0xff]  ;;  %v1743_v37 = vpop.f32.mrf.mxu1 }
 0x171   : > { %1480 = vst.msk [vmem:[#allocation4 + $0xe0] sm:$0xff] %vm711_vm0, %v1448_v62  ;;  %1848 = vst.msk [vmem:[#allocation4 + $0xd0] sm:$0xff] %vm711_vm0, %v1816_v3  ;;  %v1451_v35 = vadd.f32 %v9187_v0, %v1419_v21  ;;  %v1814_v30 = vadd.f32 %v1782_v13, %v1727_v7  ;;  %v2138_v62 = vld [vmem:[#allocation4 + $0x50] sm:$0xff] }
 0x172   : > { %v1376_v36 = vpop.f32.mrf.mxu0  ;;  %v1785_v24 = vld [vmem:[#allocation4 + $0xd8] sm:$0xff]  ;;  %v9235_v20 = vpop.f32.mrf.mxu1 }
 0x173   : > { %1483 = vst.msk [vmem:[#allocation4 + $0xf8] sm:$0xff] %vm711_vm0, %v1451_v35  ;;  %1846 = vst.msk [vmem:[#allocation4 + $0xc0] sm:$0xff] %vm711_vm0, %v1814_v30  ;;  %v1449_v8 = vadd.f32 %v1417_v61, %v1376_v36  ;;  %v1817_v10 = vadd.f32 %v9231_v6, %v1785_v24  ;;  %v2136_v35 = vld [vmem:[#allocation4 + $0x40] sm:$0xff] }
 0x174   : > { %v1783_v22 = vld [vmem:[#allocation4 + $0xc8] sm:$0xff]  ;;  %v9254_v25 = vpop.f32.mrf.mxu0  ;;  %v1746_v33 = vpop.f32.mrf.mxu1 }
 0x175   : > { %1481 = vst.msk [vmem:[#allocation4 + $0xe8] sm:$0xff] %vm711_vm0, %v1449_v8  ;;  %1849 = vst.msk [vmem:[#allocation4 + $0xd8] sm:$0xff] %vm711_vm0, %v1817_v10  ;;  %v1815_v31 = vadd.f32 %v1783_v22, %v1730_v43  ;;  %v2162_v32 = vadd.f32 %v9254_v25, %v2130_v44  ;;  %v2139_v8 = vld [vmem:[#allocation4 + $0x58] sm:$0xff] }
 0x176   : > { %v1788_v16 = vld [vmem:[#allocation4 + $0xf0] sm:$0xff]  ;;  %v2001_v39 = vpop.f32.mrf.mxu0  ;;  %v9302_v14 = vpop.f32.mrf.mxu1 }
 0x177   : > { %1847 = vst.msk [vmem:[#allocation4 + $0xc8] sm:$0xff] %vm711_vm0, %v1815_v31  ;;  %2194 = vst.msk [vmem:[#allocation4 + $0x10] sm:$0xff] %vm711_vm0, %v2162_v32  ;;  %v1820_v34 = vadd.f32 %v9234_v23, %v1788_v16  ;;  %v2160_v11 = vadd.f32 %v2128_v38, %v2001_v39  ;;  %v2137_v31 = vld [vmem:[#allocation4 + $0x48] sm:$0xff] }
 0x178   : > { %v1786_v15 = vld [vmem:[#allocation4 + $0xe0] sm:$0xff]  ;;  %v9255_v26 = vpop.f32.mrf.mxu0  ;;  %v2371_v40 = vpop.f32.mrf.mxu1 }
 0x179   : > { %1852 = vst.msk [vmem:[#allocation4 + $0xf0] sm:$0xff] %vm711_vm0, %v1820_v34  ;;  %2192 = vst.msk [vmem:[#allocation4] sm:$0xff] %vm711_vm0, %v2160_v11  ;;  %v1818_v63 = vadd.f32 %v1786_v15, %v1743_v37  ;;  %v2163_v51 = vadd.f32 %v9255_v26, %v2131_v47  ;;  %v2142_v34 = vld [vmem:[#allocation4 + $0x70] sm:$0xff] }
 0x17a   : > { %v1789_v53 = vld [vmem:[#allocation4 + $0xf8] sm:$0xff]  ;;  %v2004_v52 = vpop.f32.mrf.mxu0  ;;  %v9303_v29 = vpop.f32.mrf.mxu1 }
 0x17b   : > { %1850 = vst.msk [vmem:[#allocation4 + $0xe0] sm:$0xff] %vm711_vm0, %v1818_v63  ;;  %2195 = vst.msk [vmem:[#allocation4 + $0x18] sm:$0xff] %vm711_vm0, %v2163_v51  ;;  %v1821_v2 = vadd.f32 %v9235_v20, %v1789_v53  ;;  %v2161_v18 = vadd.f32 %v2129_v60, %v2004_v52  ;;  %v2140_v63 = vld [vmem:[#allocation4 + $0x60] sm:$0xff] }
 0x17c   : > { %v1787_v27 = vld [vmem:[#allocation4 + $0xe8] sm:$0xff]  ;;  %v9258_v54 = vpop.f32.mrf.mxu0  ;;  %v2374_v4 = vpop.f32.mrf.mxu1 }
 0x17d   : > { %1853 = vst.msk [vmem:[#allocation4 + $0xf8] sm:$0xff] %vm711_vm0, %v1821_v2  ;;  %2193 = vst.msk [vmem:[#allocation4 + $0x8] sm:$0xff] %vm711_vm0, %v2161_v18  ;;  %v1819_v56 = vadd.f32 %v1787_v27, %v1746_v33  ;;  %v2166_v1 = vadd.f32 %v9258_v54, %v2134_v49  ;;  %v2143_v2 = vld [vmem:[#allocation4 + $0x78] sm:$0xff] }
 0x17e   : > { %v2017_v58 = vpop.f32.mrf.mxu0  ;;  %v2500_v7 = vld [vmem:[#allocation4 + $0x10] sm:$0xff]  ;;  %v9306_v12 = vpop.f32.mrf.mxu1 }
 0x17f   : > { %1851 = vst.msk [vmem:[#allocation4 + $0xe8] sm:$0xff] %vm711_vm0, %v1819_v56  ;;  %2198 = vst.msk [vmem:[#allocation4 + $0x30] sm:$0xff] %vm711_vm0, %v2166_v1  ;;  %v2164_v41 = vadd.f32 %v2132_v5, %v2017_v58  ;;  %v2532_v9 = vadd.f32 %v9302_v14, %v2500_v7  ;;  %v2141_v56 = vld [vmem:[#allocation4 + $0x68] sm:$0xff] }
 0x180   : > { %v9259_v57 = vpop.f32.mrf.mxu0  ;;  %v2498_v6 = vld [vmem:[#allocation4] sm:$0xff]  ;;  %v2387_v48 = vpop.f32.mrf.mxu1 }
 0x181   : > { %2196 = vst.msk [vmem:[#allocation4 + $0x20] sm:$0xff] %vm711_vm0, %v2164_v41  ;;  %2564 = vst.msk [vmem:[#allocation4 + $0x10] sm:$0xff] %vm711_vm0, %v2532_v9  ;;  %v2167_v46 = vadd.f32 %v9259_v57, %v2135_v42  ;;  %v2530_v19 = vadd.f32 %v2498_v6, %v2371_v40  ;;  %v2146_v41 = vld [vmem:[#allocation4 + $0x90] sm:$0xff] }
 0x182   : > { %v2020_v59 = vpop.f32.mrf.mxu0  ;;  %v2501_v43 = vld [vmem:[#allocation4 + $0x18] sm:$0xff]  ;;  %v9307_v17 = vpop.f32.mrf.mxu1 }
 0x183   : > { %2199 = vst.msk [vmem:[#allocation4 + $0x38] sm:$0xff] %vm711_vm0, %v2167_v46  ;;  %2562 = vst.msk [vmem:[#allocation4] sm:$0xff] %vm711_vm0, %v2530_v19  ;;  %v2165_v55 = vadd.f32 %v2133_v50, %v2020_v59  ;;  %v2533_v28 = vadd.f32 %v9303_v29, %v2501_v43  ;;  %v2144_v46 = vld [vmem:[#allocation4 + $0x80] sm:$0xff] }
 0x184   : > { %v9262_v45 = vpop.f32.mrf.mxu0  ;;  %v2499_v3 = vld [vmem:[#allocation4 + $0x8] sm:$0xff]  ;;  %v2390_v21 = vpop.f32.mrf.mxu1 }
 0x185   : > { %2197 = vst.msk [vmem:[#allocation4 + $0x28] sm:$0xff] %vm711_vm0, %v2165_v55  ;;  %2565 = vst.msk [vmem:[#allocation4 + $0x18] sm:$0xff] %vm711_vm0, %v2533_v28  ;;  %v2170_v23 = vadd.f32 %v9262_v45, %v2138_v62  ;;  %v2531_v0 = vadd.f32 %v2499_v3, %v2374_v4  ;;  %v2147_v55 = vld [vmem:[#allocation4 + $0x98] sm:$0xff] }
 0x186   : > { %v2033_v13 = vpop.f32.mrf.mxu0  ;;  %v2504_v30 = vld [vmem:[#allocation4 + $0x30] sm:$0xff]  ;;  %v9310_v61 = vpop.f32.mrf.mxu1 }
 0x187   : > { %2202 = vst.msk [vmem:[#allocation4 + $0x50] sm:$0xff] %vm711_vm0, %v2170_v23  ;;  %2563 = vst.msk [vmem:[#allocation4 + $0x8] sm:$0xff] %vm711_vm0, %v2531_v0  ;;  %v2168_v37 = vadd.f32 %v2136_v35, %v2033_v13  ;;  %v2536_v36 = vadd.f32 %v9306_v12, %v2504_v30  ;;  %v2145_v23 = vld [vmem:[#allocation4 + $0x88] sm:$0xff] }
 0x188   : > { %v9263_v24 = vpop.f32.mrf.mxu0  ;;  %v2502_v10 = vld [vmem:[#allocation4 + $0x20] sm:$0xff]  ;;  %v2403_v25 = vpop.f32.mrf.mxu1 }
 0x189   : > { %2200 = vst.msk [vmem:[#allocation4 + $0x40] sm:$0xff] %vm711_vm0, %v2168_v37  ;;  %2568 = vst.msk [vmem:[#allocation4 + $0x30] sm:$0xff] %vm711_vm0, %v2536_v36  ;;  %v2171_v20 = vadd.f32 %v9263_v24, %v2139_v8  ;;  %v2534_v22 = vadd.f32 %v2502_v10, %v2387_v48  ;;  %v2150_v37 = vld [vmem:[#allocation4 + $0xb0] sm:$0xff] }
 0x18a   : > { %v2036_v44 = vpop.f32.mrf.mxu0  ;;  %v2505_v32 = vld [vmem:[#allocation4 + $0x38] sm:$0xff]  ;;  %v9311_v39 = vpop.f32.mrf.mxu1 }
 0x18b   : > { %2203 = vst.msk [vmem:[#allocation4 + $0x58] sm:$0xff] %vm711_vm0, %v2171_v20  ;;  %2566 = vst.msk [vmem:[#allocation4 + $0x20] sm:$0xff] %vm711_vm0, %v2534_v22  ;;  %v2169_v33 = vadd.f32 %v2137_v31, %v2036_v44  ;;  %v2537_v16 = vadd.f32 %v9307_v17, %v2505_v32  ;;  %v2148_v20 = vld [vmem:[#allocation4 + $0xa0] sm:$0xff] }
 0x18c   : > { %v9266_v38 = vpop.f32.mrf.mxu0  ;;  %v2503_v11 = vld [vmem:[#allocation4 + $0x28] sm:$0xff]  ;;  %v2406_v26 = vpop.f32.mrf.mxu1 }
 0x18d   : > { %2201 = vst.msk [vmem:[#allocation4 + $0x48] sm:$0xff] %vm711_vm0, %v2169_v33  ;;  %2569 = vst.msk [vmem:[#allocation4 + $0x38] sm:$0xff] %vm711_vm0, %v2537_v16  ;;  %v2174_v14 = vadd.f32 %v9266_v38, %v2142_v34  ;;  %v2535_v15 = vadd.f32 %v2503_v11, %v2390_v21  ;;  %v2151_v33 = vld [vmem:[#allocation4 + $0xb8] sm:$0xff] }
 0x18e   : > { %v2049_v47 = vpop.f32.mrf.mxu0  ;;  %v2508_v51 = vld [vmem:[#allocation4 + $0x50] sm:$0xff]  ;;  %v9314_v52 = vpop.f32.mrf.mxu1 }
 0x18f   : > { %2206 = vst.msk [vmem:[#allocation4 + $0x70] sm:$0xff] %vm711_vm0, %v2174_v14  ;;  %2567 = vst.msk [vmem:[#allocation4 + $0x28] sm:$0xff] %vm711_vm0, %v2535_v15  ;;  %v2172_v40 = vadd.f32 %v2140_v63, %v2049_v47  ;;  %v2540_v53 = vadd.f32 %v9310_v61, %v2508_v51  ;;  %v2149_v14 = vld [vmem:[#allocation4 + $0xa8] sm:$0xff] }
 0x190   : > { %v9267_v60 = vpop.f32.mrf.mxu0  ;;  %v2506_v18 = vld [vmem:[#allocation4 + $0x40] sm:$0xff]  ;;  %v2419_v54 = vpop.f32.mrf.mxu1 }
 0x191   : > { %2204 = vst.msk [vmem:[#allocation4 + $0x60] sm:$0xff] %vm711_vm0, %v2172_v40  ;;  %2572 = vst.msk [vmem:[#allocation4 + $0x50] sm:$0xff] %vm711_vm0, %v2540_v53  ;;  %v2175_v29 = vadd.f32 %v9267_v60, %v2143_v2  ;;  %v2538_v27 = vadd.f32 %v2506_v18, %v2403_v25  ;;  %v2154_v40 = vld [vmem:[#allocation4 + $0xd0] sm:$0xff] }
 0x192   : > { %v2052_v49 = vpop.f32.mrf.mxu0  ;;  %v2509_v1 = vld [vmem:[#allocation4 + $0x58] sm:$0xff]  ;;  %v9315_v5 = vpop.f32.mrf.mxu1 }
 0x193   : > { %2207 = vst.msk [vmem:[#allocation4 + $0x78] sm:$0xff] %vm711_vm0, %v2175_v29  ;;  %2570 = vst.msk [vmem:[#allocation4 + $0x40] sm:$0xff] %vm711_vm0, %v2538_v27  ;;  %v2173_v4 = vadd.f32 %v2141_v56, %v2052_v49  ;;  %v2541_v58 = vadd.f32 %v9311_v39, %v2509_v1  ;;  %v2152_v29 = vld [vmem:[#allocation4 + $0xc0] sm:$0xff] }
 0x194   : > { %v9270_v7 = vpop.f32.mrf.mxu0  ;;  %v2507_v9 = vld [vmem:[#allocation4 + $0x48] sm:$0xff]  ;;  %v2422_v42 = vpop.f32.mrf.mxu1 }
 0x195   : > { %2205 = vst.msk [vmem:[#allocation4 + $0x68] sm:$0xff] %vm711_vm0, %v2173_v4  ;;  %2573 = vst.msk [vmem:[#allocation4 + $0x58] sm:$0xff] %vm711_vm0, %v2541_v58  ;;  %v2178_v12 = vadd.f32 %v9270_v7, %v2146_v41  ;;  %v2539_v57 = vadd.f32 %v2507_v9, %v2406_v26  ;;  %v2155_v4 = vld [vmem:[#allocation4 + $0xd8] sm:$0xff] }
 0x196   : > { %v2065_v6 = vpop.f32.mrf.mxu0  ;;  %v2512_v19 = vld [vmem:[#allocation4 + $0x70] sm:$0xff]  ;;  %v9318_v50 = vpop.f32.mrf.mxu1 }
 0x197   : > { %2210 = vst.msk [vmem:[#allocation4 + $0x90] sm:$0xff] %vm711_vm0, %v2178_v12  ;;  %2571 = vst.msk [vmem:[#allocation4 + $0x48] sm:$0xff] %vm711_vm0, %v2539_v57  ;;  %v2176_v48 = vadd.f32 %v2144_v46, %v2065_v6  ;;  %v2544_v59 = vadd.f32 %v9314_v52, %v2512_v19  ;;  %v2153_v12 = vld [vmem:[#allocation4 + $0xc8] sm:$0xff] }
 0x198   : > { %v9271_v43 = vpop.f32.mrf.mxu0  ;;  %v2510_v28 = vld [vmem:[#allocation4 + $0x60] sm:$0xff]  ;;  %v2435_v62 = vpop.f32.mrf.mxu1 }
 0x199   : > { %2208 = vst.msk [vmem:[#allocation4 + $0x80] sm:$0xff] %vm711_vm0, %v2176_v48  ;;  %2576 = vst.msk [vmem:[#allocation4 + $0x70] sm:$0xff] %vm711_vm0, %v2544_v59  ;;  %v2179_v17 = vadd.f32 %v9271_v43, %v2147_v55  ;;  %v2542_v45 = vadd.f32 %v2510_v28, %v2419_v54  ;;  %v2158_v48 = vld [vmem:[#allocation4 + $0xf0] sm:$0xff] }
 0x19a   : > { %v2068_v3 = vpop.f32.mrf.mxu0  ;;  %v2513_v0 = vld [vmem:[#allocation4 + $0x78] sm:$0xff]  ;;  %v9319_v35 = vpop.f32.mrf.mxu1 }
 0x19b   : > { %2211 = vst.msk [vmem:[#allocation4 + $0x98] sm:$0xff] %vm711_vm0, %v2179_v17  ;;  %2574 = vst.msk [vmem:[#allocation4 + $0x60] sm:$0xff] %vm711_vm0, %v2542_v45  ;;  %v2177_v21 = vadd.f32 %v2145_v23, %v2068_v3  ;;  %v2545_v13 = vadd.f32 %v9315_v5, %v2513_v0  ;;  %v2156_v17 = vld [vmem:[#allocation4 + $0xe0] sm:$0xff] }
 0x19c   : > { %v9274_v30 = vpop.f32.mrf.mxu0  ;;  %v2511_v36 = vld [vmem:[#allocation4 + $0x68] sm:$0xff]  ;;  %v2438_v8 = vpop.f32.mrf.mxu1 }
 0x19d   : > { %2209 = vst.msk [vmem:[#allocation4 + $0x88] sm:$0xff] %vm711_vm0, %v2177_v21  ;;  %2577 = vst.msk [vmem:[#allocation4 + $0x78] sm:$0xff] %vm711_vm0, %v2545_v13  ;;  %v2182_v61 = vadd.f32 %v9274_v30, %v2150_v37  ;;  %v2543_v24 = vadd.f32 %v2511_v36, %v2422_v42  ;;  %v2159_v21 = vld [vmem:[#allocation4 + $0xf8] sm:$0xff] }
 0x19e   : > { %v2081_v10 = vpop.f32.mrf.mxu0  ;;  %v2516_v22 = vld [vmem:[#allocation4 + $0x90] sm:$0xff]  ;;  %v9322_v31 = vpop.f32.mrf.mxu1 }
 0x19f   : > { %2214 = vst.msk [vmem:[#allocation4 + $0xb0] sm:$0xff] %vm711_vm0, %v2182_v61  ;;  %2575 = vst.msk [vmem:[#allocation4 + $0x68] sm:$0xff] %vm711_vm0, %v2543_v24  ;;  %v2180_v25 = vadd.f32 %v2148_v20, %v2081_v10  ;;  %v2548_v44 = vadd.f32 %v9318_v50, %v2516_v22  ;;  %v2157_v61 = vld [vmem:[#allocation4 + $0xe8] sm:$0xff] }
 0x1a0   : > { %v9275_v32 = vpop.f32.mrf.mxu0  ;;  %v2514_v16 = vld [vmem:[#allocation4 + $0x80] sm:$0xff]  ;;  %v2451_v34 = vpop.f32.mrf.mxu1 }
 0x1a1   : > { %2212 = vst.msk [vmem:[#allocation4 + $0xa0] sm:$0xff] %vm711_vm0, %v2180_v25  ;;  %2580 = vst.msk [vmem:[#allocation4 + $0x90] sm:$0xff] %vm711_vm0, %v2548_v44  ;;  %v2183_v39 = vadd.f32 %v9275_v32, %v2151_v33  ;;  %v2546_v38 = vadd.f32 %v2514_v16, %v2435_v62  ;;  %v2871_v44 = vld [vmem:[#allocation4 + $0x10] sm:$0xff] }
 0x1a2   : > { %v2084_v11 = vpop.f32.mrf.mxu0  ;;  %v2517_v15 = vld [vmem:[#allocation4 + $0x98] sm:$0xff]  ;;  %v9323_v63 = vpop.f32.mrf.mxu1 }
 0x1a3   : > { %2215 = vst.msk [vmem:[#allocation4 + $0xb8] sm:$0xff] %vm711_vm0, %v2183_v39  ;;  %2578 = vst.msk [vmem:[#allocation4 + $0x80] sm:$0xff] %vm711_vm0, %v2546_v38  ;;  %v2181_v26 = vadd.f32 %v2149_v14, %v2084_v11  ;;  %v2549_v47 = vadd.f32 %v9319_v35, %v2517_v15  ;;  %v2869_v38 = vld [vmem:[#allocation4] sm:$0xff] }
 0x1a4   : > { %v9278_v51 = vpop.f32.mrf.mxu0  ;;  %v2515_v53 = vld [vmem:[#allocation4 + $0x88] sm:$0xff]  ;;  %v2454_v2 = vpop.f32.mrf.mxu1 }
 0x1a5   : > { %2213 = vst.msk [vmem:[#allocation4 + $0xa8] sm:$0xff] %vm711_vm0, %v2181_v26  ;;  %2581 = vst.msk [vmem:[#allocation4 + $0x98] sm:$0xff] %vm711_vm0, %v2549_v47  ;;  %v2186_v52 = vadd.f32 %v9278_v51, %v2154_v40  ;;  %v2547_v60 = vadd.f32 %v2515_v53, %v2438_v8  ;;  %v2872_v47 = vld [vmem:[#allocation4 + $0x18] sm:$0xff] }
 0x1a6   : > { %v2097_v18 = vpop.f32.mrf.mxu0  ;;  %v2520_v27 = vld [vmem:[#allocation4 + $0xb0] sm:$0xff]  ;;  %v9326_v56 = vpop.f32.mrf.mxu1 }
 0x1a7   : > { %2218 = vst.msk [vmem:[#allocation4 + $0xd0] sm:$0xff] %vm711_vm0, %v2186_v52  ;;  %2579 = vst.msk [vmem:[#allocation4 + $0x88] sm:$0xff] %vm711_vm0, %v2547_v60  ;;  %v2184_v54 = vadd.f32 %v2152_v29, %v2097_v18  ;;  %v2552_v49 = vadd.f32 %v9322_v31, %v2520_v27  ;;  %v2870_v60 = vld [vmem:[#allocation4 + $0x8] sm:$0xff] }
 0x1a8   : > { %v9279_v1 = vpop.f32.mrf.mxu0  ;;  %v2518_v58 = vld [vmem:[#allocation4 + $0xa0] sm:$0xff]  ;;  %v2467_v41 = vpop.f32.mrf.mxu1 }
 0x1a9   : > { %2216 = vst.msk [vmem:[#allocation4 + $0xc0] sm:$0xff] %vm711_vm0, %v2184_v54  ;;  %2584 = vst.msk [vmem:[#allocation4 + $0xb0] sm:$0xff] %vm711_vm0, %v2552_v49  ;;  %v2187_v5 = vadd.f32 %v9279_v1, %v2155_v4  ;;  %v2550_v7 = vadd.f32 %v2518_v58, %v2451_v34  ;;  %v2875_v49 = vld [vmem:[#allocation4 + $0x30] sm:$0xff] }
 0x1aa   : > { %v2100_v9 = vpop.f32.mrf.mxu0  ;;  %v2521_v57 = vld [vmem:[#allocation4 + $0xb8] sm:$0xff]  ;;  %v9327_v46 = vpop.f32.mrf.mxu1 }
 0x1ab   : > { %2219 = vst.msk [vmem:[#allocation4 + $0xd8] sm:$0xff] %vm711_vm0, %v2187_v5  ;;  %2582 = vst.msk [vmem:[#allocation4 + $0xa0] sm:$0xff] %vm711_vm0, %v2550_v7  ;;  %v2185_v42 = vadd.f32 %v2153_v12, %v2100_v9  ;;  %v2553_v6 = vadd.f32 %v9323_v63, %v2521_v57  ;;  %v2873_v5 = vld [vmem:[#allocation4 + $0x20] sm:$0xff] }
 0x1ac   : > { %v9282_v19 = vpop.f32.mrf.mxu0  ;;  %v2519_v59 = vld [vmem:[#allocation4 + $0xa8] sm:$0xff]  ;;  %v2470_v55 = vpop.f32.mrf.mxu1 }
 0x1ad   : > { %2217 = vst.msk [vmem:[#allocation4 + $0xc8] sm:$0xff] %vm711_vm0, %v2185_v42  ;;  %2585 = vst.msk [vmem:[#allocation4 + $0xb8] sm:$0xff] %vm711_vm0, %v2553_v6  ;;  %v2190_v50 = vadd.f32 %v9282_v19, %v2158_v48  ;;  %v2551_v43 = vadd.f32 %v2519_v59, %v2454_v2  ;;  %v2876_v42 = vld [vmem:[#allocation4 + $0x38] sm:$0xff] }
 0x1ae   : > { %v2113_v28 = vpop.f32.mrf.mxu0  ;;  %v2524_v45 = vld [vmem:[#allocation4 + $0xd0] sm:$0xff]  ;;  %v9330_v23 = vpop.f32.mrf.mxu1 }
 0x1af   : > { %2222 = vst.msk [vmem:[#allocation4 + $0xf0] sm:$0xff] %vm711_vm0, %v2190_v50  ;;  %2583 = vst.msk [vmem:[#allocation4 + $0xa8] sm:$0xff] %vm711_vm0, %v2551_v43  ;;  %v2188_v62 = vadd.f32 %v2156_v17, %v2113_v28  ;;  %v2556_v3 = vadd.f32 %v9326_v56, %v2524_v45  ;;  %v2874_v50 = vld [vmem:[#allocation4 + $0x28] sm:$0xff] }
 0x1b0   : > { %v9283_v0 = vpop.f32.mrf.mxu0  ;;  %v2522_v13 = vld [vmem:[#allocation4 + $0xc0] sm:$0xff]  ;;  %v2483_v37 = vpop.f32.mrf.mxu1 }
 0x1b1   : > { %2220 = vst.msk [vmem:[#allocation4 + $0xe0] sm:$0xff] %vm711_vm0, %v2188_v62  ;;  %2588 = vst.msk [vmem:[#allocation4 + $0xd0] sm:$0xff] %vm711_vm0, %v2556_v3  ;;  %v2191_v35 = vadd.f32 %v9283_v0, %v2159_v21  ;;  %v2554_v30 = vadd.f32 %v2522_v13, %v2467_v41  ;;  %v10097_v62 = vld [vmem:[%s12578_s1 + $0x270] sm:$0xff]  }
 0x1b2   : > { %v2116_v36 = vpop.f32.mrf.mxu0  ;;  %v2525_v24 = vld [vmem:[#allocation4 + $0xd8] sm:$0xff]  ;;  %v9331_v20 = vpop.f32.mrf.mxu1 }
 0x1b3   : > { %2223 = vst.msk [vmem:[#allocation4 + $0xf8] sm:$0xff] %vm711_vm0, %v2191_v35  ;;  %2586 = vst.msk [vmem:[#allocation4 + $0xc0] sm:$0xff] %vm711_vm0, %v2554_v30  ;;  %v2189_v8 = vadd.f32 %v2157_v61, %v2116_v36  ;;  %v2557_v10 = vadd.f32 %v9327_v46, %v2525_v24  ;;  %v11299_v30 = vld [vmem:[%s12578_s1 + $0x2b8] sm:$0xff]   ;;  %v2877_v36 = vld [vmem:[#allocation4 + $0x40] sm:$0xff] }
 0x1b4   : > { %v2523_v22 = vld [vmem:[#allocation4 + $0xc8] sm:$0xff]  ;;  %v9350_v25 = vpop.f32.mrf.mxu0  ;;  %v2486_v33 = vpop.f32.mrf.mxu1  ;;  %v10098_v24 = vld [vmem:[%s12578_s1 + $0x268] sm:$0xff]   ;;  %9560 = vmatprep.subr.bf16.mxu1 %v11299_v30 }
 0x1b5   : > { %2221 = vst.msk [vmem:[#allocation4 + $0xe8] sm:$0xff] %vm711_vm0, %v2189_v8  ;;  %2589 = vst.msk [vmem:[#allocation4 + $0xd8] sm:$0xff] %vm711_vm0, %v2557_v10  ;;  %v2555_v31 = vadd.f32 %v2523_v22, %v2470_v55  ;;  %v2903_v32 = vadd.f32 %v9350_v25, %v2871_v44  ;;  %v10096_v55 = vld [vmem:[%s12578_s1 + $0x278] sm:$0xff]   ;;  %v2880_v25 = vld [vmem:[#allocation4 + $0x58] sm:$0xff] }
 0x1b6   : > { %v2528_v16 = vld [vmem:[#allocation4 + $0xf0] sm:$0xff]  ;;  %v2742_v39 = vpop.f32.mrf.mxu0  ;;  %v9398_v14 = vpop.f32.mrf.mxu1  ;;  %9512 = vmatprep.subr.bf16.mxu0 %v10096_v55 }
 0x1b7   : > { %2587 = vst.msk [vmem:[#allocation4 + $0xc8] sm:$0xff] %vm711_vm0, %v2555_v31  ;;  %2935 = vst.msk [vmem:[#allocation4 + $0x10] sm:$0xff] %vm711_vm0, %v2903_v32  ;;  %v2560_v34 = vadd.f32 %v9330_v23, %v2528_v16  ;;  %v2901_v11 = vadd.f32 %v2869_v38, %v2742_v39  ;;  %v2879_v23 = vld [vmem:[#allocation4 + $0x50] sm:$0xff]  ;;  %9513 = vmatpush3.bf16.msra.mxu0 %v10096_v55  ;;  %v2878_v39 = vld [vmem:[#allocation4 + $0x48] sm:$0xff] }
 0x1b8   : > { %v2526_v15 = vld [vmem:[#allocation4 + $0xe0] sm:$0xff]  ;;  %v9351_v26 = vpop.f32.mrf.mxu0  ;;  %v3112_v40 = vpop.f32.mrf.mxu1  ;;  %9514 = vmatprep.subr.bf16.mxu0 %v10097_v62 }
 0x1b9   : > { %2592 = vst.msk [vmem:[#allocation4 + $0xf0] sm:$0xff] %vm711_vm0, %v2560_v34  ;;  %2933 = vst.msk [vmem:[#allocation4] sm:$0xff] %vm711_vm0, %v2901_v11  ;;  %v2558_v63 = vadd.f32 %v2526_v15, %v2483_v37  ;;  %v2904_v51 = vadd.f32 %v9351_v26, %v2872_v47  ;;  %v10099_v34 = vld [vmem:[%s12578_s1 + $0x260] sm:$0xff]  }
 0x1ba   : > { %v2529_v53 = vld [vmem:[#allocation4 + $0xf8] sm:$0xff]  ;;  %v2745_v52 = vpop.f32.mrf.mxu0  ;;  %v9399_v29 = vpop.f32.mrf.mxu1  ;;  %v2883_v47 = vld [vmem:[#allocation4 + $0x70] sm:$0xff] }
 0x1bb   : > { %2590 = vst.msk [vmem:[#allocation4 + $0xe0] sm:$0xff] %vm711_vm0, %v2558_v63  ;;  %2936 = vst.msk [vmem:[#allocation4 + $0x18] sm:$0xff] %vm711_vm0, %v2904_v51  ;;  %v2561_v2 = vadd.f32 %v9331_v20, %v2529_v53  ;;  %v2902_v18 = vadd.f32 %v2870_v60, %v2745_v52  ;;  %9515 = vmatpush3.bf16.msra.mxu0 %v10097_v62  ;;  %v2881_v60 = vld [vmem:[#allocation4 + $0x60] sm:$0xff] }
 0x1bc   : > { %v2527_v27 = vld [vmem:[#allocation4 + $0xe8] sm:$0xff]  ;;  %v9354_v54 = vpop.f32.mrf.mxu0  ;;  %v3115_v4 = vpop.f32.mrf.mxu1  ;;  %9516 = vmatprep.subr.bf16.mxu0 %v10098_v24 }
 0x1bd   : > { %2593 = vst.msk [vmem:[#allocation4 + $0xf8] sm:$0xff] %vm711_vm0, %v2561_v2  ;;  %2934 = vst.msk [vmem:[#allocation4 + $0x8] sm:$0xff] %vm711_vm0, %v2902_v18  ;;  %v2559_v56 = vadd.f32 %v2527_v27, %v2486_v33  ;;  %v2907_v1 = vadd.f32 %v9354_v54, %v2875_v49  ;;  %v10100_v18 = vld [vmem:[%s12578_s1 + $0x258] sm:$0xff]  }
 0x1be   : > { %v2758_v58 = vpop.f32.mrf.mxu0  ;;  %v3241_v7 = vld [vmem:[#allocation4 + $0x10] sm:$0xff]  ;;  %v9402_v12 = vpop.f32.mrf.mxu1 }
 0x1bf   : > { %2591 = vst.msk [vmem:[#allocation4 + $0xe8] sm:$0xff] %vm711_vm0, %v2559_v56  ;;  %2939 = vst.msk [vmem:[#allocation4 + $0x30] sm:$0xff] %vm711_vm0, %v2907_v1  ;;  %v2905_v41 = vadd.f32 %v2873_v5, %v2758_v58  ;;  %v3273_v9 = vadd.f32 %v9398_v14, %v3241_v7  ;;  %9517 = vmatpush3.bf16.msra.mxu0 %v10098_v24  ;;  %v2884_v56 = vld [vmem:[#allocation4 + $0x78] sm:$0xff] }
 0x1c0   : > { %v9355_v57 = vpop.f32.mrf.mxu0  ;;  %v3239_v6 = vld [vmem:[#allocation4] sm:$0xff]  ;;  %v3128_v48 = vpop.f32.mrf.mxu1  ;;  %9518 = vmatprep.subr.bf16.mxu0 %v10099_v34 }
 0x1c1   : > { %2937 = vst.msk [vmem:[#allocation4 + $0x20] sm:$0xff] %vm711_vm0, %v2905_v41  ;;  %3305 = vst.msk [vmem:[#allocation4 + $0x10] sm:$0xff] %vm711_vm0, %v3273_v9  ;;  %v2908_v46 = vadd.f32 %v9355_v57, %v2876_v42  ;;  %v3271_v19 = vadd.f32 %v3239_v6, %v3112_v40  ;;  %v2882_v41 = vld [vmem:[#allocation4 + $0x68] sm:$0xff] }
 0x1c2   : > { %v2761_v59 = vpop.f32.mrf.mxu0  ;;  %v3242_v43 = vld [vmem:[#allocation4 + $0x18] sm:$0xff]  ;;  %v9403_v45 = vpop.f32.mrf.mxu1 }
 0x1c3   : > { %2940 = vst.msk [vmem:[#allocation4 + $0x38] sm:$0xff] %vm711_vm0, %v2908_v46  ;;  %3303 = vst.msk [vmem:[#allocation4] sm:$0xff] %vm711_vm0, %v3271_v19  ;;  %v2906_v28 = vadd.f32 %v2874_v50, %v2761_v59  ;;  %v3274_v17 = vadd.f32 %v9399_v29, %v3242_v43  ;;  %9519 = vmatpush3.bf16.msra.mxu0 %v10099_v34  ;;  %v2887_v19 = vld [vmem:[#allocation4 + $0x90] sm:$0xff] }
 0x1c4   : > { %v9358_v3 = vpop.f32.mrf.mxu0  ;;  %v3240_v0 = vld [vmem:[#allocation4 + $0x8] sm:$0xff]  ;;  %v3131_v35 = vpop.f32.mrf.mxu1  ;;  %9520 = vmatprep.subr.bf16.mxu0 %v10100_v18 }
 0x1c5   : > { %2938 = vst.msk [vmem:[#allocation4 + $0x28] sm:$0xff] %vm711_vm0, %v2906_v28  ;;  %3306 = vst.msk [vmem:[#allocation4 + $0x18] sm:$0xff] %vm711_vm0, %v3274_v17  ;;  %v2911_v21 = vadd.f32 %v9358_v3, %v2879_v23  ;;  %v3272_v13 = vadd.f32 %v3240_v0, %v3115_v4  ;;  %v2885_v28 = vld [vmem:[#allocation4 + $0x80] sm:$0xff]  ;;  %v2888_v0 = vld [vmem:[#allocation4 + $0x98] sm:$0xff] }
 0x1c6   : > { %v2774_v37 = vpop.f32.mrf.mxu0  ;;  %v3245_v61 = vld [vmem:[#allocation4 + $0x30] sm:$0xff]  ;;  %v9406_v20 = vpop.f32.mrf.mxu1 }
 0x1c7   : > { %2943 = vst.msk [vmem:[#allocation4 + $0x50] sm:$0xff] %vm711_vm0, %v2911_v21  ;;  %3304 = vst.msk [vmem:[#allocation4 + $0x8] sm:$0xff] %vm711_vm0, %v3272_v13  ;;  %v2909_v8 = vadd.f32 %v2877_v36, %v2774_v37  ;;  %v3277_v10 = vadd.f32 %v9402_v12, %v3245_v61  ;;  %v10103_v12 = vld [vmem:[%s12578_s1 + $0x250] sm:$0xff]   ;;  %9521 = vmatpush3.bf16.msra.mxu0 %v10100_v18  ;;  %v2886_v61 = vld [vmem:[#allocation4 + $0x88] sm:$0xff] }
 0x1c8   : > { %v9359_v22 = vpop.f32.mrf.mxu0  ;;  %v3243_v44 = vld [vmem:[#allocation4 + $0x20] sm:$0xff]  ;;  %v3144_v33 = vpop.f32.mrf.mxu1  ;;  %9522 = vmatprep.subr.bf16.mxu0 %v10103_v12 }
 0x1c9   : > { %2941 = vst.msk [vmem:[#allocation4 + $0x40] sm:$0xff] %vm711_vm0, %v2909_v8  ;;  %3309 = vst.msk [vmem:[#allocation4 + $0x30] sm:$0xff] %vm711_vm0, %v3277_v10  ;;  %v2912_v31 = vadd.f32 %v9359_v22, %v2880_v25  ;;  %v3275_v32 = vadd.f32 %v3243_v44, %v3128_v48  ;;  %v2891_v25 = vld [vmem:[#allocation4 + $0xb0] sm:$0xff] }
 0x1ca   : > { %v2777_v16 = vpop.f32.mrf.mxu0  ;;  %v3246_v38 = vld [vmem:[#allocation4 + $0x38] sm:$0xff]  ;;  %v9407_v15 = vpop.f32.mrf.mxu1 }
 0x1cb   : > { %2944 = vst.msk [vmem:[#allocation4 + $0x58] sm:$0xff] %vm711_vm0, %v2912_v31  ;;  %3307 = vst.msk [vmem:[#allocation4 + $0x20] sm:$0xff] %vm711_vm0, %v3275_v32  ;;  %v2910_v11 = vadd.f32 %v2878_v39, %v2777_v16  ;;  %v3278_v14 = vadd.f32 %v9403_v45, %v3246_v38  ;;  %9523 = vmatpush3.bf16.msra.mxu0 %v10103_v12  ;;  %v2889_v39 = vld [vmem:[#allocation4 + $0xa0] sm:$0xff] }
 0x1cc   : > { %v9362_v26 = vpop.f32.mrf.mxu0  ;;  %v3244_v63 = vld [vmem:[#allocation4 + $0x28] sm:$0xff]  ;;  %v3147_v53 = vpop.f32.mrf.mxu1 }
 0x1cd   : > { %2942 = vst.msk [vmem:[#allocation4 + $0x48] sm:$0xff] %vm711_vm0, %v2910_v11  ;;  %3310 = vst.msk [vmem:[#allocation4 + $0x38] sm:$0xff] %vm711_vm0, %v3278_v14  ;;  %v2915_v51 = vadd.f32 %v9362_v26, %v2883_v47  ;;  %v3276_v40 = vadd.f32 %v3244_v63, %v3131_v35  ;;  %v2892_v26 = vld [vmem:[#allocation4 + $0xb8] sm:$0xff] }
 0x1ce   : > { %v2790_v52 = vpop.f32.mrf.mxu0  ;;  %v3249_v2 = vld [vmem:[#allocation4 + $0x50] sm:$0xff]  ;;  %v9410_v54 = vpop.f32.mrf.mxu1 }
 0x1cf   : > { %2947 = vst.msk [vmem:[#allocation4 + $0x70] sm:$0xff] %vm711_vm0, %v2915_v51  ;;  %3308 = vst.msk [vmem:[#allocation4 + $0x28] sm:$0xff] %vm711_vm0, %v3276_v40  ;;  %v2913_v29 = vadd.f32 %v2881_v60, %v2790_v52  ;;  %v3281_v27 = vadd.f32 %v9406_v20, %v3249_v2  ;;  %v2890_v52 = vld [vmem:[#allocation4 + $0xa8] sm:$0xff] }
 0x1d0   : > { %v9363_v49 = vpop.f32.mrf.mxu0  ;;  %v3247_v1 = vld [vmem:[#allocation4 + $0x40] sm:$0xff]  ;;  %v3160_v5 = vpop.f32.mrf.mxu1 }
 0x1d1   : > { %2945 = vst.msk [vmem:[#allocation4 + $0x60] sm:$0xff] %vm711_vm0, %v2913_v29  ;;  %3313 = vst.msk [vmem:[#allocation4 + $0x50] sm:$0xff] %vm711_vm0, %v3281_v27  ;;  %v2916_v4 = vadd.f32 %v9363_v49, %v2884_v56  ;;  %v3279_v58 = vadd.f32 %v3247_v1, %v3144_v33 }
 0x1d2   : > { %v2793_v7 = vpop.f32.mrf.mxu0  ;;  %v3250_v9 = vld [vmem:[#allocation4 + $0x58] sm:$0xff]  ;;  %v9411_v6 = vpop.f32.mrf.mxu1 }
 0x1d3   : > { %2948 = vst.msk [vmem:[#allocation4 + $0x78] sm:$0xff] %vm711_vm0, %v2916_v4  ;;  %3311 = vst.msk [vmem:[#allocation4 + $0x40] sm:$0xff] %vm711_vm0, %v3279_v58  ;;  %v2914_v57 = vadd.f32 %v2882_v41, %v2793_v7  ;;  %v3282_v42 = vadd.f32 %v9407_v15, %v3250_v9 }
 0x1d4   : > { %v9366_v46 = vpop.f32.mrf.mxu0  ;;  %v3248_v48 = vld [vmem:[#allocation4 + $0x48] sm:$0xff]  ;;  %v3163_v43 = vpop.f32.mrf.mxu1 }
 0x1d5   : > { %2946 = vst.msk [vmem:[#allocation4 + $0x68] sm:$0xff] %vm711_vm0, %v2914_v57  ;;  %3314 = vst.msk [vmem:[#allocation4 + $0x58] sm:$0xff] %vm711_vm0, %v3282_v42  ;;  %v2919_v59 = vadd.f32 %v9366_v46, %v2887_v19  ;;  %v3280_v50 = vadd.f32 %v3248_v48, %v3147_v53  ;;  %v2896_v42 = vld [vmem:[#allocation4 + $0xd8] sm:$0xff] }
 0x1d6   : > { %v2806_v55 = vpop.f32.mrf.mxu0  ;;  %v3253_v17 = vld [vmem:[#allocation4 + $0x70] sm:$0xff]  ;;  %v9414_v3 = vpop.f32.mrf.mxu1 }
 0x1d7   : > { %2951 = vst.msk [vmem:[#allocation4 + $0x90] sm:$0xff] %vm711_vm0, %v2919_v59  ;;  %3312 = vst.msk [vmem:[#allocation4 + $0x48] sm:$0xff] %vm711_vm0, %v3280_v50  ;;  %v2917_v45 = vadd.f32 %v2885_v28, %v2806_v55  ;;  %v3285_v62 = vadd.f32 %v9410_v54, %v3253_v17  ;;  %v2895_v54 = vld [vmem:[#allocation4 + $0xd0] sm:$0xff]  ;;  %v2894_v50 = vld [vmem:[#allocation4 + $0xc8] sm:$0xff] }
 0x1d8   : > { %v9367_v23 = vpop.f32.mrf.mxu0  ;;  %v3251_v21 = vld [vmem:[#allocation4 + $0x60] sm:$0xff]  ;;  %v3176_v37 = vpop.f32.mrf.mxu1 }
 0x1d9   : > { %2949 = vst.msk [vmem:[#allocation4 + $0x80] sm:$0xff] %vm711_vm0, %v2917_v45  ;;  %3317 = vst.msk [vmem:[#allocation4 + $0x70] sm:$0xff] %vm711_vm0, %v3285_v62  ;;  %v2920_v13 = vadd.f32 %v9367_v23, %v2888_v0  ;;  %v3283_v35 = vadd.f32 %v3251_v21, %v3160_v5  ;;  %v2893_v5 = vld [vmem:[#allocation4 + $0xc0] sm:$0xff]  ;;  %v2899_v62 = vld [vmem:[#allocation4 + $0xf0] sm:$0xff] }
 0x1da   : > { %v2809_v36 = vpop.f32.mrf.mxu0  ;;  %v3254_v24 = vld [vmem:[#allocation4 + $0x78] sm:$0xff]  ;;  %v9415_v20 = vpop.f32.mrf.mxu1 }
 0x1db   : > { %2952 = vst.msk [vmem:[#allocation4 + $0x98] sm:$0xff] %vm711_vm0, %v2920_v13  ;;  %3315 = vst.msk [vmem:[#allocation4 + $0x60] sm:$0xff] %vm711_vm0, %v3283_v35  ;;  %v2918_v8 = vadd.f32 %v2886_v61, %v2809_v36  ;;  %v3286_v10 = vadd.f32 %v9411_v6, %v3254_v24  ;;  %v2897_v35 = vld [vmem:[#allocation4 + $0xe0] sm:$0xff] }
 0x1dc   : > { %v9370_v22 = vpop.f32.mrf.mxu0  ;;  %v3252_v44 = vld [vmem:[#allocation4 + $0x68] sm:$0xff]  ;;  %v3179_v33 = vpop.f32.mrf.mxu1 }
 0x1dd   : > { %2950 = vst.msk [vmem:[#allocation4 + $0x88] sm:$0xff] %vm711_vm0, %v2918_v8  ;;  %3318 = vst.msk [vmem:[#allocation4 + $0x78] sm:$0xff] %vm711_vm0, %v3286_v10  ;;  %v2923_v31 = vadd.f32 %v9370_v22, %v2891_v25  ;;  %v3284_v32 = vadd.f32 %v3252_v44, %v3163_v43  ;;  %v2900_v10 = vld [vmem:[#allocation4 + $0xf8] sm:$0xff] }
 0x1de   : > { %v2822_v16 = vpop.f32.mrf.mxu0  ;;  %v3257_v38 = vld [vmem:[#allocation4 + $0x90] sm:$0xff]  ;;  %v9418_v14 = vpop.f32.mrf.mxu1 }
 0x1df   : > { %2955 = vst.msk [vmem:[#allocation4 + $0xb0] sm:$0xff] %vm711_vm0, %v2923_v31  ;;  %3316 = vst.msk [vmem:[#allocation4 + $0x68] sm:$0xff] %vm711_vm0, %v3284_v32  ;;  %v2921_v34 = vadd.f32 %v2889_v39, %v2822_v16  ;;  %v3289_v11 = vadd.f32 %v9414_v3, %v3257_v38  ;;  %v2898_v31 = vld [vmem:[#allocation4 + $0xe8] sm:$0xff] }
 0x1e0   : > { %v9371_v15 = vpop.f32.mrf.mxu0  ;;  %v3255_v47 = vld [vmem:[#allocation4 + $0x80] sm:$0xff]  ;;  %v3192_v40 = vpop.f32.mrf.mxu1 }
 0x1e1   : > { %2953 = vst.msk [vmem:[#allocation4 + $0xa0] sm:$0xff] %vm711_vm0, %v2921_v34  ;;  %3321 = vst.msk [vmem:[#allocation4 + $0x90] sm:$0xff] %vm711_vm0, %v3289_v11  ;;  %v2924_v63 = vadd.f32 %v9371_v15, %v2892_v26  ;;  %v3287_v51 = vadd.f32 %v3255_v47, %v3176_v37  ;;  %v3611_v11 = vld [vmem:[#allocation4 + $0x10] sm:$0xff] }
 0x1e2   : > { %v2825_v53 = vpop.f32.mrf.mxu0  ;;  %v3258_v60 = vld [vmem:[#allocation4 + $0x98] sm:$0xff]  ;;  %v9419_v29 = vpop.f32.mrf.mxu1 }
 0x1e3   : > { %2956 = vst.msk [vmem:[#allocation4 + $0xb8] sm:$0xff] %vm711_vm0, %v2924_v63  ;;  %3319 = vst.msk [vmem:[#allocation4 + $0x80] sm:$0xff] %vm711_vm0, %v3287_v51  ;;  %v2922_v2 = vadd.f32 %v2890_v52, %v2825_v53  ;;  %v3290_v18 = vadd.f32 %v9415_v20, %v3258_v60  ;;  %v3609_v63 = vld [vmem:[#allocation4] sm:$0xff] }
 0x1e4   : > { %v9374_v27 = vpop.f32.mrf.mxu0  ;;  %v3256_v49 = vld [vmem:[#allocation4 + $0x88] sm:$0xff]  ;;  %v3195_v4 = vpop.f32.mrf.mxu1 }
 0x1e5   : > { %2954 = vst.msk [vmem:[#allocation4 + $0xa8] sm:$0xff] %vm711_vm0, %v2922_v2  ;;  %3322 = vst.msk [vmem:[#allocation4 + $0x98] sm:$0xff] %vm711_vm0, %v3290_v18  ;;  %v2927_v56 = vadd.f32 %v9374_v27, %v2895_v54  ;;  %v3288_v1 = vadd.f32 %v3256_v49, %v3179_v33  ;;  %v3612_v2 = vld [vmem:[#allocation4 + $0x18] sm:$0xff]  ;;  %v3610_v49 = vld [vmem:[#allocation4 + $0x8] sm:$0xff] }
 0x1e6   : > { %v2838_v58 = vpop.f32.mrf.mxu0  ;;  %v3261_v7 = vld [vmem:[#allocation4 + $0xb0] sm:$0xff]  ;;  %v9422_v12 = vpop.f32.mrf.mxu1 }
 0x1e7   : > { %2959 = vst.msk [vmem:[#allocation4 + $0xd0] sm:$0xff] %vm711_vm0, %v2927_v56  ;;  %3320 = vst.msk [vmem:[#allocation4 + $0x88] sm:$0xff] %vm711_vm0, %v3288_v1  ;;  %v2925_v41 = vadd.f32 %v2893_v5, %v2838_v58  ;;  %v3293_v9 = vadd.f32 %v9418_v14, %v3261_v7  ;;  %v3615_v7 = vld [vmem:[#allocation4 + $0x30] sm:$0xff] }
 0x1e8   : > { %v9375_v57 = vpop.f32.mrf.mxu0  ;;  %v3259_v6 = vld [vmem:[#allocation4 + $0xa0] sm:$0xff]  ;;  %v3208_v48 = vpop.f32.mrf.mxu1 }
 0x1e9   : > { %2957 = vst.msk [vmem:[#allocation4 + $0xc0] sm:$0xff] %vm711_vm0, %v2925_v41  ;;  %3325 = vst.msk [vmem:[#allocation4 + $0xb0] sm:$0xff] %vm711_vm0, %v3293_v9  ;;  %v2928_v46 = vadd.f32 %v9375_v57, %v2896_v42  ;;  %v3291_v19 = vadd.f32 %v3259_v6, %v3192_v40  ;;  %v3613_v57 = vld [vmem:[#allocation4 + $0x20] sm:$0xff] }
 0x1ea   : > { %v2841_v59 = vpop.f32.mrf.mxu0  ;;  %v3262_v43 = vld [vmem:[#allocation4 + $0xb8] sm:$0xff]  ;;  %v9423_v17 = vpop.f32.mrf.mxu1 }
 0x1eb   : > { %2960 = vst.msk [vmem:[#allocation4 + $0xd8] sm:$0xff] %vm711_vm0, %v2928_v46  ;;  %3323 = vst.msk [vmem:[#allocation4 + $0xa0] sm:$0xff] %vm711_vm0, %v3291_v19  ;;  %v2926_v55 = vadd.f32 %v2894_v50, %v2841_v59  ;;  %v3294_v28 = vadd.f32 %v9419_v29, %v3262_v43  ;;  %v3616_v46 = vld [vmem:[#allocation4 + $0x38] sm:$0xff]  ;;  %v3614_v59 = vld [vmem:[#allocation4 + $0x28] sm:$0xff] }
 0x1ec   : > { %v9378_v45 = vpop.f32.mrf.mxu0  ;;  %v3260_v3 = vld [vmem:[#allocation4 + $0xa8] sm:$0xff]  ;;  %v3211_v21 = vpop.f32.mrf.mxu1 }
 0x1ed   : > { %2958 = vst.msk [vmem:[#allocation4 + $0xc8] sm:$0xff] %vm711_vm0, %v2926_v55  ;;  %3326 = vst.msk [vmem:[#allocation4 + $0xb8] sm:$0xff] %vm711_vm0, %v3294_v28  ;;  %v2931_v23 = vadd.f32 %v9378_v45, %v2899_v62  ;;  %v3292_v0 = vadd.f32 %v3260_v3, %v3195_v4  ;;  %v3619_v45 = vld [vmem:[#allocation4 + $0x50] sm:$0xff] }
 0x1ee   : > { %v2854_v13 = vpop.f32.mrf.mxu0  ;;  %v3265_v37 = vld [vmem:[#allocation4 + $0xd0] sm:$0xff]  ;;  %v9426_v24 = vpop.f32.mrf.mxu1 }
 0x1ef   : > { %2963 = vst.msk [vmem:[#allocation4 + $0xf0] sm:$0xff] %vm711_vm0, %v2931_v23  ;;  %3324 = vst.msk [vmem:[#allocation4 + $0xa8] sm:$0xff] %vm711_vm0, %v3292_v0  ;;  %v2929_v36 = vadd.f32 %v2897_v35, %v2854_v13  ;;  %v3297_v61 = vadd.f32 %v9422_v12, %v3265_v37  ;;  %v3617_v35 = vld [vmem:[#allocation4 + $0x40] sm:$0xff] }
 0x1f0   : > { %v9379_v8 = vpop.f32.mrf.mxu0  ;;  %v3263_v20 = vld [vmem:[#allocation4 + $0xc0] sm:$0xff]  ;;  %v3224_v33 = vpop.f32.mrf.mxu1 }
 0x1f1   : > { %2961 = vst.msk [vmem:[#allocation4 + $0xe0] sm:$0xff] %vm711_vm0, %v2929_v36  ;;  %3329 = vst.msk [vmem:[#allocation4 + $0xd0] sm:$0xff] %vm711_vm0, %v3297_v61  ;;  %v2932_v22 = vadd.f32 %v9379_v8, %v2900_v10  ;;  %v3295_v25 = vadd.f32 %v3263_v20, %v3208_v48  ;;  %v3620_v8 = vld [vmem:[#allocation4 + $0x58] sm:$0xff]  ;;  %v10102_v20 = vld [vmem:[%s12578_s1 + $0x2b0] sm:$0xff]  }
 0x1f2   : > { %v2857_v44 = vpop.f32.mrf.mxu0  ;;  %v3266_v32 = vld [vmem:[#allocation4 + $0xd8] sm:$0xff]  ;;  %v9427_v51 = vpop.f32.mrf.mxu1 }
 0x1f3   : > { %2964 = vst.msk [vmem:[#allocation4 + $0xf8] sm:$0xff] %vm711_vm0, %v2932_v22  ;;  %3327 = vst.msk [vmem:[#allocation4 + $0xc0] sm:$0xff] %vm711_vm0, %v3295_v25  ;;  %v2930_v16 = vadd.f32 %v2898_v31, %v2857_v44  ;;  %v3298_v39 = vadd.f32 %v9423_v17, %v3266_v32  ;;  %v3618_v44 = vld [vmem:[#allocation4 + $0x48] sm:$0xff] }
 0x1f4   : > { %v3264_v38 = vld [vmem:[#allocation4 + $0xc8] sm:$0xff]  ;;  %v9446_v34 = vpop.f32.mrf.mxu0  ;;  %v3227_v56 = vpop.f32.mrf.mxu1 }
 0x1f5   : > { %2962 = vst.msk [vmem:[#allocation4 + $0xe8] sm:$0xff] %vm711_vm0, %v2930_v16  ;;  %3330 = vst.msk [vmem:[#allocation4 + $0xd8] sm:$0xff] %vm711_vm0, %v3298_v39  ;;  %v3296_v14 = vadd.f32 %v3264_v38, %v3211_v21  ;;  %v3643_v15 = vadd.f32 %v9446_v34, %v3611_v11  ;;  %v3623_v38 = vld [vmem:[#allocation4 + $0x70] sm:$0xff] }
 0x1f6   : > { %v3269_v26 = vld [vmem:[#allocation4 + $0xf0] sm:$0xff]  ;;  %v3482_v47 = vpop.f32.mrf.mxu0 }
 0x1f7   : > { %3328 = vst.msk [vmem:[#allocation4 + $0xc8] sm:$0xff] %vm711_vm0, %v3296_v14  ;;  %3675 = vst.msk [vmem:[#allocation4 + $0x10] sm:$0xff] %vm711_vm0, %v3643_v15  ;;  %v3301_v40 = vadd.f32 %v9426_v24, %v3269_v26  ;;  %v3641_v53 = vadd.f32 %v3609_v63, %v3482_v47  ;;  %v10104_v14 = vld [vmem:[%s12578_s1 + $0x2a8] sm:$0xff]  }
 0x1f8   : > { %v3267_v52 = vld [vmem:[#allocation4 + $0xe0] sm:$0xff]  ;;  %v9447_v60 = vpop.f32.mrf.mxu0 }
 0x1f9   : > { %3333 = vst.msk [vmem:[#allocation4 + $0xf0] sm:$0xff] %vm711_vm0, %v3301_v40  ;;  %3673 = vst.msk [vmem:[#allocation4] sm:$0xff] %vm711_vm0, %v3641_v53  ;;  %v3299_v18 = vadd.f32 %v3267_v52, %v3224_v33  ;;  %v3644_v29 = vadd.f32 %v9447_v60, %v3612_v2  ;;  %v3624_v60 = vld [vmem:[#allocation4 + $0x78] sm:$0xff] }
 0x1fa   : > { %v3270_v27 = vld [vmem:[#allocation4 + $0xf8] sm:$0xff]  ;;  %v3485_v54 = vpop.f32.mrf.mxu0 }
 0x1fb   : > { %3331 = vst.msk [vmem:[#allocation4 + $0xe0] sm:$0xff] %vm711_vm0, %v3299_v18  ;;  %3676 = vst.msk [vmem:[#allocation4 + $0x18] sm:$0xff] %vm711_vm0, %v3644_v29  ;;  %v3302_v1 = vadd.f32 %v9427_v51, %v3270_v27  ;;  %v3642_v4 = vadd.f32 %v3610_v49, %v3485_v54  ;;  %v3621_v51 = vld [vmem:[#allocation4 + $0x60] sm:$0xff]  ;;  %v3622_v27 = vld [vmem:[#allocation4 + $0x68] sm:$0xff] }
 0x1fc   : > { %v3268_v58 = vld [vmem:[#allocation4 + $0xe8] sm:$0xff]  ;;  %v9450_v5 = vpop.f32.mrf.mxu0 }
 0x1fd   : > { %3334 = vst.msk [vmem:[#allocation4 + $0xf8] sm:$0xff] %vm711_vm0, %v3302_v1  ;;  %3674 = vst.msk [vmem:[#allocation4 + $0x8] sm:$0xff] %vm711_vm0, %v3642_v4  ;;  %v3300_v41 = vadd.f32 %v3268_v58, %v3227_v56  ;;  %v3647_v9 = vadd.f32 %v9450_v5, %v3615_v7  ;;  %v3627_v58 = vld [vmem:[#allocation4 + $0x90] sm:$0xff] }
 0x1fe   : > { %v3498_v12 = vpop.f32.mrf.mxu0  ;;  %v3707_v28 = vld [vmem:[#allocation4 + $0x10] sm:$0xff] }
 0x1ff   : > { %3332 = vst.msk [vmem:[#allocation4 + $0xe8] sm:$0xff] %vm711_vm0, %v3300_v41  ;;  %3679 = vst.msk [vmem:[#allocation4 + $0x30] sm:$0xff] %vm711_vm0, %v3647_v9  ;;  %v3645_v42 = vadd.f32 %v3613_v57, %v3498_v12  ;;  %v3739_v37 = vmax.f32 %v3707_v28, 0.0  ;;  %v3626_v28 = vld [vmem:[#allocation4 + $0x88] sm:$0xff] }
 0x200   : > { %v9451_v6 = vpop.f32.mrf.mxu0  ;;  %v3705_v50 = vld [vmem:[#allocation4] sm:$0xff] }
 0x201   : > { %3677 = vst.msk [vmem:[#allocation4 + $0x20] sm:$0xff] %vm711_vm0, %v3645_v42  ;;  %v3648_v19 = vadd.f32 %v9451_v6, %v3616_v46  ;;  %v3737_v0 = vmax.f32 %v3705_v50, 0.0  ;;  %v3625_v42 = vld [vmem:[#allocation4 + $0x80] sm:$0xff] }
 0x202   : > { %v3501_v48 = vpop.f32.mrf.mxu0  ;;  %v3708_v43 = vld [vmem:[#allocation4 + $0x18] sm:$0xff] }
 0x203   : > { %3680 = vst.msk [vmem:[#allocation4 + $0x38] sm:$0xff] %vm711_vm0, %v3648_v19  ;;  %v3646_v55 = vadd.f32 %v3614_v59, %v3501_v48  ;;  %v3740_v3 = vmax.f32 %v3708_v43, 0.0  ;;  %v3628_v59 = vld [vmem:[#allocation4 + $0x98] sm:$0xff] }
 0x204   : > { %v9454_v17 = vpop.f32.mrf.mxu0  ;;  %v3706_v62 = vld [vmem:[#allocation4 + $0x8] sm:$0xff] }
 0x205   : > { %3678 = vst.msk [vmem:[#allocation4 + $0x28] sm:$0xff] %vm711_vm0, %v3646_v55  ;;  %v3651_v23 = vadd.f32 %v9454_v17, %v3619_v45  ;;  %v3738_v21 = vmax.f32 %v3706_v62, 0.0  ;;  %v3770_v10 = vpack.c.bf16 %v3740_v3, %v3739_v37 }
 0x206   : > { %v3514_v13 = vpop.f32.mrf.mxu0  ;;  %v3711_v16 = vld [vmem:[#allocation4 + $0x30] sm:$0xff] }
 0x207   : > { %3683 = vst.msk [vmem:[#allocation4 + $0x50] sm:$0xff] %vm711_vm0, %v3651_v23  ;;  %v3649_v36 = vadd.f32 %v3617_v35, %v3514_v13  ;;  %v3769_v61 = vpack.c.bf16 %v3738_v21, %v3737_v0  ;;  %v3743_v40 = vmax.f32 %v3711_v16, 0.0  ;;  %v3631_v0 = vld [vmem:[#allocation4 + $0xb0] sm:$0xff] }
 0x208   : > { %v9455_v24 = vpop.f32.mrf.mxu0  ;;  %v3709_v31 = vld [vmem:[#allocation4 + $0x20] sm:$0xff] }
 0x209   : > { %3681 = vst.msk [vmem:[#allocation4 + $0x40] sm:$0xff] %vm711_vm0, %v3649_v36  ;;  %v3652_v22 = vadd.f32 %v9455_v24, %v3620_v8  ;;  %9480 = vmatprep.mubr.msk.bf16.mxu1 %vm711_vm0, %v3769_v61  ;;  %v3741_v26 = vmax.f32 %v3709_v31, 0.0  ;;  %v3629_v24 = vld [vmem:[#allocation4 + $0xa0] sm:$0xff] }
 0x20a   : > { %v3517_v25 = vpop.f32.mrf.mxu0  ;;  %9481 = vmatmul.mubr.msk.bf16.vlgmr.msra.gmra.mxu1 %vm711_vm0, %v3770_v10  ;;  %v3712_v32 = vld [vmem:[#allocation4 + $0x38] sm:$0xff] }
 0x20b   : > { %3684 = vst.msk [vmem:[#allocation4 + $0x58] sm:$0xff] %vm711_vm0, %v3652_v22  ;;  %v3650_v33 = vadd.f32 %v3618_v44, %v3517_v25  ;;  %9561 = vmatpush3.bf16.msra.mxu1 %v11299_v30  ;;  %v3744_v11 = vmax.f32 %v3712_v32, 0.0  ;;  %v3632_v25 = vld [vmem:[#allocation4 + $0xb8] sm:$0xff] }
 0x20c   : > { %v9458_v39 = vpop.f32.mrf.mxu0  ;;  %v3710_v34 = vld [vmem:[#allocation4 + $0x28] sm:$0xff]  ;;  %9562 = vmatprep.subr.bf16.mxu1 %v10102_v20 }
 0x20d   : > { %3682 = vst.msk [vmem:[#allocation4 + $0x48] sm:$0xff] %vm711_vm0, %v3650_v33  ;;  %v3655_v15 = vadd.f32 %v9458_v39, %v3623_v38  ;;  %v3742_v47 = vmax.f32 %v3710_v34, 0.0  ;;  %v3772_v2 = vpack.c.bf16 %v3744_v11, %v3743_v40  ;;  %v3630_v33 = vld [vmem:[#allocation4 + $0xa8] sm:$0xff] }
 0x20e   : > { %v3530_v63 = vpop.f32.mrf.mxu0  ;;  %v3715_v1 = vld [vmem:[#allocation4 + $0x50] sm:$0xff] }
 0x20f   : > { %3687 = vst.msk [vmem:[#allocation4 + $0x70] sm:$0xff] %vm711_vm0, %v3655_v15  ;;  %v3653_v30 = vadd.f32 %v3621_v51, %v3530_v63  ;;  %v3771_v53 = vpack.c.bf16 %v3742_v47, %v3741_v26  ;;  %9563 = vmatpush3.bf16.msra.mxu1 %v10102_v20  ;;  %v3747_v6 = vmax.f32 %v3715_v1, 0.0 }
 0x210   : > { %v9459_v52 = vpop.f32.mrf.mxu0  ;;  %9564 = vmatprep.subr.bf16.mxu1 %v10104_v14  ;;  %v3713_v54 = vld [vmem:[#allocation4 + $0x40] sm:$0xff] }
 0x211   : > { %3685 = vst.msk [vmem:[#allocation4 + $0x60] sm:$0xff] %vm711_vm0, %v3653_v30  ;;  %v3656_v18 = vadd.f32 %v9459_v52, %v3624_v60  ;;  %9484 = vmatprep.mubr.msk.bf16.mxu1 %vm711_vm0, %v3771_v53  ;;  %v3745_v9 = vmax.f32 %v3713_v54, 0.0  ;;  %v3633_v30 = vld [vmem:[#allocation4 + $0xc0] sm:$0xff] }
 0x212   : > { %v3533_v29 = vpop.f32.mrf.mxu0  ;;  %9485 = vmatmul.mubr.msk.bf16.gmra.mxu1 %vm711_vm0, %v3772_v2  ;;  %v3716_v49 = vld [vmem:[#allocation4 + $0x58] sm:$0xff] }
 0x213   : > { %3688 = vst.msk [vmem:[#allocation4 + $0x78] sm:$0xff] %vm711_vm0, %v3656_v18  ;;  %v3654_v56 = vadd.f32 %v3622_v27, %v3533_v29  ;;  %9565 = vmatpush3.bf16.msra.mxu1 %v10104_v14  ;;  %v3748_v7 = vmax.f32 %v3716_v49, 0.0  ;;  %v3635_v14 = vld [vmem:[#allocation4 + $0xd0] sm:$0xff]  ;;  %v3636_v18 = vld [vmem:[#allocation4 + $0xd8] sm:$0xff]  ;;  %v3634_v49 = vld [vmem:[#allocation4 + $0xc8] sm:$0xff] }
 0x214   : > { %v9462_v4 = vpop.f32.mrf.mxu0  ;;  %v3714_v5 = vld [vmem:[#allocation4 + $0x48] sm:$0xff] }
 0x215   : > { %3686 = vst.msk [vmem:[#allocation4 + $0x68] sm:$0xff] %vm711_vm0, %v3654_v56  ;;  %v3659_v41 = vadd.f32 %v9462_v4, %v3627_v58  ;;  %v3746_v12 = vmax.f32 %v3714_v5, 0.0  ;;  %v3774_v50 = vpack.c.bf16 %v3748_v7, %v3747_v6  ;;  %v3639_v7 = vld [vmem:[#allocation4 + $0xf0] sm:$0xff] }
 0x216   : > { %v3546_v57 = vpop.f32.mrf.mxu0  ;;  %v3719_v3 = vld [vmem:[#allocation4 + $0x70] sm:$0xff] }
 0x217   : > { %3691 = vst.msk [vmem:[#allocation4 + $0x90] sm:$0xff] %vm711_vm0, %v3659_v41  ;;  %v3657_v46 = vadd.f32 %v3625_v42, %v3546_v57  ;;  %v3773_v19 = vpack.c.bf16 %v3746_v12, %v3745_v9  ;;  %v3751_v8 = vmax.f32 %v3719_v3, 0.0 }
 0x218   : > { %v9463_v48 = vpop.f32.mrf.mxu0  ;;  %v3717_v17 = vld [vmem:[#allocation4 + $0x60] sm:$0xff] }
 0x219   : > { %3689 = vst.msk [vmem:[#allocation4 + $0x80] sm:$0xff] %vm711_vm0, %v3657_v46  ;;  %v3660_v43 = vadd.f32 %v9463_v48, %v3628_v59  ;;  %9488 = vmatprep.mubr.msk.bf16.mxu1 %vm711_vm0, %v3773_v19  ;;  %v3749_v37 = vmax.f32 %v3717_v17, 0.0  ;;  %v3637_v46 = vld [vmem:[#allocation4 + $0xe0] sm:$0xff] }
 0x21a   : > { %v3549_v55 = vpop.f32.mrf.mxu0  ;;  %9489 = vmatmul.mubr.msk.bf16.gmra.mxu1 %vm711_vm0, %v3774_v50  ;;  %v3720_v45 = vld [vmem:[#allocation4 + $0x78] sm:$0xff] }
 0x21b   : > { %3692 = vst.msk [vmem:[#allocation4 + $0x98] sm:$0xff] %vm711_vm0, %v3660_v43  ;;  %v3658_v62 = vadd.f32 %v3626_v28, %v3549_v55  ;;  %v3752_v13 = vmax.f32 %v3720_v45, 0.0  ;;  %v3640_v43 = vld [vmem:[#allocation4 + $0xf8] sm:$0xff]  ;;  %v3638_v45 = vld [vmem:[#allocation4 + $0xe8] sm:$0xff] }
 0x21c   : > { %v9466_v23 = vpop.f32.mrf.mxu0  ;;  %v3718_v21 = vld [vmem:[#allocation4 + $0x68] sm:$0xff] }
 0x21d   : > { %3690 = vst.msk [vmem:[#allocation4 + $0x88] sm:$0xff] %vm711_vm0, %v3658_v62  ;;  %v3663_v35 = vadd.f32 %v9466_v23, %v3631_v0  ;;  %v3750_v36 = vmax.f32 %v3718_v21, 0.0  ;;  %v3776_v44 = vpack.c.bf16 %v3752_v13, %v3751_v8 }
 0x21e   : > { %v3562_v61 = vpop.f32.mrf.mxu0  ;;  %v3723_v34 = vld [vmem:[#allocation4 + $0x90] sm:$0xff] }
 0x21f   : > { %3695 = vst.msk [vmem:[#allocation4 + $0xb0] sm:$0xff] %vm711_vm0, %v3663_v35  ;;  %v3661_v10 = vadd.f32 %v3629_v24, %v3562_v61  ;;  %v3775_v20 = vpack.c.bf16 %v3750_v36, %v3749_v37  ;;  %v3755_v53 = vmax.f32 %v3723_v34, 0.0  ;;  %v10108_v34 = vld [vmem:[%s12578_s1 + $0x290] sm:$0xff]  }
 0x220   : > { %v9467_v22 = vpop.f32.mrf.mxu0  ;;  %v3721_v16 = vld [vmem:[#allocation4 + $0x80] sm:$0xff] }
 0x221   : > { %3693 = vst.msk [vmem:[#allocation4 + $0xa0] sm:$0xff] %vm711_vm0, %v3661_v10  ;;  %v3664_v31 = vadd.f32 %v9467_v22, %v3632_v25  ;;  %9492 = vmatprep.mubr.msk.bf16.mxu1 %vm711_vm0, %v3775_v20  ;;  %v3753_v63 = vmax.f32 %v3721_v16, 0.0 }
 0x222   : > { %v3565_v32 = vpop.f32.mrf.mxu0  ;;  %9493 = vmatmul.mubr.msk.bf16.gmra.mxu1 %vm711_vm0, %v3776_v44  ;;  %v3724_v39 = vld [vmem:[#allocation4 + $0x98] sm:$0xff] }
 0x223   : > { %3696 = vst.msk [vmem:[#allocation4 + $0xb8] sm:$0xff] %vm711_vm0, %v3664_v31  ;;  %v3662_v38 = vadd.f32 %v3630_v33, %v3565_v32  ;;  %v3756_v26 = vmax.f32 %v3724_v39, 0.0  ;;  %v10105_v39 = vld [vmem:[%s12578_s1 + $0x2a0] sm:$0xff]  }
 0x224   : > { %v9470_v11 = vpop.f32.mrf.mxu0  ;;  %v3722_v15 = vld [vmem:[#allocation4 + $0x88] sm:$0xff]  ;;  %9566 = vmatprep.subr.bf16.mxu1 %v10105_v39 }
 0x225   : > { %3694 = vst.msk [vmem:[#allocation4 + $0xa8] sm:$0xff] %vm711_vm0, %v3662_v38  ;;  %v3667_v47 = vadd.f32 %v9470_v11, %v3635_v14  ;;  %v3754_v51 = vmax.f32 %v3722_v15, 0.0  ;;  %v3778_v29 = vpack.c.bf16 %v3756_v26, %v3755_v53  ;;  %9567 = vmatpush3.bf16.msra.mxu1 %v10105_v39  ;;  %v10107_v38 = vld [vmem:[%s12578_s1 + $0x298] sm:$0xff]   ;;  %v10110_v11 = vld [vmem:[%s12578_s1 + $0x288] sm:$0xff]   ;;  %v10111_v14 = vld [vmem:[%s12578_s1 + $0x280] sm:$0xff]  }
 0x226   : > { %v3578_v40 = vpop.f32.mrf.mxu0  ;;  %v3727_v58 = vld [vmem:[#allocation4 + $0xb0] sm:$0xff]  ;;  %9568 = vmatprep.subr.bf16.mxu1 %v10107_v38  ;;  %v10106_v15 = vld [vmem:[%s12578_s1 + $0x248] sm:$0xff]   ;;  %v10113_v39 = vld [vmem:[%s12578_s1 + $0x2f0] sm:$0xff]  }
 0x227   : > { %3699 = vst.msk [vmem:[#allocation4 + $0xd0] sm:$0xff] %vm711_vm0, %v3667_v47  ;;  %v3665_v52 = vadd.f32 %v3633_v30, %v3578_v40  ;;  %v3777_v60 = vpack.c.bf16 %v3754_v51, %v3753_v63  ;;  %v3759_v19 = vmax.f32 %v3727_v58, 0.0  ;;  %v4572_v26 = vld [vmem:[#allocation3 + $0x1] sm:$0xff]  ;;  %v4573_v47 = vld [vmem:[#allocation3 + $0x9] sm:$0xff]  ;;  %9524 = vmatprep.subr.bf16.mxu0 %v10106_v15  ;;  %v10174_v58 = vld [vmem:[#allocation3 + $0x39] sm:$0xff] }
 0x228   : > { %v9471_v2 = vpop.f32.mrf.mxu0  ;;  %v3725_v56 = vld [vmem:[#allocation4 + $0xa0] sm:$0xff]  ;;  %v4604_v63 = vpack.c.bf16 %v4573_v47, %v4572_v26  ;;  %9525 = vmatpush3.bf16.msra.mxu0 %v10106_v15  ;;  %v10109_v51 = vld [vmem:[%s12578_s1 + $0x240] sm:$0xff]   ;;  %v10171_v30 = vld [vmem:[#allocation3 + $0x8] sm:$0xff] }
 0x229   : > { %3697 = vst.msk [vmem:[#allocation4 + $0xc0] sm:$0xff] %vm711_vm0, %v3665_v52  ;;  %v3668_v27 = vadd.f32 %v9471_v2, %v3636_v18  ;;  %9496 = vmatprep.mubr.msk.bf16.mxu1 %vm711_vm0, %v3777_v60  ;;  %v3757_v57 = vmax.f32 %v3725_v56, 0.0  ;;  %9569 = vmatpush3.bf16.msra.mxu1 %v10107_v38  ;;  %v4266_v40 = vld [vmem:[#allocation3] sm:$0xff]  ;;  %v11446_v52 = vld [vmem:[%s12578_s1 + $0x2f8] sm:$0xff]  }
 0x22a   : > { %v3581_v54 = vpop.f32.mrf.mxu0  ;;  %9497 = vmatmul.mubr.msk.bf16.gmra.mxu1 %vm711_vm0, %v3778_v29  ;;  %v3728_v1 = vld [vmem:[#allocation4 + $0xb8] sm:$0xff]  ;;  %9570 = vmatprep.subr.bf16.mxu1 %v10108_v34  ;;  %v4298_v53 = vpack.c.bf16 %v10171_v30, %v4266_v40  ;;  %v10117_v60 = vld [vmem:[%s12578_s1 + $0x338] sm:$0xff]   ;;  %v10121_v47 = vld [vmem:[%s12578_s1 + $0x320] sm:$0xff]  }
 0x22b   : > { %3700 = vst.msk [vmem:[#allocation4 + $0xd8] sm:$0xff] %vm711_vm0, %v3668_v27  ;;  %v3666_v4 = vadd.f32 %v3634_v49, %v3581_v54  ;;  %v3760_v9 = vmax.f32 %v3728_v1, 0.0  ;;  %9526 = vmatprep.subr.bf16.mxu0 %v10109_v51  ;;  %v10172_v18 = vld [vmem:[#allocation3 + $0x31] sm:$0xff]  ;;  %v10173_v49 = vld [vmem:[#allocation3 + $0x19] sm:$0xff]  ;;  %v10183_v40 = vld [vmem:[#allocation3 + $0x81] sm:$0xff] }
 0x22c   : > { %v9474_v5 = vpop.f32.mrf.mxu0  ;;  %v3726_v41 = vld [vmem:[#allocation4 + $0xa8] sm:$0xff]  ;;  %9527 = vmatpush3.bf16.msra.mxu0 %v10109_v51  ;;  %9528 = vmatprep.mubr.bf16.mxu0 %v4298_v53  ;;  %v10114_v53 = vld [vmem:[%s12578_s1 + $0x2e8] sm:$0xff]  }
 0x22d   : > { %3698 = vst.msk [vmem:[#allocation4 + $0xc8] sm:$0xff] %vm711_vm0, %v3666_v4  ;;  %v3671_v12 = vadd.f32 %v9474_v5, %v3639_v7  ;;  %v3758_v42 = vmax.f32 %v3726_v41, 0.0  ;;  %v3780_v55 = vpack.c.bf16 %v3760_v9, %v3759_v19  ;;  %9571 = vmatpush3.bf16.msra.mxu1 %v10108_v34  ;;  %9608 = vmatprep.subr.bf16.mxu0 %v11446_v52  ;;  %v10175_v9 = vld [vmem:[#allocation3 + $0x21] sm:$0xff] }
 0x22e   : > { %v3594_v6 = vpop.f32.mrf.mxu0  ;;  %v3731_v0 = vld [vmem:[#allocation4 + $0xd0] sm:$0xff]  ;;  %9572 = vmatprep.subr.bf16.mxu1 %v10110_v11 }
 0x22f   : > { %3703 = vst.msk [vmem:[#allocation4 + $0xf0] sm:$0xff] %vm711_vm0, %v3671_v12  ;;  %v3669_v48 = vadd.f32 %v3637_v46, %v3594_v6  ;;  %v3779_v59 = vpack.c.bf16 %v3758_v42, %v3757_v57  ;;  %v3763_v36 = vmax.f32 %v3731_v0, 0.0  ;;  %v10176_v6 = vld [vmem:[#allocation3 + $0x61] sm:$0xff] }
 0x230   : > { %v9475_v50 = vpop.f32.mrf.mxu0  ;;  %v3729_v62 = vld [vmem:[#allocation4 + $0xc0] sm:$0xff] }
 0x231   : > { %3701 = vst.msk [vmem:[#allocation4 + $0xe0] sm:$0xff] %vm711_vm0, %v3669_v48  ;;  %v3672_v28 = vadd.f32 %v9475_v50, %v3640_v43  ;;  %9500 = vmatprep.mubr.msk.bf16.mxu1 %vm711_vm0, %v3779_v59  ;;  %v3761_v35 = vmax.f32 %v3729_v62, 0.0  ;;  %9573 = vmatpush3.bf16.msra.mxu1 %v10110_v11  ;;  %v10177_v59 = vld [vmem:[#allocation3 + $0x49] sm:$0xff] }
 0x232   : > { %v3597_v17 = vpop.f32.mrf.mxu0  ;;  %9501 = vmatmul.mubr.msk.bf16.gmra.mxu1 %vm711_vm0, %v3780_v55  ;;  %v3732_v3 = vld [vmem:[#allocation4 + $0xd8] sm:$0xff]  ;;  %9574 = vmatprep.subr.bf16.mxu1 %v10111_v14  ;;  %v10118_v55 = vld [vmem:[%s12578_s1 + $0x330] sm:$0xff]  }
 0x233   : > { %3704 = vst.msk [vmem:[#allocation4 + $0xf8] sm:$0xff] %vm711_vm0, %v3672_v28  ;;  %v3670_v23 = vadd.f32 %v3638_v45, %v3597_v17  ;;  %v3764_v13 = vmax.f32 %v3732_v3, 0.0  ;;  %v10178_v62 = vld [vmem:[#allocation3 + $0x69] sm:$0xff] }
 0x234   : > { %v3730_v21 = vld [vmem:[#allocation4 + $0xc8] sm:$0xff] }
 0x235   : > { %3702 = vst.msk [vmem:[#allocation4 + $0xe8] sm:$0xff] %vm711_vm0, %v3670_v23  ;;  %v3762_v37 = vmax.f32 %v3730_v21, 0.0  ;;  %v3782_v24 = vpack.c.bf16 %v3764_v13, %v3763_v36  ;;  %9575 = vmatpush3.bf16.msra.mxu1 %v10111_v14  ;;  %v10179_v21 = vld [vmem:[#allocation3 + $0x51] sm:$0xff]  ;;  %v10182_v14 = vld [vmem:[#allocation3 + $0x99] sm:$0xff] }
 0x236   : > { %v3735_v20 = vld [vmem:[#allocation4 + $0xf0] sm:$0xff]  ;;  %9656 = vmatprep.subr.bf16.mxu1 %v10117_v60 }
 0x237   : > { %v3781_v61 = vpack.c.bf16 %v3762_v37, %v3761_v35  ;;  %v3767_v32 = vmax.f32 %v3735_v20, 0.0  ;;  %v10120_v35 = vld [vmem:[%s12578_s1 + $0x328] sm:$0xff]  }
 0x238   : > { %v3733_v8 = vld [vmem:[#allocation4 + $0xe0] sm:$0xff] }
 0x239   : > { %9504 = vmatprep.mubr.msk.bf16.mxu1 %vm711_vm0, %v3781_v61  ;;  %v3765_v44 = vmax.f32 %v3733_v8, 0.0  ;;  %v10180_v61 = vld [vmem:[#allocation3 + $0x91] sm:$0xff] }
 0x23a   : > { %9505 = vmatmul.mubr.msk.bf16.gmra.mxu1 %vm711_vm0, %v3782_v24  ;;  %v3736_v10 = vld [vmem:[#allocation4 + $0xf8] sm:$0xff] }
 0x23b   : > { %v3768_v25 = vmax.f32 %v3736_v10, 0.0 }
 0x23c   : > { %v3734_v22 = vld [vmem:[#allocation4 + $0xe8] sm:$0xff] }
 0x23d   : > { %v3766_v31 = vmax.f32 %v3734_v22, 0.0  ;;  %v3784_v16 = vpack.c.bf16 %v3768_v25, %v3767_v32 }
 0x23f   : > { %v3783_v33 = vpack.c.bf16 %v3766_v31, %v3765_v44  ;;  %v10181_v44 = vld [vmem:[#allocation3 + $0x79] sm:$0xff] }
 0x241   : > { %9508 = vmatprep.mubr.msk.bf16.mxu1 %vm711_vm0, %v3783_v33 }
 0x242   : > { %9509 = vmatmul.mubr.msk.bf16.gmra.mxu1 %vm711_vm0, %v3784_v16 }
 0x243   : > { %9576 = vmatprep.mubr.bf16.mxu1 %v4604_v63 }
 0x2ca   : > { %v9482_v2 = vpop.f32.mrf.mxu1 }
 0x2cb   : > { %v4044_v29 = vadd.f32 %v10172_v18, %v9482_v2  ;;  %v10184_v18 = vld [vmem:[#allocation3 + $0xc1] sm:$0xff] }
 0x2cc   : > { %v3883_v27 = vpop.f32.mrf.mxu1 }
 0x2cd   : > { %v4140_v54 = vmax.f32 %v4044_v29, 0.0  ;;  %v4042_v56 = vadd.f32 %v10173_v49, %v3883_v27 }
 0x2ce   : > { %v9483_v1 = vpop.f32.mrf.mxu1 }
 0x2cf   : > { %4236 = vst [vmem:[#allocation3 + $0x31] sm:$0xff] %v4140_v54  ;;  %v4138_v4 = vmax.f32 %v4042_v56, 0.0  ;;  %v4045_v5 = vadd.f32 %v10174_v58, %v9483_v1  ;;  %v10185_v1 = vld [vmem:[#allocation3 + $0xa9] sm:$0xff] }
 0x2d0   : > { %v3886_v7 = vpop.f32.mrf.mxu1 }
 0x2d1   : > { %4234 = vst [vmem:[#allocation3 + $0x19] sm:$0xff] %v4138_v4  ;;  %v4141_v41 = vmax.f32 %v4045_v5, 0.0  ;;  %v4043_v12 = vadd.f32 %v10175_v9, %v3886_v7 }
 0x2d2   : > { %v9486_v57 = vpop.f32.mrf.mxu1 }
 0x2d3   : > { %4237 = vst [vmem:[#allocation3 + $0x39] sm:$0xff] %v4141_v41  ;;  %v4139_v42 = vmax.f32 %v4043_v12, 0.0  ;;  %v4048_v46 = vadd.f32 %v10176_v6, %v9486_v57  ;;  %v4606_v17 = vpack.c.bf16 %v4141_v41, %v4140_v54  ;;  %v10123_v41 = vld [vmem:[%s12578_s1 + $0x318] sm:$0xff]  }
 0x2d4   : > { %v3899_v19 = vpop.f32.mrf.mxu1 }
 0x2d5   : > { %4235 = vst [vmem:[#allocation3 + $0x21] sm:$0xff] %v4139_v42  ;;  %v4144_v48 = vmax.f32 %v4048_v46, 0.0  ;;  %v4046_v50 = vadd.f32 %v10177_v59, %v3899_v19  ;;  %v4605_v43 = vpack.c.bf16 %v4139_v42, %v4138_v4  ;;  %v10115_v42 = vld [vmem:[%s12578_s1 + $0x2e0] sm:$0xff]   ;;  %v10186_v46 = vld [vmem:[#allocation3 + $0xc9] sm:$0xff] }
 0x2d6   : > { %v9487_v28 = vpop.f32.mrf.mxu1  ;;  %v4270_v33 = vld [vmem:[#allocation3 + $0x30] sm:$0xff] }
 0x2d7   : > { %4240 = vst [vmem:[#allocation3 + $0x61] sm:$0xff] %v4144_v48  ;;  %v4142_v45 = vmax.f32 %v4046_v50, 0.0  ;;  %v4049_v3 = vadd.f32 %v10178_v62, %v9487_v28  ;;  %9577 = vmatmul.mubr.bf16.vlgmr.msra.gmra.mxu1 %v4605_v43  ;;  %v10187_v43 = vld [vmem:[#allocation3 + $0xb1] sm:$0xff] }
 0x2d8   : > { %v3902_v23 = vpop.f32.mrf.mxu1  ;;  %9580 = vmatprep.mubr.bf16.mxu1 %v4606_v17  ;;  %9657 = vmatpush3.bf16.msra.mxu1 %v10117_v60  ;;  %v4268_v20 = vld [vmem:[#allocation3 + $0x18] sm:$0xff] }
 0x2d9   : > { %4238 = vst [vmem:[#allocation3 + $0x49] sm:$0xff] %v4142_v45  ;;  %v4145_v0 = vmax.f32 %v4049_v3, 0.0  ;;  %v4047_v13 = vadd.f32 %v10179_v21, %v3902_v23  ;;  %9658 = vmatprep.subr.bf16.mxu1 %v10118_v55  ;;  %v10116_v17 = vld [vmem:[%s12578_s1 + $0x2d8] sm:$0xff]  }
 0x2da   : > { %v9490_v37 = vpop.f32.mrf.mxu1  ;;  %v4271_v8 = vld [vmem:[#allocation3 + $0x38] sm:$0xff] }
 0x2db   : > { %4241 = vst [vmem:[#allocation3 + $0x69] sm:$0xff] %v4145_v0  ;;  %v4143_v36 = vmax.f32 %v4047_v13, 0.0  ;;  %v4052_v24 = vadd.f32 %v10180_v61, %v9490_v37  ;;  %v11463_v34 = vpack.c.bf16 %v4271_v8, %v4270_v33  ;;  %v4608_v26 = vpack.c.bf16 %v4145_v0, %v4144_v48  ;;  %v10124_v48 = vld [vmem:[%s12578_s1 + $0x310] sm:$0xff]   ;;  %v10189_v37 = vld [vmem:[#allocation3 + $0xd9] sm:$0xff] }
 0x2dc   : > { %v3915_v10 = vpop.f32.mrf.mxu1  ;;  %v4269_v22 = vld [vmem:[#allocation3 + $0x20] sm:$0xff]  ;;  %9659 = vmatpush3.bf16.msra.mxu1 %v10118_v55  ;;  %v10188_v62 = vld [vmem:[#allocation3 + $0xf1] sm:$0xff] }
 0x2dd   : > { %4239 = vst [vmem:[#allocation3 + $0x51] sm:$0xff] %v4143_v36  ;;  %v4148_v25 = vmax.f32 %v4052_v24, 0.0  ;;  %v4050_v31 = vadd.f32 %v10181_v44, %v3915_v10  ;;  %v11458_v32 = vpack.c.bf16 %v4269_v22, %v4268_v20  ;;  %v4607_v16 = vpack.c.bf16 %v4143_v36, %v4142_v45  ;;  %9660 = vmatprep.subr.bf16.mxu1 %v10120_v35  ;;  %v10126_v10 = vld [vmem:[%s12578_s1 + $0x308] sm:$0xff]   ;;  %v10119_v44 = vld [vmem:[%s12578_s1 + $0x2d0] sm:$0xff]   ;;  %v10190_v33 = vld [vmem:[#allocation3 + $0xf9] sm:$0xff] }
 0x2de   : > { %v9491_v38 = vpop.f32.mrf.mxu1  ;;  %v4274_v5 = vld [vmem:[#allocation3 + $0x60] sm:$0xff] }
 0x2df   : > { %4244 = vst [vmem:[#allocation3 + $0x91] sm:$0xff] %v4148_v25  ;;  %v4146_v11 = vmax.f32 %v4050_v31, 0.0  ;;  %v4053_v15 = vadd.f32 %v10182_v14, %v9491_v38  ;;  %9529 = vmatmul.mubr.bf16.vlgmr.msra.gmra.mxu0 %v11458_v32  ;;  %9581 = vmatmul.mubr.bf16.gmra.mxu1 %v4607_v16  ;;  %v10191_v14 = vld [vmem:[#allocation3 + $0xe1] sm:$0xff] }
 0x2e0   : > { %v3918_v63 = vpop.f32.mrf.mxu1  ;;  %9532 = vmatprep.mubr.bf16.mxu0 %v11463_v34  ;;  %9609 = vmatpush3.bf16.msra.mxu0 %v11446_v52  ;;  %v4272_v52 = vld [vmem:[#allocation3 + $0x48] sm:$0xff] }
 0x2e1   : > { %4242 = vst [vmem:[#allocation3 + $0x79] sm:$0xff] %v4146_v11  ;;  %v4149_v51 = vmax.f32 %v4053_v15, 0.0  ;;  %v4051_v30 = vadd.f32 %v10183_v40, %v3918_v63  ;;  %9610 = vmatprep.subr.bf16.mxu0 %v10113_v39  ;;  %9584 = vmatprep.mubr.bf16.mxu1 %v4608_v26 }
 0x2e2   : > { %v9494_v60 = vpop.f32.mrf.mxu1  ;;  %9661 = vmatpush3.bf16.msra.mxu1 %v10120_v35  ;;  %v4275_v27 = vld [vmem:[#allocation3 + $0x68] sm:$0xff] }
 0x2e3   : > { %4245 = vst [vmem:[#allocation3 + $0x99] sm:$0xff] %v4149_v51  ;;  %v4147_v2 = vmax.f32 %v4051_v30, 0.0  ;;  %v4056_v29 = vadd.f32 %v10184_v18, %v9494_v60  ;;  %9662 = vmatprep.subr.bf16.mxu1 %v10121_v47  ;;  %v11479_v12 = vpack.c.bf16 %v4275_v27, %v4274_v5  ;;  %v4610_v57 = vpack.c.bf16 %v4149_v51, %v4148_v25  ;;  %v10192_v51 = vld [vmem:[#allocation3 + $0x121] sm:$0xff] }
 0x2e4   : > { %v3931_v54 = vpop.f32.mrf.mxu1  ;;  %v4273_v49 = vld [vmem:[#allocation3 + $0x50] sm:$0xff]  ;;  %9611 = vmatpush3.bf16.msra.mxu0 %v10113_v39  ;;  %v10127_v39 = vld [vmem:[%s12578_s1 + $0x300] sm:$0xff]  }
 0x2e5   : > { %4243 = vst [vmem:[#allocation3 + $0x81] sm:$0xff] %v4147_v2  ;;  %v4152_v56 = vmax.f32 %v4056_v29, 0.0  ;;  %v4054_v4 = vadd.f32 %v10185_v1, %v3931_v54  ;;  %v11474_v58 = vpack.c.bf16 %v4273_v49, %v4272_v52  ;;  %v4609_v7 = vpack.c.bf16 %v4147_v2, %v4146_v11  ;;  %9612 = vmatprep.subr.bf16.mxu0 %v10114_v53  ;;  %v10193_v29 = vld [vmem:[#allocation3 + $0x109] sm:$0xff] }
 0x2e6   : > { %v9495_v9 = vpop.f32.mrf.mxu1  ;;  %9663 = vmatpush3.bf16.msra.mxu1 %v10121_v47  ;;  %v4278_v24 = vld [vmem:[#allocation3 + $0x90] sm:$0xff]  ;;  %v10122_v47 = vld [vmem:[%s12578_s1 + $0x2c8] sm:$0xff]  }
 0x2e7   : > { %4248 = vst [vmem:[#allocation3 + $0xc1] sm:$0xff] %v4152_v56  ;;  %v4150_v6 = vmax.f32 %v4054_v4, 0.0  ;;  %v4057_v19 = vadd.f32 %v10186_v46, %v9495_v9  ;;  %9533 = vmatmul.mubr.bf16.gmra.mxu0 %v11474_v58  ;;  %9585 = vmatmul.mubr.bf16.gmra.mxu1 %v4609_v7  ;;  %v10125_v7 = vld [vmem:[%s12578_s1 + $0x2c0] sm:$0xff]   ;;  %v10194_v9 = vld [vmem:[#allocation3 + $0x129] sm:$0xff]  ;;  %v10195_v46 = vld [vmem:[#allocation3 + $0x111] sm:$0xff] }
 0x2e8   : > { %v3934_v59 = vpop.f32.mrf.mxu1  ;;  %9536 = vmatprep.mubr.bf16.mxu0 %v11479_v12  ;;  %9588 = vmatprep.mubr.bf16.mxu1 %v4610_v57  ;;  %v4276_v21 = vld [vmem:[#allocation3 + $0x78] sm:$0xff] }
 0x2e9   : > { %4246 = vst [vmem:[#allocation3 + $0xa9] sm:$0xff] %v4150_v6  ;;  %v4153_v50 = vmax.f32 %v4057_v19, 0.0  ;;  %v4055_v55 = vadd.f32 %v10187_v43, %v3934_v59  ;;  %9613 = vmatpush3.bf16.msra.mxu0 %v10114_v53  ;;  %9664 = vmatprep.subr.bf16.mxu1 %v10123_v41  ;;  %v11541_v59 = vld [vmem:[%s12578_s1 + $0x378] sm:$0xff]  }
 0x2ea   : > { %v9498_v28 = vpop.f32.mrf.mxu1  ;;  %9614 = vmatprep.subr.bf16.mxu0 %v10115_v42  ;;  %9665 = vmatpush3.bf16.msra.mxu1 %v10123_v41  ;;  %v4279_v23 = vld [vmem:[#allocation3 + $0x98] sm:$0xff] }
 0x2eb   : > { %4249 = vst [vmem:[#allocation3 + $0xc9] sm:$0xff] %v4153_v50  ;;  %v11492_v45 = vmax.f32 %v4055_v55, 0.0  ;;  %v4060_v3 = vadd.f32 %v10188_v62, %v9498_v28  ;;  %9666 = vmatprep.subr.bf16.mxu1 %v10124_v48  ;;  %v11501_v22 = vpack.c.bf16 %v4279_v23, %v4278_v24  ;;  %v4612_v25 = vpack.c.bf16 %v4153_v50, %v4152_v56  ;;  %v11524_v56 = vld [vmem:[%s12578_s1 + $0x3b8] sm:$0xff]  }
 0x2ec   : > { %v3947_v0 = vpop.f32.mrf.mxu1  ;;  %v4277_v13 = vld [vmem:[#allocation3 + $0x80] sm:$0xff]  ;;  %v10196_v43 = vld [vmem:[#allocation3 + $0x151] sm:$0xff] }
 0x2ed   : > { %4247 = vst [vmem:[#allocation3 + $0xb1] sm:$0xff] %v11492_v45  ;;  %v4156_v35 = vmax.f32 %v4060_v3, 0.0  ;;  %v4058_v36 = vadd.f32 %v10189_v37, %v3947_v0  ;;  %v11495_v61 = vpack.c.bf16 %v4277_v13, %v4276_v21  ;;  %v4611_v8 = vpack.c.bf16 %v11492_v45, %v4150_v6  ;;  %9615 = vmatpush3.bf16.msra.mxu0 %v10115_v42  ;;  %v10197_v0 = vld [vmem:[#allocation3 + $0x139] sm:$0xff] }
 0x2ee   : > { %v9499_v20 = vpop.f32.mrf.mxu1  ;;  %9616 = vmatprep.subr.bf16.mxu0 %v10116_v17  ;;  %9667 = vmatpush3.bf16.msra.mxu1 %v10124_v48  ;;  %v4282_v52 = vld [vmem:[#allocation3 + $0xc0] sm:$0xff] }
 0x2ef   : > { %4252 = vst [vmem:[#allocation3 + $0xf1] sm:$0xff] %v4156_v35  ;;  %v4154_v31 = vmax.f32 %v4058_v36, 0.0  ;;  %v4061_v16 = vadd.f32 %v10190_v33, %v9499_v20  ;;  %9537 = vmatmul.mubr.bf16.gmra.mxu0 %v11495_v61  ;;  %9589 = vmatmul.mubr.bf16.gmra.mxu1 %v4611_v8  ;;  %v10198_v20 = vld [vmem:[#allocation3 + $0x159] sm:$0xff]  ;;  %v10199_v33 = vld [vmem:[#allocation3 + $0x141] sm:$0xff] }
 0x2f0   : > { %v3950_v38 = vpop.f32.mrf.mxu1  ;;  %9540 = vmatprep.mubr.bf16.mxu0 %v11501_v22  ;;  %9592 = vmatprep.mubr.bf16.mxu1 %v4612_v25  ;;  %v4280_v60 = vld [vmem:[#allocation3 + $0xa8] sm:$0xff] }
 0x2f1   : > { %4250 = vst [vmem:[#allocation3 + $0xd9] sm:$0xff] %v4154_v31  ;;  %v11511_v11 = vmax.f32 %v4061_v16, 0.0  ;;  %v4059_v15 = vadd.f32 %v10191_v14, %v3950_v38  ;;  %9617 = vmatpush3.bf16.msra.mxu0 %v10116_v17  ;;  %9668 = vmatprep.subr.bf16.mxu1 %v10126_v10  ;;  %v10200_v14 = vld [vmem:[#allocation3 + $0x181] sm:$0xff] }
 0x2f2   : > { %v9502_v26 = vpop.f32.mrf.mxu1  ;;  %9618 = vmatprep.subr.bf16.mxu0 %v10119_v44  ;;  %9669 = vmatpush3.bf16.msra.mxu1 %v10126_v10  ;;  %v4283_v30 = vld [vmem:[#allocation3 + $0xc8] sm:$0xff] }
 0x2f3   : > { %4253 = vst [vmem:[#allocation3 + $0xf9] sm:$0xff] %v11511_v11  ;;  %v4155_v63 = vmax.f32 %v4059_v15, 0.0  ;;  %v4064_v40 = vadd.f32 %v10192_v51, %v9502_v26  ;;  %9670 = vmatprep.subr.bf16.mxu1 %v10127_v39  ;;  %v11526_v4 = vpack.c.bf16 %v4283_v30, %v4282_v52  ;;  %v4614_v5 = vpack.c.bf16 %v11511_v11, %v4156_v35  ;;  %v10201_v30 = vld [vmem:[#allocation3 + $0x169] sm:$0xff] }
 0x2f4   : > { %v3963_v53 = vpop.f32.mrf.mxu1  ;;  %v4281_v2 = vld [vmem:[#allocation3 + $0xb0] sm:$0xff] }
 0x2f5   : > { %4251 = vst [vmem:[#allocation3 + $0xe1] sm:$0xff] %v4155_v63  ;;  %v4160_v18 = vmax.f32 %v4064_v40, 0.0  ;;  %v4062_v27 = vadd.f32 %v10193_v29, %v3963_v53  ;;  %v11517_v54 = vpack.c.bf16 %v4281_v2, %v4280_v60  ;;  %v11519_v49 = vpack.c.bf16 %v4155_v63, %v4154_v31  ;;  %9619 = vmatpush3.bf16.msra.mxu0 %v10119_v44 }
 0x2f6   : > { %v9503_v1 = vpop.f32.mrf.mxu1  ;;  %9620 = vmatprep.subr.bf16.mxu0 %v10122_v47  ;;  %9671 = vmatpush3.bf16.msra.mxu1 %v10127_v39  ;;  %v4286_v35 = vld [vmem:[#allocation3 + $0xf0] sm:$0xff] }
 0x2f7   : > { %4256 = vst [vmem:[#allocation3 + $0x121] sm:$0xff] %v4160_v18  ;;  %v4158_v41 = vmax.f32 %v4062_v27, 0.0  ;;  %v4065_v57 = vadd.f32 %v10194_v9, %v9503_v1  ;;  %9541 = vmatmul.mubr.bf16.gmra.mxu0 %v11517_v54  ;;  %9593 = vmatmul.mubr.bf16.gmra.mxu1 %v11519_v49 }
 0x2f8   : > { %v3966_v42 = vpop.f32.mrf.mxu1  ;;  %9544 = vmatprep.mubr.bf16.mxu0 %v11526_v4  ;;  %9596 = vmatprep.mubr.bf16.mxu1 %v4614_v5  ;;  %v4284_v62 = vld [vmem:[#allocation3 + $0xd8] sm:$0xff]  ;;  %v10202_v5 = vld [vmem:[#allocation3 + $0x189] sm:$0xff] }
 0x2f9   : > { %4254 = vst [vmem:[#allocation3 + $0x109] sm:$0xff] %v4158_v41  ;;  %v11535_v6 = vmax.f32 %v4065_v57, 0.0  ;;  %v4063_v19 = vadd.f32 %v10195_v46, %v3966_v42  ;;  %9621 = vmatpush3.bf16.msra.mxu0 %v10122_v47  ;;  %9752 = vmatprep.subr.bf16.mxu1 %v11524_v56  ;;  %v10203_v57 = vld [vmem:[#allocation3 + $0x171] sm:$0xff] }
 0x2fa   : > { %v9506_v48 = vpop.f32.mrf.mxu1  ;;  %9622 = vmatprep.subr.bf16.mxu0 %v10125_v7  ;;  %v4287_v28 = vld [vmem:[#allocation3 + $0xf8] sm:$0xff] }
 0x2fb   : > { %4257 = vst [vmem:[#allocation3 + $0x129] sm:$0xff] %v11535_v6  ;;  %v4159_v50 = vmax.f32 %v4063_v19, 0.0  ;;  %v4068_v55 = vadd.f32 %v10196_v43, %v9506_v48  ;;  %v11548_v24 = vpack.c.bf16 %v4287_v28, %v4286_v35  ;;  %v4616_v8 = vpack.c.bf16 %v11535_v6, %v4160_v18 }
 0x2fc   : > { %v3979_v17 = vpop.f32.mrf.mxu1  ;;  %v4285_v3 = vld [vmem:[#allocation3 + $0xe0] sm:$0xff] }
 0x2fd   : > { %4255 = vst [vmem:[#allocation3 + $0x111] sm:$0xff] %v4159_v50  ;;  %v4164_v23 = vmax.f32 %v4068_v55, 0.0  ;;  %v4066_v21 = vadd.f32 %v10197_v0, %v3979_v17  ;;  %v11544_v13 = vpack.c.bf16 %v4285_v3, %v4284_v62  ;;  %v11546_v37 = vpack.c.bf16 %v4159_v50, %v4158_v41  ;;  %9623 = vmatpush3.bf16.msra.mxu0 %v10125_v7  ;;  %v4942_v62 = vld [vmem:[#allocation3 + $0x2] sm:$0xff]  ;;  %v4943_v3 = vld [vmem:[#allocation3 + $0xa] sm:$0xff] }
 0x2fe   : > { %v9507_v36 = vpop.f32.mrf.mxu1  ;;  %9704 = vmatprep.subr.bf16.mxu0 %v11541_v59  ;;  %v4290_v2 = vld [vmem:[#allocation3 + $0x120] sm:$0xff] }
 0x2ff   : > { %4260 = vst [vmem:[#allocation3 + $0x151] sm:$0xff] %v4164_v23  ;;  %v4162_v10 = vmax.f32 %v4066_v21, 0.0  ;;  %v4069_v25 = vadd.f32 %v10198_v20, %v9507_v36  ;;  %9545 = vmatmul.mubr.bf16.gmra.mxu0 %v11544_v13  ;;  %9597 = vmatmul.mubr.bf16.gmra.mxu1 %v11546_v37  ;;  %v4974_v21 = vpack.c.bf16 %v4943_v3, %v4942_v62  ;;  %v10134_v36 = vld [vmem:[%s12578_s1 + $0x3b0] sm:$0xff]   ;;  %v10144_v62 = vld [vmem:[%s12578_s1 + $0x3f8] sm:$0xff]  }
 0x300   : > { %v3982_v44 = vpop.f32.mrf.mxu1  ;;  %9548 = vmatprep.mubr.bf16.mxu0 %v11548_v24  ;;  %9600 = vmatprep.mubr.bf16.mxu1 %v4616_v8  ;;  %v4288_v63 = vld [vmem:[#allocation3 + $0x108] sm:$0xff]  ;;  %v4946_v20 = vld [vmem:[#allocation3 + $0x32] sm:$0xff] }
 0x301   : > { %4258 = vst [vmem:[#allocation3 + $0x139] sm:$0xff] %v4162_v10  ;;  %v4165_v31 = vmax.f32 %v4069_v25, 0.0  ;;  %v4067_v16 = vadd.f32 %v10199_v33, %v3982_v44  ;;  %v4945_v8 = vld [vmem:[#allocation3 + $0x22] sm:$0xff]  ;;  %v4947_v25 = vld [vmem:[#allocation3 + $0x3a] sm:$0xff]  ;;  %v4948_v33 = vld [vmem:[#allocation3 + $0x4a] sm:$0xff] }
 0x302   : > { %v9510_v39 = vpop.f32.mrf.mxu1  ;;  %v4291_v26 = vld [vmem:[#allocation3 + $0x128] sm:$0xff]  ;;  %v4962_v3 = vld [vmem:[#allocation3 + $0xf2] sm:$0xff] }
 0x303   : > { %4261 = vst [vmem:[#allocation3 + $0x159] sm:$0xff] %v4165_v31  ;;  %v4163_v38 = vmax.f32 %v4067_v16, 0.0  ;;  %v11555_v15 = vadd.f32 %v10200_v14, %v9510_v39  ;;  %v11562_v27 = vpack.c.bf16 %v4291_v26, %v4290_v2  ;;  %v11564_v52 = vpack.c.bf16 %v4165_v31, %v4164_v23  ;;  %v4949_v16 = vld [vmem:[#allocation3 + $0x52] sm:$0xff]  ;;  %v4950_v39 = vld [vmem:[#allocation3 + $0x62] sm:$0xff] }
 0x304   : > { %v3995_v47 = vpop.f32.mrf.mxu1  ;;  %v4289_v51 = vld [vmem:[#allocation3 + $0x110] sm:$0xff]  ;;  %v11604_v31 = vpack.c.bf16 %v4947_v25, %v4946_v20 }
 0x305   : > { %4259 = vst [vmem:[#allocation3 + $0x141] sm:$0xff] %v4163_v38  ;;  %v4168_v40 = vmax.f32 %v11555_v15, 0.0  ;;  %v4070_v53 = vadd.f32 %v10201_v30, %v3995_v47  ;;  %v11558_v60 = vpack.c.bf16 %v4289_v51, %v4288_v63  ;;  %v11560_v18 = vpack.c.bf16 %v4163_v38, %v4162_v10  ;;  %v10136_v10 = vld [vmem:[%s12578_s1 + $0x3a8] sm:$0xff]   ;;  %v10140_v26 = vld [vmem:[%s12578_s1 + $0x390] sm:$0xff]   ;;  %v4952_v47 = vld [vmem:[#allocation3 + $0x7a] sm:$0xff] }
 0x306   : > { %v9511_v29 = vpop.f32.mrf.mxu1  ;;  %v4294_v55 = vld [vmem:[#allocation3 + $0x150] sm:$0xff]  ;;  %v11617_v38 = vpack.c.bf16 %v4949_v16, %v4948_v33  ;;  %v4953_v63 = vld [vmem:[#allocation3 + $0x82] sm:$0xff]  ;;  %v10132_v51 = vld [vmem:[%s12578_s1 + $0x358] sm:$0xff]  }
 0x307   : > { %4264 = vst [vmem:[#allocation3 + $0x181] sm:$0xff] %v4168_v40  ;;  %v4166_v1 = vmax.f32 %v4070_v53, 0.0  ;;  %v11568_v7 = vadd.f32 %v10202_v5, %v9511_v29  ;;  %9549 = vmatmul.mubr.bf16.gmra.mxu0 %v11558_v60  ;;  %9601 = vmatmul.mubr.bf16.gmra.mxu1 %v11560_v18  ;;  %v4954_v30 = vld [vmem:[#allocation3 + $0x92] sm:$0xff]  ;;  %v11637_v53 = vpack.c.bf16 %v4953_v63, %v4952_v47  ;;  %v4956_v5 = vld [vmem:[#allocation3 + $0xaa] sm:$0xff]  ;;  %v6426_v15 = vld [vmem:[#allocation3 + $0x60] sm:$0xff] }
 0x308   : > { %v3998_v41 = vpop.f32.mrf.mxu1  ;;  %9552 = vmatprep.mubr.bf16.mxu0 %v11562_v27  ;;  %9604 = vmatprep.mubr.bf16.mxu1 %v11564_v52  ;;  %v4292_v48 = vld [vmem:[#allocation3 + $0x138] sm:$0xff]  ;;  %v10135_v29 = vld [vmem:[%s12578_s1 + $0x350] sm:$0xff]   ;;  %v10152_v47 = vld [vmem:[%s12578_s1 + $0x428] sm:$0xff]  }
 0x309   : > { %4262 = vst [vmem:[#allocation3 + $0x169] sm:$0xff] %v4166_v1  ;;  %v4169_v9 = vmax.f32 %v11568_v7, 0.0  ;;  %v4071_v42 = vadd.f32 %v10203_v57, %v3998_v41  ;;  %v4957_v41 = vld [vmem:[#allocation3 + $0xb2] sm:$0xff]  ;;  %v10138_v57 = vld [vmem:[%s12578_s1 + $0x348] sm:$0xff]  }
 0x30a   : > { %v4295_v19 = vld [vmem:[#allocation3 + $0x158] sm:$0xff] }
 0x30b   : > { %4265 = vst [vmem:[#allocation3 + $0x189] sm:$0xff] %v4169_v9  ;;  %v4167_v46 = vmax.f32 %v4071_v42, 0.0  ;;  %v11581_v17 = vpack.c.bf16 %v4295_v19, %v4294_v55  ;;  %v4958_v42 = vld [vmem:[#allocation3 + $0xc2] sm:$0xff]  ;;  %v5687_v63 = vld [vmem:[#allocation3 + $0x51] sm:$0xff] }
 0x30c   : > { %v4293_v50 = vld [vmem:[#allocation3 + $0x140] sm:$0xff] }
 0x30d   : > { %4263 = vst [vmem:[#allocation3 + $0x171] sm:$0xff] %v4167_v46  ;;  %v11577_v43 = vpack.c.bf16 %v4293_v50, %v4292_v48  ;;  %v11579_v28 = vpack.c.bf16 %v4167_v46, %v4166_v1  ;;  %v10143_v1 = vld [vmem:[%s12578_s1 + $0x380] sm:$0xff]   ;;  %v11657_v46 = vpack.c.bf16 %v4957_v41, %v4956_v5 }
 0x30e   : > { %v10141_v48 = vld [vmem:[%s12578_s1 + $0x340] sm:$0xff]  }
 0x30f   : > { %9553 = vmatmul.mubr.bf16.gmra.mxu0 %v11577_v43  ;;  %9605 = vmatmul.mubr.bf16.gmra.mxu1 %v11579_v28  ;;  %v4960_v50 = vld [vmem:[#allocation3 + $0xda] sm:$0xff]  ;;  %v4961_v55 = vld [vmem:[#allocation3 + $0xe2] sm:$0xff] }
 0x310   : > { %9556 = vmatprep.mubr.bf16.mxu0 %v11581_v17  ;;  %9672 = vmatprep.mubr.bf16.mxu1 %v11458_v32  ;;  %v4296_v23 = vld [vmem:[#allocation3 + $0x168] sm:$0xff]  ;;  %v4944_v32 = vld [vmem:[#allocation3 + $0x1a] sm:$0xff] }
 0x311   : > { %v11599_v44 = vpack.c.bf16 %v4945_v8, %v4944_v32  ;;  %v4967_v32 = vld [vmem:[#allocation3 + $0x12a] sm:$0xff]  ;;  %v4969_v20 = vld [vmem:[#allocation3 + $0x142] sm:$0xff] }
 0x312   : > { %v5343_v25 = vld [vmem:[#allocation3 + $0x188] sm:$0xff] }
 0x313   : > { %v5691_v5 = vld [vmem:[#allocation3 + $0x81] sm:$0xff] }
 0x314   : > { %v4297_v0 = vld [vmem:[#allocation3 + $0x170] sm:$0xff]  ;;  %v5688_v41 = vld [vmem:[#allocation3 + $0x61] sm:$0xff] }
 0x315   : > { %v11587_v35 = vpack.c.bf16 %v4297_v0, %v4296_v23  ;;  %v4963_v23 = vld [vmem:[#allocation3 + $0xfa] sm:$0xff]  ;;  %v11674_v0 = vpack.c.bf16 %v4961_v55, %v4960_v50  ;;  %v11745_v55 = vld [vmem:[#allocation3 + $0xa9] sm:$0xff] }
 0x316   : > { %v10148_v50 = vld [vmem:[%s12578_s1 + $0x3d8] sm:$0xff]  }
 0x317   : > { %9557 = vmatmul.mubr.bf16.gmra.mxu0 %v11587_v35  ;;  %9673 = vmatmul.mubr.bf16.vlgmr.msra.gmra.mxu1 %v11463_v34  ;;  %v10129_v34 = vld [vmem:[%s12578_s1 + $0x370] sm:$0xff]  }
 0x318   : > { %9624 = vmatprep.mubr.bf16.mxu0 %v4974_v21  ;;  %9676 = vmatprep.mubr.bf16.mxu1 %v11474_v58  ;;  %v10137_v58 = vld [vmem:[%s12578_s1 + $0x3a0] sm:$0xff]   ;;  %v11676_v21 = vpack.c.bf16 %v4963_v23, %v4962_v3  ;;  %v5720_v3 = vpack.c.bf16 %v11492_v45, %v11745_v55  ;;  %v10151_v23 = vld [vmem:[%s12578_s1 + $0x3d0] sm:$0xff]  }
 0x319   : > { %9753 = vmatpush3.bf16.msra.mxu1 %v11524_v56  ;;  %v10130_v56 = vld [vmem:[%s12578_s1 + $0x368] sm:$0xff]  }
 0x31a   : > { %9754 = vmatprep.subr.bf16.mxu1 %v10134_v36  ;;  %v5697_v45 = vld [vmem:[#allocation3 + $0xc9] sm:$0xff] }
 0x31d   : > { %9755 = vmatpush3.bf16.msra.mxu1 %v10134_v36  ;;  %v4966_v36 = vld [vmem:[#allocation3 + $0x122] sm:$0xff] }
 0x31e   : > { %9756 = vmatprep.subr.bf16.mxu1 %v10136_v10 }
 0x31f   : > { %9625 = vmatmul.mubr.bf16.vlgmr.msra.gmra.mxu0 %v11599_v44  ;;  %9677 = vmatmul.mubr.bf16.gmra.mxu1 %v11479_v12  ;;  %v4951_v12 = vld [vmem:[#allocation3 + $0x6a] sm:$0xff] }
 0x320   : > { %9628 = vmatprep.mubr.bf16.mxu0 %v11604_v31  ;;  %9705 = vmatpush3.bf16.msra.mxu0 %v11541_v59  ;;  %v10139_v59 = vld [vmem:[%s12578_s1 + $0x398] sm:$0xff]   ;;  %v11622_v14 = vpack.c.bf16 %v4951_v12, %v4950_v39  ;;  %v5683_v39 = vld [vmem:[#allocation3 + $0x21] sm:$0xff] }
 0x321   : > { %9706 = vmatprep.subr.bf16.mxu0 %v10129_v34  ;;  %9680 = vmatprep.mubr.bf16.mxu1 %v11495_v61  ;;  %v10131_v61 = vld [vmem:[%s12578_s1 + $0x360] sm:$0xff]  }
 0x322   : > { %9757 = vmatpush3.bf16.msra.mxu1 %v10136_v10  ;;  %v11684_v10 = vpack.c.bf16 %v4967_v32, %v4966_v36  ;;  %v5696_v36 = vld [vmem:[#allocation3 + $0xc1] sm:$0xff] }
 0x323   : > { %9758 = vmatprep.subr.bf16.mxu1 %v10137_v58  ;;  %v11766_v32 = vpack.c.bf16 %v5697_v45, %v5696_v36  ;;  %v6806_v45 = vld [vmem:[#allocation3 + $0xd9] sm:$0xff] }
 0x324   : > { %9707 = vmatpush3.bf16.msra.mxu0 %v10129_v34  ;;  %v4971_v34 = vld [vmem:[#allocation3 + $0x15a] sm:$0xff] }
 0x325   : > { %9708 = vmatprep.subr.bf16.mxu0 %v10130_v56 }
 0x326   : > { %9759 = vmatpush3.bf16.msra.mxu1 %v10137_v58  ;;  %v5342_v58 = vld [vmem:[#allocation3 + $0x180] sm:$0xff] }
 0x327   : > { %9629 = vmatmul.mubr.bf16.gmra.mxu0 %v11617_v38  ;;  %9681 = vmatmul.mubr.bf16.gmra.mxu1 %v11501_v22  ;;  %v4955_v22 = vld [vmem:[#allocation3 + $0x9a] sm:$0xff]  ;;  %v5359_v33 = vpack.c.bf16 %v5343_v25, %v5342_v58 }
 0x328   : > { %9632 = vmatprep.mubr.bf16.mxu0 %v11622_v14  ;;  %9684 = vmatprep.mubr.bf16.mxu1 %v11517_v54  ;;  %v10142_v54 = vld [vmem:[%s12578_s1 + $0x388] sm:$0xff]   ;;  %v11642_v2 = vpack.c.bf16 %v4955_v22, %v4954_v30 }
 0x329   : > { %9709 = vmatpush3.bf16.msra.mxu0 %v10130_v56  ;;  %9760 = vmatprep.subr.bf16.mxu1 %v10139_v59  ;;  %v5686_v22 = vld [vmem:[#allocation3 + $0x49] sm:$0xff] }
 0x32a   : > { %9710 = vmatprep.subr.bf16.mxu0 %v10131_v61  ;;  %9761 = vmatpush3.bf16.msra.mxu1 %v10139_v59  ;;  %v5682_v59 = vld [vmem:[#allocation3 + $0x19] sm:$0xff] }
 0x32b   : > { %9762 = vmatprep.subr.bf16.mxu1 %v10140_v26 }
 0x32d   : > { %9711 = vmatpush3.bf16.msra.mxu0 %v10131_v61  ;;  %v5714_v61 = vpack.c.bf16 %v5683_v39, %v5682_v59  ;;  %v6429_v59 = vld [vmem:[#allocation3 + $0x80] sm:$0xff] }
 0x32e   : > { %9712 = vmatprep.subr.bf16.mxu0 %v10132_v51  ;;  %9763 = vmatpush3.bf16.msra.mxu1 %v10140_v26  ;;  %v10150_v26 = vld [vmem:[%s12578_s1 + $0x430] sm:$0xff]  }
 0x32f   : > { %9633 = vmatmul.mubr.bf16.gmra.mxu0 %v11637_v53  ;;  %9685 = vmatmul.mubr.bf16.gmra.mxu1 %v11526_v4  ;;  %v4959_v4 = vld [vmem:[#allocation3 + $0xca] sm:$0xff] }
 0x330   : > { %9636 = vmatprep.mubr.bf16.mxu0 %v11642_v2  ;;  %9688 = vmatprep.mubr.bf16.mxu1 %v11544_v13  ;;  %v10149_v13 = vld [vmem:[%s12578_s1 + $0x438] sm:$0xff]   ;;  %v11662_v19 = vpack.c.bf16 %v4959_v4, %v4958_v42 }
 0x331   : > { %9713 = vmatpush3.bf16.msra.mxu0 %v10132_v51  ;;  %9764 = vmatprep.subr.bf16.mxu1 %v10142_v54  ;;  %v5684_v51 = vld [vmem:[#allocation3 + $0x31] sm:$0xff] }
 0x332   : > { %9714 = vmatprep.subr.bf16.mxu0 %v10135_v29  ;;  %9765 = vmatpush3.bf16.msra.mxu1 %v10142_v54  ;;  %v10145_v54 = vld [vmem:[%s12578_s1 + $0x3f0] sm:$0xff]   ;;  %v10155_v42 = vld [vmem:[%s12578_s1 + $0x418] sm:$0xff]  }
 0x333   : > { %9766 = vmatprep.subr.bf16.mxu1 %v10143_v1 }
 0x335   : > { %9715 = vmatpush3.bf16.msra.mxu0 %v10135_v29  ;;  %v10146_v29 = vld [vmem:[%s12578_s1 + $0x3e8] sm:$0xff]  }
 0x336   : > { %9716 = vmatprep.subr.bf16.mxu0 %v10138_v57  ;;  %9767 = vmatpush3.bf16.msra.mxu1 %v10143_v1  ;;  %v5689_v1 = vld [vmem:[#allocation3 + $0x69] sm:$0xff] }
 0x337   : > { %9637 = vmatmul.mubr.bf16.gmra.mxu0 %v11657_v46  ;;  %9689 = vmatmul.mubr.bf16.gmra.mxu1 %v11548_v24  ;;  %v4964_v24 = vld [vmem:[#allocation3 + $0x10a] sm:$0xff] }
 0x338   : > { %9640 = vmatprep.mubr.bf16.mxu0 %v11662_v19  ;;  %9692 = vmatprep.mubr.bf16.mxu1 %v11558_v60  ;;  %v4965_v60 = vld [vmem:[#allocation3 + $0x112] sm:$0xff] }
 0x339   : > { %9717 = vmatpush3.bf16.msra.mxu0 %v10138_v57  ;;  %9848 = vmatprep.subr.bf16.mxu1 %v10149_v13  ;;  %v11682_v8 = vpack.c.bf16 %v4965_v60, %v4964_v24  ;;  %v5690_v57 = vld [vmem:[#allocation3 + $0x79] sm:$0xff]  ;;  %v10154_v60 = vld [vmem:[%s12578_s1 + $0x3c8] sm:$0xff]  }
 0x33a   : > { %9718 = vmatprep.subr.bf16.mxu0 %v10141_v48  ;;  %v11730_v4 = vpack.c.bf16 %v5691_v5, %v5690_v57  ;;  %v10159_v24 = vld [vmem:[%s12578_s1 + $0x400] sm:$0xff]  }
 0x33d   : > { %9719 = vmatpush3.bf16.msra.mxu0 %v10141_v48  ;;  %v5693_v48 = vld [vmem:[#allocation3 + $0x99] sm:$0xff] }
 0x33e   : > { %9800 = vmatprep.subr.bf16.mxu0 %v10144_v62 }
 0x33f   : > { %9641 = vmatmul.mubr.bf16.gmra.mxu0 %v11674_v0  ;;  %9693 = vmatmul.mubr.bf16.gmra.mxu1 %v11562_v27  ;;  %v4968_v27 = vld [vmem:[#allocation3 + $0x13a] sm:$0xff] }
 0x340   : > { %9644 = vmatprep.mubr.bf16.mxu0 %v11676_v21  ;;  %9696 = vmatprep.mubr.bf16.mxu1 %v11577_v43  ;;  %v4970_v43 = vld [vmem:[#allocation3 + $0x152] sm:$0xff]  ;;  %v11690_v56 = vpack.c.bf16 %v4969_v20, %v4968_v27 }
 0x341   : > { %v11692_v16 = vpack.c.bf16 %v4971_v34, %v4970_v43  ;;  %v10160_v27 = vld [vmem:[%s12578_s1 + $0x478] sm:$0xff]   ;;  %v6425_v34 = vld [vmem:[#allocation3 + $0x50] sm:$0xff] }
 0x347   : > { %9645 = vmatmul.mubr.bf16.gmra.mxu0 %v11682_v8  ;;  %9697 = vmatmul.mubr.bf16.gmra.mxu1 %v11581_v17  ;;  %v4972_v17 = vld [vmem:[#allocation3 + $0x16a] sm:$0xff] }
 0x348   : > { %9648 = vmatprep.mubr.bf16.mxu0 %v11684_v10  ;;  %9700 = vmatprep.mubr.bf16.mxu1 %v11587_v35  ;;  %v4973_v35 = vld [vmem:[#allocation3 + $0x172] sm:$0xff] }
 0x349   : > { %v11697_v12 = vpack.c.bf16 %v4973_v35, %v4972_v17 }
 0x34f   : > { %9649 = vmatmul.mubr.bf16.gmra.mxu0 %v11690_v56  ;;  %9701 = vmatmul.mubr.bf16.gmra.mxu1 %v5359_v33 }
 0x350   : > { %9652 = vmatprep.mubr.bf16.mxu0 %v11692_v16  ;;  %9768 = vmatprep.mubr.bf16.mxu1 %v11599_v44  ;;  %v5685_v44 = vld [vmem:[#allocation3 + $0x39] sm:$0xff] }
 0x351   : > { %v11708_v30 = vpack.c.bf16 %v5685_v44, %v5684_v51  ;;  %v6431_v44 = vld [vmem:[#allocation3 + $0x98] sm:$0xff] }
 0x357   : > { %9653 = vmatmul.mubr.bf16.gmra.mxu0 %v11697_v12  ;;  %9769 = vmatmul.mubr.bf16.vlgmr.msra.gmra.mxu1 %v11604_v31  ;;  %v11713_v31 = vpack.c.bf16 %v5687_v63, %v5686_v22  ;;  %v6428_v63 = vld [vmem:[#allocation3 + $0x78] sm:$0xff]  ;;  %v6430_v22 = vld [vmem:[#allocation3 + $0x90] sm:$0xff] }
 0x358   : > { %9720 = vmatprep.mubr.bf16.mxu0 %v5714_v61  ;;  %9772 = vmatprep.mubr.bf16.mxu1 %v11617_v38  ;;  %v10153_v38 = vld [vmem:[%s12578_s1 + $0x420] sm:$0xff]   ;;  %v6803_v61 = vld [vmem:[#allocation3 + $0xb1] sm:$0xff] }
 0x359   : > { %9849 = vmatpush3.bf16.msra.mxu1 %v10149_v13  ;;  %v10156_v13 = vld [vmem:[%s12578_s1 + $0x410] sm:$0xff]  }
 0x35a   : > { %9850 = vmatprep.subr.bf16.mxu1 %v10150_v26 }
 0x35d   : > { %9851 = vmatpush3.bf16.msra.mxu1 %v10150_v26 }
 0x35e   : > { %9852 = vmatprep.subr.bf16.mxu1 %v10152_v47 }
 0x35f   : > { %9721 = vmatmul.mubr.bf16.vlgmr.msra.gmra.mxu0 %v11708_v30  ;;  %9773 = vmatmul.mubr.bf16.gmra.mxu1 %v11622_v14  ;;  %v11725_v14 = vpack.c.bf16 %v5689_v1, %v5688_v41 }
 0x360   : > { %9724 = vmatprep.mubr.bf16.mxu0 %v11713_v31  ;;  %9801 = vmatpush3.bf16.msra.mxu0 %v10144_v62 }
 0x361   : > { %9802 = vmatprep.subr.bf16.mxu0 %v10145_v54  ;;  %9776 = vmatprep.mubr.bf16.mxu1 %v11637_v53  ;;  %v10147_v53 = vld [vmem:[%s12578_s1 + $0x3e0] sm:$0xff]  }
 0x362   : > { %9853 = vmatpush3.bf16.msra.mxu1 %v10152_v47 }
 0x363   : > { %9854 = vmatprep.subr.bf16.mxu1 %v10153_v38 }
 0x364   : > { %9803 = vmatpush3.bf16.msra.mxu0 %v10145_v54 }
 0x365   : > { %9804 = vmatprep.subr.bf16.mxu0 %v10146_v29 }
 0x366   : > { %9855 = vmatpush3.bf16.msra.mxu1 %v10153_v38  ;;  %v6458_v38 = vpack.c.bf16 %v6431_v44, %v6430_v22 }
 0x367   : > { %9725 = vmatmul.mubr.bf16.gmra.mxu0 %v11725_v14  ;;  %9777 = vmatmul.mubr.bf16.gmra.mxu1 %v11642_v2  ;;  %v5692_v2 = vld [vmem:[#allocation3 + $0x91] sm:$0xff] }
 0x368   : > { %9728 = vmatprep.mubr.bf16.mxu0 %v11730_v4  ;;  %9780 = vmatprep.mubr.bf16.mxu1 %v11657_v46  ;;  %v11747_v62 = vpack.c.bf16 %v5693_v48, %v5692_v2  ;;  %v10158_v46 = vld [vmem:[%s12578_s1 + $0x408] sm:$0xff]  }
 0x369   : > { %9805 = vmatpush3.bf16.msra.mxu0 %v10146_v29  ;;  %9856 = vmatprep.subr.bf16.mxu1 %v10155_v42  ;;  %v10163_v29 = vld [vmem:[%s12578_s1 + $0x460] sm:$0xff]  }
 0x36a   : > { %9806 = vmatprep.subr.bf16.mxu0 %v10147_v53  ;;  %9857 = vmatpush3.bf16.msra.mxu1 %v10155_v42  ;;  %v6807_v48 = vld [vmem:[#allocation3 + $0xe1] sm:$0xff] }
 0x36b   : > { %9858 = vmatprep.subr.bf16.mxu1 %v10156_v13 }
 0x36d   : > { %9807 = vmatpush3.bf16.msra.mxu0 %v10147_v53 }
 0x36e   : > { %9808 = vmatprep.subr.bf16.mxu0 %v10148_v50  ;;  %9859 = vmatpush3.bf16.msra.mxu1 %v10156_v13  ;;  %v6433_v13 = vld [vmem:[#allocation3 + $0xb0] sm:$0xff] }
 0x36f   : > { %9729 = vmatmul.mubr.bf16.gmra.mxu0 %v11747_v62  ;;  %9781 = vmatmul.mubr.bf16.gmra.mxu1 %v11662_v19  ;;  %v10157_v19 = vld [vmem:[%s12578_s1 + $0x3c0] sm:$0xff]  }
 0x370   : > { %9732 = vmatprep.mubr.bf16.mxu0 %v5720_v3  ;;  %9784 = vmatprep.mubr.bf16.mxu1 %v11674_v0  ;;  %v11775_v0 = vld [vmem:[#allocation3 + $0xf1] sm:$0xff]  ;;  %v6809_v3 = vld [vmem:[#allocation3 + $0xf9] sm:$0xff] }
 0x371   : > { %9809 = vmatpush3.bf16.msra.mxu0 %v10148_v50  ;;  %9860 = vmatprep.subr.bf16.mxu1 %v10158_v46  ;;  %v5723_v20 = vpack.c.bf16 %v11511_v11, %v11775_v0  ;;  %v6082_v11 = vld [vmem:[#allocation3 + $0x182] sm:$0xff]  ;;  %v10164_v50 = vld [vmem:[%s12578_s1 + $0x458] sm:$0xff]  }
 0x372   : > { %9810 = vmatprep.subr.bf16.mxu0 %v10151_v23  ;;  %9861 = vmatpush3.bf16.msra.mxu1 %v10158_v46 }
 0x373   : > { %9862 = vmatprep.subr.bf16.mxu1 %v10159_v24 }
 0x375   : > { %9811 = vmatpush3.bf16.msra.mxu0 %v10151_v23 }
 0x376   : > { %9812 = vmatprep.subr.bf16.mxu0 %v10154_v60  ;;  %9863 = vmatpush3.bf16.msra.mxu1 %v10159_v24  ;;  %v6432_v24 = vld [vmem:[#allocation3 + $0xa8] sm:$0xff] }
 0x377   : > { %9733 = vmatmul.mubr.bf16.gmra.mxu0 %v11766_v32  ;;  %9785 = vmatmul.mubr.bf16.gmra.mxu1 %v11676_v21 }
 0x378   : > { %9736 = vmatprep.mubr.bf16.mxu0 %v11519_v49  ;;  %9788 = vmatprep.mubr.bf16.mxu1 %v11682_v8  ;;  %v11785_v49 = vld [vmem:[#allocation3 + $0x121] sm:$0xff]  ;;  %v6083_v8 = vld [vmem:[#allocation3 + $0x18a] sm:$0xff] }
 0x379   : > { %9813 = vmatpush3.bf16.msra.mxu0 %v10154_v60  ;;  %v5725_v21 = vpack.c.bf16 %v11535_v6, %v11785_v49  ;;  %v6099_v25 = vpack.c.bf16 %v6083_v8, %v6082_v11  ;;  %v5729_v6 = vpack.c.bf16 %v4169_v9, %v4168_v40  ;;  %v10161_v40 = vld [vmem:[%s12578_s1 + $0x470] sm:$0xff]   ;;  %v6832_v8 = vpack.c.bf16 %v6809_v3, %v11775_v0 }
 0x37a   : > { %9814 = vmatprep.subr.bf16.mxu0 %v10157_v19 }
 0x37d   : > { %9815 = vmatpush3.bf16.msra.mxu0 %v10157_v19  ;;  %v6434_v19 = vld [vmem:[#allocation3 + $0xc0] sm:$0xff] }
 0x37e   : > { %9896 = vmatprep.subr.bf16.mxu0 %v10160_v27 }
 0x37f   : > { %9737 = vmatmul.mubr.bf16.gmra.mxu0 %v5723_v20  ;;  %9789 = vmatmul.mubr.bf16.gmra.mxu1 %v11684_v10  ;;  %v6422_v10 = vld [vmem:[#allocation3 + $0x30] sm:$0xff]  ;;  %v6831_v20 = vpack.c.bf16 %v6807_v48, %v6806_v45  ;;  %v6817_v48 = vld [vmem:[#allocation3 + $0x159] sm:$0xff] }
 0x380   : > { %9740 = vmatprep.mubr.bf16.mxu0 %v11546_v37  ;;  %9792 = vmatprep.mubr.bf16.mxu1 %v11690_v56  ;;  %v6423_v37 = vld [vmem:[#allocation3 + $0x38] sm:$0xff]  ;;  %v6424_v56 = vld [vmem:[#allocation3 + $0x48] sm:$0xff] }
 0x381   : > { %v6455_v33 = vpack.c.bf16 %v6425_v34, %v6424_v56  ;;  %v10166_v56 = vld [vmem:[%s12578_s1 + $0x448] sm:$0xff]  }
 0x387   : > { %9741 = vmatmul.mubr.bf16.gmra.mxu0 %v5725_v21  ;;  %9793 = vmatmul.mubr.bf16.gmra.mxu1 %v11692_v16 }
 0x388   : > { %9744 = vmatprep.mubr.bf16.mxu0 %v11560_v18  ;;  %9796 = vmatprep.mubr.bf16.mxu1 %v11697_v12  ;;  %v6454_v18 = vpack.c.bf16 %v6423_v37, %v6422_v10  ;;  %v10162_v12 = vld [vmem:[%s12578_s1 + $0x468] sm:$0xff]  }
 0x38f   : > { %9745 = vmatmul.mubr.bf16.gmra.mxu0 %v11564_v52  ;;  %9797 = vmatmul.mubr.bf16.gmra.mxu1 %v6099_v25  ;;  %v10165_v25 = vld [vmem:[%s12578_s1 + $0x450] sm:$0xff]  }
 0x390   : > { %9748 = vmatprep.mubr.bf16.mxu0 %v11579_v28  ;;  %9864 = vmatprep.mubr.bf16.mxu1 %v11708_v30  ;;  %v6427_v28 = vld [vmem:[#allocation3 + $0x68] sm:$0xff]  ;;  %v6457_v30 = vpack.c.bf16 %v6429_v59, %v6428_v63 }
 0x391   : > { %v6456_v7 = vpack.c.bf16 %v6427_v28, %v6426_v15  ;;  %v6437_v28 = vld [vmem:[#allocation3 + $0xe0] sm:$0xff] }
 0x397   : > { %9749 = vmatmul.mubr.bf16.gmra.mxu0 %v5729_v6  ;;  %v9578_v43 = vpop.f32.mrf.mxu1  ;;  %9865 = vmatmul.mubr.bf16.vlgmr.msra.gmra.mxu1 %v11713_v31  ;;  %v6829_v31 = vpack.c.bf16 %v6803_v61, %v11745_v55  ;;  %v6438_v61 = vld [vmem:[#allocation3 + $0xf0] sm:$0xff] }
 0x398   : > { %9816 = vmatprep.mubr.bf16.mxu0 %v6454_v18  ;;  %9868 = vmatprep.mubr.bf16.mxu1 %v11725_v14 }
 0x399   : > { %v4719_v52 = vpop.f32.mrf.mxu1 }
 0x39b   : > { %v11801_v58 = vpop.f32.mrf.mxu1 }
 0x39d   : > { %v11803_v16 = vpop.f32.mrf.mxu1 }
 0x39f   : > { %v9530_v9 = vpop.f32.mrf.mxu0  ;;  %9817 = vmatmul.mubr.bf16.vlgmr.msra.gmra.mxu0 %v6455_v33  ;;  %v11808_v17 = vpop.f32.mrf.mxu1  ;;  %9869 = vmatmul.mubr.bf16.gmra.mxu1 %v11730_v4 }
 0x3a0   : > { %4542 = vst.msk [vmem:[#allocation4 + $0x10] sm:$0xff] %vm711_vm0, %v9530_v9  ;;  %9820 = vmatprep.mubr.bf16.mxu0 %v6456_v7  ;;  %9897 = vmatpush3.bf16.msra.mxu0 %v10160_v27  ;;  %v6813_v7 = vld [vmem:[#allocation3 + $0x129] sm:$0xff] }
 0x3a1   : > { %v4413_v35 = vpop.f32.mrf.mxu0  ;;  %9898 = vmatprep.subr.bf16.mxu0 %v10161_v40  ;;  %9872 = vmatprep.mubr.bf16.mxu1 %v11747_v62  ;;  %v11813_v39 = vpop.f32.mrf.mxu1  ;;  %v6435_v62 = vld [vmem:[#allocation3 + $0xc8] sm:$0xff] }
 0x3a2   : > { %4540 = vst.msk [vmem:[#allocation4] sm:$0xff] %vm711_vm0, %v4413_v35  ;;  %v6460_v11 = vpack.c.bf16 %v6435_v62, %v6434_v19  ;;  %v6810_v35 = vld [vmem:[#allocation3 + $0x109] sm:$0xff] }
 0x3a3   : > { %v9531_v26 = vpop.f32.mrf.mxu0  ;;  %v11819_v47 = vpop.f32.mrf.mxu1 }
 0x3a4   : > { %4543 = vst.msk [vmem:[#allocation4 + $0x18] sm:$0xff] %vm711_vm0, %v9531_v26  ;;  %9899 = vmatpush3.bf16.msra.mxu0 %v10161_v40 }
 0x3a5   : > { %v4416_v51 = vpop.f32.mrf.mxu0  ;;  %v11822_v54 = vpop.f32.mrf.mxu1  ;;  %9900 = vmatprep.subr.bf16.mxu0 %v10162_v12 }
 0x3a6   : > { %4541 = vst.msk [vmem:[#allocation4 + $0x8] sm:$0xff] %vm711_vm0, %v4416_v51 }
 0x3a7   : > { %v4848_v1 = vld [vmem:[#allocation4 + $0x10] sm:$0xff]  ;;  %v9534_v5 = vpop.f32.mrf.mxu0  ;;  %9821 = vmatmul.mubr.bf16.gmra.mxu0 %v6457_v30  ;;  %v11829_v41 = vpop.f32.mrf.mxu1  ;;  %9873 = vmatmul.mubr.bf16.gmra.mxu1 %v6829_v31 }
 0x3a8   : > { %v4880_v14 = vadd.f32 %v9578_v43, %v4848_v1  ;;  %4546 = vst.msk [vmem:[#allocation4 + $0x30] sm:$0xff] %vm711_vm0, %v9534_v5  ;;  %9824 = vmatprep.mubr.bf16.mxu0 %v6458_v38  ;;  %9876 = vmatprep.mubr.bf16.mxu1 %v11766_v32  ;;  %v6459_v32 = vpack.c.bf16 %v6433_v13, %v6432_v24  ;;  %v10167_v30 = vld [vmem:[%s12578_s1 + $0x440] sm:$0xff]  }
 0x3a9   : > { %v4846_v57 = vld [vmem:[#allocation4] sm:$0xff]  ;;  %v4429_v42 = vpop.f32.mrf.mxu0  ;;  %9901 = vmatpush3.bf16.msra.mxu0 %v10162_v12  ;;  %v11833_v4 = vpop.f32.mrf.mxu1 }
 0x3aa   : > { %4912 = vst.msk [vmem:[#allocation4 + $0x10] sm:$0xff] %vm711_vm0, %v4880_v14  ;;  %v4878_v53 = vadd.f32 %v4846_v57, %v4719_v52  ;;  %4544 = vst.msk [vmem:[#allocation4 + $0x20] sm:$0xff] %vm711_vm0, %v4429_v42  ;;  %9902 = vmatprep.subr.bf16.mxu0 %v10163_v29  ;;  %v6441_v14 = vld [vmem:[#allocation3 + $0x110] sm:$0xff]  ;;  %v6815_v57 = vld [vmem:[#allocation3 + $0x141] sm:$0xff] }
 0x3ab   : > { %v4849_v55 = vld [vmem:[#allocation4 + $0x18] sm:$0xff]  ;;  %v9535_v2 = vpop.f32.mrf.mxu0  ;;  %v11840_v46 = vpop.f32.mrf.mxu1 }
 0x3ac   : > { %4910 = vst.msk [vmem:[#allocation4] sm:$0xff] %vm711_vm0, %v4878_v53  ;;  %v4881_v23 = vadd.f32 %v11801_v58, %v4849_v55  ;;  %4547 = vst.msk [vmem:[#allocation4 + $0x38] sm:$0xff] %vm711_vm0, %v9535_v2  ;;  %v6811_v58 = vld [vmem:[#allocation3 + $0x111] sm:$0xff]  ;;  %v6443_v53 = vld [vmem:[#allocation3 + $0x128] sm:$0xff] }
 0x3ad   : > { %v4847_v60 = vld [vmem:[#allocation4 + $0x8] sm:$0xff]  ;;  %v4432_v36 = vpop.f32.mrf.mxu0  ;;  %v11845_v27 = vpop.f32.mrf.mxu1  ;;  %9903 = vmatpush3.bf16.msra.mxu0 %v10163_v29  ;;  %v6833_v44 = vpack.c.bf16 %v6811_v58, %v6810_v35  ;;  %v6440_v55 = vld [vmem:[#allocation3 + $0x108] sm:$0xff] }
 0x3ae   : > { %4913 = vst.msk [vmem:[#allocation4 + $0x18] sm:$0xff] %vm711_vm0, %v4881_v23  ;;  %v4879_v21 = vadd.f32 %v4847_v60, %v11803_v16  ;;  %4545 = vst.msk [vmem:[#allocation4 + $0x28] sm:$0xff] %vm711_vm0, %v4432_v36  ;;  %9904 = vmatprep.subr.bf16.mxu0 %v10164_v50  ;;  %v6439_v16 = vld [vmem:[#allocation3 + $0xf8] sm:$0xff]  ;;  %v6463_v3 = vpack.c.bf16 %v6441_v14, %v6440_v55  ;;  %v6442_v23 = vld [vmem:[#allocation3 + $0x120] sm:$0xff] }
 0x3af   : > { %v4852_v37 = vld [vmem:[#allocation4 + $0x30] sm:$0xff]  ;;  %v9538_v6 = vpop.f32.mrf.mxu0  ;;  %9825 = vmatmul.mubr.bf16.gmra.mxu0 %v6459_v32  ;;  %v11854_v10 = vpop.f32.mrf.mxu1  ;;  %9877 = vmatmul.mubr.bf16.gmra.mxu1 %v6831_v20  ;;  %v6462_v51 = vpack.c.bf16 %v6439_v16, %v6438_v61  ;;  %v6816_v60 = vld [vmem:[#allocation3 + $0x151] sm:$0xff] }
 0x3b0   : > { %4911 = vst.msk [vmem:[#allocation4 + $0x8] sm:$0xff] %vm711_vm0, %v4879_v21  ;;  %v4884_v18 = vadd.f32 %v11808_v17, %v4852_v37  ;;  %4550 = vst.msk [vmem:[#allocation4 + $0x50] sm:$0xff] %vm711_vm0, %v9538_v6  ;;  %9828 = vmatprep.mubr.bf16.mxu0 %v6460_v11  ;;  %9880 = vmatprep.mubr.bf16.mxu1 %v6832_v8  ;;  %v6436_v17 = vld [vmem:[#allocation3 + $0xd8] sm:$0xff]  ;;  %v6836_v32 = vpack.c.bf16 %v6817_v48, %v6816_v60  ;;  %v6445_v6 = vld [vmem:[#allocation3 + $0x140] sm:$0xff] }
 0x3b1   : > { %v4850_v0 = vld [vmem:[#allocation4 + $0x20] sm:$0xff]  ;;  %v4445_v43 = vpop.f32.mrf.mxu0  ;;  %v11859_v52 = vpop.f32.mrf.mxu1  ;;  %9905 = vmatpush3.bf16.msra.mxu0 %v10164_v50  ;;  %v6461_v59 = vpack.c.bf16 %v6437_v28, %v6436_v17  ;;  %v6814_v2 = vld [vmem:[#allocation3 + $0x139] sm:$0xff]  ;;  %v6820_v35 = vld [vmem:[#allocation3 + $0x181] sm:$0xff] }
 0x3b2   : > { %4916 = vst.msk [vmem:[#allocation4 + $0x30] sm:$0xff] %vm711_vm0, %v4884_v18  ;;  %v4882_v34 = vadd.f32 %v4850_v0, %v11813_v39  ;;  %4548 = vst.msk [vmem:[#allocation4 + $0x40] sm:$0xff] %vm711_vm0, %v4445_v43  ;;  %9906 = vmatprep.subr.bf16.mxu0 %v10165_v25  ;;  %v6835_v45 = vpack.c.bf16 %v6815_v57, %v6814_v2  ;;  %v6819_v18 = vld [vmem:[#allocation3 + $0x171] sm:$0xff]  ;;  %v6821_v28 = vld [vmem:[#allocation3 + $0x189] sm:$0xff] }
 0x3b3   : > { %v4853_v33 = vld [vmem:[#allocation4 + $0x38] sm:$0xff]  ;;  %v9539_v15 = vpop.f32.mrf.mxu0  ;;  %v11867_v40 = vpop.f32.mrf.mxu1 }
 0x3b4   : > { %4914 = vst.msk [vmem:[#allocation4 + $0x20] sm:$0xff] %vm711_vm0, %v4882_v34  ;;  %v4885_v9 = vadd.f32 %v11819_v47, %v4853_v33  ;;  %4551 = vst.msk [vmem:[#allocation4 + $0x58] sm:$0xff] %vm711_vm0, %v9539_v15  ;;  %v6834_v47 = vpack.c.bf16 %v6813_v7, %v11785_v49  ;;  %v6447_v34 = vld [vmem:[#allocation3 + $0x158] sm:$0xff]  ;;  %v6818_v33 = vld [vmem:[#allocation3 + $0x169] sm:$0xff] }
 0x3b5   : > { %v4851_v39 = vld [vmem:[#allocation4 + $0x28] sm:$0xff]  ;;  %v4448_v12 = vpop.f32.mrf.mxu0  ;;  %v11872_v26 = vpop.f32.mrf.mxu1  ;;  %9907 = vmatpush3.bf16.msra.mxu0 %v10165_v25  ;;  %v6446_v7 = vld [vmem:[#allocation3 + $0x150] sm:$0xff]  ;;  %v6837_v17 = vpack.c.bf16 %v6819_v18, %v6818_v33 }
 0x3b6   : > { %4917 = vst.msk [vmem:[#allocation4 + $0x38] sm:$0xff] %vm711_vm0, %v4885_v9  ;;  %v4883_v63 = vadd.f32 %v4851_v39, %v11822_v54  ;;  %4549 = vst.msk [vmem:[#allocation4 + $0x48] sm:$0xff] %vm711_vm0, %v4448_v12  ;;  %9908 = vmatprep.subr.bf16.mxu0 %v10166_v56  ;;  %v6466_v12 = vpack.c.bf16 %v6447_v34, %v6446_v7 }
 0x3b7   : > { %v4856_v22 = vld [vmem:[#allocation4 + $0x50] sm:$0xff]  ;;  %v9542_v31 = vpop.f32.mrf.mxu0  ;;  %9829 = vmatmul.mubr.bf16.gmra.mxu0 %v6461_v59  ;;  %v11881_v38 = vpop.f32.mrf.mxu1  ;;  %9881 = vmatmul.mubr.bf16.gmra.mxu1 %v6833_v44 }
 0x3b8   : > { %4915 = vst.msk [vmem:[#allocation4 + $0x28] sm:$0xff] %vm711_vm0, %v4883_v63  ;;  %v4888_v54 = vadd.f32 %v11829_v41, %v4856_v22  ;;  %4554 = vst.msk [vmem:[#allocation4 + $0x70] sm:$0xff] %vm711_vm0, %v9542_v31  ;;  %9832 = vmatprep.mubr.bf16.mxu0 %v6462_v51  ;;  %9884 = vmatprep.mubr.bf16.mxu1 %v6834_v47  ;;  %v6822_v51 = vld [vmem:[#allocation3 + $0x199] sm:$0xff] }
 0x3b9   : > { %v4854_v49 = vld [vmem:[#allocation4 + $0x40] sm:$0xff]  ;;  %v4461_v29 = vpop.f32.mrf.mxu0  ;;  %v11886_v1 = vpop.f32.mrf.mxu1  ;;  %9909 = vmatpush3.bf16.msra.mxu0 %v10166_v56  ;;  %v6444_v56 = vld [vmem:[#allocation3 + $0x138] sm:$0xff] }
 0x3ba   : > { %4920 = vst.msk [vmem:[#allocation4 + $0x50] sm:$0xff] %vm711_vm0, %v4888_v54  ;;  %v4886_v5 = vadd.f32 %v4854_v49, %v11833_v4  ;;  %4552 = vst.msk [vmem:[#allocation4 + $0x60] sm:$0xff] %vm711_vm0, %v4461_v29  ;;  %9910 = vmatprep.subr.bf16.mxu0 %v10167_v30  ;;  %v6465_v16 = vpack.c.bf16 %v6445_v6, %v6444_v56  ;;  %v6449_v54 = vld [vmem:[#allocation3 + $0x170] sm:$0xff] }
 0x3bb   : > { %v4857_v42 = vld [vmem:[#allocation4 + $0x58] sm:$0xff]  ;;  %v9543_v41 = vpop.f32.mrf.mxu0  ;;  %v11891_v13 = vpop.f32.mrf.mxu1 }
 0x3bc   : > { %4918 = vst.msk [vmem:[#allocation4 + $0x40] sm:$0xff] %vm711_vm0, %v4886_v5  ;;  %v4889_v50 = vadd.f32 %v11840_v46, %v4857_v42  ;;  %4555 = vst.msk [vmem:[#allocation4 + $0x78] sm:$0xff] %vm711_vm0, %v9543_v41  ;;  %v6464_v46 = vpack.c.bf16 %v6443_v53, %v6442_v23  ;;  %v6448_v42 = vld [vmem:[#allocation3 + $0x168] sm:$0xff]  ;;  %v6452_v23 = vld [vmem:[#allocation3 + $0x198] sm:$0xff] }
 0x3bd   : > { %v4855_v4 = vld [vmem:[#allocation4 + $0x48] sm:$0xff]  ;;  %v4464_v62 = vpop.f32.mrf.mxu0  ;;  %v11896_v24 = vpop.f32.mrf.mxu1  ;;  %9911 = vmatpush3.bf16.msra.mxu0 %v10167_v30  ;;  %v6467_v48 = vpack.c.bf16 %v6449_v54, %v6448_v42 }
 0x3be   : > { %4921 = vst.msk [vmem:[#allocation4 + $0x58] sm:$0xff] %vm711_vm0, %v4889_v50  ;;  %v4887_v36 = vadd.f32 %v4855_v4, %v11845_v27  ;;  %4553 = vst.msk [vmem:[#allocation4 + $0x68] sm:$0xff] %vm711_vm0, %v4464_v62  ;;  %v7168_v42 = vld [vmem:[#allocation3 + $0x7a] sm:$0xff] }
 0x3bf   : > { %v4860_v19 = vld [vmem:[#allocation4 + $0x70] sm:$0xff]  ;;  %v9546_v20 = vpop.f32.mrf.mxu0  ;;  %9833 = vmatmul.mubr.bf16.gmra.mxu0 %v6463_v3  ;;  %v11901_v21 = vpop.f32.mrf.mxu1  ;;  %9885 = vmatmul.mubr.bf16.gmra.mxu1 %v6835_v45 }
 0x3c0   : > { %4919 = vst.msk [vmem:[#allocation4 + $0x48] sm:$0xff] %vm711_vm0, %v4887_v36  ;;  %v4892_v11 = vadd.f32 %v11854_v10, %v4860_v19  ;;  %4558 = vst.msk [vmem:[#allocation4 + $0x90] sm:$0xff] %vm711_vm0, %v9546_v20  ;;  %9836 = vmatprep.mubr.bf16.mxu0 %v6464_v46  ;;  %9888 = vmatprep.mubr.bf16.mxu1 %v6836_v32  ;;  %v10204_v19 = vld [vmem:[#allocation3 + $0x8] sm:$0xff] }
 0x3c1   : > { %v4858_v8 = vld [vmem:[#allocation4 + $0x60] sm:$0xff]  ;;  %v4477_v27 = vpop.f32.mrf.mxu0  ;;  %v11906_v25 = vpop.f32.mrf.mxu1  ;;  %v6469_v20 = vpack.c.bf16 %v10204_v19, %v6452_v23  ;;  %v5217_v23 = vld [vmem:[#allocation4 + $0x8] sm:$0xff]  ;;  %v5222_v19 = vld [vmem:[#allocation4 + $0x30] sm:$0xff] }
 0x3c2   : > { %4924 = vst.msk [vmem:[#allocation4 + $0x70] sm:$0xff] %vm711_vm0, %v4892_v11  ;;  %v4890_v37 = vadd.f32 %v4858_v8, %v11859_v52  ;;  %4556 = vst.msk [vmem:[#allocation4 + $0x80] sm:$0xff] %vm711_vm0, %v4477_v27  ;;  %v7162_v11 = vld [vmem:[#allocation3 + $0x32] sm:$0xff] }
 0x3c3   : > { %v4861_v0 = vld [vmem:[#allocation4 + $0x78] sm:$0xff]  ;;  %v9547_v43 = vpop.f32.mrf.mxu0  ;;  %v11911_v10 = vpop.f32.mrf.mxu1 }
 0x3c4   : > { %4922 = vst.msk [vmem:[#allocation4 + $0x60] sm:$0xff] %vm711_vm0, %v4890_v37  ;;  %v4893_v58 = vadd.f32 %v11867_v40, %v4861_v0  ;;  %4559 = vst.msk [vmem:[#allocation4 + $0x98] sm:$0xff] %vm711_vm0, %v9547_v43  ;;  %v6838_v40 = vpack.c.bf16 %v6821_v28, %v6820_v35  ;;  %v7167_v35 = vld [vmem:[#allocation3 + $0x6a] sm:$0xff] }
 0x3c5   : > { %v4859_v15 = vld [vmem:[#allocation4 + $0x68] sm:$0xff]  ;;  %v4480_v52 = vpop.f32.mrf.mxu0  ;;  %v11916_v9 = vpop.f32.mrf.mxu1 }
 0x3c6   : > { %4925 = vst.msk [vmem:[#allocation4 + $0x78] sm:$0xff] %vm711_vm0, %v4893_v58  ;;  %v4891_v39 = vadd.f32 %v4859_v15, %v11872_v26  ;;  %4557 = vst.msk [vmem:[#allocation4 + $0x88] sm:$0xff] %vm711_vm0, %v4480_v52  ;;  %v6823_v26 = vld [vmem:[#allocation3 + $0x1a1] sm:$0xff]  ;;  %v7164_v52 = vld [vmem:[#allocation3 + $0x4a] sm:$0xff] }
 0x3c7   : > { %v4864_v59 = vld [vmem:[#allocation4 + $0x90] sm:$0xff]  ;;  %v9550_v61 = vpop.f32.mrf.mxu0  ;;  %9837 = vmatmul.mubr.bf16.gmra.mxu0 %v6465_v16  ;;  %v11921_v44 = vpop.f32.mrf.mxu1  ;;  %9889 = vmatmul.mubr.bf16.gmra.mxu1 %v6837_v17  ;;  %v6839_v14 = vpack.c.bf16 %v6823_v26, %v6822_v51  ;;  %v7165_v16 = vld [vmem:[#allocation3 + $0x52] sm:$0xff] }
 0x3c8   : > { %4923 = vst.msk [vmem:[#allocation4 + $0x68] sm:$0xff] %vm711_vm0, %v4891_v39  ;;  %v4896_v63 = vadd.f32 %v11881_v38, %v4864_v59  ;;  %4562 = vst.msk [vmem:[#allocation4 + $0xb0] sm:$0xff] %vm711_vm0, %v9550_v61  ;;  %9840 = vmatprep.mubr.bf16.mxu0 %v6466_v12  ;;  %9892 = vmatprep.mubr.bf16.mxu1 %v6838_v40  ;;  %v6451_v38 = vld [vmem:[#allocation3 + $0x188] sm:$0xff]  ;;  %v7195_v61 = vpack.c.bf16 %v7165_v16, %v7164_v52 }
 0x3c9   : > { %v4862_v47 = vld [vmem:[#allocation4 + $0x80] sm:$0xff]  ;;  %v4493_v30 = vpop.f32.mrf.mxu0  ;;  %v11926_v22 = vpop.f32.mrf.mxu1  ;;  %v7166_v17 = vld [vmem:[#allocation3 + $0x62] sm:$0xff] }
 0x3ca   : > { %4928 = vst.msk [vmem:[#allocation4 + $0x90] sm:$0xff] %vm711_vm0, %v4896_v63  ;;  %v4894_v31 = vadd.f32 %v4862_v47, %v11886_v1  ;;  %4560 = vst.msk [vmem:[#allocation4 + $0xa0] sm:$0xff] %vm711_vm0, %v4493_v30  ;;  %v6450_v1 = vld [vmem:[#allocation3 + $0x180] sm:$0xff]  ;;  %v7196_v51 = vpack.c.bf16 %v7167_v35, %v7166_v17 }
 0x3cb   : > { %v4865_v49 = vld [vmem:[#allocation4 + $0x98] sm:$0xff]  ;;  %v9551_v29 = vpop.f32.mrf.mxu0  ;;  %v11931_v5 = vpop.f32.mrf.mxu1  ;;  %v6468_v2 = vpack.c.bf16 %v6451_v38, %v6450_v1  ;;  %v5218_v30 = vld [vmem:[#allocation4 + $0x10] sm:$0xff]  ;;  %v5216_v38 = vld [vmem:[#allocation4] sm:$0xff] }
 0x3cc   : > { %4926 = vst.msk [vmem:[#allocation4 + $0x80] sm:$0xff] %vm711_vm0, %v4894_v31  ;;  %v4897_v57 = vadd.f32 %v11891_v13, %v4865_v49  ;;  %4563 = vst.msk [vmem:[#allocation4 + $0xb8] sm:$0xff] %vm711_vm0, %v9551_v29 }
 0x3cd   : > { %v4863_v41 = vld [vmem:[#allocation4 + $0x88] sm:$0xff]  ;;  %v4496_v53 = vpop.f32.mrf.mxu0  ;;  %v11936_v50 = vpop.f32.mrf.mxu1 }
 0x3ce   : > { %4929 = vst.msk [vmem:[#allocation4 + $0x98] sm:$0xff] %vm711_vm0, %v4897_v57  ;;  %v4895_v55 = vadd.f32 %v4863_v41, %v11896_v24  ;;  %4561 = vst.msk [vmem:[#allocation4 + $0xa8] sm:$0xff] %vm711_vm0, %v4496_v53  ;;  %v7169_v41 = vld [vmem:[#allocation3 + $0x82] sm:$0xff]  ;;  %v7170_v53 = vld [vmem:[#allocation3 + $0x92] sm:$0xff] }
 0x3cf   : > { %v4868_v4 = vld [vmem:[#allocation4 + $0xb0] sm:$0xff]  ;;  %v9554_v62 = vpop.f32.mrf.mxu0  ;;  %9841 = vmatmul.mubr.bf16.gmra.mxu0 %v6467_v48  ;;  %v11941_v13 = vpop.f32.mrf.mxu1  ;;  %9893 = vmatmul.mubr.bf16.gmra.mxu1 %v6839_v14 }
 0x3d0   : > { %4927 = vst.msk [vmem:[#allocation4 + $0x88] sm:$0xff] %vm711_vm0, %v4895_v55  ;;  %v4900_v3 = vadd.f32 %v11901_v21, %v4868_v4  ;;  %4566 = vst.msk [vmem:[#allocation4 + $0xd0] sm:$0xff] %vm711_vm0, %v9554_v62  ;;  %9844 = vmatprep.mubr.bf16.mxu0 %v6468_v2  ;;  %v7163_v21 = vld [vmem:[#allocation3 + $0x3a] sm:$0xff] }
 0x3d1   : > { %v4866_v45 = vld [vmem:[#allocation4 + $0xa0] sm:$0xff]  ;;  %v4509_v60 = vpop.f32.mrf.mxu0  ;;  %v11946_v24 = vpop.f32.mrf.mxu1  ;;  %v7194_v0 = vpack.c.bf16 %v7163_v21, %v7162_v11  ;;  %v7171_v55 = vld [vmem:[#allocation3 + $0x9a] sm:$0xff] }
 0x3d2   : > { %4932 = vst.msk [vmem:[#allocation4 + $0xb0] sm:$0xff] %vm711_vm0, %v4900_v3  ;;  %v4898_v36 = vadd.f32 %v4866_v45, %v11906_v25  ;;  %4564 = vst.msk [vmem:[#allocation4 + $0xc0] sm:$0xff] %vm711_vm0, %v4509_v60  ;;  %v7197_v45 = vpack.c.bf16 %v7169_v41, %v7168_v42  ;;  %v5227_v41 = vld [vmem:[#allocation4 + $0x58] sm:$0xff] }
 0x3d3   : > { %v4869_v46 = vld [vmem:[#allocation4 + $0xb8] sm:$0xff]  ;;  %v9555_v32 = vpop.f32.mrf.mxu0  ;;  %v11951_v8 = vpop.f32.mrf.mxu1 }
 0x3d4   : > { %4930 = vst.msk [vmem:[#allocation4 + $0xa0] sm:$0xff] %vm711_vm0, %v4898_v36  ;;  %v4901_v27 = vadd.f32 %v11911_v10, %v4869_v46  ;;  %4567 = vst.msk [vmem:[#allocation4 + $0xd8] sm:$0xff] %vm711_vm0, %v9555_v32  ;;  %v7198_v46 = vpack.c.bf16 %v7171_v55, %v7170_v53  ;;  %v7179_v53 = vld [vmem:[#allocation3 + $0xfa] sm:$0xff] }
 0x3d5   : > { %v4867_v37 = vld [vmem:[#allocation4 + $0xa8] sm:$0xff]  ;;  %v4512_v6 = vpop.f32.mrf.mxu0  ;;  %v11956_v18 = vpop.f32.mrf.mxu1 }
 0x3d6   : > { %4933 = vst.msk [vmem:[#allocation4 + $0xb8] sm:$0xff] %vm711_vm0, %v4901_v27  ;;  %v4899_v25 = vadd.f32 %v4867_v37, %v11916_v9  ;;  %4565 = vst.msk [vmem:[#allocation4 + $0xc8] sm:$0xff] %vm711_vm0, %v4512_v6  ;;  %v5220_v27 = vld [vmem:[#allocation4 + $0x20] sm:$0xff] }
 0x3d7   : > { %v4872_v43 = vld [vmem:[#allocation4 + $0xd0] sm:$0xff]  ;;  %v9558_v34 = vpop.f32.mrf.mxu0  ;;  %9845 = vmatmul.mubr.bf16.gmra.mxu0 %v6469_v20  ;;  %v11961_v28 = vpop.f32.mrf.mxu1 }
 0x3d8   : > { %4931 = vst.msk [vmem:[#allocation4 + $0xa8] sm:$0xff] %vm711_vm0, %v4899_v25  ;;  %v4904_v10 = vadd.f32 %v11921_v44, %v4872_v43  ;;  %4570 = vst.msk [vmem:[#allocation4 + $0xf0] sm:$0xff] %vm711_vm0, %v9558_v34  ;;  %9912 = vmatprep.mubr.bf16.mxu0 %v7194_v0  ;;  %v7172_v25 = vld [vmem:[#allocation3 + $0xaa] sm:$0xff]  ;;  %v7173_v0 = vld [vmem:[#allocation3 + $0xb2] sm:$0xff] }
 0x3d9   : > { %v4870_v58 = vld [vmem:[#allocation4 + $0xc0] sm:$0xff]  ;;  %v4525_v56 = vpop.f32.mrf.mxu0  ;;  %v11966_v33 = vpop.f32.mrf.mxu1  ;;  %v7174_v43 = vld [vmem:[#allocation3 + $0xc2] sm:$0xff]  ;;  %v7199_v17 = vpack.c.bf16 %v7173_v0, %v7172_v25 }
 0x3da   : > { %4936 = vst.msk [vmem:[#allocation4 + $0xd0] sm:$0xff] %vm711_vm0, %v4904_v10  ;;  %v4902_v15 = vadd.f32 %v4870_v58, %v11926_v22  ;;  %4568 = vst.msk [vmem:[#allocation4 + $0xe0] sm:$0xff] %vm711_vm0, %v4525_v56  ;;  %v5223_v58 = vld [vmem:[#allocation4 + $0x38] sm:$0xff]  ;;  %v7181_v25 = vld [vmem:[#allocation3 + $0x112] sm:$0xff] }
 0x3db   : > { %v4873_v7 = vld [vmem:[#allocation4 + $0xd8] sm:$0xff]  ;;  %v9559_v9 = vpop.f32.mrf.mxu0  ;;  %v11971_v39 = vpop.f32.mrf.mxu1 }
 0x3dc   : > { %4934 = vst.msk [vmem:[#allocation4 + $0xc0] sm:$0xff] %vm711_vm0, %v4902_v15  ;;  %v4905_v12 = vadd.f32 %v11931_v5, %v4873_v7  ;;  %4571 = vst.msk [vmem:[#allocation4 + $0xf8] sm:$0xff] %vm711_vm0, %v9559_v9  ;;  %v7175_v56 = vld [vmem:[#allocation3 + $0xca] sm:$0xff]  ;;  %v5221_v9 = vld [vmem:[#allocation4 + $0x28] sm:$0xff] }
 0x3dd   : > { %v4871_v40 = vld [vmem:[#allocation4 + $0xc8] sm:$0xff]  ;;  %v4528_v59 = vpop.f32.mrf.mxu0  ;;  %v11976_v44 = vpop.f32.mrf.mxu1  ;;  %v7182_v0 = vld [vmem:[#allocation3 + $0x122] sm:$0xff] }
 0x3de   : > { %4937 = vst.msk [vmem:[#allocation4 + $0xd8] sm:$0xff] %vm711_vm0, %v4905_v12  ;;  %v4903_v63 = vadd.f32 %v4871_v40, %v11936_v50  ;;  %4569 = vst.msk [vmem:[#allocation4 + $0xe8] sm:$0xff] %vm711_vm0, %v4528_v59  ;;  %v5219_v50 = vld [vmem:[#allocation4 + $0x18] sm:$0xff]  ;;  %v7200_v59 = vpack.c.bf16 %v7175_v56, %v7174_v43 }
 0x3df   : > { %v4876_v26 = vld [vmem:[#allocation4 + $0xf0] sm:$0xff]  ;;  %v9626_v47 = vpop.f32.mrf.mxu0  ;;  %9913 = vmatmul.mubr.bf16.vlgmr.msra.gmra.mxu0 %v7195_v61  ;;  %v11981_v22 = vpop.f32.mrf.mxu1 }
 0x3e0   : > { %4935 = vst.msk [vmem:[#allocation4 + $0xc8] sm:$0xff] %vm711_vm0, %v4903_v63  ;;  %v4908_v31 = vadd.f32 %v11941_v13, %v4876_v26  ;;  %v5250_v54 = vadd.f32 %v9626_v47, %v5218_v30  ;;  %9916 = vmatprep.mubr.bf16.mxu0 %v7196_v51 }
 0x3e1   : > { %v4874_v49 = vld [vmem:[#allocation4 + $0xe0] sm:$0xff]  ;;  %v5089_v29 = vpop.f32.mrf.mxu0  ;;  %v11985_v5 = vpop.f32.mrf.mxu1 }
 0x3e2   : > { %4940 = vst.msk [vmem:[#allocation4 + $0xf0] sm:$0xff] %vm711_vm0, %v4908_v31  ;;  %v4906_v14 = vadd.f32 %v4874_v49, %v11946_v24  ;;  %5282 = vst.msk [vmem:[#allocation4 + $0x10] sm:$0xff] %vm711_vm0, %v5250_v54  ;;  %v5248_v57 = vadd.f32 %v5216_v38, %v5089_v29  ;;  %v5224_v31 = vld [vmem:[#allocation4 + $0x40] sm:$0xff]  ;;  %v7176_v38 = vld [vmem:[#allocation3 + $0xda] sm:$0xff] }
 0x3e3   : > { %v4877_v48 = vld [vmem:[#allocation4 + $0xf8] sm:$0xff]  ;;  %v9627_v1 = vpop.f32.mrf.mxu0  ;;  %v11990_v2 = vpop.f32.mrf.mxu1 }
 0x3e4   : > { %4938 = vst.msk [vmem:[#allocation4 + $0xe0] sm:$0xff] %vm711_vm0, %v4906_v14  ;;  %v4909_v4 = vadd.f32 %v11951_v8, %v4877_v48  ;;  %5280 = vst.msk [vmem:[#allocation4] sm:$0xff] %vm711_vm0, %v5248_v57  ;;  %v5251_v62 = vadd.f32 %v9627_v1, %v5219_v50  ;;  %v7177_v14 = vld [vmem:[#allocation3 + $0xe2] sm:$0xff]  ;;  %v7178_v57 = vld [vmem:[#allocation3 + $0xf2] sm:$0xff] }
 0x3e5   : > { %v4875_v13 = vld [vmem:[#allocation4 + $0xe8] sm:$0xff]  ;;  %v5092_v3 = vpop.f32.mrf.mxu0  ;;  %v11995_v60 = vpop.f32.mrf.mxu1 }
 0x3e6   : > { %4941 = vst.msk [vmem:[#allocation4 + $0xf8] sm:$0xff] %vm711_vm0, %v4909_v4  ;;  %v4907_v24 = vadd.f32 %v4875_v13, %v11956_v18  ;;  %5283 = vst.msk [vmem:[#allocation4 + $0x18] sm:$0xff] %vm711_vm0, %v5251_v62  ;;  %v5249_v36 = vadd.f32 %v5217_v23, %v5092_v3  ;;  %v5225_v4 = vld [vmem:[#allocation4 + $0x48] sm:$0xff]  ;;  %v7201_v62 = vpack.c.bf16 %v7177_v14, %v7176_v38  ;;  %v7185_v38 = vld [vmem:[#allocation3 + $0x142] sm:$0xff] }
 0x3e7   : > { %v9630_v32 = vpop.f32.mrf.mxu0  ;;  %9917 = vmatmul.mubr.bf16.gmra.mxu0 %v7197_v45  ;;  %v12000_v20 = vpop.f32.mrf.mxu1  ;;  %v7202_v45 = vpack.c.bf16 %v7179_v53, %v7178_v57  ;;  %v7186_v14 = vld [vmem:[#allocation3 + $0x152] sm:$0xff] }
 0x3e8   : > { %4939 = vst.msk [vmem:[#allocation4 + $0xe8] sm:$0xff] %vm711_vm0, %v4907_v24  ;;  %5281 = vst.msk [vmem:[#allocation4 + $0x8] sm:$0xff] %vm711_vm0, %v5249_v36  ;;  %v5254_v11 = vadd.f32 %v9630_v32, %v5222_v19  ;;  %9920 = vmatprep.mubr.bf16.mxu0 %v7198_v46 }
 0x3e9   : > { %v5588_v21 = vld [vmem:[#allocation4 + $0x10] sm:$0xff]  ;;  %v5105_v8 = vpop.f32.mrf.mxu0  ;;  %v12004_v37 = vpop.f32.mrf.mxu1 }
 0x3ea   : > { %v5620_v6 = vadd.f32 %v11961_v28, %v5588_v21  ;;  %5286 = vst.msk [vmem:[#allocation4 + $0x30] sm:$0xff] %vm711_vm0, %v5254_v11  ;;  %v5252_v18 = vadd.f32 %v5220_v27, %v5105_v8  ;;  %v5228_v21 = vld [vmem:[#allocation4 + $0x60] sm:$0xff] }
 0x3eb   : > { %v5586_v34 = vld [vmem:[#allocation4] sm:$0xff]  ;;  %v9631_v10 = vpop.f32.mrf.mxu0  ;;  %v12008_v15 = vpop.f32.mrf.mxu1 }
 0x3ec   : > { %5652 = vst.msk [vmem:[#allocation4 + $0x10] sm:$0xff] %vm711_vm0, %v5620_v6  ;;  %v5618_v52 = vadd.f32 %v5586_v34, %v11966_v33  ;;  %5284 = vst.msk [vmem:[#allocation4 + $0x20] sm:$0xff] %vm711_vm0, %v5252_v18  ;;  %v5255_v16 = vadd.f32 %v9631_v10, %v5223_v58  ;;  %v5226_v33 = vld [vmem:[#allocation4 + $0x50] sm:$0xff]  ;;  %v7180_v18 = vld [vmem:[#allocation3 + $0x10a] sm:$0xff] }
 0x3ed   : > { %v5589_v28 = vld [vmem:[#allocation4 + $0x18] sm:$0xff]  ;;  %v5108_v7 = vpop.f32.mrf.mxu0  ;;  %v12013_v35 = vpop.f32.mrf.mxu1 }
 0x3ee   : > { %5650 = vst.msk [vmem:[#allocation4] sm:$0xff] %vm711_vm0, %v5618_v52  ;;  %v5621_v12 = vadd.f32 %v11971_v39, %v5589_v28  ;;  %5287 = vst.msk [vmem:[#allocation4 + $0x38] sm:$0xff] %vm711_vm0, %v5255_v16  ;;  %v5253_v40 = vadd.f32 %v5221_v9, %v5108_v7  ;;  %v5231_v34 = vld [vmem:[#allocation4 + $0x78] sm:$0xff]  ;;  %v5229_v28 = vld [vmem:[#allocation4 + $0x68] sm:$0xff]  ;;  %v7203_v7 = vpack.c.bf16 %v7181_v25, %v7180_v18 }
 0x3ef   : > { %v5587_v61 = vld [vmem:[#allocation4 + $0x8] sm:$0xff]  ;;  %v9634_v63 = vpop.f32.mrf.mxu0  ;;  %9921 = vmatmul.mubr.bf16.gmra.mxu0 %v7199_v17  ;;  %v12018_v51 = vpop.f32.mrf.mxu1  ;;  %v7183_v10 = vld [vmem:[#allocation3 + $0x12a] sm:$0xff] }
 0x3f0   : > { %5653 = vst.msk [vmem:[#allocation4 + $0x18] sm:$0xff] %vm711_vm0, %v5621_v12  ;;  %v5619_v26 = vadd.f32 %v5587_v61, %v11976_v44  ;;  %5285 = vst.msk [vmem:[#allocation4 + $0x28] sm:$0xff] %vm711_vm0, %v5253_v40  ;;  %v5258_v47 = vadd.f32 %v9634_v63, %v5226_v33  ;;  %9924 = vmatprep.mubr.bf16.mxu0 %v7200_v59  ;;  %v7204_v40 = vpack.c.bf16 %v7183_v10, %v7182_v0  ;;  %v7188_v18 = vld [vmem:[#allocation3 + $0x16a] sm:$0xff]  ;;  %v7189_v25 = vld [vmem:[#allocation3 + $0x172] sm:$0xff] }
 0x3f1   : > { %v5592_v30 = vld [vmem:[#allocation4 + $0x30] sm:$0xff]  ;;  %v5121_v39 = vpop.f32.mrf.mxu0  ;;  %v12023_v54 = vpop.f32.mrf.mxu1 }
 0x3f2   : > { %5651 = vst.msk [vmem:[#allocation4 + $0x8] sm:$0xff] %vm711_vm0, %v5619_v26  ;;  %v5624_v49 = vadd.f32 %v11981_v22, %v5592_v30  ;;  %5290 = vst.msk [vmem:[#allocation4 + $0x50] sm:$0xff] %vm711_vm0, %v5258_v47  ;;  %v5256_v29 = vadd.f32 %v5224_v31, %v5121_v39  ;;  %v5232_v30 = vld [vmem:[#allocation4 + $0x80] sm:$0xff]  ;;  %v7184_v39 = vld [vmem:[#allocation3 + $0x13a] sm:$0xff] }
 0x3f3   : > { %v5590_v44 = vld [vmem:[#allocation4 + $0x20] sm:$0xff]  ;;  %v9635_v42 = vpop.f32.mrf.mxu0  ;;  %v12028_v48 = vpop.f32.mrf.mxu1  ;;  %v7190_v0 = vld [vmem:[#allocation3 + $0x182] sm:$0xff] }
 0x3f4   : > { %5656 = vst.msk [vmem:[#allocation4 + $0x30] sm:$0xff] %vm711_vm0, %v5624_v49  ;;  %v5622_v1 = vadd.f32 %v5590_v44, %v11985_v5  ;;  %5288 = vst.msk [vmem:[#allocation4 + $0x40] sm:$0xff] %vm711_vm0, %v5256_v29  ;;  %v5259_v50 = vadd.f32 %v9635_v42, %v5227_v41  ;;  %v5230_v5 = vld [vmem:[#allocation4 + $0x70] sm:$0xff]  ;;  %v5235_v42 = vld [vmem:[#allocation4 + $0x98] sm:$0xff] }
 0x3f5   : > { %v5593_v22 = vld [vmem:[#allocation4 + $0x38] sm:$0xff]  ;;  %v5124_v55 = vpop.f32.mrf.mxu0  ;;  %v12033_v13 = vpop.f32.mrf.mxu1  ;;  %v7187_v41 = vld [vmem:[#allocation3 + $0x15a] sm:$0xff] }
 0x3f6   : > { %5654 = vst.msk [vmem:[#allocation4 + $0x20] sm:$0xff] %vm711_vm0, %v5622_v1  ;;  %v5625_v3 = vadd.f32 %v11990_v2, %v5593_v22  ;;  %5291 = vst.msk [vmem:[#allocation4 + $0x58] sm:$0xff] %vm711_vm0, %v5259_v50  ;;  %v5257_v23 = vadd.f32 %v5225_v4, %v5124_v55  ;;  %v5233_v55 = vld [vmem:[#allocation4 + $0x88] sm:$0xff]  ;;  %v7205_v4 = vpack.c.bf16 %v7185_v38, %v7184_v39  ;;  %v5240_v39 = vld [vmem:[#allocation4 + $0xc0] sm:$0xff] }
 0x3f7   : > { %v5591_v24 = vld [vmem:[#allocation4 + $0x28] sm:$0xff]  ;;  %v9638_v36 = vpop.f32.mrf.mxu0  ;;  %9925 = vmatmul.mubr.bf16.gmra.mxu0 %v7201_v62  ;;  %v12038_v46 = vpop.f32.mrf.mxu1 }
 0x3f8   : > { %5657 = vst.msk [vmem:[#allocation4 + $0x38] sm:$0xff] %vm711_vm0, %v5625_v3  ;;  %v5623_v32 = vadd.f32 %v5591_v24, %v11995_v60  ;;  %5289 = vst.msk [vmem:[#allocation4 + $0x48] sm:$0xff] %vm711_vm0, %v5257_v23  ;;  %v5262_v19 = vadd.f32 %v9638_v36, %v5230_v5  ;;  %9928 = vmatprep.mubr.bf16.mxu0 %v7202_v45  ;;  %v7206_v45 = vpack.c.bf16 %v7187_v41, %v7186_v14  ;;  %v5238_v36 = vld [vmem:[#allocation4 + $0xb0] sm:$0xff] }
 0x3f9   : > { %v5596_v11 = vld [vmem:[#allocation4 + $0x50] sm:$0xff]  ;;  %v5137_v2 = vpop.f32.mrf.mxu0  ;;  %v12043_v8 = vpop.f32.mrf.mxu1 }
 0x3fa   : > { %5655 = vst.msk [vmem:[#allocation4 + $0x28] sm:$0xff] %vm711_vm0, %v5623_v32  ;;  %v5628_v27 = vadd.f32 %v12000_v20, %v5596_v11  ;;  %5294 = vst.msk [vmem:[#allocation4 + $0x70] sm:$0xff] %vm711_vm0, %v5262_v19  ;;  %v5260_v6 = vadd.f32 %v5228_v21, %v5137_v2  ;;  %v5236_v2 = vld [vmem:[#allocation4 + $0xa0] sm:$0xff] }
 0x3fb   : > { %v5594_v60 = vld [vmem:[#allocation4 + $0x40] sm:$0xff]  ;;  %v9639_v43 = vpop.f32.mrf.mxu0  ;;  %v12048_v58 = vpop.f32.mrf.mxu1 }
 0x3fc   : > { %5660 = vst.msk [vmem:[#allocation4 + $0x50] sm:$0xff] %vm711_vm0, %v5628_v27  ;;  %v5626_v56 = vadd.f32 %v5594_v60, %v12004_v37  ;;  %5292 = vst.msk [vmem:[#allocation4 + $0x60] sm:$0xff] %vm711_vm0, %v5260_v6  ;;  %v5263_v52 = vadd.f32 %v9639_v43, %v5231_v34  ;;  %v5234_v37 = vld [vmem:[#allocation4 + $0x90] sm:$0xff]  ;;  %v5239_v43 = vld [vmem:[#allocation4 + $0xb8] sm:$0xff] }
 0x3fd   : > { %v5597_v20 = vld [vmem:[#allocation4 + $0x58] sm:$0xff]  ;;  %v5140_v16 = vpop.f32.mrf.mxu0  ;;  %v12053_v9 = vpop.f32.mrf.mxu1 }
 0x3fe   : > { %5658 = vst.msk [vmem:[#allocation4 + $0x40] sm:$0xff] %vm711_vm0, %v5626_v56  ;;  %v5629_v17 = vadd.f32 %v12008_v15, %v5597_v20  ;;  %5295 = vst.msk [vmem:[#allocation4 + $0x78] sm:$0xff] %vm711_vm0, %v5263_v52  ;;  %v5261_v12 = vadd.f32 %v5229_v28, %v5140_v16  ;;  %v7191_v34 = vld [vmem:[#allocation3 + $0x18a] sm:$0xff]  ;;  %v5237_v16 = vld [vmem:[#allocation4 + $0xa8] sm:$0xff]  ;;  %v7207_v28 = vpack.c.bf16 %v7189_v25, %v7188_v18 }
 0x3ff   : > { %v5595_v59 = vld [vmem:[#allocation4 + $0x48] sm:$0xff]  ;;  %v9642_v61 = vpop.f32.mrf.mxu0  ;;  %9929 = vmatmul.mubr.bf16.gmra.mxu0 %v7203_v7  ;;  %v12058_v63 = vpop.f32.mrf.mxu1 }
 0x400   : > { %5661 = vst.msk [vmem:[#allocation4 + $0x58] sm:$0xff] %vm711_vm0, %v5629_v17  ;;  %v5627_v33 = vadd.f32 %v5595_v59, %v12013_v35  ;;  %5293 = vst.msk [vmem:[#allocation4 + $0x68] sm:$0xff] %vm711_vm0, %v5261_v12  ;;  %v5266_v26 = vadd.f32 %v9642_v61, %v5234_v37  ;;  %9932 = vmatprep.mubr.bf16.mxu0 %v7204_v40  ;;  %v10168_v35 = vld [vmem:[%s12579_s2 + $0x18] sm:$0xff]   ;;  %v7208_v40 = vpack.c.bf16 %v7191_v34, %v7190_v0 }
 0x401   : > { %v5600_v47 = vld [vmem:[#allocation4 + $0x70] sm:$0xff]  ;;  %v5153_v15 = vpop.f32.mrf.mxu0  ;;  %v12063_v31 = vpop.f32.mrf.mxu1  ;;  %9944 = vmatprep.subr.bf16.mxu1 %v10168_v35 }
 0x402   : > { %5659 = vst.msk [vmem:[#allocation4 + $0x48] sm:$0xff] %vm711_vm0, %v5627_v33  ;;  %v5632_v49 = vadd.f32 %v12018_v51, %v5600_v47  ;;  %5298 = vst.msk [vmem:[#allocation4 + $0x90] sm:$0xff] %vm711_vm0, %v5266_v26  ;;  %v5264_v29 = vadd.f32 %v5232_v30, %v5153_v15  ;;  %9945 = vmatpush3.bf16.msra.mxu1 %v10168_v35  ;;  %v7192_v47 = vld [vmem:[#allocation3 + $0x19a] sm:$0xff]  ;;  %v5243_v35 = vld [vmem:[#allocation4 + $0xd8] sm:$0xff] }
 0x403   : > { %v5598_v57 = vld [vmem:[#allocation4 + $0x60] sm:$0xff]  ;;  %v9643_v44 = vpop.f32.mrf.mxu0  ;;  %v12071_v53 = vpop.f32.mrf.mxu1 }
 0x404   : > { %5664 = vst.msk [vmem:[#allocation4 + $0x70] sm:$0xff] %vm711_vm0, %v5632_v49  ;;  %v5630_v1 = vadd.f32 %v5598_v57, %v12023_v54  ;;  %5296 = vst.msk [vmem:[#allocation4 + $0x80] sm:$0xff] %vm711_vm0, %v5264_v29  ;;  %v5267_v51 = vadd.f32 %v9643_v44, %v5235_v42 }
 0x405   : > { %v5601_v50 = vld [vmem:[#allocation4 + $0x78] sm:$0xff]  ;;  %v5156_v22 = vpop.f32.mrf.mxu0  ;;  %v12076_v62 = vpop.f32.mrf.mxu1 }
 0x406   : > { %5662 = vst.msk [vmem:[#allocation4 + $0x60] sm:$0xff] %vm711_vm0, %v5630_v1  ;;  %v5633_v3 = vadd.f32 %v12028_v48, %v5601_v50  ;;  %5299 = vst.msk [vmem:[#allocation4 + $0x98] sm:$0xff] %vm711_vm0, %v5267_v51  ;;  %v5265_v23 = vadd.f32 %v5233_v55, %v5156_v22  ;;  %v5241_v50 = vld [vmem:[#allocation4 + $0xc8] sm:$0xff] }
 0x407   : > { %v5599_v54 = vld [vmem:[#allocation4 + $0x68] sm:$0xff]  ;;  %v9646_v24 = vpop.f32.mrf.mxu0  ;;  %9933 = vmatmul.mubr.bf16.gmra.mxu0 %v7205_v4  ;;  %v12081_v5 = vpop.f32.mrf.mxu1 }
 0x408   : > { %5665 = vst.msk [vmem:[#allocation4 + $0x78] sm:$0xff] %vm711_vm0, %v5633_v3  ;;  %v5631_v32 = vadd.f32 %v5599_v54, %v12033_v13  ;;  %5297 = vst.msk [vmem:[#allocation4 + $0x88] sm:$0xff] %vm711_vm0, %v5265_v23  ;;  %v5270_v19 = vadd.f32 %v9646_v24, %v5238_v36  ;;  %9936 = vmatprep.mubr.bf16.mxu0 %v7206_v45  ;;  %v5246_v23 = vld [vmem:[#allocation4 + $0xf0] sm:$0xff] }
 0x409   : > { %v5604_v11 = vld [vmem:[#allocation4 + $0x90] sm:$0xff]  ;;  %v5169_v48 = vpop.f32.mrf.mxu0  ;;  %v12086_v21 = vpop.f32.mrf.mxu1 }
 0x40a   : > { %5663 = vst.msk [vmem:[#allocation4 + $0x68] sm:$0xff] %vm711_vm0, %v5631_v32  ;;  %v5636_v27 = vadd.f32 %v12038_v46, %v5604_v11  ;;  %5302 = vst.msk [vmem:[#allocation4 + $0xb0] sm:$0xff] %vm711_vm0, %v5270_v19  ;;  %v5268_v6 = vadd.f32 %v5236_v2, %v5169_v48  ;;  %v5244_v32 = vld [vmem:[#allocation4 + $0xe0] sm:$0xff] }
 0x40b   : > { %v5602_v13 = vld [vmem:[#allocation4 + $0x80] sm:$0xff]  ;;  %v9647_v60 = vpop.f32.mrf.mxu0  ;;  %v12091_v10 = vpop.f32.mrf.mxu1 }
 0x40c   : > { %5668 = vst.msk [vmem:[#allocation4 + $0x90] sm:$0xff] %vm711_vm0, %v5636_v27  ;;  %v5634_v56 = vadd.f32 %v5602_v13, %v12043_v8  ;;  %5300 = vst.msk [vmem:[#allocation4 + $0xa0] sm:$0xff] %vm711_vm0, %v5268_v6  ;;  %v5271_v52 = vadd.f32 %v9647_v60, %v5239_v43  ;;  %v5242_v8 = vld [vmem:[#allocation4 + $0xd0] sm:$0xff]  ;;  %v5247_v27 = vld [vmem:[#allocation4 + $0xf8] sm:$0xff] }
 0x40d   : > { %v5605_v46 = vld [vmem:[#allocation4 + $0x98] sm:$0xff]  ;;  %v5172_v20 = vpop.f32.mrf.mxu0  ;;  %v12096_v7 = vpop.f32.mrf.mxu1  ;;  %v5245_v13 = vld [vmem:[#allocation4 + $0xe8] sm:$0xff] }
 0x40e   : > { %5666 = vst.msk [vmem:[#allocation4 + $0x80] sm:$0xff] %vm711_vm0, %v5634_v56  ;;  %v5637_v17 = vadd.f32 %v12048_v58, %v5605_v46  ;;  %5303 = vst.msk [vmem:[#allocation4 + $0xb8] sm:$0xff] %vm711_vm0, %v5271_v52  ;;  %v5269_v12 = vadd.f32 %v5237_v16, %v5172_v20  ;;  %v7193_v58 = vld [vmem:[#allocation3 + $0x1a2] sm:$0xff] }
 0x40f   : > { %v5603_v59 = vld [vmem:[#allocation4 + $0x88] sm:$0xff]  ;;  %v9650_v61 = vpop.f32.mrf.mxu0  ;;  %9937 = vmatmul.mubr.bf16.gmra.mxu0 %v7207_v28  ;;  %v12101_v37 = vpop.f32.mrf.mxu1  ;;  %v7209_v57 = vpack.c.bf16 %v7193_v58, %v7192_v47  ;;  %v5958_v52 = vld [vmem:[#allocation4 + $0x10] sm:$0xff] }
 0x410   : > { %5669 = vst.msk [vmem:[#allocation4 + $0x98] sm:$0xff] %vm711_vm0, %v5637_v17  ;;  %v5635_v33 = vadd.f32 %v5603_v59, %v12053_v9  ;;  %5301 = vst.msk [vmem:[#allocation4 + $0xa8] sm:$0xff] %vm711_vm0, %v5269_v12  ;;  %v5274_v26 = vadd.f32 %v9650_v61, %v5242_v8  ;;  %9940 = vmatprep.mubr.bf16.mxu0 %v7208_v40  ;;  %v5956_v17 = vld [vmem:[#allocation4] sm:$0xff]  ;;  %v5959_v8 = vld [vmem:[#allocation4 + $0x18] sm:$0xff] }
 0x411   : > { %v5608_v15 = vld [vmem:[#allocation4 + $0xb0] sm:$0xff]  ;;  %v5185_v30 = vpop.f32.mrf.mxu0  ;;  %v12106_v49 = vpop.f32.mrf.mxu1  ;;  %v10169_v59 = vld [vmem:[%s12579_s2 + $0x10] sm:$0xff]  }
 0x412   : > { %5667 = vst.msk [vmem:[#allocation4 + $0x88] sm:$0xff] %vm711_vm0, %v5635_v33  ;;  %v5640_v29 = vadd.f32 %v12058_v63, %v5608_v15  ;;  %5306 = vst.msk [vmem:[#allocation4 + $0xd0] sm:$0xff] %vm711_vm0, %v5274_v26  ;;  %v5272_v38 = vadd.f32 %v5240_v39, %v5185_v30  ;;  %9946 = vmatprep.subr.bf16.mxu1 %v10169_v59  ;;  %v5957_v15 = vld [vmem:[#allocation4 + $0x8] sm:$0xff] }
 0x413   : > { %v5606_v14 = vld [vmem:[#allocation4 + $0xa0] sm:$0xff]  ;;  %v9651_v9 = vpop.f32.mrf.mxu0  ;;  %v12111_v44 = vpop.f32.mrf.mxu1  ;;  %9947 = vmatpush3.bf16.msra.mxu1 %v10169_v59  ;;  %v5970_v59 = vld [vmem:[#allocation4 + $0x70] sm:$0xff] }
 0x414   : > { %5672 = vst.msk [vmem:[#allocation4 + $0xb0] sm:$0xff] %vm711_vm0, %v5640_v29  ;;  %v5638_v42 = vadd.f32 %v5606_v14, %v12063_v31  ;;  %5304 = vst.msk [vmem:[#allocation4 + $0xc0] sm:$0xff] %vm711_vm0, %v5272_v38  ;;  %v5275_v41 = vadd.f32 %v9651_v9, %v5243_v35 }
 0x415   : > { %v5609_v1 = vld [vmem:[#allocation4 + $0xb8] sm:$0xff]  ;;  %v5188_v51 = vpop.f32.mrf.mxu0  ;;  %v12116_v63 = vpop.f32.mrf.mxu1 }
 0x416   : > { %5670 = vst.msk [vmem:[#allocation4 + $0xa0] sm:$0xff] %vm711_vm0, %v5638_v42  ;;  %v5641_v22 = vadd.f32 %v12071_v53, %v5609_v1  ;;  %5307 = vst.msk [vmem:[#allocation4 + $0xd8] sm:$0xff] %vm711_vm0, %v5275_v41  ;;  %v5273_v55 = vadd.f32 %v5241_v50, %v5188_v51  ;;  %v5960_v1 = vld [vmem:[#allocation4 + $0x20] sm:$0xff] }
 0x417   : > { %v5607_v4 = vld [vmem:[#allocation4 + $0xa8] sm:$0xff]  ;;  %v9654_v3 = vpop.f32.mrf.mxu0  ;;  %9941 = vmatmul.mubr.bf16.gmra.mxu0 %v7209_v57  ;;  %v12121_v31 = vpop.f32.mrf.mxu1 }
 0x418   : > { %5673 = vst.msk [vmem:[#allocation4 + $0xb8] sm:$0xff] %vm711_vm0, %v5641_v22  ;;  %v5639_v45 = vadd.f32 %v5607_v4, %v12076_v62  ;;  %5305 = vst.msk [vmem:[#allocation4 + $0xc8] sm:$0xff] %vm711_vm0, %v5273_v55  ;;  %v5278_v54 = vadd.f32 %v9654_v3, %v5246_v23  ;;  %v5963_v4 = vld [vmem:[#allocation4 + $0x38] sm:$0xff] }
 0x419   : > { %v5612_v24 = vld [vmem:[#allocation4 + $0xd0] sm:$0xff]  ;;  %v5201_v36 = vpop.f32.mrf.mxu0  ;;  %v12126_v53 = vpop.f32.mrf.mxu1 }
 0x41a   : > { %5671 = vst.msk [vmem:[#allocation4 + $0xa8] sm:$0xff] %vm711_vm0, %v5639_v45  ;;  %v5644_v19 = vadd.f32 %v12081_v5, %v5612_v24  ;;  %5310 = vst.msk [vmem:[#allocation4 + $0xf0] sm:$0xff] %vm711_vm0, %v5278_v54  ;;  %v5276_v11 = vadd.f32 %v5244_v32, %v5201_v36  ;;  %v5961_v24 = vld [vmem:[#allocation4 + $0x28] sm:$0xff] }
 0x41b   : > { %v5610_v48 = vld [vmem:[#allocation4 + $0xc0] sm:$0xff]  ;;  %v9655_v2 = vpop.f32.mrf.mxu0  ;;  %v12131_v6 = vpop.f32.mrf.mxu1 }
 0x41c   : > { %5676 = vst.msk [vmem:[#allocation4 + $0xd0] sm:$0xff] %vm711_vm0, %v5644_v19  ;;  %v5642_v62 = vadd.f32 %v5610_v48, %v12086_v21  ;;  %5308 = vst.msk [vmem:[#allocation4 + $0xe0] sm:$0xff] %vm711_vm0, %v5276_v11  ;;  %v5279_v18 = vadd.f32 %v9655_v2, %v5247_v27  ;;  %v5966_v48 = vld [vmem:[#allocation4 + $0x50] sm:$0xff] }
 0x41d   : > { %v5613_v25 = vld [vmem:[#allocation4 + $0xd8] sm:$0xff]  ;;  %v5204_v0 = vpop.f32.mrf.mxu0  ;;  %v12136_v60 = vpop.f32.mrf.mxu1 }
 0x41e   : > { %5674 = vst.msk [vmem:[#allocation4 + $0xc0] sm:$0xff] %vm711_vm0, %v5642_v62  ;;  %v5645_v5 = vadd.f32 %v12091_v10, %v5613_v25  ;;  %5311 = vst.msk [vmem:[#allocation4 + $0xf8] sm:$0xff] %vm711_vm0, %v5279_v18  ;;  %v5277_v43 = vadd.f32 %v5245_v13, %v5204_v0  ;;  %v5964_v25 = vld [vmem:[#allocation4 + $0x40] sm:$0xff] }
 0x41f   : > { %v5611_v34 = vld [vmem:[#allocation4 + $0xc8] sm:$0xff]  ;;  %v9722_v56 = vpop.f32.mrf.mxu0  ;;  %v12141_v46 = vpop.f32.mrf.mxu1 }
 0x420   : > { %5677 = vst.msk [vmem:[#allocation4 + $0xd8] sm:$0xff] %vm711_vm0, %v5645_v5  ;;  %v5643_v21 = vadd.f32 %v5611_v34, %v12096_v7  ;;  %5309 = vst.msk [vmem:[#allocation4 + $0xe8] sm:$0xff] %vm711_vm0, %v5277_v43  ;;  %v5990_v20 = vadd.f32 %v9722_v56, %v5958_v52  ;;  %v5967_v34 = vld [vmem:[#allocation4 + $0x58] sm:$0xff] }
 0x421   : > { %v5616_v16 = vld [vmem:[#allocation4 + $0xf0] sm:$0xff]  ;;  %v5829_v28 = vpop.f32.mrf.mxu0  ;;  %v12146_v12 = vpop.f32.mrf.mxu1 }
 0x422   : > { %5675 = vst.msk [vmem:[#allocation4 + $0xc8] sm:$0xff] %vm711_vm0, %v5643_v21  ;;  %v5648_v10 = vadd.f32 %v12101_v37, %v5616_v16  ;;  %6022 = vst.msk [vmem:[#allocation4 + $0x10] sm:$0xff] %vm711_vm0, %v5990_v20  ;;  %v5988_v40 = vadd.f32 %v5956_v17, %v5829_v28  ;;  %v5965_v16 = vld [vmem:[#allocation4 + $0x48] sm:$0xff] }
 0x423   : > { %v5614_v7 = vld [vmem:[#allocation4 + $0xe0] sm:$0xff]  ;;  %v9723_v61 = vpop.f32.mrf.mxu0  ;;  %v12154_v33 = vpop.f32.mrf.mxu1 }
 0x424   : > { %5680 = vst.msk [vmem:[#allocation4 + $0xf0] sm:$0xff] %vm711_vm0, %v5648_v10  ;;  %v5646_v26 = vadd.f32 %v5614_v7, %v12106_v49  ;;  %6020 = vst.msk [vmem:[#allocation4] sm:$0xff] %vm711_vm0, %v5988_v40  ;;  %v5991_v47 = vadd.f32 %v9723_v61, %v5959_v8  ;;  %v5962_v49 = vld [vmem:[#allocation4 + $0x30] sm:$0xff] }
 0x425   : > { %v5617_v37 = vld [vmem:[#allocation4 + $0xf8] sm:$0xff]  ;;  %v5832_v58 = vpop.f32.mrf.mxu0  ;;  %v12159_v30 = vpop.f32.mrf.mxu1 }
 0x426   : > { %5678 = vst.msk [vmem:[#allocation4 + $0xe0] sm:$0xff] %vm711_vm0, %v5646_v26  ;;  %v5649_v39 = vadd.f32 %v12111_v44, %v5617_v37  ;;  %6023 = vst.msk [vmem:[#allocation4 + $0x18] sm:$0xff] %vm711_vm0, %v5991_v47  ;;  %v5989_v29 = vadd.f32 %v5957_v15, %v5832_v58  ;;  %v5968_v47 = vld [vmem:[#allocation4 + $0x60] sm:$0xff] }
 0x427   : > { %v5615_v38 = vld [vmem:[#allocation4 + $0xe8] sm:$0xff]  ;;  %v9726_v14 = vpop.f32.mrf.mxu0  ;;  %v12164_v9 = vpop.f32.mrf.mxu1 }
 0x428   : > { %5681 = vst.msk [vmem:[#allocation4 + $0xf8] sm:$0xff] %vm711_vm0, %v5649_v39  ;;  %v5647_v35 = vadd.f32 %v5615_v38, %v12116_v63  ;;  %6021 = vst.msk [vmem:[#allocation4 + $0x8] sm:$0xff] %vm711_vm0, %v5989_v29  ;;  %v5994_v57 = vadd.f32 %v9726_v14, %v5962_v49  ;;  %v5971_v29 = vld [vmem:[#allocation4 + $0x78] sm:$0xff] }
 0x429   : > { %v6328_v42 = vld [vmem:[#allocation4 + $0x10] sm:$0xff]  ;;  %v5845_v41 = vpop.f32.mrf.mxu0  ;;  %v12169_v51 = vpop.f32.mrf.mxu1 }
 0x42a   : > { %5679 = vst.msk [vmem:[#allocation4 + $0xe8] sm:$0xff] %vm711_vm0, %v5647_v35  ;;  %v6360_v44 = vadd.f32 %v12121_v31, %v6328_v42  ;;  %6026 = vst.msk [vmem:[#allocation4 + $0x30] sm:$0xff] %vm711_vm0, %v5994_v57  ;;  %v5992_v50 = vadd.f32 %v5960_v1, %v5845_v41  ;;  %v5969_v57 = vld [vmem:[#allocation4 + $0x68] sm:$0xff] }
 0x42b   : > { %v6326_v22 = vld [vmem:[#allocation4] sm:$0xff]  ;;  %v9727_v55 = vpop.f32.mrf.mxu0  ;;  %v12174_v3 = vpop.f32.mrf.mxu1 }
 0x42c   : > { %6392 = vst.msk [vmem:[#allocation4 + $0x10] sm:$0xff] %vm711_vm0, %v6360_v44  ;;  %v6358_v63 = vadd.f32 %v6326_v22, %v12126_v53  ;;  %6024 = vst.msk [vmem:[#allocation4 + $0x20] sm:$0xff] %vm711_vm0, %v5992_v50  ;;  %v5995_v23 = vadd.f32 %v9727_v55, %v5963_v4  ;;  %v5974_v50 = vld [vmem:[#allocation4 + $0x90] sm:$0xff] }
 0x42d   : > { %v6329_v45 = vld [vmem:[#allocation4 + $0x18] sm:$0xff]  ;;  %v5848_v54 = vpop.f32.mrf.mxu0  ;;  %v12179_v36 = vpop.f32.mrf.mxu1 }
 0x42e   : > { %6390 = vst.msk [vmem:[#allocation4] sm:$0xff] %vm711_vm0, %v6358_v63  ;;  %v6361_v31 = vadd.f32 %v12131_v6, %v6329_v45  ;;  %6027 = vst.msk [vmem:[#allocation4 + $0x38] sm:$0xff] %vm711_vm0, %v5995_v23  ;;  %v5993_v32 = vadd.f32 %v5961_v24, %v5848_v54  ;;  %v5972_v23 = vld [vmem:[#allocation4 + $0x80] sm:$0xff] }
 0x42f   : > { %v6327_v19 = vld [vmem:[#allocation4 + $0x8] sm:$0xff]  ;;  %v9730_v11 = vpop.f32.mrf.mxu0  ;;  %v12184_v2 = vpop.f32.mrf.mxu1 }
 0x430   : > { %6393 = vst.msk [vmem:[#allocation4 + $0x18] sm:$0xff] %vm711_vm0, %v6361_v31  ;;  %v6359_v53 = vadd.f32 %v6327_v19, %v12136_v60  ;;  %6025 = vst.msk [vmem:[#allocation4 + $0x28] sm:$0xff] %vm711_vm0, %v5993_v32  ;;  %v5998_v27 = vadd.f32 %v9730_v11, %v5966_v48  ;;  %v5975_v32 = vld [vmem:[#allocation4 + $0x98] sm:$0xff] }
 0x431   : > { %v6332_v62 = vld [vmem:[#allocation4 + $0x30] sm:$0xff]  ;;  %v5861_v18 = vpop.f32.mrf.mxu0  ;;  %v12189_v0 = vpop.f32.mrf.mxu1 }
 0x432   : > { %6391 = vst.msk [vmem:[#allocation4 + $0x8] sm:$0xff] %vm711_vm0, %v6359_v53  ;;  %v6364_v6 = vadd.f32 %v12141_v46, %v6332_v62  ;;  %6030 = vst.msk [vmem:[#allocation4 + $0x50] sm:$0xff] %vm711_vm0, %v5998_v27  ;;  %v5996_v13 = vadd.f32 %v5964_v25, %v5861_v18  ;;  %v5973_v27 = vld [vmem:[#allocation4 + $0x88] sm:$0xff] }
 0x433   : > { %v6330_v5 = vld [vmem:[#allocation4 + $0x20] sm:$0xff]  ;;  %v9731_v43 = vpop.f32.mrf.mxu0  ;;  %v12194_v56 = vpop.f32.mrf.mxu1 }
 0x434   : > { %6396 = vst.msk [vmem:[#allocation4 + $0x30] sm:$0xff] %vm711_vm0, %v6364_v6  ;;  %v6362_v60 = vadd.f32 %v6330_v5, %v12146_v12  ;;  %6028 = vst.msk [vmem:[#allocation4 + $0x40] sm:$0xff] %vm711_vm0, %v5996_v13  ;;  %v5999_v52 = vadd.f32 %v9731_v43, %v5967_v34  ;;  %v5978_v13 = vld [vmem:[#allocation4 + $0xb0] sm:$0xff] }
 0x435   : > { %v6333_v21 = vld [vmem:[#allocation4 + $0x38] sm:$0xff]  ;;  %v5864_v20 = vpop.f32.mrf.mxu0  ;;  %v12199_v28 = vpop.f32.mrf.mxu1 }
 0x436   : > { %6394 = vst.msk [vmem:[#allocation4 + $0x20] sm:$0xff] %vm711_vm0, %v6362_v60  ;;  %v6365_v46 = vadd.f32 %v12154_v33, %v6333_v21  ;;  %6031 = vst.msk [vmem:[#allocation4 + $0x58] sm:$0xff] %vm711_vm0, %v5999_v52  ;;  %v5997_v17 = vadd.f32 %v5965_v16, %v5864_v20  ;;  %v5976_v52 = vld [vmem:[#allocation4 + $0xa0] sm:$0xff] }
 0x437   : > { %v6331_v10 = vld [vmem:[#allocation4 + $0x28] sm:$0xff]  ;;  %v9734_v40 = vpop.f32.mrf.mxu0  ;;  %v12204_v7 = vpop.f32.mrf.mxu1 }
 0x438   : > { %6397 = vst.msk [vmem:[#allocation4 + $0x38] sm:$0xff] %vm711_vm0, %v6365_v46  ;;  %v6363_v12 = vadd.f32 %v6331_v10, %v12159_v30  ;;  %6029 = vst.msk [vmem:[#allocation4 + $0x48] sm:$0xff] %vm711_vm0, %v5997_v17  ;;  %v6002_v61 = vadd.f32 %v9734_v40, %v5970_v59  ;;  %v5979_v17 = vld [vmem:[#allocation4 + $0xb8] sm:$0xff] }
 0x439   : > { %v6336_v8 = vld [vmem:[#allocation4 + $0x50] sm:$0xff]  ;;  %v5877_v26 = vpop.f32.mrf.mxu0  ;;  %v12209_v37 = vpop.f32.mrf.mxu1 }
 0x43a   : > { %6395 = vst.msk [vmem:[#allocation4 + $0x28] sm:$0xff] %vm711_vm0, %v6363_v12  ;;  %v6368_v33 = vadd.f32 %v12164_v9, %v6336_v8  ;;  %6034 = vst.msk [vmem:[#allocation4 + $0x70] sm:$0xff] %vm711_vm0, %v6002_v61  ;;  %v6000_v58 = vadd.f32 %v5968_v47, %v5877_v26  ;;  %v5977_v61 = vld [vmem:[#allocation4 + $0xa8] sm:$0xff] }
 0x43b   : > { %v6334_v15 = vld [vmem:[#allocation4 + $0x40] sm:$0xff]  ;;  %v9735_v39 = vpop.f32.mrf.mxu0  ;;  %v12214_v38 = vpop.f32.mrf.mxu1 }
 0x43c   : > { %6400 = vst.msk [vmem:[#allocation4 + $0x50] sm:$0xff] %vm711_vm0, %v6368_v33  ;;  %v6366_v30 = vadd.f32 %v6334_v15, %v12169_v51  ;;  %6032 = vst.msk [vmem:[#allocation4 + $0x60] sm:$0xff] %vm711_vm0, %v6000_v58  ;;  %v6003_v14 = vadd.f32 %v9735_v39, %v5971_v29  ;;  %v5982_v58 = vld [vmem:[#allocation4 + $0xd0] sm:$0xff] }
 0x43d   : > { %v6337_v49 = vld [vmem:[#allocation4 + $0x58] sm:$0xff]  ;;  %v5880_v35 = vpop.f32.mrf.mxu0  ;;  %v12219_v42 = vpop.f32.mrf.mxu1 }
 0x43e   : > { %6398 = vst.msk [vmem:[#allocation4 + $0x40] sm:$0xff] %vm711_vm0, %v6366_v30  ;;  %v6369_v9 = vadd.f32 %v12174_v3, %v6337_v49  ;;  %6035 = vst.msk [vmem:[#allocation4 + $0x78] sm:$0xff] %vm711_vm0, %v6003_v14  ;;  %v6001_v41 = vadd.f32 %v5969_v57, %v5880_v35  ;;  %v5980_v14 = vld [vmem:[#allocation4 + $0xc0] sm:$0xff] }
 0x43f   : > { %v6335_v1 = vld [vmem:[#allocation4 + $0x48] sm:$0xff]  ;;  %v9738_v44 = vpop.f32.mrf.mxu0  ;;  %v12224_v22 = vpop.f32.mrf.mxu1 }
 0x440   : > { %6401 = vst.msk [vmem:[#allocation4 + $0x58] sm:$0xff] %vm711_vm0, %v6369_v9  ;;  %v6367_v51 = vadd.f32 %v6335_v1, %v12179_v36  ;;  %6033 = vst.msk [vmem:[#allocation4 + $0x68] sm:$0xff] %vm711_vm0, %v6001_v41  ;;  %v6006_v55 = vadd.f32 %v9738_v44, %v5974_v50  ;;  %v5983_v41 = vld [vmem:[#allocation4 + $0xd8] sm:$0xff] }
 0x441   : > { %v6340_v4 = vld [vmem:[#allocation4 + $0x70] sm:$0xff]  ;;  %v5893_v63 = vpop.f32.mrf.mxu0  ;;  %v12229_v45 = vpop.f32.mrf.mxu1 }
 0x442   : > { %6399 = vst.msk [vmem:[#allocation4 + $0x48] sm:$0xff] %vm711_vm0, %v6367_v51  ;;  %v6372_v3 = vadd.f32 %v12184_v2, %v6340_v4  ;;  %6038 = vst.msk [vmem:[#allocation4 + $0x90] sm:$0xff] %vm711_vm0, %v6006_v55  ;;  %v6004_v54 = vadd.f32 %v5972_v23, %v5893_v63  ;;  %v5981_v55 = vld [vmem:[#allocation4 + $0xc8] sm:$0xff] }
 0x443   : > { %v6338_v24 = vld [vmem:[#allocation4 + $0x60] sm:$0xff]  ;;  %v9739_v31 = vpop.f32.mrf.mxu0  ;;  %v12234_v19 = vpop.f32.mrf.mxu1 }
 0x444   : > { %6404 = vst.msk [vmem:[#allocation4 + $0x70] sm:$0xff] %vm711_vm0, %v6372_v3  ;;  %v6370_v36 = vadd.f32 %v6338_v24, %v12189_v0  ;;  %6036 = vst.msk [vmem:[#allocation4 + $0x80] sm:$0xff] %vm711_vm0, %v6004_v54  ;;  %v6007_v11 = vadd.f32 %v9739_v31, %v5975_v32  ;;  %v5986_v54 = vld [vmem:[#allocation4 + $0xf0] sm:$0xff] }
 0x445   : > { %v6341_v48 = vld [vmem:[#allocation4 + $0x78] sm:$0xff]  ;;  %v5896_v53 = vpop.f32.mrf.mxu0  ;;  %v12239_v62 = vpop.f32.mrf.mxu1 }
 0x446   : > { %6402 = vst.msk [vmem:[#allocation4 + $0x60] sm:$0xff] %vm711_vm0, %v6370_v36  ;;  %v6373_v2 = vadd.f32 %v12194_v56, %v6341_v48  ;;  %6039 = vst.msk [vmem:[#allocation4 + $0x98] sm:$0xff] %vm711_vm0, %v6007_v11  ;;  %v6005_v18 = vadd.f32 %v5973_v27, %v5896_v53  ;;  %v5984_v11 = vld [vmem:[#allocation4 + $0xe0] sm:$0xff] }
 0x447   : > { %v6339_v25 = vld [vmem:[#allocation4 + $0x68] sm:$0xff]  ;;  %v9742_v6 = vpop.f32.mrf.mxu0  ;;  %v12244_v5 = vpop.f32.mrf.mxu1 }
 0x448   : > { %6405 = vst.msk [vmem:[#allocation4 + $0x78] sm:$0xff] %vm711_vm0, %v6373_v2  ;;  %v6371_v0 = vadd.f32 %v6339_v25, %v12199_v28  ;;  %6037 = vst.msk [vmem:[#allocation4 + $0x88] sm:$0xff] %vm711_vm0, %v6005_v18  ;;  %v6010_v43 = vadd.f32 %v9742_v6, %v5978_v13  ;;  %v5987_v18 = vld [vmem:[#allocation4 + $0xf8] sm:$0xff] }
 0x449   : > { %v6344_v34 = vld [vmem:[#allocation4 + $0x90] sm:$0xff]  ;;  %v5909_v60 = vpop.f32.mrf.mxu0  ;;  %v12249_v21 = vpop.f32.mrf.mxu1 }
 0x44a   : > { %6403 = vst.msk [vmem:[#allocation4 + $0x68] sm:$0xff] %vm711_vm0, %v6371_v0  ;;  %v6376_v56 = vadd.f32 %v12204_v7, %v6344_v34  ;;  %6042 = vst.msk [vmem:[#allocation4 + $0xb0] sm:$0xff] %vm711_vm0, %v6010_v43  ;;  %v6008_v20 = vadd.f32 %v5976_v52, %v5909_v60  ;;  %v5985_v43 = vld [vmem:[#allocation4 + $0xe8] sm:$0xff] }
 0x44b   : > { %v6342_v16 = vld [vmem:[#allocation4 + $0x80] sm:$0xff]  ;;  %v9743_v46 = vpop.f32.mrf.mxu0  ;;  %v12254_v10 = vpop.f32.mrf.mxu1 }
 0x44c   : > { %6408 = vst.msk [vmem:[#allocation4 + $0x90] sm:$0xff] %vm711_vm0, %v6376_v56  ;;  %v6374_v28 = vadd.f32 %v6342_v16, %v12209_v37  ;;  %6040 = vst.msk [vmem:[#allocation4 + $0xa0] sm:$0xff] %vm711_vm0, %v6008_v20  ;;  %v6011_v40 = vadd.f32 %v9743_v46, %v5979_v17  ;;  %v6698_v20 = vld [vmem:[#allocation4 + $0x10] sm:$0xff] }
 0x44d   : > { %v6345_v59 = vld [vmem:[#allocation4 + $0x98] sm:$0xff]  ;;  %v5912_v12 = vpop.f32.mrf.mxu0  ;;  %v12259_v8 = vpop.f32.mrf.mxu1 }
 0x44e   : > { %6406 = vst.msk [vmem:[#allocation4 + $0x80] sm:$0xff] %vm711_vm0, %v6374_v28  ;;  %v6377_v7 = vadd.f32 %v12214_v38, %v6345_v59  ;;  %6043 = vst.msk [vmem:[#allocation4 + $0xb8] sm:$0xff] %vm711_vm0, %v6011_v40  ;;  %v6009_v26 = vadd.f32 %v5977_v61, %v5912_v12  ;;  %v6696_v40 = vld [vmem:[#allocation4] sm:$0xff] }
 0x44f   : > { %v6343_v47 = vld [vmem:[#allocation4 + $0x88] sm:$0xff]  ;;  %v9746_v33 = vpop.f32.mrf.mxu0  ;;  %v12264_v15 = vpop.f32.mrf.mxu1 }
 0x450   : > { %6409 = vst.msk [vmem:[#allocation4 + $0x98] sm:$0xff] %vm711_vm0, %v6377_v7  ;;  %v6375_v37 = vadd.f32 %v6343_v47, %v12219_v42  ;;  %6041 = vst.msk [vmem:[#allocation4 + $0xa8] sm:$0xff] %vm711_vm0, %v6009_v26  ;;  %v6014_v39 = vadd.f32 %v9746_v33, %v5982_v58  ;;  %v6699_v26 = vld [vmem:[#allocation4 + $0x18] sm:$0xff] }
 0x451   : > { %v6348_v29 = vld [vmem:[#allocation4 + $0xb0] sm:$0xff]  ;;  %v5925_v30 = vpop.f32.mrf.mxu0  ;;  %v12269_v49 = vpop.f32.mrf.mxu1 }
 0x452   : > { %6407 = vst.msk [vmem:[#allocation4 + $0x88] sm:$0xff] %vm711_vm0, %v6375_v37  ;;  %v6380_v38 = vadd.f32 %v12224_v22, %v6348_v29  ;;  %6046 = vst.msk [vmem:[#allocation4 + $0xd0] sm:$0xff] %vm711_vm0, %v6014_v39  ;;  %v6012_v35 = vadd.f32 %v5980_v14, %v5925_v30  ;;  %v6697_v39 = vld [vmem:[#allocation4 + $0x8] sm:$0xff] }
 0x453   : > { %v6346_v57 = vld [vmem:[#allocation4 + $0xa0] sm:$0xff]  ;;  %v9747_v9 = vpop.f32.mrf.mxu0  ;;  %v12274_v1 = vpop.f32.mrf.mxu1 }
 0x454   : > { %6412 = vst.msk [vmem:[#allocation4 + $0xb0] sm:$0xff] %vm711_vm0, %v6380_v38  ;;  %v6378_v42 = vadd.f32 %v6346_v57, %v12229_v45  ;;  %6044 = vst.msk [vmem:[#allocation4 + $0xc0] sm:$0xff] %vm711_vm0, %v6012_v35  ;;  %v6015_v44 = vadd.f32 %v9747_v9, %v5983_v41  ;;  %v6702_v35 = vld [vmem:[#allocation4 + $0x30] sm:$0xff] }
 0x455   : > { %v6349_v50 = vld [vmem:[#allocation4 + $0xb8] sm:$0xff]  ;;  %v5928_v51 = vpop.f32.mrf.mxu0  ;;  %v12279_v4 = vpop.f32.mrf.mxu1 }
 0x456   : > { %6410 = vst.msk [vmem:[#allocation4 + $0xa0] sm:$0xff] %vm711_vm0, %v6378_v42  ;;  %v6381_v22 = vadd.f32 %v12234_v19, %v6349_v50  ;;  %6047 = vst.msk [vmem:[#allocation4 + $0xd8] sm:$0xff] %vm711_vm0, %v6015_v44  ;;  %v6013_v63 = vadd.f32 %v5981_v55, %v5928_v51  ;;  %v6700_v44 = vld [vmem:[#allocation4 + $0x20] sm:$0xff] }
 0x457   : > { %v6347_v23 = vld [vmem:[#allocation4 + $0xa8] sm:$0xff]  ;;  %v9750_v3 = vpop.f32.mrf.mxu0  ;;  %v12284_v24 = vpop.f32.mrf.mxu1 }
 0x458   : > { %6413 = vst.msk [vmem:[#allocation4 + $0xb8] sm:$0xff] %vm711_vm0, %v6381_v22  ;;  %v6379_v45 = vadd.f32 %v6347_v23, %v12239_v62  ;;  %6045 = vst.msk [vmem:[#allocation4 + $0xc8] sm:$0xff] %vm711_vm0, %v6013_v63  ;;  %v6018_v31 = vadd.f32 %v9750_v3, %v5986_v54  ;;  %v6703_v63 = vld [vmem:[#allocation4 + $0x38] sm:$0xff] }
 0x459   : > { %v6352_v32 = vld [vmem:[#allocation4 + $0xd0] sm:$0xff]  ;;  %v5941_v36 = vpop.f32.mrf.mxu0  ;;  %v12289_v48 = vpop.f32.mrf.mxu1 }
 0x45a   : > { %6411 = vst.msk [vmem:[#allocation4 + $0xa8] sm:$0xff] %vm711_vm0, %v6379_v45  ;;  %v6384_v19 = vadd.f32 %v12244_v5, %v6352_v32  ;;  %6050 = vst.msk [vmem:[#allocation4 + $0xf0] sm:$0xff] %vm711_vm0, %v6018_v31  ;;  %v6016_v53 = vadd.f32 %v5984_v11, %v5941_v36  ;;  %v6701_v31 = vld [vmem:[#allocation4 + $0x28] sm:$0xff] }
 0x45b   : > { %v6350_v27 = vld [vmem:[#allocation4 + $0xc0] sm:$0xff]  ;;  %v9751_v2 = vpop.f32.mrf.mxu0  ;;  %v12294_v25 = vpop.f32.mrf.mxu1 }
 0x45c   : > { %6416 = vst.msk [vmem:[#allocation4 + $0xd0] sm:$0xff] %vm711_vm0, %v6384_v19  ;;  %v6382_v62 = vadd.f32 %v6350_v27, %v12249_v21  ;;  %6048 = vst.msk [vmem:[#allocation4 + $0xe0] sm:$0xff] %vm711_vm0, %v6016_v53  ;;  %v6019_v6 = vadd.f32 %v9751_v2, %v5987_v18  ;;  %v6706_v53 = vld [vmem:[#allocation4 + $0x50] sm:$0xff] }
 0x45d   : > { %v6353_v13 = vld [vmem:[#allocation4 + $0xd8] sm:$0xff]  ;;  %v5944_v0 = vpop.f32.mrf.mxu0  ;;  %v12299_v34 = vpop.f32.mrf.mxu1 }
 0x45e   : > { %6414 = vst.msk [vmem:[#allocation4 + $0xc0] sm:$0xff] %vm711_vm0, %v6382_v62  ;;  %v6385_v5 = vadd.f32 %v12254_v10, %v6353_v13  ;;  %6051 = vst.msk [vmem:[#allocation4 + $0xf8] sm:$0xff] %vm711_vm0, %v6019_v6  ;;  %v6017_v60 = vadd.f32 %v5985_v43, %v5944_v0  ;;  %v6704_v6 = vld [vmem:[#allocation4 + $0x40] sm:$0xff] }
 0x45f   : > { %v6351_v52 = vld [vmem:[#allocation4 + $0xc8] sm:$0xff]  ;;  %v9818_v56 = vpop.f32.mrf.mxu0  ;;  %v12304_v16 = vpop.f32.mrf.mxu1 }
 0x460   : > { %6417 = vst.msk [vmem:[#allocation4 + $0xd8] sm:$0xff] %vm711_vm0, %v6385_v5  ;;  %v6383_v21 = vadd.f32 %v6351_v52, %v12259_v8  ;;  %6049 = vst.msk [vmem:[#allocation4 + $0xe8] sm:$0xff] %vm711_vm0, %v6017_v60  ;;  %v6730_v46 = vadd.f32 %v9818_v56, %v6698_v20  ;;  %v6707_v60 = vld [vmem:[#allocation4 + $0x58] sm:$0xff] }
 0x461   : > { %v6356_v17 = vld [vmem:[#allocation4 + $0xf0] sm:$0xff]  ;;  %v6569_v28 = vpop.f32.mrf.mxu0  ;;  %v12309_v59 = vpop.f32.mrf.mxu1 }
 0x462   : > { %6415 = vst.msk [vmem:[#allocation4 + $0xc8] sm:$0xff] %vm711_vm0, %v6383_v21  ;;  %v6388_v10 = vadd.f32 %v12264_v15, %v6356_v17  ;;  %6762 = vst.msk [vmem:[#allocation4 + $0x10] sm:$0xff] %vm711_vm0, %v6730_v46  ;;  %v6728_v12 = vadd.f32 %v6696_v40, %v6569_v28  ;;  %v6705_v46 = vld [vmem:[#allocation4 + $0x48] sm:$0xff] }
 0x463   : > { %v6354_v61 = vld [vmem:[#allocation4 + $0xe0] sm:$0xff]  ;;  %v9819_v7 = vpop.f32.mrf.mxu0  ;;  %v12314_v47 = vpop.f32.mrf.mxu1 }
 0x464   : > { %6420 = vst.msk [vmem:[#allocation4 + $0xf0] sm:$0xff] %vm711_vm0, %v6388_v10  ;;  %v6386_v8 = vadd.f32 %v6354_v61, %v12269_v49  ;;  %6760 = vst.msk [vmem:[#allocation4] sm:$0xff] %vm711_vm0, %v6728_v12  ;;  %v6731_v33 = vadd.f32 %v9819_v7, %v6699_v26  ;;  %v6710_v12 = vld [vmem:[#allocation4 + $0x70] sm:$0xff] }
 0x465   : > { %v6357_v58 = vld [vmem:[#allocation4 + $0xf8] sm:$0xff]  ;;  %v6572_v37 = vpop.f32.mrf.mxu0  ;;  %v12319_v29 = vpop.f32.mrf.mxu1 }
 0x466   : > { %6418 = vst.msk [vmem:[#allocation4 + $0xe0] sm:$0xff] %vm711_vm0, %v6386_v8  ;;  %v6389_v15 = vadd.f32 %v12274_v1, %v6357_v58  ;;  %6763 = vst.msk [vmem:[#allocation4 + $0x18] sm:$0xff] %vm711_vm0, %v6731_v33  ;;  %v6729_v30 = vadd.f32 %v6697_v39, %v6572_v37  ;;  %v6708_v33 = vld [vmem:[#allocation4 + $0x60] sm:$0xff] }
 0x467   : > { %v6355_v14 = vld [vmem:[#allocation4 + $0xe8] sm:$0xff]  ;;  %v9822_v38 = vpop.f32.mrf.mxu0  ;;  %v12324_v57 = vpop.f32.mrf.mxu1 }
 0x468   : > { %6421 = vst.msk [vmem:[#allocation4 + $0xf8] sm:$0xff] %vm711_vm0, %v6389_v15  ;;  %v6387_v49 = vadd.f32 %v6355_v14, %v12279_v4  ;;  %6761 = vst.msk [vmem:[#allocation4 + $0x8] sm:$0xff] %vm711_vm0, %v6729_v30  ;;  %v6734_v9 = vadd.f32 %v9822_v38, %v6702_v35  ;;  %v6711_v30 = vld [vmem:[#allocation4 + $0x78] sm:$0xff] }
 0x469   : > { %v7068_v41 = vld [vmem:[#allocation4 + $0x10] sm:$0xff]  ;;  %v6585_v42 = vpop.f32.mrf.mxu0  ;;  %v12329_v50 = vpop.f32.mrf.mxu1 }
 0x46a   : > { %6419 = vst.msk [vmem:[#allocation4 + $0xe8] sm:$0xff] %vm711_vm0, %v6387_v49  ;;  %v7100_v1 = vadd.f32 %v12284_v24, %v7068_v41  ;;  %6766 = vst.msk [vmem:[#allocation4 + $0x30] sm:$0xff] %vm711_vm0, %v6734_v9  ;;  %v6732_v51 = vadd.f32 %v6700_v44, %v6585_v42  ;;  %v6709_v9 = vld [vmem:[#allocation4 + $0x68] sm:$0xff] }
 0x46b   : > { %v7066_v55 = vld [vmem:[#allocation4] sm:$0xff]  ;;  %v9823_v22 = vpop.f32.mrf.mxu0  ;;  %v12334_v23 = vpop.f32.mrf.mxu1 }
 0x46c   : > { %7132 = vst.msk [vmem:[#allocation4 + $0x10] sm:$0xff] %vm711_vm0, %v7100_v1  ;;  %v7098_v4 = vadd.f32 %v7066_v55, %v12289_v48  ;;  %6764 = vst.msk [vmem:[#allocation4 + $0x20] sm:$0xff] %vm711_vm0, %v6732_v51  ;;  %v6735_v3 = vadd.f32 %v9823_v22, %v6703_v63  ;;  %v6714_v51 = vld [vmem:[#allocation4 + $0x90] sm:$0xff] }
 0x46d   : > { %v7069_v54 = vld [vmem:[#allocation4 + $0x18] sm:$0xff]  ;;  %v6588_v45 = vpop.f32.mrf.mxu0  ;;  %v12339_v32 = vpop.f32.mrf.mxu1 }
 0x46e   : > { %7130 = vst.msk [vmem:[#allocation4] sm:$0xff] %vm711_vm0, %v7098_v4  ;;  %v7101_v24 = vadd.f32 %v12294_v25, %v7069_v54  ;;  %6767 = vst.msk [vmem:[#allocation4 + $0x38] sm:$0xff] %vm711_vm0, %v6735_v3  ;;  %v6733_v36 = vadd.f32 %v6701_v31, %v6588_v45  ;;  %v6712_v3 = vld [vmem:[#allocation4 + $0x80] sm:$0xff] }
 0x46f   : > { %v7067_v11 = vld [vmem:[#allocation4 + $0x8] sm:$0xff]  ;;  %v9826_v19 = vpop.f32.mrf.mxu0  ;;  %v12344_v27 = vpop.f32.mrf.mxu1 }
 0x470   : > { %7133 = vst.msk [vmem:[#allocation4 + $0x18] sm:$0xff] %vm711_vm0, %v7101_v24  ;;  %v7099_v48 = vadd.f32 %v7067_v11, %v12299_v34  ;;  %6765 = vst.msk [vmem:[#allocation4 + $0x28] sm:$0xff] %vm711_vm0, %v6733_v36  ;;  %v6738_v2 = vadd.f32 %v9826_v19, %v6706_v53  ;;  %v6715_v36 = vld [vmem:[#allocation4 + $0x98] sm:$0xff] }
 0x471   : > { %v7072_v18 = vld [vmem:[#allocation4 + $0x30] sm:$0xff]  ;;  %v6601_v62 = vpop.f32.mrf.mxu0  ;;  %v12349_v13 = vpop.f32.mrf.mxu1 }
 0x472   : > { %7131 = vst.msk [vmem:[#allocation4 + $0x8] sm:$0xff] %vm711_vm0, %v7099_v48  ;;  %v7104_v25 = vadd.f32 %v12304_v16, %v7072_v18  ;;  %6770 = vst.msk [vmem:[#allocation4 + $0x50] sm:$0xff] %vm711_vm0, %v6738_v2  ;;  %v6736_v0 = vadd.f32 %v6704_v6, %v6601_v62  ;;  %v6713_v2 = vld [vmem:[#allocation4 + $0x88] sm:$0xff] }
 0x473   : > { %v7070_v43 = vld [vmem:[#allocation4 + $0x20] sm:$0xff]  ;;  %v9827_v5 = vpop.f32.mrf.mxu0  ;;  %v12354_v52 = vpop.f32.mrf.mxu1 }
 0x474   : > { %7136 = vst.msk [vmem:[#allocation4 + $0x30] sm:$0xff] %vm711_vm0, %v7104_v25  ;;  %v7102_v34 = vadd.f32 %v7070_v43, %v12309_v59  ;;  %6768 = vst.msk [vmem:[#allocation4 + $0x40] sm:$0xff] %vm711_vm0, %v6736_v0  ;;  %v6739_v56 = vadd.f32 %v9827_v5, %v6707_v60  ;;  %v6718_v25 = vld [vmem:[#allocation4 + $0xb0] sm:$0xff] }
 0x475   : > { %v7073_v20 = vld [vmem:[#allocation4 + $0x38] sm:$0xff]  ;;  %v6604_v21 = vpop.f32.mrf.mxu0  ;;  %v12359_v17 = vpop.f32.mrf.mxu1 }
 0x476   : > { %7134 = vst.msk [vmem:[#allocation4 + $0x20] sm:$0xff] %vm711_vm0, %v7102_v34  ;;  %v7105_v16 = vadd.f32 %v12314_v47, %v7073_v20  ;;  %6771 = vst.msk [vmem:[#allocation4 + $0x58] sm:$0xff] %vm711_vm0, %v6739_v56  ;;  %v6737_v28 = vadd.f32 %v6705_v46, %v6604_v21  ;;  %v6716_v34 = vld [vmem:[#allocation4 + $0xa0] sm:$0xff]  ;;  %v6719_v46 = vld [vmem:[#allocation4 + $0xb8] sm:$0xff] }
 0x477   : > { %v7071_v40 = vld [vmem:[#allocation4 + $0x28] sm:$0xff]  ;;  %v9830_v10 = vpop.f32.mrf.mxu0  ;;  %v12364_v61 = vpop.f32.mrf.mxu1 }
 0x478   : > { %7137 = vst.msk [vmem:[#allocation4 + $0x38] sm:$0xff] %vm711_vm0, %v7105_v16  ;;  %v7103_v59 = vadd.f32 %v7071_v40, %v12319_v29  ;;  %6769 = vst.msk [vmem:[#allocation4 + $0x48] sm:$0xff] %vm711_vm0, %v6737_v28  ;;  %v6742_v7 = vadd.f32 %v9830_v10, %v6710_v12  ;;  %v6717_v12 = vld [vmem:[#allocation4 + $0xa8] sm:$0xff] }
 0x479   : > { %v7076_v26 = vld [vmem:[#allocation4 + $0x50] sm:$0xff]  ;;  %v6617_v8 = vpop.f32.mrf.mxu0  ;;  %v12369_v58 = vpop.f32.mrf.mxu1 }
 0x47a   : > { %7135 = vst.msk [vmem:[#allocation4 + $0x28] sm:$0xff] %vm711_vm0, %v7103_v59  ;;  %v7108_v47 = vadd.f32 %v12324_v57, %v7076_v26  ;;  %6774 = vst.msk [vmem:[#allocation4 + $0x70] sm:$0xff] %vm711_vm0, %v6742_v7  ;;  %v6740_v37 = vadd.f32 %v6708_v33, %v6617_v8  ;;  %v6722_v8 = vld [vmem:[#allocation4 + $0xd0] sm:$0xff] }
 0x47b   : > { %v7074_v39 = vld [vmem:[#allocation4 + $0x40] sm:$0xff]  ;;  %v9831_v15 = vpop.f32.mrf.mxu0  ;;  %v12374_v14 = vpop.f32.mrf.mxu1 }
 0x47c   : > { %7140 = vst.msk [vmem:[#allocation4 + $0x50] sm:$0xff] %vm711_vm0, %v7108_v47  ;;  %v7106_v29 = vadd.f32 %v7074_v39, %v12329_v50  ;;  %6772 = vst.msk [vmem:[#allocation4 + $0x60] sm:$0xff] %vm711_vm0, %v6740_v37  ;;  %v6743_v38 = vadd.f32 %v9831_v15, %v6711_v30  ;;  %v6720_v15 = vld [vmem:[#allocation4 + $0xc0] sm:$0xff] }
 0x47d   : > { %v7077_v35 = vld [vmem:[#allocation4 + $0x58] sm:$0xff]  ;;  %v6620_v49 = vpop.f32.mrf.mxu0  ;;  %v12379_v41 = vpop.f32.mrf.mxu1 }
 0x47e   : > { %7138 = vst.msk [vmem:[#allocation4 + $0x40] sm:$0xff] %vm711_vm0, %v7106_v29  ;;  %v7109_v57 = vadd.f32 %v12334_v23, %v7077_v35  ;;  %6775 = vst.msk [vmem:[#allocation4 + $0x78] sm:$0xff] %vm711_vm0, %v6743_v38  ;;  %v6741_v42 = vadd.f32 %v6709_v9, %v6620_v49  ;;  %v6723_v35 = vld [vmem:[#allocation4 + $0xd8] sm:$0xff] }
 0x47f   : > { %v7075_v44 = vld [vmem:[#allocation4 + $0x48] sm:$0xff]  ;;  %v9834_v1 = vpop.f32.mrf.mxu0  ;;  %v12384_v55 = vpop.f32.mrf.mxu1 }
 0x480   : > { %7141 = vst.msk [vmem:[#allocation4 + $0x58] sm:$0xff] %vm711_vm0, %v7109_v57  ;;  %v7107_v50 = vadd.f32 %v7075_v44, %v12339_v32  ;;  %6773 = vst.msk [vmem:[#allocation4 + $0x68] sm:$0xff] %vm711_vm0, %v6741_v42  ;;  %v6746_v22 = vadd.f32 %v9834_v1, %v6714_v51  ;;  %v6721_v44 = vld [vmem:[#allocation4 + $0xc8] sm:$0xff] }
 0x481   : > { %v7080_v63 = vld [vmem:[#allocation4 + $0x70] sm:$0xff]  ;;  %v6633_v4 = vpop.f32.mrf.mxu0  ;;  %v12389_v54 = vpop.f32.mrf.mxu1 }
 0x482   : > { %7139 = vst.msk [vmem:[#allocation4 + $0x48] sm:$0xff] %vm711_vm0, %v7107_v50  ;;  %v7112_v23 = vadd.f32 %v12344_v27, %v7080_v63  ;;  %6778 = vst.msk [vmem:[#allocation4 + $0x90] sm:$0xff] %vm711_vm0, %v6746_v22  ;;  %v6744_v45 = vadd.f32 %v6712_v3, %v6633_v4  ;;  %v6726_v63 = vld [vmem:[#allocation4 + $0xf0] sm:$0xff] }
 0x483   : > { %v7078_v31 = vld [vmem:[#allocation4 + $0x60] sm:$0xff]  ;;  %v9835_v24 = vpop.f32.mrf.mxu0  ;;  %v12394_v11 = vpop.f32.mrf.mxu1 }
 0x484   : > { %7144 = vst.msk [vmem:[#allocation4 + $0x70] sm:$0xff] %vm711_vm0, %v7112_v23  ;;  %v7110_v32 = vadd.f32 %v7078_v31, %v12349_v13  ;;  %6776 = vst.msk [vmem:[#allocation4 + $0x80] sm:$0xff] %vm711_vm0, %v6744_v45  ;;  %v6747_v19 = vadd.f32 %v9835_v24, %v6715_v36  ;;  %v6724_v45 = vld [vmem:[#allocation4 + $0xe0] sm:$0xff] }
 0x485   : > { %v7081_v53 = vld [vmem:[#allocation4 + $0x78] sm:$0xff]  ;;  %v6636_v48 = vpop.f32.mrf.mxu0  ;;  %v7022_v0 = vpop.f32.mrf.mxu1 }
 0x486   : > { %7142 = vst.msk [vmem:[#allocation4 + $0x60] sm:$0xff] %vm711_vm0, %v7110_v32  ;;  %v7113_v27 = vadd.f32 %v12354_v52, %v7081_v53  ;;  %6779 = vst.msk [vmem:[#allocation4 + $0x98] sm:$0xff] %vm711_vm0, %v6747_v19  ;;  %v6745_v18 = vadd.f32 %v6713_v2, %v6636_v48  ;;  %v6727_v19 = vld [vmem:[#allocation4 + $0xf8] sm:$0xff] }
 0x487   : > { %v7079_v62 = vld [vmem:[#allocation4 + $0x68] sm:$0xff]  ;;  %v9838_v6 = vpop.f32.mrf.mxu0  ;;  %v9890_v16 = vpop.f32.mrf.mxu1 }
 0x488   : > { %7145 = vst.msk [vmem:[#allocation4 + $0x78] sm:$0xff] %vm711_vm0, %v7113_v27  ;;  %v7111_v13 = vadd.f32 %v7079_v62, %v12359_v17  ;;  %6777 = vst.msk [vmem:[#allocation4 + $0x88] sm:$0xff] %vm711_vm0, %v6745_v18  ;;  %v6750_v43 = vadd.f32 %v9838_v6, %v6718_v25  ;;  %v6725_v18 = vld [vmem:[#allocation4 + $0xe8] sm:$0xff] }
 0x489   : > { %v7084_v5 = vld [vmem:[#allocation4 + $0x90] sm:$0xff]  ;;  %v6649_v60 = vpop.f32.mrf.mxu0  ;;  %v7035_v33 = vpop.f32.mrf.mxu1 }
 0x48a   : > { %7143 = vst.msk [vmem:[#allocation4 + $0x68] sm:$0xff] %vm711_vm0, %v7111_v13  ;;  %v7116_v52 = vadd.f32 %v12364_v61, %v7084_v5  ;;  %6782 = vst.msk [vmem:[#allocation4 + $0xb0] sm:$0xff] %vm711_vm0, %v6750_v43  ;;  %v6748_v56 = vadd.f32 %v6716_v34, %v6649_v60  ;;  %v7438_v43 = vld [vmem:[#allocation4 + $0x10] sm:$0xff] }
 0x48b   : > { %v7082_v20 = vld [vmem:[#allocation4 + $0x80] sm:$0xff]  ;;  %v9839_v21 = vpop.f32.mrf.mxu0  ;;  %v9891_v49 = vpop.f32.mrf.mxu1 }
 0x48c   : > { %7148 = vst.msk [vmem:[#allocation4 + $0x90] sm:$0xff] %vm711_vm0, %v7116_v52  ;;  %v7114_v17 = vadd.f32 %v7082_v20, %v12369_v58  ;;  %6780 = vst.msk [vmem:[#allocation4 + $0xa0] sm:$0xff] %vm711_vm0, %v6748_v56  ;;  %v6751_v28 = vadd.f32 %v9839_v21, %v6719_v46  ;;  %v7436_v56 = vld [vmem:[#allocation4] sm:$0xff] }
 0x48d   : > { %v7085_v40 = vld [vmem:[#allocation4 + $0x98] sm:$0xff]  ;;  %v6652_v10 = vpop.f32.mrf.mxu0  ;;  %v7038_v50 = vpop.f32.mrf.mxu1 }
 0x48e   : > { %7146 = vst.msk [vmem:[#allocation4 + $0x80] sm:$0xff] %vm711_vm0, %v7114_v17  ;;  %v7117_v61 = vadd.f32 %v12374_v14, %v7085_v40  ;;  %6783 = vst.msk [vmem:[#allocation4 + $0xb8] sm:$0xff] %vm711_vm0, %v6751_v28  ;;  %v6749_v59 = vadd.f32 %v6717_v12, %v6652_v10  ;;  %v7439_v28 = vld [vmem:[#allocation4 + $0x18] sm:$0xff] }
 0x48f   : > { %v7083_v7 = vld [vmem:[#allocation4 + $0x88] sm:$0xff]  ;;  %v9842_v26 = vpop.f32.mrf.mxu0  ;;  %v9894_v31 = vpop.f32.mrf.mxu1 }
 0x490   : > { %7149 = vst.msk [vmem:[#allocation4 + $0x98] sm:$0xff] %vm711_vm0, %v7117_v61  ;;  %v7115_v58 = vadd.f32 %v7083_v7, %v12379_v41  ;;  %6781 = vst.msk [vmem:[#allocation4 + $0xa8] sm:$0xff] %vm711_vm0, %v6749_v59  ;;  %v6754_v47 = vadd.f32 %v9842_v26, %v6722_v8  ;;  %v7437_v59 = vld [vmem:[#allocation4 + $0x8] sm:$0xff] }
 0x491   : > { %v7088_v37 = vld [vmem:[#allocation4 + $0xb0] sm:$0xff]  ;;  %v6665_v39 = vpop.f32.mrf.mxu0  ;;  %v7051_v62 = vpop.f32.mrf.mxu1 }
 0x492   : > { %7147 = vst.msk [vmem:[#allocation4 + $0x88] sm:$0xff] %vm711_vm0, %v7115_v58  ;;  %v7120_v30 = vadd.f32 %v12384_v55, %v7088_v37  ;;  %6786 = vst.msk [vmem:[#allocation4 + $0xd0] sm:$0xff] %vm711_vm0, %v6754_v47  ;;  %v6752_v14 = vadd.f32 %v6720_v15, %v6665_v39  ;;  %v7442_v47 = vld [vmem:[#allocation4 + $0x30] sm:$0xff] }
 0x493   : > { %v7086_v29 = vld [vmem:[#allocation4 + $0xa0] sm:$0xff]  ;;  %v9843_v38 = vpop.f32.mrf.mxu0  ;;  %v9895_v20 = vpop.f32.mrf.mxu1 }
 0x494   : > { %7152 = vst.msk [vmem:[#allocation4 + $0xb0] sm:$0xff] %vm711_vm0, %v7120_v30  ;;  %v7118_v9 = vadd.f32 %v7086_v29, %v12389_v54  ;;  %6784 = vst.msk [vmem:[#allocation4 + $0xc0] sm:$0xff] %vm711_vm0, %v6752_v14  ;;  %v6755_v41 = vadd.f32 %v9843_v38, %v6723_v35  ;;  %v7440_v30 = vld [vmem:[#allocation4 + $0x20] sm:$0xff]  ;;  %v7443_v38 = vld [vmem:[#allocation4 + $0x38] sm:$0xff] }
 0x495   : > { %v7089_v57 = vld [vmem:[#allocation4 + $0xb8] sm:$0xff]  ;;  %v6668_v42 = vpop.f32.mrf.mxu0  ;;  %v7054_v7 = vpop.f32.mrf.mxu1 }
 0x496   : > { %7150 = vst.msk [vmem:[#allocation4 + $0xa0] sm:$0xff] %vm711_vm0, %v7118_v9  ;;  %v7121_v1 = vadd.f32 %v12394_v11, %v7089_v57  ;;  %6787 = vst.msk [vmem:[#allocation4 + $0xd8] sm:$0xff] %vm711_vm0, %v6755_v41  ;;  %v6753_v51 = vadd.f32 %v6721_v44, %v6668_v42  ;;  %v7441_v9 = vld [vmem:[#allocation4 + $0x28] sm:$0xff] }
 0x497   : > { %v7087_v55 = vld [vmem:[#allocation4 + $0xa8] sm:$0xff]  ;;  %v9846_v22 = vpop.f32.mrf.mxu0 }
 0x498   : > { %7153 = vst.msk [vmem:[#allocation4 + $0xb8] sm:$0xff] %vm711_vm0, %v7121_v1  ;;  %v7119_v4 = vadd.f32 %v7087_v55, %v7022_v0  ;;  %6785 = vst.msk [vmem:[#allocation4 + $0xc8] sm:$0xff] %vm711_vm0, %v6753_v51  ;;  %v6758_v3 = vadd.f32 %v9846_v22, %v6726_v63  ;;  %v7446_v51 = vld [vmem:[#allocation4 + $0x50] sm:$0xff] }
 0x499   : > { %v7092_v54 = vld [vmem:[#allocation4 + $0xd0] sm:$0xff]  ;;  %v6681_v23 = vpop.f32.mrf.mxu0 }
 0x49a   : > { %7151 = vst.msk [vmem:[#allocation4 + $0xa8] sm:$0xff] %vm711_vm0, %v7119_v4  ;;  %v7124_v24 = vadd.f32 %v9890_v16, %v7092_v54  ;;  %6790 = vst.msk [vmem:[#allocation4 + $0xf0] sm:$0xff] %vm711_vm0, %v6758_v3  ;;  %v6756_v36 = vadd.f32 %v6724_v45, %v6681_v23  ;;  %v7444_v54 = vld [vmem:[#allocation4 + $0x40] sm:$0xff] }
 0x49b   : > { %v7090_v11 = vld [vmem:[#allocation4 + $0xc0] sm:$0xff]  ;;  %v9847_v32 = vpop.f32.mrf.mxu0 }
 0x49c   : > { %7156 = vst.msk [vmem:[#allocation4 + $0xd0] sm:$0xff] %vm711_vm0, %v7124_v24  ;;  %v7122_v53 = vadd.f32 %v7090_v11, %v7035_v33  ;;  %6788 = vst.msk [vmem:[#allocation4 + $0xe0] sm:$0xff] %vm711_vm0, %v6756_v36  ;;  %v6759_v48 = vadd.f32 %v9847_v32, %v6727_v19  ;;  %v7447_v36 = vld [vmem:[#allocation4 + $0x58] sm:$0xff] }
 0x49d   : > { %v7093_v2 = vld [vmem:[#allocation4 + $0xd8] sm:$0xff]  ;;  %v6684_v27 = vpop.f32.mrf.mxu0 }
 0x49e   : > { %7154 = vst.msk [vmem:[#allocation4 + $0xc0] sm:$0xff] %vm711_vm0, %v7122_v53  ;;  %v7125_v6 = vadd.f32 %v9891_v49, %v7093_v2  ;;  %6791 = vst.msk [vmem:[#allocation4 + $0xf8] sm:$0xff] %vm711_vm0, %v6759_v48  ;;  %v6757_v25 = vadd.f32 %v6725_v18, %v6684_v27  ;;  %v7445_v53 = vld [vmem:[#allocation4 + $0x48] sm:$0xff] }
 0x49f   : > { %v7091_v0 = vld [vmem:[#allocation4 + $0xc8] sm:$0xff]  ;;  %v9914_v13 = vpop.f32.mrf.mxu0 }
 0x4a0   : > { %7157 = vst.msk [vmem:[#allocation4 + $0xd8] sm:$0xff] %vm711_vm0, %v7125_v6  ;;  %v7123_v5 = vadd.f32 %v7091_v0, %v7038_v50  ;;  %6789 = vst.msk [vmem:[#allocation4 + $0xe8] sm:$0xff] %vm711_vm0, %v6757_v25  ;;  %v7470_v60 = vadd.f32 %v9914_v13, %v7438_v43  ;;  %v7450_v6 = vld [vmem:[#allocation4 + $0x70] sm:$0xff] }
 0x4a1   : > { %v7096_v34 = vld [vmem:[#allocation4 + $0xf0] sm:$0xff]  ;;  %v7309_v52 = vpop.f32.mrf.mxu0 }
 0x4a2   : > { %7155 = vst.msk [vmem:[#allocation4 + $0xc8] sm:$0xff] %vm711_vm0, %v7123_v5  ;;  %7502 = vst.msk [vmem:[#allocation4 + $0x10] sm:$0xff] %vm711_vm0, %v7470_v60  ;;  %v7128_v21 = vadd.f32 %v9894_v31, %v7096_v34  ;;  %v7468_v46 = vadd.f32 %v7436_v56, %v7309_v52  ;;  %v7448_v34 = vld [vmem:[#allocation4 + $0x60] sm:$0xff] }
 0x4a3   : > { %v7094_v16 = vld [vmem:[#allocation4 + $0xe0] sm:$0xff]  ;;  %v9915_v17 = vpop.f32.mrf.mxu0 }
 0x4a4   : > { %7160 = vst.msk [vmem:[#allocation4 + $0xf0] sm:$0xff] %vm711_vm0, %v7128_v21  ;;  %7500 = vst.msk [vmem:[#allocation4] sm:$0xff] %vm711_vm0, %v7468_v46  ;;  %v7126_v40 = vadd.f32 %v7094_v16, %v7051_v62  ;;  %v7471_v10 = vadd.f32 %v9915_v17, %v7439_v28  ;;  %v7451_v46 = vld [vmem:[#allocation4 + $0x78] sm:$0xff] }
 0x4a5   : > { %v7097_v12 = vld [vmem:[#allocation4 + $0xf8] sm:$0xff]  ;;  %v7312_v61 = vpop.f32.mrf.mxu0 }
 0x4a6   : > { %7158 = vst.msk [vmem:[#allocation4 + $0xe0] sm:$0xff] %vm711_vm0, %v7126_v40  ;;  %7503 = vst.msk [vmem:[#allocation4 + $0x18] sm:$0xff] %vm711_vm0, %v7471_v10  ;;  %v7129_v26 = vadd.f32 %v9895_v20, %v7097_v12  ;;  %v7469_v8 = vadd.f32 %v7437_v59, %v7312_v61  ;;  %v7449_v40 = vld [vmem:[#allocation4 + $0x68] sm:$0xff] }
 0x4a7   : > { %v7095_v33 = vld [vmem:[#allocation4 + $0xe8] sm:$0xff]  ;;  %v9918_v58 = vpop.f32.mrf.mxu0 }
 0x4a8   : > { %7161 = vst.msk [vmem:[#allocation4 + $0xf8] sm:$0xff] %vm711_vm0, %v7129_v26  ;;  %7501 = vst.msk [vmem:[#allocation4 + $0x8] sm:$0xff] %vm711_vm0, %v7469_v8  ;;  %v7127_v37 = vadd.f32 %v7095_v33, %v7054_v7  ;;  %v7474_v39 = vadd.f32 %v9918_v58, %v7442_v47  ;;  %v7454_v26 = vld [vmem:[#allocation4 + $0x90] sm:$0xff] }
 0x4a9   : > { %v7325_v15 = vpop.f32.mrf.mxu0  ;;  %v7534_v44 = vld [vmem:[#allocation4 + $0x10] sm:$0xff] }
 0x4aa   : > { %7159 = vst.msk [vmem:[#allocation4 + $0xe8] sm:$0xff] %vm711_vm0, %v7127_v37  ;;  %7506 = vst.msk [vmem:[#allocation4 + $0x30] sm:$0xff] %vm711_vm0, %v7474_v39  ;;  %v7472_v14 = vadd.f32 %v7440_v30, %v7325_v15  ;;  %v7566_v23 = vmax.f32 %v7534_v44, 0.0  ;;  %v7452_v15 = vld [vmem:[#allocation4 + $0x80] sm:$0xff] }
 0x4ab   : > { %v9919_v29 = vpop.f32.mrf.mxu0  ;;  %v7532_v41 = vld [vmem:[#allocation4] sm:$0xff] }
 0x4ac   : > { %7504 = vst.msk [vmem:[#allocation4 + $0x20] sm:$0xff] %vm711_vm0, %v7472_v14  ;;  %v7475_v35 = vadd.f32 %v9919_v29, %v7443_v38  ;;  %v7564_v63 = vmax.f32 %v7532_v41, 0.0 }
 0x4ad   : > { %v7328_v49 = vpop.f32.mrf.mxu0  ;;  %v7535_v57 = vld [vmem:[#allocation4 + $0x18] sm:$0xff] }
 0x4ae   : > { %7507 = vst.msk [vmem:[#allocation4 + $0x38] sm:$0xff] %vm711_vm0, %v7475_v35  ;;  %v7473_v42 = vadd.f32 %v7441_v9, %v7328_v49  ;;  %v7567_v50 = vmax.f32 %v7535_v57, 0.0  ;;  %v7455_v35 = vld [vmem:[#allocation4 + $0x98] sm:$0xff]  ;;  %v7453_v57 = vld [vmem:[#allocation4 + $0x88] sm:$0xff] }
 0x4af   : > { %v9922_v1 = vpop.f32.mrf.mxu0  ;;  %v7533_v55 = vld [vmem:[#allocation4 + $0x8] sm:$0xff] }
 0x4b0   : > { %7505 = vst.msk [vmem:[#allocation4 + $0x28] sm:$0xff] %vm711_vm0, %v7473_v42  ;;  %v7478_v22 = vadd.f32 %v9922_v1, %v7446_v51  ;;  %v7565_v4 = vmax.f32 %v7533_v55, 0.0  ;;  %v7597_v11 = vpack.c.bf16 %v7567_v50, %v7566_v23  ;;  %v7458_v50 = vld [vmem:[#allocation4 + $0xb0] sm:$0xff] }
 0x4b1   : > { %v7341_v3 = vpop.f32.mrf.mxu0  ;;  %v7538_v18 = vld [vmem:[#allocation4 + $0x30] sm:$0xff] }
 0x4b2   : > { %7510 = vst.msk [vmem:[#allocation4 + $0x50] sm:$0xff] %vm711_vm0, %v7478_v22  ;;  %v7476_v45 = vadd.f32 %v7444_v54, %v7341_v3  ;;  %v7596_v31 = vpack.c.bf16 %v7565_v4, %v7564_v63  ;;  %v7570_v52 = vmax.f32 %v7538_v18, 0.0 }
 0x4b3   : > { %v9923_v24 = vpop.f32.mrf.mxu0  ;;  %v7536_v48 = vld [vmem:[#allocation4 + $0x20] sm:$0xff] }
 0x4b4   : > { %7508 = vst.msk [vmem:[#allocation4 + $0x40] sm:$0xff] %vm711_vm0, %v7476_v45  ;;  %v7479_v32 = vadd.f32 %v9923_v24, %v7447_v36  ;;  %9948 = vmatprep.mubr.msk.bf16.mxu1 %vm711_vm0, %v7596_v31  ;;  %v7568_v43 = vmax.f32 %v7536_v48, 0.0  ;;  %v7456_v45 = vld [vmem:[#allocation4 + $0xa0] sm:$0xff] }
 0x4b5   : > { %v7344_v19 = vpop.f32.mrf.mxu0  ;;  %9949 = vmatmul.mubr.msk.bf16.vlgmr.msra.gmra.mxu1 %vm711_vm0, %v7597_v11  ;;  %v7539_v2 = vld [vmem:[#allocation4 + $0x38] sm:$0xff] }
 0x4b6   : > { %7511 = vst.msk [vmem:[#allocation4 + $0x58] sm:$0xff] %vm711_vm0, %v7479_v32  ;;  %v7477_v27 = vadd.f32 %v7445_v53, %v7344_v19  ;;  %v7571_v0 = vmax.f32 %v7539_v2, 0.0  ;;  %v7459_v32 = vld [vmem:[#allocation4 + $0xb8] sm:$0xff]  ;;  %v7457_v2 = vld [vmem:[#allocation4 + $0xa8] sm:$0xff] }
 0x4b7   : > { %v9926_v62 = vpop.f32.mrf.mxu0  ;;  %v7537_v25 = vld [vmem:[#allocation4 + $0x28] sm:$0xff] }
 0x4b8   : > { %7509 = vst.msk [vmem:[#allocation4 + $0x48] sm:$0xff] %vm711_vm0, %v7477_v27  ;;  %v7482_v13 = vadd.f32 %v9926_v62, %v7450_v6  ;;  %v7569_v5 = vmax.f32 %v7537_v25, 0.0  ;;  %v7599_v16 = vpack.c.bf16 %v7571_v0, %v7570_v52  ;;  %v7462_v0 = vld [vmem:[#allocation4 + $0xd0] sm:$0xff] }
 0x4b9   : > { %v7357_v60 = vpop.f32.mrf.mxu0  ;;  %v7542_v59 = vld [vmem:[#allocation4 + $0x50] sm:$0xff] }
 0x4ba   : > { %7514 = vst.msk [vmem:[#allocation4 + $0x70] sm:$0xff] %vm711_vm0, %v7482_v13  ;;  %v7480_v56 = vadd.f32 %v7448_v34, %v7357_v60  ;;  %v7598_v20 = vpack.c.bf16 %v7569_v5, %v7568_v43  ;;  %v7574_v30 = vmax.f32 %v7542_v59, 0.0 }
 0x4bb   : > { %v9927_v21 = vpop.f32.mrf.mxu0  ;;  %v7540_v10 = vld [vmem:[#allocation4 + $0x40] sm:$0xff] }
 0x4bc   : > { %7512 = vst.msk [vmem:[#allocation4 + $0x60] sm:$0xff] %vm711_vm0, %v7480_v56  ;;  %v7483_v17 = vadd.f32 %v9927_v21, %v7451_v46  ;;  %9952 = vmatprep.mubr.msk.bf16.mxu1 %vm711_vm0, %v7598_v20  ;;  %v7572_v47 = vmax.f32 %v7540_v10, 0.0  ;;  %v7460_v56 = vld [vmem:[#allocation4 + $0xc0] sm:$0xff] }
 0x4bd   : > { %v7360_v28 = vpop.f32.mrf.mxu0  ;;  %9953 = vmatmul.mubr.msk.bf16.gmra.mxu1 %vm711_vm0, %v7599_v16  ;;  %v7543_v12 = vld [vmem:[#allocation4 + $0x58] sm:$0xff] }
 0x4be   : > { %7515 = vst.msk [vmem:[#allocation4 + $0x78] sm:$0xff] %vm711_vm0, %v7483_v17  ;;  %v7481_v61 = vadd.f32 %v7449_v40, %v7360_v28  ;;  %v7575_v33 = vmax.f32 %v7543_v12, 0.0  ;;  %v7463_v17 = vld [vmem:[#allocation4 + $0xd8] sm:$0xff]  ;;  %v7461_v12 = vld [vmem:[#allocation4 + $0xc8] sm:$0xff] }
 0x4bf   : > { %v9930_v7 = vpop.f32.mrf.mxu0  ;;  %v7541_v8 = vld [vmem:[#allocation4 + $0x48] sm:$0xff] }
 0x4c0   : > { %7513 = vst.msk [vmem:[#allocation4 + $0x68] sm:$0xff] %vm711_vm0, %v7481_v61  ;;  %v7486_v58 = vadd.f32 %v9930_v7, %v7454_v26  ;;  %v7573_v37 = vmax.f32 %v7541_v8, 0.0  ;;  %v7601_v49 = vpack.c.bf16 %v7575_v33, %v7574_v30  ;;  %v7466_v33 = vld [vmem:[#allocation4 + $0xf0] sm:$0xff] }
 0x4c1   : > { %v7373_v39 = vpop.f32.mrf.mxu0  ;;  %v7546_v51 = vld [vmem:[#allocation4 + $0x70] sm:$0xff] }
 0x4c2   : > { %7518 = vst.msk [vmem:[#allocation4 + $0x90] sm:$0xff] %vm711_vm0, %v7486_v58  ;;  %v7484_v14 = vadd.f32 %v7452_v15, %v7373_v39  ;;  %v7600_v29 = vpack.c.bf16 %v7573_v37, %v7572_v47  ;;  %v7578_v31 = vmax.f32 %v7546_v51, 0.0 }
 0x4c3   : > { %v9931_v38 = vpop.f32.mrf.mxu0  ;;  %v7544_v42 = vld [vmem:[#allocation4 + $0x60] sm:$0xff] }
 0x4c4   : > { %7516 = vst.msk [vmem:[#allocation4 + $0x80] sm:$0xff] %vm711_vm0, %v7484_v14  ;;  %v7487_v9 = vadd.f32 %v9931_v38, %v7455_v35  ;;  %9956 = vmatprep.mubr.msk.bf16.mxu1 %vm711_vm0, %v7600_v29  ;;  %v7576_v3 = vmax.f32 %v7544_v42, 0.0  ;;  %v7464_v14 = vld [vmem:[#allocation4 + $0xe0] sm:$0xff] }
 0x4c5   : > { %v7376_v41 = vpop.f32.mrf.mxu0  ;;  %9957 = vmatmul.mubr.msk.bf16.gmra.mxu1 %vm711_vm0, %v7601_v49  ;;  %v7547_v44 = vld [vmem:[#allocation4 + $0x78] sm:$0xff] }
 0x4c6   : > { %7519 = vst.msk [vmem:[#allocation4 + $0x98] sm:$0xff] %vm711_vm0, %v7487_v9  ;;  %v7485_v1 = vadd.f32 %v7453_v57, %v7376_v41  ;;  %v7579_v63 = vmax.f32 %v7547_v44, 0.0  ;;  %v7467_v9 = vld [vmem:[#allocation4 + $0xf8] sm:$0xff]  ;;  %v7465_v44 = vld [vmem:[#allocation4 + $0xe8] sm:$0xff] }
 0x4c7   : > { %v9934_v55 = vpop.f32.mrf.mxu0  ;;  %v7545_v22 = vld [vmem:[#allocation4 + $0x68] sm:$0xff] }
 0x4c8   : > { %7517 = vst.msk [vmem:[#allocation4 + $0x88] sm:$0xff] %vm711_vm0, %v7485_v1  ;;  %v7490_v4 = vadd.f32 %v9934_v55, %v7458_v50  ;;  %v7577_v54 = vmax.f32 %v7545_v22, 0.0  ;;  %v7603_v19 = vpack.c.bf16 %v7579_v63, %v7578_v31 }
 0x4c9   : > { %v7389_v23 = vpop.f32.mrf.mxu0  ;;  %v7550_v6 = vld [vmem:[#allocation4 + $0x90] sm:$0xff] }
 0x4ca   : > { %7522 = vst.msk [vmem:[#allocation4 + $0xb0] sm:$0xff] %vm711_vm0, %v7490_v4  ;;  %v7488_v24 = vadd.f32 %v7456_v45, %v7389_v23  ;;  %v7602_v36 = vpack.c.bf16 %v7577_v54, %v7576_v3  ;;  %v7582_v20 = vmax.f32 %v7550_v6, 0.0 }
 0x4cb   : > { %v9935_v11 = vpop.f32.mrf.mxu0  ;;  %v7548_v27 = vld [vmem:[#allocation4 + $0x80] sm:$0xff] }
 0x4cc   : > { %7520 = vst.msk [vmem:[#allocation4 + $0xa0] sm:$0xff] %vm711_vm0, %v7488_v24  ;;  %v7491_v53 = vadd.f32 %v9935_v11, %v7459_v32  ;;  %9960 = vmatprep.mubr.msk.bf16.mxu1 %vm711_vm0, %v7602_v36  ;;  %v7580_v60 = vmax.f32 %v7548_v27, 0.0 }
 0x4cd   : > { %v7392_v48 = vpop.f32.mrf.mxu0  ;;  %9961 = vmatmul.mubr.msk.bf16.gmra.mxu1 %vm711_vm0, %v7603_v19  ;;  %v7551_v18 = vld [vmem:[#allocation4 + $0x98] sm:$0xff] }
 0x4ce   : > { %7523 = vst.msk [vmem:[#allocation4 + $0xb8] sm:$0xff] %vm711_vm0, %v7491_v53  ;;  %v7489_v62 = vadd.f32 %v7457_v2, %v7392_v48  ;;  %v7583_v43 = vmax.f32 %v7551_v18, 0.0 }
 0x4cf   : > { %v9938_v25 = vpop.f32.mrf.mxu0  ;;  %v7549_v13 = vld [vmem:[#allocation4 + $0x88] sm:$0xff] }
 0x4d0   : > { %7521 = vst.msk [vmem:[#allocation4 + $0xa8] sm:$0xff] %vm711_vm0, %v7489_v62  ;;  %v7494_v5 = vadd.f32 %v9938_v25, %v7462_v0  ;;  %v7581_v34 = vmax.f32 %v7549_v13, 0.0  ;;  %v7605_v28 = vpack.c.bf16 %v7583_v43, %v7582_v20  ;;  %v10205_v62 = vld [vmem:[#allocation3 + $0x31] sm:$0xff]  ;;  %v10206_v13 = vld [vmem:[#allocation3 + $0x19] sm:$0xff] }
 0x4d1   : > { %v7405_v52 = vpop.f32.mrf.mxu0  ;;  %v7554_v26 = vld [vmem:[#allocation4 + $0xb0] sm:$0xff] }
 0x4d2   : > { %7526 = vst.msk [vmem:[#allocation4 + $0xd0] sm:$0xff] %vm711_vm0, %v7494_v5  ;;  %v7492_v21 = vadd.f32 %v7460_v56, %v7405_v52  ;;  %v7604_v46 = vpack.c.bf16 %v7581_v34, %v7580_v60  ;;  %v7586_v29 = vmax.f32 %v7554_v26, 0.0  ;;  %v10207_v34 = vld [vmem:[#allocation3 + $0x39] sm:$0xff] }
 0x4d3   : > { %v9939_v16 = vpop.f32.mrf.mxu0  ;;  %v7552_v61 = vld [vmem:[#allocation4 + $0xa0] sm:$0xff] }
 0x4d4   : > { %7524 = vst.msk [vmem:[#allocation4 + $0xc0] sm:$0xff] %vm711_vm0, %v7492_v21  ;;  %v7495_v40 = vadd.f32 %v9939_v16, %v7463_v17  ;;  %9964 = vmatprep.mubr.msk.bf16.mxu1 %vm711_vm0, %v7604_v46  ;;  %v7584_v39 = vmax.f32 %v7552_v61, 0.0  ;;  %v10208_v21 = vld [vmem:[#allocation3 + $0x21] sm:$0xff]  ;;  %v10210_v61 = vld [vmem:[#allocation3 + $0x49] sm:$0xff] }
 0x4d5   : > { %v7408_v10 = vpop.f32.mrf.mxu0  ;;  %9965 = vmatmul.mubr.msk.bf16.gmra.mxu1 %vm711_vm0, %v7605_v28  ;;  %v7555_v59 = vld [vmem:[#allocation4 + $0xb8] sm:$0xff] }
 0x4d6   : > { %7527 = vst.msk [vmem:[#allocation4 + $0xd8] sm:$0xff] %vm711_vm0, %v7495_v40  ;;  %v7493_v7 = vadd.f32 %v7461_v12, %v7408_v10  ;;  %v7587_v47 = vmax.f32 %v7555_v59, 0.0  ;;  %v10209_v28 = vld [vmem:[#allocation3 + $0x61] sm:$0xff] }
 0x4d7   : > { %v9942_v8 = vpop.f32.mrf.mxu0  ;;  %v7553_v58 = vld [vmem:[#allocation4 + $0xa8] sm:$0xff] }
 0x4d8   : > { %7525 = vst.msk [vmem:[#allocation4 + $0xc8] sm:$0xff] %vm711_vm0, %v7493_v7  ;;  %v7498_v37 = vadd.f32 %v9942_v8, %v7466_v33  ;;  %v7585_v15 = vmax.f32 %v7553_v58, 0.0  ;;  %v7607_v41 = vpack.c.bf16 %v7587_v47, %v7586_v29  ;;  %v10211_v8 = vld [vmem:[#allocation3 + $0x69] sm:$0xff] }
 0x4d9   : > { %v7421_v30 = vpop.f32.mrf.mxu0  ;;  %v7558_v50 = vld [vmem:[#allocation4 + $0xd0] sm:$0xff] }
 0x4da   : > { %7530 = vst.msk [vmem:[#allocation4 + $0xf0] sm:$0xff] %vm711_vm0, %v7498_v37  ;;  %v7496_v38 = vadd.f32 %v7464_v14, %v7421_v30  ;;  %v7606_v35 = vpack.c.bf16 %v7585_v15, %v7584_v39  ;;  %v7590_v54 = vmax.f32 %v7558_v50, 0.0  ;;  %v10212_v37 = vld [vmem:[#allocation3 + $0x51] sm:$0xff] }
 0x4db   : > { %v9943_v49 = vpop.f32.mrf.mxu0  ;;  %v7556_v1 = vld [vmem:[#allocation4 + $0xc0] sm:$0xff] }
 0x4dc   : > { %7528 = vst.msk [vmem:[#allocation4 + $0xe0] sm:$0xff] %vm711_vm0, %v7496_v38  ;;  %v7499_v57 = vadd.f32 %v9943_v49, %v7467_v9  ;;  %9968 = vmatprep.mubr.msk.bf16.mxu1 %vm711_vm0, %v7606_v35  ;;  %v7588_v4 = vmax.f32 %v7556_v1, 0.0  ;;  %v10213_v14 = vld [vmem:[#allocation3 + $0x91] sm:$0xff]  ;;  %v10214_v49 = vld [vmem:[#allocation3 + $0x79] sm:$0xff] }
 0x4dd   : > { %v7424_v42 = vpop.f32.mrf.mxu0  ;;  %9969 = vmatmul.mubr.msk.bf16.gmra.mxu1 %vm711_vm0, %v7607_v41  ;;  %v7559_v51 = vld [vmem:[#allocation4 + $0xd8] sm:$0xff] }
 0x4de   : > { %7531 = vst.msk [vmem:[#allocation4 + $0xf8] sm:$0xff] %vm711_vm0, %v7499_v57  ;;  %v7497_v55 = vadd.f32 %v7465_v44, %v7424_v42  ;;  %v7591_v63 = vmax.f32 %v7559_v51, 0.0  ;;  %v10215_v42 = vld [vmem:[#allocation3 + $0x99] sm:$0xff] }
 0x4df   : > { %v7557_v22 = vld [vmem:[#allocation4 + $0xc8] sm:$0xff] }
 0x4e0   : > { %7529 = vst.msk [vmem:[#allocation4 + $0xe8] sm:$0xff] %vm711_vm0, %v7497_v55  ;;  %v7589_v3 = vmax.f32 %v7557_v22, 0.0  ;;  %v7609_v45 = vpack.c.bf16 %v7591_v63, %v7590_v54  ;;  %v10216_v55 = vld [vmem:[#allocation3 + $0x81] sm:$0xff] }
 0x4e1   : > { %v7562_v36 = vld [vmem:[#allocation4 + $0xf0] sm:$0xff] }
 0x4e2   : > { %v7608_v23 = vpack.c.bf16 %v7589_v3, %v7588_v4  ;;  %v7594_v48 = vmax.f32 %v7562_v36, 0.0  ;;  %v10217_v4 = vld [vmem:[#allocation3 + $0xc1] sm:$0xff] }
 0x4e3   : > { %v7560_v31 = vld [vmem:[#allocation4 + $0xe0] sm:$0xff] }
 0x4e4   : > { %9972 = vmatprep.mubr.msk.bf16.mxu1 %vm711_vm0, %v7608_v23  ;;  %v7592_v19 = vmax.f32 %v7560_v31, 0.0 }
 0x4e5   : > { %9973 = vmatmul.mubr.msk.bf16.gmra.mxu1 %vm711_vm0, %v7609_v45  ;;  %v7563_v24 = vld [vmem:[#allocation4 + $0xf8] sm:$0xff] }
 0x4e6   : > { %v7595_v32 = vmax.f32 %v7563_v24, 0.0  ;;  %v10218_v45 = vld [vmem:[#allocation3 + $0xa9] sm:$0xff] }
 0x4e7   : > { %v7561_v11 = vld [vmem:[#allocation4 + $0xe8] sm:$0xff] }
 0x4e8   : > { %v7593_v53 = vmax.f32 %v7561_v11, 0.0  ;;  %v7611_v27 = vpack.c.bf16 %v7595_v32, %v7594_v48  ;;  %v10219_v11 = vld [vmem:[#allocation3 + $0xc9] sm:$0xff]  ;;  %v10220_v48 = vld [vmem:[#allocation3 + $0xb1] sm:$0xff] }
 0x4ea   : > { %v7610_v2 = vpack.c.bf16 %v7593_v53, %v7592_v19 }
 0x4ec   : > { %9976 = vmatprep.mubr.msk.bf16.mxu1 %vm711_vm0, %v7610_v2 }
 0x4ed   : > { %9977 = vmatmul.mubr.msk.bf16.gmra.mxu1 %vm711_vm0, %v7611_v27 }
 0x575   : > { %v9950_v18 = vpop.f32.mrf.mxu1 }
 0x576   : > { %v7872_v6 = vadd.f32 %v10205_v62, %v9950_v18  ;;  %v10221_v62 = vld [vmem:[#allocation3 + $0xf1] sm:$0xff] }
 0x577   : > { %v7711_v25 = vpop.f32.mrf.mxu1 }
 0x578   : > { %v7968_v0 = vmax.f32 %v7872_v6, 0.0  ;;  %v7870_v43 = vadd.f32 %v10206_v13, %v7711_v25  ;;  %v10222_v13 = vld [vmem:[#allocation3 + $0xd9] sm:$0xff] }
 0x579   : > { %v9951_v5 = vpop.f32.mrf.mxu1 }
 0x57a   : > { %8000 = vst [vmem:[%s12492_s20 + $0x10] sm:$0xff] %v7968_v0  ;;  %v7966_v60 = vmax.f32 %v7870_v43, 0.0  ;;  %v7873_v52 = vadd.f32 %v10207_v34, %v9951_v5  ;;  %v10223_v34 = vld [vmem:[#allocation3 + $0xf9] sm:$0xff] }
 0x57b   : > { %v7714_v56 = vpop.f32.mrf.mxu1 }
 0x57c   : > { %7998 = vst [vmem:[%s12492_s20] sm:$0xff] %v7966_v60  ;;  %v7969_v20 = vmax.f32 %v7873_v52, 0.0  ;;  %v7871_v46 = vadd.f32 %v10208_v21, %v7714_v56  ;;  %v10224_v21 = vld [vmem:[#allocation3 + $0xe1] sm:$0xff] }
 0x57d   : > { %v9954_v16 = vpop.f32.mrf.mxu1 }
 0x57e   : > { %8001 = vst [vmem:[%s12492_s20 + $0x18] sm:$0xff] %v7969_v20  ;;  %v7967_v17 = vmax.f32 %v7871_v46, 0.0  ;;  %v7876_v40 = vadd.f32 %v10209_v28, %v9954_v16  ;;  %v10225_v28 = vld [vmem:[#allocation3 + $0x121] sm:$0xff] }
 0x57f   : > { %v7727_v10 = vpop.f32.mrf.mxu1 }
 0x580   : > { %7999 = vst [vmem:[%s12492_s20 + $0x8] sm:$0xff] %v7967_v17  ;;  %v7972_v12 = vmax.f32 %v7876_v40, 0.0  ;;  %v7874_v59 = vadd.f32 %v10210_v61, %v7727_v10  ;;  %v10226_v61 = vld [vmem:[#allocation3 + $0x109] sm:$0xff] }
 0x581   : > { %v9955_v7 = vpop.f32.mrf.mxu1 }
 0x582   : > { %8004 = vst [vmem:[%s12492_s20 + $0x30] sm:$0xff] %v7972_v12  ;;  %v7970_v26 = vmax.f32 %v7874_v59, 0.0  ;;  %v7877_v33 = vadd.f32 %v10211_v8, %v9955_v7  ;;  %v10227_v8 = vld [vmem:[#allocation3 + $0x129] sm:$0xff] }
 0x583   : > { %v7730_v58 = vpop.f32.mrf.mxu1 }
 0x584   : > { %8002 = vst [vmem:[%s12492_s20 + $0x20] sm:$0xff] %v7970_v26  ;;  %v7973_v47 = vmax.f32 %v7877_v33, 0.0  ;;  %v7875_v39 = vadd.f32 %v10212_v37, %v7730_v58  ;;  %v10228_v37 = vld [vmem:[#allocation3 + $0x111] sm:$0xff] }
 0x585   : > { %v9958_v15 = vpop.f32.mrf.mxu1 }
 0x586   : > { %8005 = vst [vmem:[%s12492_s20 + $0x38] sm:$0xff] %v7973_v47  ;;  %v7971_v30 = vmax.f32 %v7875_v39, 0.0  ;;  %v7880_v29 = vadd.f32 %v10213_v14, %v9958_v15  ;;  %v10229_v14 = vld [vmem:[#allocation3 + $0x151] sm:$0xff] }
 0x587   : > { %v7743_v38 = vpop.f32.mrf.mxu1 }
 0x588   : > { %8003 = vst [vmem:[%s12492_s20 + $0x28] sm:$0xff] %v7971_v30  ;;  %v7976_v35 = vmax.f32 %v7880_v29, 0.0  ;;  %v7878_v9 = vadd.f32 %v10214_v49, %v7743_v38  ;;  %v10230_v49 = vld [vmem:[#allocation3 + $0x139] sm:$0xff] }
 0x589   : > { %v9959_v41 = vpop.f32.mrf.mxu1 }
 0x58a   : > { %8008 = vst [vmem:[%s12492_s20 + $0x50] sm:$0xff] %v7976_v35  ;;  %v7974_v57 = vmax.f32 %v7878_v9, 0.0  ;;  %v7881_v44 = vadd.f32 %v10215_v42, %v9959_v41  ;;  %v10231_v42 = vld [vmem:[#allocation3 + $0x159] sm:$0xff] }
 0x58b   : > { %v7746_v1 = vpop.f32.mrf.mxu1 }
 0x58c   : > { %8006 = vst [vmem:[%s12492_s20 + $0x40] sm:$0xff] %v7974_v57  ;;  %v7977_v51 = vmax.f32 %v7881_v44, 0.0  ;;  %v7879_v50 = vadd.f32 %v10216_v55, %v7746_v1  ;;  %v10232_v55 = vld [vmem:[#allocation3 + $0x141] sm:$0xff] }
 0x58d   : > { %v9962_v22 = vpop.f32.mrf.mxu1 }
 0x58e   : > { %8009 = vst [vmem:[%s12492_s20 + $0x58] sm:$0xff] %v7977_v51  ;;  %v7975_v63 = vmax.f32 %v7879_v50, 0.0  ;;  %v7884_v3 = vadd.f32 %v10217_v4, %v9962_v22  ;;  %v10233_v4 = vld [vmem:[#allocation3 + $0x181] sm:$0xff] }
 0x58f   : > { %v7759_v54 = vpop.f32.mrf.mxu1 }
 0x590   : > { %8007 = vst [vmem:[%s12492_s20 + $0x48] sm:$0xff] %v7975_v63  ;;  %v7980_v23 = vmax.f32 %v7884_v3, 0.0  ;;  %v7882_v31 = vadd.f32 %v10218_v45, %v7759_v54  ;;  %v10234_v45 = vld [vmem:[#allocation3 + $0x169] sm:$0xff] }
 0x591   : > { %v9963_v24 = vpop.f32.mrf.mxu1 }
 0x592   : > { %8012 = vst [vmem:[%s12492_s20 + $0x70] sm:$0xff] %v7980_v23  ;;  %v7978_v36 = vmax.f32 %v7882_v31, 0.0  ;;  %v7885_v32 = vadd.f32 %v10219_v11, %v9963_v24  ;;  %v10235_v11 = vld [vmem:[#allocation3 + $0x189] sm:$0xff] }
 0x593   : > { %v7762_v19 = vpop.f32.mrf.mxu1 }
 0x594   : > { %8010 = vst [vmem:[%s12492_s20 + $0x60] sm:$0xff] %v7978_v36  ;;  %v7981_v53 = vmax.f32 %v7885_v32, 0.0  ;;  %v7883_v2 = vadd.f32 %v10220_v48, %v7762_v19  ;;  %v10236_v48 = vld [vmem:[#allocation3 + $0x171] sm:$0xff] }
 0x595   : > { %v9966_v27 = vpop.f32.mrf.mxu1 }
 0x596   : > { %8013 = vst [vmem:[%s12492_s20 + $0x78] sm:$0xff] %v7981_v53  ;;  %v7979_v18 = vmax.f32 %v7883_v2, 0.0  ;;  %v7888_v6 = vadd.f32 %v10221_v62, %v9966_v27 }
 0x597   : > { %v7775_v25 = vpop.f32.mrf.mxu1 }
 0x598   : > { %8011 = vst [vmem:[%s12492_s20 + $0x68] sm:$0xff] %v7979_v18  ;;  %v7984_v0 = vmax.f32 %v7888_v6, 0.0  ;;  %v7886_v43 = vadd.f32 %v10222_v13, %v7775_v25 }
 0x599   : > { %v9967_v5 = vpop.f32.mrf.mxu1 }
 0x59a   : > { %8016 = vst [vmem:[%s12492_s20 + $0x90] sm:$0xff] %v7984_v0  ;;  %v7982_v60 = vmax.f32 %v7886_v43, 0.0  ;;  %v7889_v52 = vadd.f32 %v10223_v34, %v9967_v5 }
 0x59b   : > { %v7778_v56 = vpop.f32.mrf.mxu1 }
 0x59c   : > { %8014 = vst [vmem:[%s12492_s20 + $0x80] sm:$0xff] %v7982_v60  ;;  %v7985_v20 = vmax.f32 %v7889_v52, 0.0  ;;  %v7887_v46 = vadd.f32 %v10224_v21, %v7778_v56 }
 0x59d   : > { %v9970_v16 = vpop.f32.mrf.mxu1 }
 0x59e   : > { %8017 = vst [vmem:[%s12492_s20 + $0x98] sm:$0xff] %v7985_v20  ;;  %v7983_v17 = vmax.f32 %v7887_v46, 0.0  ;;  %v7892_v40 = vadd.f32 %v10225_v28, %v9970_v16 }
 0x59f   : > { %v7791_v10 = vpop.f32.mrf.mxu1 }
 0x5a0   : > { %8015 = vst [vmem:[%s12492_s20 + $0x88] sm:$0xff] %v7983_v17  ;;  %v7988_v12 = vmax.f32 %v7892_v40, 0.0  ;;  %v7890_v59 = vadd.f32 %v10226_v61, %v7791_v10 }
 0x5a1   : > { %v9971_v7 = vpop.f32.mrf.mxu1 }
 0x5a2   : > { %8020 = vst [vmem:[%s12492_s20 + $0xb0] sm:$0xff] %v7988_v12  ;;  %v7986_v26 = vmax.f32 %v7890_v59, 0.0  ;;  %v7893_v33 = vadd.f32 %v10227_v8, %v9971_v7 }
 0x5a3   : > { %v7794_v58 = vpop.f32.mrf.mxu1 }
 0x5a4   : > { %8018 = vst [vmem:[%s12492_s20 + $0xa0] sm:$0xff] %v7986_v26  ;;  %v7989_v47 = vmax.f32 %v7893_v33, 0.0  ;;  %v7891_v39 = vadd.f32 %v10228_v37, %v7794_v58 }
 0x5a5   : > { %v9974_v15 = vpop.f32.mrf.mxu1 }
 0x5a6   : > { %8021 = vst [vmem:[%s12492_s20 + $0xb8] sm:$0xff] %v7989_v47  ;;  %v7987_v30 = vmax.f32 %v7891_v39, 0.0  ;;  %v7896_v29 = vadd.f32 %v10229_v14, %v9974_v15 }
 0x5a7   : > { %v7807_v38 = vpop.f32.mrf.mxu1 }
 0x5a8   : > { %8019 = vst [vmem:[%s12492_s20 + $0xa8] sm:$0xff] %v7987_v30  ;;  %v7992_v35 = vmax.f32 %v7896_v29, 0.0  ;;  %v7894_v9 = vadd.f32 %v10230_v49, %v7807_v38 }
 0x5a9   : > { %v9975_v41 = vpop.f32.mrf.mxu1 }
 0x5aa   : > { %8024 = vst [vmem:[%s12492_s20 + $0xd0] sm:$0xff] %v7992_v35  ;;  %v7990_v57 = vmax.f32 %v7894_v9, 0.0  ;;  %v7897_v44 = vadd.f32 %v10231_v42, %v9975_v41 }
 0x5ab   : > { %v7810_v1 = vpop.f32.mrf.mxu1 }
 0x5ac   : > { %8022 = vst [vmem:[%s12492_s20 + $0xc0] sm:$0xff] %v7990_v57  ;;  %v7993_v51 = vmax.f32 %v7897_v44, 0.0  ;;  %v7895_v50 = vadd.f32 %v10232_v55, %v7810_v1 }
 0x5ad   : > { %v9978_v22 = vpop.f32.mrf.mxu1 }
 0x5ae   : > { %8025 = vst [vmem:[%s12492_s20 + $0xd8] sm:$0xff] %v7993_v51  ;;  %v7991_v63 = vmax.f32 %v7895_v50, 0.0  ;;  %v7900_v3 = vadd.f32 %v10233_v4, %v9978_v22 }
 0x5af   : > { %v7823_v54 = vpop.f32.mrf.mxu1 }
 0x5b0   : > { %8023 = vst [vmem:[%s12492_s20 + $0xc8] sm:$0xff] %v7991_v63  ;;  %v7996_v23 = vmax.f32 %v7900_v3, 0.0  ;;  %v7898_v31 = vadd.f32 %v10234_v45, %v7823_v54 }
 0x5b1   : > { %v9979_v24 = vpop.f32.mrf.mxu1 }
 0x5b2   : > { %8028 = vst [vmem:[%s12492_s20 + $0xf0] sm:$0xff] %v7996_v23  ;;  %v7994_v36 = vmax.f32 %v7898_v31, 0.0  ;;  %v7901_v32 = vadd.f32 %v10235_v11, %v9979_v24 }
 0x5b3   : > { %v7826_v19 = vpop.f32.mrf.mxu1 }
 0x5b4   : > { %8026 = vst [vmem:[%s12492_s20 + $0xe0] sm:$0xff] %v7994_v36  ;;  %v7997_v53 = vmax.f32 %v7901_v32, 0.0  ;;  %v7899_v2 = vadd.f32 %v10236_v48, %v7826_v19 }
 0x5b6   : > { %8029 = vst [vmem:[%s12492_s20 + $0xf8] sm:$0xff] %v7997_v53  ;;  %v7995_v27 = vmax.f32 %v7899_v2, 0.0 }
 0x5b8   : > { %8027 = vst [vmem:[%s12492_s20 + $0xe8] sm:$0xff] %v7995_v27 }
 0x5b9   : > { %10250 = shalt.err (!%p10247_p3)
}
 0x5ba   : > { %s10251_s6 = scalar_lea.hbm %s12529_s28, 4096  ;;  %s10255_s9 = scalar_lea.hbm %s12580_s3, 8192 }
 0x5bb   : > { %p10252_p4 = scmp.ne.s32.totalorder %s12529_s28, %s10251_s6  ;;  %p10256_p9 = scmp.lt.s32.totalorder %s12529_s28, %s12580_s3 }
 0x5bc   : > { %p10257_p10 = scmp.lt.s32.totalorder %s10255_s9, %s10251_s6 }
 0x5bd   : > { %p10253_p7 = pnand %p10252_p4, %p10361_p5 }
 0x5be   : > { %p10258_p11 = por %p10257_p10, %p10256_p9 }
 0x5bf   : > { %p10254_p8 = pneg %p10253_p7 }
 0x5c1   : > { %p10259_p12 = pnand %p10258_p11, %p10254_p8 }
 0x5c3   : > { %10262 = shalt.err (!%p10259_p12)
}
 0x5c4   : > { %s10301_s17 = smov 128   ;;  %s10302_s19 = smov 8  }
 0x5c5   : > { %9980 = dma.vmem_to_hbm [thread:$0]  (%p10361_p5), %s12531_s25, 4096, %s12529_s28, %s12537_s16, %s10301_s17, %s10301_s17, %s10302_s19  }
 0x5c6 PF: > { %p9986_p13 = scmp.ge.s32.totalorder %s10297_s15, 2  ;;  %s8059_s20 = sand.u32 1, %s10285_s12  }
 0x5c7   : > { %s8060_s24 = scalar_lea.sflag [#allocation6], %s8059_s20 }
 0x5c8   : > { %p9983_p0 = pnand %p9986_p13, %p10365_p6 }
 0x5ca   : > { %p9984_p1 = pneg %p9983_p0 }
 0x5cc   : > { %10280 = dma.done.wait (%p9984_p1), %s8060_s24, 4096  }
 0x5cd   : > { %10282 = vsyncadd (%p9984_p1), %s8060_s24, 4294963200  ;;  %p13_p2 = scmp.ge.s32.totalorder %s10348_s18, 4   ;;  %s12583_s12 = smov %s10289_s13 }
 0x5ce   : > { %s12584_s13 = smov %s10293_s14  ;;  %s12585_s14 = smov %s10359_s21 }
 0x5cf   : > { %s12586_s15 = smov %s10348_s18  ;;  %15 = sbr.rel (!%p13_p2) target bundleno = 3 (0x3), region = 88 }
 0x5d4   :  { %8065 = vsyncpa [#allocation6], 1 }
 0x5d5   :  { %8067 = vsyncpa [#allocation6 + $0x1], 1 }

</bundles_post_ra>
